<compile_context>
chip_gen: v5e
topology: v5e:2x2
jax: 0.10.0
libtpu: 0.0.40
codegen_flags: <defaults>
</compile_context>

<pallas_src>
import functools

import jax
import jax.numpy as jnp
import numpy as np
from jax.experimental import pallas as pl
from jax.experimental.pallas import tpu as pltpu

KSIZE = 4            # all convs are 4x4
LRELU_SLOPE = 0.2
BN_EPS = 1e-5


# -----------------------------------------------------------------------------
# Static per-layer configuration (9 layers: enc1[3], dec[3], enc2[3])
# -----------------------------------------------------------------------------
def _layer_cfgs(z_dim, channel):
    enc = [
        dict(kind="conv", ic=channel, oc=32, h_in=16, stride=2, pad=1,
             act="leaky", bn=False),
        dict(kind="conv", ic=32, oc=64, h_in=8, stride=2, pad=1,
             act="leaky", bn=True),
        dict(kind="conv", ic=64, oc=z_dim, h_in=4, stride=1, pad=0,
             act="linear", bn=False),
    ]
    dec = [
        dict(kind="convt", ic=z_dim, oc=64, h_in=1, stride=1, pad=0,
             act="relu", bn=True),
        dict(kind="convt", ic=64, oc=32, h_in=4, stride=2, pad=1,
             act="relu", bn=True),
        dict(kind="convt", ic=32, oc=channel, h_in=8, stride=2, pad=1,
             act="tanh", bn=False),
    ]
    return enc + dec + [dict(d) for d in enc]


# -----------------------------------------------------------------------------
# Fused whole-network kernel.  Activation layout: (N*H, W*C) with
# row = n*H + h, col = w*C + c.  Per layer:
#   out = sum_ki (S_ki @ A) @ M_ki  [+ bias | BN]  -> activation
# -----------------------------------------------------------------------------
def _make_kernel(cfgs):
    n_ops = sum(4 if c["bn"] else 3 for c in cfgs)

    def kernel(*refs):
        x_ref = refs[0]
        op_refs = refs[1:1 + n_ops]
        fake_ref, feati_ref, feato_ref = refs[1 + n_ops:]

        a = x_ref[...]                                   # bf16 (N*16, 16*C)
        pos = 0
        for li, cfg in enumerate(cfgs):
            s_ref, m_ref = op_refs[pos], op_refs[pos + 1]
            out_rows = s_ref.shape[1]                    # N * H_out
            out_cols = m_ref.shape[2]                    # W_out * OC

            acc = jnp.zeros((out_rows, out_cols), jnp.float32)
            for ki in range(KSIZE):
                # Row gather (stride / spatial padding baked into S_ki; entries
                # are 0/1 so the bf16 selection is exact), then weight matmul.
                g = jnp.dot(s_ref[ki], a, preferred_element_type=jnp.float32)
                acc = acc + jnp.dot(g.astype(jnp.bfloat16), m_ref[ki],
                                    preferred_element_type=jnp.float32)

            if cfg["bn"]:
                # BatchNorm2d, training-mode batch stats, gamma=1, beta=0.
                # Bias is skipped entirely (mean subtraction cancels it).
                pool = op_refs[pos + 2][...]             # (out_cols, OC) 0/1
                poolT = op_refs[pos + 3][...]            # (OC, out_cols) 0/1
                pos += 4
                inv_n = 1.0 / float(out_rows * (out_cols // cfg["oc"]))
                colsum = jnp.sum(acc, axis=0, keepdims=True)
                colsq = jnp.sum(acc * acc, axis=0, keepdims=True)
                mean_c = jnp.dot(colsum, pool,
                                 preferred_element_type=jnp.float32) * inv_n
                ex2_c = jnp.dot(colsq, pool,
                                preferred_element_type=jnp.float32) * inv_n
                var_c = ex2_c - mean_c * mean_c
                inv_std = jax.lax.rsqrt(var_c + BN_EPS)
                mean_full = jnp.dot(mean_c, poolT,
                                    preferred_element_type=jnp.float32)
                istd_full = jnp.dot(inv_std, poolT,
                                    preferred_element_type=jnp.float32)
                acc = (acc - mean_full) * istd_full
            else:
                acc = acc + op_refs[pos + 2][...]        # (1, out_cols) bias
                pos += 3

            act = cfg["act"]
            if act == "leaky":
                acc = jnp.where(acc > 0, acc, LRELU_SLOPE * acc)
            elif act == "relu":
                acc = jnp.maximum(acc, 0.0)
            elif act == "tanh":
                acc = jnp.tanh(acc)
            # act == "linear": pass through

            if li == 2:                                  # encoder1 -> feat_i
                feati_ref[...] = acc
            elif li == 5:                                # decoder -> fakeimg
                fake_ref[...] = acc
            elif li == 8:                                # encoder2 -> feat_o
                feato_ref[...] = acc

            a = acc.astype(jnp.bfloat16)                 # feed next layer

    return kernel


# -----------------------------------------------------------------------------
# Parameters (PyTorch layout) + one-time host-side prep into layer operators
# -----------------------------------------------------------------------------
def init_encoder(key, z_dim, channel):
    k1, k2, k3 = jax.random.split(key, 3)
    return {
        "w1": 0.05 * jax.random.normal(k1, (32, channel, 4, 4), jnp.float32),
        "b1": jnp.zeros((32,), jnp.float32),
        "w2": 0.05 * jax.random.normal(k2, (64, 32, 4, 4), jnp.float32),
        "b2": jnp.zeros((64,), jnp.float32),
        "w3": 0.05 * jax.random.normal(k3, (z_dim, 64, 4, 4), jnp.float32),
        "b3": jnp.zeros((z_dim,), jnp.float32),
    }


def init_decoder(key, z_dim, channel):
    k1, k2, k3 = jax.random.split(key, 3)
    return {
        "w1": 0.05 * jax.random.normal(k1, (z_dim, 64, 4, 4), jnp.float32),
        "b1": jnp.zeros((64,), jnp.float32),
        "w2": 0.05 * jax.random.normal(k2, (64, 32, 4, 4), jnp.float32),
        "b2": jnp.zeros((32,), jnp.float32),
        "w3": 0.05 * jax.random.normal(k3, (32, channel, 4, 4), jnp.float32),
        "b3": jnp.zeros((channel,), jnp.float32),
    }


def init_reconstructor(key, z_dim, channel):
    k1, k2, k3 = jax.random.split(key, 3)
    return {"encoder1": init_encoder(k1, z_dim, channel),
            "decoder": init_decoder(k2, z_dim, channel),
            "encoder2": init_encoder(k3, z_dim, channel)}


def _build_layer_op(kind, w, b, *, h_in, stride, pad, batch):
    """Build (S_stack bf16, M_stack bf16, bias_row f32, h_out, oc) for a layer.

    Conv2d:          out[oh,ow,oc] = sum W[oc,ic,ki,kj] * in[s*oh+ki-p, s*ow+kj-p, ic]
    ConvTranspose2d: out[oh,ow,oc] = sum W[ic,oc,ki,kj] * in[ih,iw,ic]
                                      with oh = s*ih - p + ki, ow = s*iw - p + kj
    Boundary handling is baked into the matrices (no spatial padding at run time).
    """
    w = np.asarray(w, np.float32)
    b = np.asarray(b, np.float32)
    k = KSIZE
    if kind == "convt":
        ic, oc = w.shape[0], w.shape[1]
        h_out = (h_in - 1) * stride - 2 * pad + k
    else:
        oc, ic = w.shape[0], w.shape[1]
        h_out = (h_in + 2 * pad - k) // stride + 1

    S = np.zeros((k, h_out, h_in), np.float32)
    M = np.zeros((k, h_in * ic, h_out * oc), np.float32)
    for ki in range(k):
        for oh in range(h_out):
            if kind == "convt":
                t = oh + pad - ki
                if t % stride == 0 and 0 <= t // stride < h_in:
                    S[ki, oh, t // stride] = 1.0
            else:
                ih = stride * oh + ki - pad
                if 0 <= ih < h_in:
                    S[ki, oh, ih] = 1.0
        for kj in range(k):
            if kind == "convt":
                for iw in range(h_in):
                    ow = stride * iw - pad + kj
                    if 0 <= ow < h_out:
                        M[ki, iw * ic:(iw + 1) * ic,
                          ow * oc:(ow + 1) * oc] += w[:, :, ki, kj]      # (ic,oc)
            else:
                for ow in range(h_out):
                    iw = stride * ow + kj - pad
                    if 0 <= iw < h_in:
                        M[ki, iw * ic:(iw + 1) * ic,
                          ow * oc:(ow + 1) * oc] += w[:, :, ki, kj].T    # (ic,oc)

    eye_n = np.eye(batch, dtype=np.float32)
    S_b = np.stack([np.kron(eye_n, S[ki]) for ki in range(k)])  # (4, N*Hout, N*Hin)
    bias_row = np.tile(b, h_out)[None, :].astype(np.float32)    # (1, Hout*oc)
    return (jnp.asarray(S_b, jnp.bfloat16), jnp.asarray(M, jnp.bfloat16),
            jnp.asarray(bias_row), h_out, oc)


def _pool_mats(h_out, c):
    """Per-channel pooling (W_out*C, C) and its transpose, as 0/1 f32 matrices."""
    cols = h_out * c
    P = np.zeros((cols, c), np.float32)
    for wq in range(h_out):
        P[wq * c:(wq + 1) * c, :] = np.eye(c, dtype=np.float32)
    return jnp.asarray(P), jnp.asarray(np.ascontiguousarray(P.T))


def prep_reconstructor(params, *, z_dim, channel, batch):
    """One-time host-side build of all layer operators (bf16, VMEM-sized)."""
    cfgs = _layer_cfgs(z_dim, channel)
    blocks = [params["encoder1"], params["decoder"], params["encoder2"]]
    flat = []
    li = 0
    for p in blocks:
        for idx in (1, 2, 3):
            cfg = cfgs[li]
            S, M, bias_row, h_out, oc = _build_layer_op(
                cfg["kind"], p["w%d" % idx], p["b%d" % idx],
                h_in=cfg["h_in"], stride=cfg["stride"], pad=cfg["pad"],
                batch=batch)
            flat.append(S)
            flat.append(M)
            if cfg["bn"]:
                P, Pt = _pool_mats(h_out, oc)
                flat.append(P)
                flat.append(Pt)
            else:
                flat.append(bias_row)
            li += 1
    return flat


# -----------------------------------------------------------------------------
# Forward pass: one pallas_call for the whole Reconstructor
# -----------------------------------------------------------------------------
def reconstructor_fwd(flat_ops, img, *, z_dim, channel):
    n, c, h, w = img.shape
    cfgs = _layer_cfgs(z_dim, channel)

    # NCHW -> (N*H, W*C) layout, single boundary cast to bf16.
    x2d = jnp.transpose(img, (0, 2, 3, 1)).reshape(n * h, w * c)
    x2d = x2d.astype(jnp.bfloat16)

    out_shape = (
        jax.ShapeDtypeStruct((n * h, w * c), jnp.float32),   # fake image (layout)
        jax.ShapeDtypeStruct((n, z_dim), jnp.float32),       # feat_i
        jax.ShapeDtypeStruct((n, z_dim), jnp.float32),       # feat_o
    )
    fake2d, feat_i, feat_o = pl.pallas_call(
        _make_kernel(cfgs),
        out_shape=out_shape,
        compiler_params=pltpu.CompilerParams(
            vmem_limit_bytes=32 * 1024 * 1024),
    )(x2d, *flat_ops)

    fakeimg = jnp.transpose(fake2d.reshape(n, h, w, c), (0, 3, 1, 2))
    return (fakeimg,
            feat_i.reshape(n, z_dim, 1, 1),
            feat_o.reshape(n, z_dim, 1, 1))


# -----------------------------------------------------------------------------
if __name__ == "__main__":
    Z_DIM, CHANNEL = 32, 4
    N, H, W = 2, 16, 16

    key = jax.random.PRNGKey(0)
    k_params, k_img = jax.random.split(key)
    params = init_reconstructor(k_params, Z_DIM, CHANNEL)
    flat_ops = prep_reconstructor(params, z_dim=Z_DIM, channel=CHANNEL, batch=N)
    img = jax.random.normal(k_img, (N, CHANNEL, H, W), jnp.float32)   # NCHW

    fwd = jax.jit(functools.partial(reconstructor_fwd,
                                    z_dim=Z_DIM, channel=CHANNEL))
    fakeimg, feat_i, feat_o = fwd(flat_ops, img)
    jax.block_until_ready((fakeimg, feat_i, feat_o))

    assert fakeimg.shape == (N, CHANNEL, H, W)
    assert feat_i.shape == (N, Z_DIM, 1, 1)
    assert feat_o.shape == (N, Z_DIM, 1, 1)
    assert bool(jnp.all(jnp.isfinite(fakeimg)))
    assert bool(jnp.all(jnp.isfinite(feat_i)))
    assert bool(jnp.all(jnp.isfinite(feat_o)))
    assert bool(jnp.all(jnp.abs(fakeimg) <= 1.0))     # tanh output range
    print("KERNEL_OK")
</pallas_src>

<mosaic_0001>
module attributes {stable_mosaic.version = 11 : i64} {
  func.func @kernel(%arg0: memref<32x64xbf16, #tpu.memory_space<vmem>>, %arg1: memref<4x16x32xbf16, #tpu.memory_space<vmem>>, %arg2: memref<4x64x256xbf16, #tpu.memory_space<vmem>>, %arg3: memref<1x256xf32, #tpu.memory_space<vmem>>, %arg4: memref<4x8x16xbf16, #tpu.memory_space<vmem>>, %arg5: memref<4x256x256xbf16, #tpu.memory_space<vmem>>, %arg6: memref<256x64xf32, #tpu.memory_space<vmem>>, %arg7: memref<64x256xf32, #tpu.memory_space<vmem>>, %arg8: memref<4x2x8xbf16, #tpu.memory_space<vmem>>, %arg9: memref<4x256x32xbf16, #tpu.memory_space<vmem>>, %arg10: memref<1x32xf32, #tpu.memory_space<vmem>>, %arg11: memref<4x8x2xbf16, #tpu.memory_space<vmem>>, %arg12: memref<4x32x256xbf16, #tpu.memory_space<vmem>>, %arg13: memref<256x64xf32, #tpu.memory_space<vmem>>, %arg14: memref<64x256xf32, #tpu.memory_space<vmem>>, %arg15: memref<4x16x8xbf16, #tpu.memory_space<vmem>>, %arg16: memref<4x256x256xbf16, #tpu.memory_space<vmem>>, %arg17: memref<256x32xf32, #tpu.memory_space<vmem>>, %arg18: memref<32x256xf32, #tpu.memory_space<vmem>>, %arg19: memref<4x32x16xbf16, #tpu.memory_space<vmem>>, %arg20: memref<4x256x64xbf16, #tpu.memory_space<vmem>>, %arg21: memref<1x64xf32, #tpu.memory_space<vmem>>, %arg22: memref<4x16x32xbf16, #tpu.memory_space<vmem>>, %arg23: memref<4x64x256xbf16, #tpu.memory_space<vmem>>, %arg24: memref<1x256xf32, #tpu.memory_space<vmem>>, %arg25: memref<4x8x16xbf16, #tpu.memory_space<vmem>>, %arg26: memref<4x256x256xbf16, #tpu.memory_space<vmem>>, %arg27: memref<256x64xf32, #tpu.memory_space<vmem>>, %arg28: memref<64x256xf32, #tpu.memory_space<vmem>>, %arg29: memref<4x2x8xbf16, #tpu.memory_space<vmem>>, %arg30: memref<4x256x32xbf16, #tpu.memory_space<vmem>>, %arg31: memref<1x32xf32, #tpu.memory_space<vmem>>, %arg32: memref<32x64xf32, #tpu.memory_space<vmem>>, %arg33: memref<2x32xf32, #tpu.memory_space<vmem>>, %arg34: memref<2x32xf32, #tpu.memory_space<vmem>>) attributes {dimension_semantics = [], scalar_prefetch = 0 : i64, scratch_operands = 0 : i64, tpu.core_type = #tpu.core_type<tc>} {
    %c0 = arith.constant 0 : index
    %c0_0 = arith.constant 0 : index
    %0 = vector.load %arg0[%c0, %c0_0] : memref<32x64xbf16, #tpu.memory_space<vmem>>, vector<32x64xbf16>
    %cst = arith.constant 0.000000e+00 : f32
    %1 = vector.broadcast %cst : f32 to vector<16x256xf32>
    %c0_1 = arith.constant 0 : index
    %c0_2 = arith.constant 0 : index
    %c0_3 = arith.constant 0 : index
    %2 = vector.load %arg1[%c0_1, %c0_2, %c0_3] : memref<4x16x32xbf16, #tpu.memory_space<vmem>>, vector<1x16x32xbf16>
    %3 = vector.shape_cast %2 : vector<1x16x32xbf16> to vector<16x32xbf16>
    %cst_4 = arith.constant dense<0.000000e+00> : vector<16x64xf32>
    %4 = tpu.matmul %3, %0, %cst_4 {dimension_numbers = #tpu.dot_dimension_numbers<[1], [0], [0], [1], [0, 0, 1, 1], [], []>} : vector<16x32xbf16>, vector<32x64xbf16>, vector<16x64xf32> -> vector<16x64xf32>
    %5 = arith.truncf %4 : vector<16x64xf32> to vector<16x64xbf16>
    %c0_5 = arith.constant 0 : index
    %c0_6 = arith.constant 0 : index
    %c0_7 = arith.constant 0 : index
    %6 = vector.load %arg2[%c0_5, %c0_6, %c0_7] : memref<4x64x256xbf16, #tpu.memory_space<vmem>>, vector<1x64x256xbf16>
    %7 = vector.shape_cast %6 : vector<1x64x256xbf16> to vector<64x256xbf16>
    %cst_8 = arith.constant dense<0.000000e+00> : vector<16x256xf32>
    %8 = tpu.matmul %5, %7, %cst_8 {dimension_numbers = #tpu.dot_dimension_numbers<[1], [0], [0], [1], [0, 0, 1, 1], [], []>} : vector<16x64xbf16>, vector<64x256xbf16>, vector<16x256xf32> -> vector<16x256xf32>
    %9 = arith.addf %1, %8 : vector<16x256xf32>
    %c1 = arith.constant 1 : index
    %c0_9 = arith.constant 0 : index
    %c0_10 = arith.constant 0 : index
    %10 = vector.load %arg1[%c1, %c0_9, %c0_10] : memref<4x16x32xbf16, #tpu.memory_space<vmem>>, vector<1x16x32xbf16>
    %11 = vector.shape_cast %10 : vector<1x16x32xbf16> to vector<16x32xbf16>
    %cst_11 = arith.constant dense<0.000000e+00> : vector<16x64xf32>
    %12 = tpu.matmul %11, %0, %cst_11 {dimension_numbers = #tpu.dot_dimension_numbers<[1], [0], [0], [1], [0, 0, 1, 1], [], []>} : vector<16x32xbf16>, vector<32x64xbf16>, vector<16x64xf32> -> vector<16x64xf32>
    %13 = arith.truncf %12 : vector<16x64xf32> to vector<16x64xbf16>
    %c1_12 = arith.constant 1 : index
    %c0_13 = arith.constant 0 : index
    %c0_14 = arith.constant 0 : index
    %14 = vector.load %arg2[%c1_12, %c0_13, %c0_14] : memref<4x64x256xbf16, #tpu.memory_space<vmem>>, vector<1x64x256xbf16>
    %15 = vector.shape_cast %14 : vector<1x64x256xbf16> to vector<64x256xbf16>
    %cst_15 = arith.constant dense<0.000000e+00> : vector<16x256xf32>
    %16 = tpu.matmul %13, %15, %cst_15 {dimension_numbers = #tpu.dot_dimension_numbers<[1], [0], [0], [1], [0, 0, 1, 1], [], []>} : vector<16x64xbf16>, vector<64x256xbf16>, vector<16x256xf32> -> vector<16x256xf32>
    %17 = arith.addf %9, %16 : vector<16x256xf32>
    %c2 = arith.constant 2 : index
    %c0_16 = arith.constant 0 : index
    %c0_17 = arith.constant 0 : index
    %18 = vector.load %arg1[%c2, %c0_16, %c0_17] : memref<4x16x32xbf16, #tpu.memory_space<vmem>>, vector<1x16x32xbf16>
    %19 = vector.shape_cast %18 : vector<1x16x32xbf16> to vector<16x32xbf16>
    %cst_18 = arith.constant dense<0.000000e+00> : vector<16x64xf32>
    %20 = tpu.matmul %19, %0, %cst_18 {dimension_numbers = #tpu.dot_dimension_numbers<[1], [0], [0], [1], [0, 0, 1, 1], [], []>} : vector<16x32xbf16>, vector<32x64xbf16>, vector<16x64xf32> -> vector<16x64xf32>
    %21 = arith.truncf %20 : vector<16x64xf32> to vector<16x64xbf16>
    %c2_19 = arith.constant 2 : index
    %c0_20 = arith.constant 0 : index
    %c0_21 = arith.constant 0 : index
    %22 = vector.load %arg2[%c2_19, %c0_20, %c0_21] : memref<4x64x256xbf16, #tpu.memory_space<vmem>>, vector<1x64x256xbf16>
    %23 = vector.shape_cast %22 : vector<1x64x256xbf16> to vector<64x256xbf16>
    %cst_22 = arith.constant dense<0.000000e+00> : vector<16x256xf32>
    %24 = tpu.matmul %21, %23, %cst_22 {dimension_numbers = #tpu.dot_dimension_numbers<[1], [0], [0], [1], [0, 0, 1, 1], [], []>} : vector<16x64xbf16>, vector<64x256xbf16>, vector<16x256xf32> -> vector<16x256xf32>
    %25 = arith.addf %17, %24 : vector<16x256xf32>
    %c3 = arith.constant 3 : index
    %c0_23 = arith.constant 0 : index
    %c0_24 = arith.constant 0 : index
    %26 = vector.load %arg1[%c3, %c0_23, %c0_24] : memref<4x16x32xbf16, #tpu.memory_space<vmem>>, vector<1x16x32xbf16>
    %27 = vector.shape_cast %26 : vector<1x16x32xbf16> to vector<16x32xbf16>
    %cst_25 = arith.constant dense<0.000000e+00> : vector<16x64xf32>
    %28 = tpu.matmul %27, %0, %cst_25 {dimension_numbers = #tpu.dot_dimension_numbers<[1], [0], [0], [1], [0, 0, 1, 1], [], []>} : vector<16x32xbf16>, vector<32x64xbf16>, vector<16x64xf32> -> vector<16x64xf32>
    %29 = arith.truncf %28 : vector<16x64xf32> to vector<16x64xbf16>
    %c3_26 = arith.constant 3 : index
    %c0_27 = arith.constant 0 : index
    %c0_28 = arith.constant 0 : index
    %30 = vector.load %arg2[%c3_26, %c0_27, %c0_28] : memref<4x64x256xbf16, #tpu.memory_space<vmem>>, vector<1x64x256xbf16>
    %31 = vector.shape_cast %30 : vector<1x64x256xbf16> to vector<64x256xbf16>
    %cst_29 = arith.constant dense<0.000000e+00> : vector<16x256xf32>
    %32 = tpu.matmul %29, %31, %cst_29 {dimension_numbers = #tpu.dot_dimension_numbers<[1], [0], [0], [1], [0, 0, 1, 1], [], []>} : vector<16x64xbf16>, vector<64x256xbf16>, vector<16x256xf32> -> vector<16x256xf32>
    %33 = arith.addf %25, %32 : vector<16x256xf32>
    %c0_30 = arith.constant 0 : index
    %c0_31 = arith.constant 0 : index
    %34 = vector.load %arg3[%c0_30, %c0_31] : memref<1x256xf32, #tpu.memory_space<vmem>>, vector<1x256xf32>
    %35 = vector.broadcast %34 : vector<1x256xf32> to vector<16x256xf32>
    %36 = arith.addf %33, %35 : vector<16x256xf32>
    %cst_32 = arith.constant 0.000000e+00 : f32
    %37 = vector.broadcast %cst_32 : f32 to vector<16x256xf32>
    %38 = arith.cmpf ogt, %36, %37 : vector<16x256xf32>
    %cst_33 = arith.constant 2.000000e-01 : f32
    %39 = vector.broadcast %cst_33 : f32 to vector<16x256xf32>
    %40 = arith.mulf %39, %36 : vector<16x256xf32>
    %41 = arith.select %38, %36, %40 : vector<16x256xi1>, vector<16x256xf32>
    %42 = arith.truncf %41 : vector<16x256xf32> to vector<16x256xbf16>
    %cst_34 = arith.constant 0.000000e+00 : f32
    %43 = vector.broadcast %cst_34 : f32 to vector<8x256xf32>
    %c0_35 = arith.constant 0 : index
    %c0_36 = arith.constant 0 : index
    %c0_37 = arith.constant 0 : index
    %44 = vector.load %arg4[%c0_35, %c0_36, %c0_37] : memref<4x8x16xbf16, #tpu.memory_space<vmem>>, vector<1x8x16xbf16>
    %45 = vector.shape_cast %44 : vector<1x8x16xbf16> to vector<8x16xbf16>
    %cst_38 = arith.constant dense<0.000000e+00> : vector<8x256xf32>
    %46 = tpu.matmul %45, %42, %cst_38 {dimension_numbers = #tpu.dot_dimension_numbers<[1], [0], [0], [1], [0, 0, 1, 1], [], []>} : vector<8x16xbf16>, vector<16x256xbf16>, vector<8x256xf32> -> vector<8x256xf32>
    %47 = arith.truncf %46 : vector<8x256xf32> to vector<8x256xbf16>
    %c0_39 = arith.constant 0 : index
    %c0_40 = arith.constant 0 : index
    %c0_41 = arith.constant 0 : index
    %48 = vector.load %arg5[%c0_39, %c0_40, %c0_41] : memref<4x256x256xbf16, #tpu.memory_space<vmem>>, vector<1x256x256xbf16>
    %49 = vector.shape_cast %48 : vector<1x256x256xbf16> to vector<256x256xbf16>
    %cst_42 = arith.constant dense<0.000000e+00> : vector<8x256xf32>
    %50 = tpu.matmul %47, %49, %cst_42 {dimension_numbers = #tpu.dot_dimension_numbers<[1], [0], [0], [1], [0, 0, 1, 1], [], []>} : vector<8x256xbf16>, vector<256x256xbf16>, vector<8x256xf32> -> vector<8x256xf32>
    %51 = arith.addf %43, %50 : vector<8x256xf32>
    %c1_43 = arith.constant 1 : index
    %c0_44 = arith.constant 0 : index
    %c0_45 = arith.constant 0 : index
    %52 = vector.load %arg4[%c1_43, %c0_44, %c0_45] : memref<4x8x16xbf16, #tpu.memory_space<vmem>>, vector<1x8x16xbf16>
    %53 = vector.shape_cast %52 : vector<1x8x16xbf16> to vector<8x16xbf16>
    %cst_46 = arith.constant dense<0.000000e+00> : vector<8x256xf32>
    %54 = tpu.matmul %53, %42, %cst_46 {dimension_numbers = #tpu.dot_dimension_numbers<[1], [0], [0], [1], [0, 0, 1, 1], [], []>} : vector<8x16xbf16>, vector<16x256xbf16>, vector<8x256xf32> -> vector<8x256xf32>
    %55 = arith.truncf %54 : vector<8x256xf32> to vector<8x256xbf16>
    %c1_47 = arith.constant 1 : index
    %c0_48 = arith.constant 0 : index
    %c0_49 = arith.constant 0 : index
    %56 = vector.load %arg5[%c1_47, %c0_48, %c0_49] : memref<4x256x256xbf16, #tpu.memory_space<vmem>>, vector<1x256x256xbf16>
    %57 = vector.shape_cast %56 : vector<1x256x256xbf16> to vector<256x256xbf16>
    %cst_50 = arith.constant dense<0.000000e+00> : vector<8x256xf32>
    %58 = tpu.matmul %55, %57, %cst_50 {dimension_numbers = #tpu.dot_dimension_numbers<[1], [0], [0], [1], [0, 0, 1, 1], [], []>} : vector<8x256xbf16>, vector<256x256xbf16>, vector<8x256xf32> -> vector<8x256xf32>
    %59 = arith.addf %51, %58 : vector<8x256xf32>
    %c2_51 = arith.constant 2 : index
    %c0_52 = arith.constant 0 : index
    %c0_53 = arith.constant 0 : index
    %60 = vector.load %arg4[%c2_51, %c0_52, %c0_53] : memref<4x8x16xbf16, #tpu.memory_space<vmem>>, vector<1x8x16xbf16>
    %61 = vector.shape_cast %60 : vector<1x8x16xbf16> to vector<8x16xbf16>
    %cst_54 = arith.constant dense<0.000000e+00> : vector<8x256xf32>
    %62 = tpu.matmul %61, %42, %cst_54 {dimension_numbers = #tpu.dot_dimension_numbers<[1], [0], [0], [1], [0, 0, 1, 1], [], []>} : vector<8x16xbf16>, vector<16x256xbf16>, vector<8x256xf32> -> vector<8x256xf32>
    %63 = arith.truncf %62 : vector<8x256xf32> to vector<8x256xbf16>
    %c2_55 = arith.constant 2 : index
    %c0_56 = arith.constant 0 : index
    %c0_57 = arith.constant 0 : index
    %64 = vector.load %arg5[%c2_55, %c0_56, %c0_57] : memref<4x256x256xbf16, #tpu.memory_space<vmem>>, vector<1x256x256xbf16>
    %65 = vector.shape_cast %64 : vector<1x256x256xbf16> to vector<256x256xbf16>
    %cst_58 = arith.constant dense<0.000000e+00> : vector<8x256xf32>
    %66 = tpu.matmul %63, %65, %cst_58 {dimension_numbers = #tpu.dot_dimension_numbers<[1], [0], [0], [1], [0, 0, 1, 1], [], []>} : vector<8x256xbf16>, vector<256x256xbf16>, vector<8x256xf32> -> vector<8x256xf32>
    %67 = arith.addf %59, %66 : vector<8x256xf32>
    %c3_59 = arith.constant 3 : index
    %c0_60 = arith.constant 0 : index
    %c0_61 = arith.constant 0 : index
    %68 = vector.load %arg4[%c3_59, %c0_60, %c0_61] : memref<4x8x16xbf16, #tpu.memory_space<vmem>>, vector<1x8x16xbf16>
    %69 = vector.shape_cast %68 : vector<1x8x16xbf16> to vector<8x16xbf16>
    %cst_62 = arith.constant dense<0.000000e+00> : vector<8x256xf32>
    %70 = tpu.matmul %69, %42, %cst_62 {dimension_numbers = #tpu.dot_dimension_numbers<[1], [0], [0], [1], [0, 0, 1, 1], [], []>} : vector<8x16xbf16>, vector<16x256xbf16>, vector<8x256xf32> -> vector<8x256xf32>
    %71 = arith.truncf %70 : vector<8x256xf32> to vector<8x256xbf16>
    %c3_63 = arith.constant 3 : index
    %c0_64 = arith.constant 0 : index
    %c0_65 = arith.constant 0 : index
    %72 = vector.load %arg5[%c3_63, %c0_64, %c0_65] : memref<4x256x256xbf16, #tpu.memory_space<vmem>>, vector<1x256x256xbf16>
    %73 = vector.shape_cast %72 : vector<1x256x256xbf16> to vector<256x256xbf16>
    %cst_66 = arith.constant dense<0.000000e+00> : vector<8x256xf32>
    %74 = tpu.matmul %71, %73, %cst_66 {dimension_numbers = #tpu.dot_dimension_numbers<[1], [0], [0], [1], [0, 0, 1, 1], [], []>} : vector<8x256xbf16>, vector<256x256xbf16>, vector<8x256xf32> -> vector<8x256xf32>
    %75 = arith.addf %67, %74 : vector<8x256xf32>
    %c0_67 = arith.constant 0 : index
    %c0_68 = arith.constant 0 : index
    %76 = vector.load %arg6[%c0_67, %c0_68] : memref<256x64xf32, #tpu.memory_space<vmem>>, vector<256x64xf32>
    %c0_69 = arith.constant 0 : index
    %c0_70 = arith.constant 0 : index
    %77 = vector.load %arg7[%c0_69, %c0_70] : memref<64x256xf32, #tpu.memory_space<vmem>>, vector<64x256xf32>
    %cst_71 = arith.constant dense<0.000000e+00> : vector<256xf32>
    %78 = vector.multi_reduction <add>, %75, %cst_71 [0] : vector<8x256xf32> to vector<256xf32>
    %79 = vector.shape_cast %78 : vector<256xf32> to vector<1x256xf32>
    %80 = arith.mulf %75, %75 : vector<8x256xf32>
    %cst_72 = arith.constant dense<0.000000e+00> : vector<256xf32>
    %81 = vector.multi_reduction <add>, %80, %cst_72 [0] : vector<8x256xf32> to vector<256xf32>
    %82 = vector.shape_cast %81 : vector<256xf32> to vector<1x256xf32>
    %cst_73 = arith.constant dense<0.000000e+00> : vector<1x64xf32>
    %83 = tpu.matmul %79, %76, %cst_73 {dimension_numbers = #tpu.dot_dimension_numbers<[1], [0], [0], [1], [0, 0, 1, 1], [], []>} : vector<1x256xf32>, vector<256x64xf32>, vector<1x64xf32> -> vector<1x64xf32>
    %cst_74 = arith.constant 3.125000e-02 : f32
    %84 = vector.broadcast %cst_74 : f32 to vector<1x64xf32>
    %85 = arith.mulf %83, %84 : vector<1x64xf32>
    %cst_75 = arith.constant dense<0.000000e+00> : vector<1x64xf32>
    %86 = tpu.matmul %82, %76, %cst_75 {dimension_numbers = #tpu.dot_dimension_numbers<[1], [0], [0], [1], [0, 0, 1, 1], [], []>} : vector<1x256xf32>, vector<256x64xf32>, vector<1x64xf32> -> vector<1x64xf32>
    %cst_76 = arith.constant 3.125000e-02 : f32
    %87 = vector.broadcast %cst_76 : f32 to vector<1x64xf32>
    %88 = arith.mulf %86, %87 : vector<1x64xf32>
    %89 = arith.mulf %85, %85 : vector<1x64xf32>
    %90 = arith.subf %88, %89 : vector<1x64xf32>
    %cst_77 = arith.constant 9.99999974E-6 : f32
    %91 = vector.broadcast %cst_77 : f32 to vector<1x64xf32>
    %92 = arith.addf %90, %91 : vector<1x64xf32>
    %93 = math.rsqrt %92 : vector<1x64xf32>
    %cst_78 = arith.constant dense<0.000000e+00> : vector<1x256xf32>
    %94 = tpu.matmul %85, %77, %cst_78 {dimension_numbers = #tpu.dot_dimension_numbers<[1], [0], [0], [1], [0, 0, 1, 1], [], []>} : vector<1x64xf32>, vector<64x256xf32>, vector<1x256xf32> -> vector<1x256xf32>
    %cst_79 = arith.constant dense<0.000000e+00> : vector<1x256xf32>
    %95 = tpu.matmul %93, %77, %cst_79 {dimension_numbers = #tpu.dot_dimension_numbers<[1], [0], [0], [1], [0, 0, 1, 1], [], []>} : vector<1x64xf32>, vector<64x256xf32>, vector<1x256xf32> -> vector<1x256xf32>
    %96 = vector.broadcast %94 : vector<1x256xf32> to vector<8x256xf32>
    %97 = arith.subf %75, %96 : vector<8x256xf32>
    %98 = vector.broadcast %95 : vector<1x256xf32> to vector<8x256xf32>
    %99 = arith.mulf %97, %98 : vector<8x256xf32>
    %cst_80 = arith.constant 0.000000e+00 : f32
    %100 = vector.broadcast %cst_80 : f32 to vector<8x256xf32>
    %101 = arith.cmpf ogt, %99, %100 : vector<8x256xf32>
    %cst_81 = arith.constant 2.000000e-01 : f32
    %102 = vector.broadcast %cst_81 : f32 to vector<8x256xf32>
    %103 = arith.mulf %102, %99 : vector<8x256xf32>
    %104 = arith.select %101, %99, %103 : vector<8x256xi1>, vector<8x256xf32>
    %105 = arith.truncf %104 : vector<8x256xf32> to vector<8x256xbf16>
    %cst_82 = arith.constant 0.000000e+00 : f32
    %106 = vector.broadcast %cst_82 : f32 to vector<2x32xf32>
    %c0_83 = arith.constant 0 : index
    %c0_84 = arith.constant 0 : index
    %c0_85 = arith.constant 0 : index
    %107 = vector.load %arg8[%c0_83, %c0_84, %c0_85] : memref<4x2x8xbf16, #tpu.memory_space<vmem>>, vector<1x2x8xbf16>
    %108 = vector.shape_cast %107 : vector<1x2x8xbf16> to vector<2x8xbf16>
    %cst_86 = arith.constant dense<0.000000e+00> : vector<2x256xf32>
    %109 = tpu.matmul %108, %105, %cst_86 {dimension_numbers = #tpu.dot_dimension_numbers<[1], [0], [0], [1], [0, 0, 1, 1], [], []>} : vector<2x8xbf16>, vector<8x256xbf16>, vector<2x256xf32> -> vector<2x256xf32>
    %110 = arith.truncf %109 : vector<2x256xf32> to vector<2x256xbf16>
    %c0_87 = arith.constant 0 : index
    %c0_88 = arith.constant 0 : index
    %c0_89 = arith.constant 0 : index
    %111 = vector.load %arg9[%c0_87, %c0_88, %c0_89] : memref<4x256x32xbf16, #tpu.memory_space<vmem>>, vector<1x256x32xbf16>
    %112 = vector.shape_cast %111 : vector<1x256x32xbf16> to vector<256x32xbf16>
    %cst_90 = arith.constant dense<0.000000e+00> : vector<2x32xf32>
    %113 = tpu.matmul %110, %112, %cst_90 {dimension_numbers = #tpu.dot_dimension_numbers<[1], [0], [0], [1], [0, 0, 1, 1], [], []>} : vector<2x256xbf16>, vector<256x32xbf16>, vector<2x32xf32> -> vector<2x32xf32>
    %114 = arith.addf %106, %113 : vector<2x32xf32>
    %c1_91 = arith.constant 1 : index
    %c0_92 = arith.constant 0 : index
    %c0_93 = arith.constant 0 : index
    %115 = vector.load %arg8[%c1_91, %c0_92, %c0_93] : memref<4x2x8xbf16, #tpu.memory_space<vmem>>, vector<1x2x8xbf16>
    %116 = vector.shape_cast %115 : vector<1x2x8xbf16> to vector<2x8xbf16>
    %cst_94 = arith.constant dense<0.000000e+00> : vector<2x256xf32>
    %117 = tpu.matmul %116, %105, %cst_94 {dimension_numbers = #tpu.dot_dimension_numbers<[1], [0], [0], [1], [0, 0, 1, 1], [], []>} : vector<2x8xbf16>, vector<8x256xbf16>, vector<2x256xf32> -> vector<2x256xf32>
    %118 = arith.truncf %117 : vector<2x256xf32> to vector<2x256xbf16>
    %c1_95 = arith.constant 1 : index
    %c0_96 = arith.constant 0 : index
    %c0_97 = arith.constant 0 : index
    %119 = vector.load %arg9[%c1_95, %c0_96, %c0_97] : memref<4x256x32xbf16, #tpu.memory_space<vmem>>, vector<1x256x32xbf16>
    %120 = vector.shape_cast %119 : vector<1x256x32xbf16> to vector<256x32xbf16>
    %cst_98 = arith.constant dense<0.000000e+00> : vector<2x32xf32>
    %121 = tpu.matmul %118, %120, %cst_98 {dimension_numbers = #tpu.dot_dimension_numbers<[1], [0], [0], [1], [0, 0, 1, 1], [], []>} : vector<2x256xbf16>, vector<256x32xbf16>, vector<2x32xf32> -> vector<2x32xf32>
    %122 = arith.addf %114, %121 : vector<2x32xf32>
    %c2_99 = arith.constant 2 : index
    %c0_100 = arith.constant 0 : index
    %c0_101 = arith.constant 0 : index
    %123 = vector.load %arg8[%c2_99, %c0_100, %c0_101] : memref<4x2x8xbf16, #tpu.memory_space<vmem>>, vector<1x2x8xbf16>
    %124 = vector.shape_cast %123 : vector<1x2x8xbf16> to vector<2x8xbf16>
    %cst_102 = arith.constant dense<0.000000e+00> : vector<2x256xf32>
    %125 = tpu.matmul %124, %105, %cst_102 {dimension_numbers = #tpu.dot_dimension_numbers<[1], [0], [0], [1], [0, 0, 1, 1], [], []>} : vector<2x8xbf16>, vector<8x256xbf16>, vector<2x256xf32> -> vector<2x256xf32>
    %126 = arith.truncf %125 : vector<2x256xf32> to vector<2x256xbf16>
    %c2_103 = arith.constant 2 : index
    %c0_104 = arith.constant 0 : index
    %c0_105 = arith.constant 0 : index
    %127 = vector.load %arg9[%c2_103, %c0_104, %c0_105] : memref<4x256x32xbf16, #tpu.memory_space<vmem>>, vector<1x256x32xbf16>
    %128 = vector.shape_cast %127 : vector<1x256x32xbf16> to vector<256x32xbf16>
    %cst_106 = arith.constant dense<0.000000e+00> : vector<2x32xf32>
    %129 = tpu.matmul %126, %128, %cst_106 {dimension_numbers = #tpu.dot_dimension_numbers<[1], [0], [0], [1], [0, 0, 1, 1], [], []>} : vector<2x256xbf16>, vector<256x32xbf16>, vector<2x32xf32> -> vector<2x32xf32>
    %130 = arith.addf %122, %129 : vector<2x32xf32>
    %c3_107 = arith.constant 3 : index
    %c0_108 = arith.constant 0 : index
    %c0_109 = arith.constant 0 : index
    %131 = vector.load %arg8[%c3_107, %c0_108, %c0_109] : memref<4x2x8xbf16, #tpu.memory_space<vmem>>, vector<1x2x8xbf16>
    %132 = vector.shape_cast %131 : vector<1x2x8xbf16> to vector<2x8xbf16>
    %cst_110 = arith.constant dense<0.000000e+00> : vector<2x256xf32>
    %133 = tpu.matmul %132, %105, %cst_110 {dimension_numbers = #tpu.dot_dimension_numbers<[1], [0], [0], [1], [0, 0, 1, 1], [], []>} : vector<2x8xbf16>, vector<8x256xbf16>, vector<2x256xf32> -> vector<2x256xf32>
    %134 = arith.truncf %133 : vector<2x256xf32> to vector<2x256xbf16>
    %c3_111 = arith.constant 3 : index
    %c0_112 = arith.constant 0 : index
    %c0_113 = arith.constant 0 : index
    %135 = vector.load %arg9[%c3_111, %c0_112, %c0_113] : memref<4x256x32xbf16, #tpu.memory_space<vmem>>, vector<1x256x32xbf16>
    %136 = vector.shape_cast %135 : vector<1x256x32xbf16> to vector<256x32xbf16>
    %cst_114 = arith.constant dense<0.000000e+00> : vector<2x32xf32>
    %137 = tpu.matmul %134, %136, %cst_114 {dimension_numbers = #tpu.dot_dimension_numbers<[1], [0], [0], [1], [0, 0, 1, 1], [], []>} : vector<2x256xbf16>, vector<256x32xbf16>, vector<2x32xf32> -> vector<2x32xf32>
    %138 = arith.addf %130, %137 : vector<2x32xf32>
    %c0_115 = arith.constant 0 : index
    %c0_116 = arith.constant 0 : index
    %139 = vector.load %arg10[%c0_115, %c0_116] : memref<1x32xf32, #tpu.memory_space<vmem>>, vector<1x32xf32>
    %140 = vector.broadcast %139 : vector<1x32xf32> to vector<2x32xf32>
    %141 = arith.addf %138, %140 : vector<2x32xf32>
    %c0_117 = arith.constant 0 : index
    %c0_118 = arith.constant 0 : index
    %142 = vector.load %arg33[%c0_117, %c0_118] : memref<2x32xf32, #tpu.memory_space<vmem>>, vector<2x32xf32>
    tpu.vector_store %arg33[%c0_117, %c0_118], %141 {strides = array<i32>} : memref<2x32xf32, #tpu.memory_space<vmem>>, vector<2x32xf32>,
    %143 = arith.truncf %141 : vector<2x32xf32> to vector<2x32xbf16>
    %cst_119 = arith.constant 0.000000e+00 : f32
    %144 = vector.broadcast %cst_119 : f32 to vector<8x256xf32>
    %c0_120 = arith.constant 0 : index
    %c0_121 = arith.constant 0 : index
    %c0_122 = arith.constant 0 : index
    %145 = vector.load %arg11[%c0_120, %c0_121, %c0_122] : memref<4x8x2xbf16, #tpu.memory_space<vmem>>, vector<1x8x2xbf16>
    %146 = vector.shape_cast %145 : vector<1x8x2xbf16> to vector<8x2xbf16>
    %cst_123 = arith.constant dense<0.000000e+00> : vector<8x32xf32>
    %147 = tpu.matmul %146, %143, %cst_123 {dimension_numbers = #tpu.dot_dimension_numbers<[1], [0], [0], [1], [0, 0, 1, 1], [], []>} : vector<8x2xbf16>, vector<2x32xbf16>, vector<8x32xf32> -> vector<8x32xf32>
    %148 = arith.truncf %147 : vector<8x32xf32> to vector<8x32xbf16>
    %c0_124 = arith.constant 0 : index
    %c0_125 = arith.constant 0 : index
    %c0_126 = arith.constant 0 : index
    %149 = vector.load %arg12[%c0_124, %c0_125, %c0_126] : memref<4x32x256xbf16, #tpu.memory_space<vmem>>, vector<1x32x256xbf16>
    %150 = vector.shape_cast %149 : vector<1x32x256xbf16> to vector<32x256xbf16>
    %cst_127 = arith.constant dense<0.000000e+00> : vector<8x256xf32>
    %151 = tpu.matmul %148, %150, %cst_127 {dimension_numbers = #tpu.dot_dimension_numbers<[1], [0], [0], [1], [0, 0, 1, 1], [], []>} : vector<8x32xbf16>, vector<32x256xbf16>, vector<8x256xf32> -> vector<8x256xf32>
    %152 = arith.addf %144, %151 : vector<8x256xf32>
    %c1_128 = arith.constant 1 : index
    %c0_129 = arith.constant 0 : index
    %c0_130 = arith.constant 0 : index
    %153 = vector.load %arg11[%c1_128, %c0_129, %c0_130] : memref<4x8x2xbf16, #tpu.memory_space<vmem>>, vector<1x8x2xbf16>
    %154 = vector.shape_cast %153 : vector<1x8x2xbf16> to vector<8x2xbf16>
    %cst_131 = arith.constant dense<0.000000e+00> : vector<8x32xf32>
    %155 = tpu.matmul %154, %143, %cst_131 {dimension_numbers = #tpu.dot_dimension_numbers<[1], [0], [0], [1], [0, 0, 1, 1], [], []>} : vector<8x2xbf16>, vector<2x32xbf16>, vector<8x32xf32> -> vector<8x32xf32>
    %156 = arith.truncf %155 : vector<8x32xf32> to vector<8x32xbf16>
    %c1_132 = arith.constant 1 : index
    %c0_133 = arith.constant 0 : index
    %c0_134 = arith.constant 0 : index
    %157 = vector.load %arg12[%c1_132, %c0_133, %c0_134] : memref<4x32x256xbf16, #tpu.memory_space<vmem>>, vector<1x32x256xbf16>
    %158 = vector.shape_cast %157 : vector<1x32x256xbf16> to vector<32x256xbf16>
    %cst_135 = arith.constant dense<0.000000e+00> : vector<8x256xf32>
    %159 = tpu.matmul %156, %158, %cst_135 {dimension_numbers = #tpu.dot_dimension_numbers<[1], [0], [0], [1], [0, 0, 1, 1], [], []>} : vector<8x32xbf16>, vector<32x256xbf16>, vector<8x256xf32> -> vector<8x256xf32>
    %160 = arith.addf %152, %159 : vector<8x256xf32>
    %c2_136 = arith.constant 2 : index
    %c0_137 = arith.constant 0 : index
    %c0_138 = arith.constant 0 : index
    %161 = vector.load %arg11[%c2_136, %c0_137, %c0_138] : memref<4x8x2xbf16, #tpu.memory_space<vmem>>, vector<1x8x2xbf16>
    %162 = vector.shape_cast %161 : vector<1x8x2xbf16> to vector<8x2xbf16>
    %cst_139 = arith.constant dense<0.000000e+00> : vector<8x32xf32>
    %163 = tpu.matmul %162, %143, %cst_139 {dimension_numbers = #tpu.dot_dimension_numbers<[1], [0], [0], [1], [0, 0, 1, 1], [], []>} : vector<8x2xbf16>, vector<2x32xbf16>, vector<8x32xf32> -> vector<8x32xf32>
    %164 = arith.truncf %163 : vector<8x32xf32> to vector<8x32xbf16>
    %c2_140 = arith.constant 2 : index
    %c0_141 = arith.constant 0 : index
    %c0_142 = arith.constant 0 : index
    %165 = vector.load %arg12[%c2_140, %c0_141, %c0_142] : memref<4x32x256xbf16, #tpu.memory_space<vmem>>, vector<1x32x256xbf16>
    %166 = vector.shape_cast %165 : vector<1x32x256xbf16> to vector<32x256xbf16>
    %cst_143 = arith.constant dense<0.000000e+00> : vector<8x256xf32>
    %167 = tpu.matmul %164, %166, %cst_143 {dimension_numbers = #tpu.dot_dimension_numbers<[1], [0], [0], [1], [0, 0, 1, 1], [], []>} : vector<8x32xbf16>, vector<32x256xbf16>, vector<8x256xf32> -> vector<8x256xf32>
    %168 = arith.addf %160, %167 : vector<8x256xf32>
    %c3_144 = arith.constant 3 : index
    %c0_145 = arith.constant 0 : index
    %c0_146 = arith.constant 0 : index
    %169 = vector.load %arg11[%c3_144, %c0_145, %c0_146] : memref<4x8x2xbf16, #tpu.memory_space<vmem>>, vector<1x8x2xbf16>
    %170 = vector.shape_cast %169 : vector<1x8x2xbf16> to vector<8x2xbf16>
    %cst_147 = arith.constant dense<0.000000e+00> : vector<8x32xf32>
    %171 = tpu.matmul %170, %143, %cst_147 {dimension_numbers = #tpu.dot_dimension_numbers<[1], [0], [0], [1], [0, 0, 1, 1], [], []>} : vector<8x2xbf16>, vector<2x32xbf16>, vector<8x32xf32> -> vector<8x32xf32>
    %172 = arith.truncf %171 : vector<8x32xf32> to vector<8x32xbf16>
    %c3_148 = arith.constant 3 : index
    %c0_149 = arith.constant 0 : index
    %c0_150 = arith.constant 0 : index
    %173 = vector.load %arg12[%c3_148, %c0_149, %c0_150] : memref<4x32x256xbf16, #tpu.memory_space<vmem>>, vector<1x32x256xbf16>
    %174 = vector.shape_cast %173 : vector<1x32x256xbf16> to vector<32x256xbf16>
    %cst_151 = arith.constant dense<0.000000e+00> : vector<8x256xf32>
    %175 = tpu.matmul %172, %174, %cst_151 {dimension_numbers = #tpu.dot_dimension_numbers<[1], [0], [0], [1], [0, 0, 1, 1], [], []>} : vector<8x32xbf16>, vector<32x256xbf16>, vector<8x256xf32> -> vector<8x256xf32>
    %176 = arith.addf %168, %175 : vector<8x256xf32>
    %c0_152 = arith.constant 0 : index
    %c0_153 = arith.constant 0 : index
    %177 = vector.load %arg13[%c0_152, %c0_153] : memref<256x64xf32, #tpu.memory_space<vmem>>, vector<256x64xf32>
    %c0_154 = arith.constant 0 : index
    %c0_155 = arith.constant 0 : index
    %178 = vector.load %arg14[%c0_154, %c0_155] : memref<64x256xf32, #tpu.memory_space<vmem>>, vector<64x256xf32>
    %cst_156 = arith.constant dense<0.000000e+00> : vector<256xf32>
    %179 = vector.multi_reduction <add>, %176, %cst_156 [0] : vector<8x256xf32> to vector<256xf32>
    %180 = vector.shape_cast %179 : vector<256xf32> to vector<1x256xf32>
    %181 = arith.mulf %176, %176 : vector<8x256xf32>
    %cst_157 = arith.constant dense<0.000000e+00> : vector<256xf32>
    %182 = vector.multi_reduction <add>, %181, %cst_157 [0] : vector<8x256xf32> to vector<256xf32>
    %183 = vector.shape_cast %182 : vector<256xf32> to vector<1x256xf32>
    %cst_158 = arith.constant dense<0.000000e+00> : vector<1x64xf32>
    %184 = tpu.matmul %180, %177, %cst_158 {dimension_numbers = #tpu.dot_dimension_numbers<[1], [0], [0], [1], [0, 0, 1, 1], [], []>} : vector<1x256xf32>, vector<256x64xf32>, vector<1x64xf32> -> vector<1x64xf32>
    %cst_159 = arith.constant 3.125000e-02 : f32
    %185 = vector.broadcast %cst_159 : f32 to vector<1x64xf32>
    %186 = arith.mulf %184, %185 : vector<1x64xf32>
    %cst_160 = arith.constant dense<0.000000e+00> : vector<1x64xf32>
    %187 = tpu.matmul %183, %177, %cst_160 {dimension_numbers = #tpu.dot_dimension_numbers<[1], [0], [0], [1], [0, 0, 1, 1], [], []>} : vector<1x256xf32>, vector<256x64xf32>, vector<1x64xf32> -> vector<1x64xf32>
    %cst_161 = arith.constant 3.125000e-02 : f32
    %188 = vector.broadcast %cst_161 : f32 to vector<1x64xf32>
    %189 = arith.mulf %187, %188 : vector<1x64xf32>
    %190 = arith.mulf %186, %186 : vector<1x64xf32>
    %191 = arith.subf %189, %190 : vector<1x64xf32>
    %cst_162 = arith.constant 9.99999974E-6 : f32
    %192 = vector.broadcast %cst_162 : f32 to vector<1x64xf32>
    %193 = arith.addf %191, %192 : vector<1x64xf32>
    %194 = math.rsqrt %193 : vector<1x64xf32>
    %cst_163 = arith.constant dense<0.000000e+00> : vector<1x256xf32>
    %195 = tpu.matmul %186, %178, %cst_163 {dimension_numbers = #tpu.dot_dimension_numbers<[1], [0], [0], [1], [0, 0, 1, 1], [], []>} : vector<1x64xf32>, vector<64x256xf32>, vector<1x256xf32> -> vector<1x256xf32>
    %cst_164 = arith.constant dense<0.000000e+00> : vector<1x256xf32>
    %196 = tpu.matmul %194, %178, %cst_164 {dimension_numbers = #tpu.dot_dimension_numbers<[1], [0], [0], [1], [0, 0, 1, 1], [], []>} : vector<1x64xf32>, vector<64x256xf32>, vector<1x256xf32> -> vector<1x256xf32>
    %197 = vector.broadcast %195 : vector<1x256xf32> to vector<8x256xf32>
    %198 = arith.subf %176, %197 : vector<8x256xf32>
    %199 = vector.broadcast %196 : vector<1x256xf32> to vector<8x256xf32>
    %200 = arith.mulf %198, %199 : vector<8x256xf32>
    %cst_165 = arith.constant 0.000000e+00 : f32
    %201 = vector.broadcast %cst_165 : f32 to vector<8x256xf32>
    %202 = arith.maximumf %200, %201 : vector<8x256xf32>
    %203 = arith.truncf %202 : vector<8x256xf32> to vector<8x256xbf16>
    %cst_166 = arith.constant 0.000000e+00 : f32
    %204 = vector.broadcast %cst_166 : f32 to vector<16x256xf32>
    %c0_167 = arith.constant 0 : index
    %c0_168 = arith.constant 0 : index
    %c0_169 = arith.constant 0 : index
    %205 = vector.load %arg15[%c0_167, %c0_168, %c0_169] : memref<4x16x8xbf16, #tpu.memory_space<vmem>>, vector<1x16x8xbf16>
    %206 = vector.shape_cast %205 : vector<1x16x8xbf16> to vector<16x8xbf16>
    %cst_170 = arith.constant dense<0.000000e+00> : vector<16x256xf32>
    %207 = tpu.matmul %206, %203, %cst_170 {dimension_numbers = #tpu.dot_dimension_numbers<[1], [0], [0], [1], [0, 0, 1, 1], [], []>} : vector<16x8xbf16>, vector<8x256xbf16>, vector<16x256xf32> -> vector<16x256xf32>
    %208 = arith.truncf %207 : vector<16x256xf32> to vector<16x256xbf16>
    %c0_171 = arith.constant 0 : index
    %c0_172 = arith.constant 0 : index
    %c0_173 = arith.constant 0 : index
    %209 = vector.load %arg16[%c0_171, %c0_172, %c0_173] : memref<4x256x256xbf16, #tpu.memory_space<vmem>>, vector<1x256x256xbf16>
    %210 = vector.shape_cast %209 : vector<1x256x256xbf16> to vector<256x256xbf16>
    %cst_174 = arith.constant dense<0.000000e+00> : vector<16x256xf32>
    %211 = tpu.matmul %208, %210, %cst_174 {dimension_numbers = #tpu.dot_dimension_numbers<[1], [0], [0], [1], [0, 0, 1, 1], [], []>} : vector<16x256xbf16>, vector<256x256xbf16>, vector<16x256xf32> -> vector<16x256xf32>
    %212 = arith.addf %204, %211 : vector<16x256xf32>
    %c1_175 = arith.constant 1 : index
    %c0_176 = arith.constant 0 : index
    %c0_177 = arith.constant 0 : index
    %213 = vector.load %arg15[%c1_175, %c0_176, %c0_177] : memref<4x16x8xbf16, #tpu.memory_space<vmem>>, vector<1x16x8xbf16>
    %214 = vector.shape_cast %213 : vector<1x16x8xbf16> to vector<16x8xbf16>
    %cst_178 = arith.constant dense<0.000000e+00> : vector<16x256xf32>
    %215 = tpu.matmul %214, %203, %cst_178 {dimension_numbers = #tpu.dot_dimension_numbers<[1], [0], [0], [1], [0, 0, 1, 1], [], []>} : vector<16x8xbf16>, vector<8x256xbf16>, vector<16x256xf32> -> vector<16x256xf32>
    %216 = arith.truncf %215 : vector<16x256xf32> to vector<16x256xbf16>
    %c1_179 = arith.constant 1 : index
    %c0_180 = arith.constant 0 : index
    %c0_181 = arith.constant 0 : index
    %217 = vector.load %arg16[%c1_179, %c0_180, %c0_181] : memref<4x256x256xbf16, #tpu.memory_space<vmem>>, vector<1x256x256xbf16>
    %218 = vector.shape_cast %217 : vector<1x256x256xbf16> to vector<256x256xbf16>
    %cst_182 = arith.constant dense<0.000000e+00> : vector<16x256xf32>
    %219 = tpu.matmul %216, %218, %cst_182 {dimension_numbers = #tpu.dot_dimension_numbers<[1], [0], [0], [1], [0, 0, 1, 1], [], []>} : vector<16x256xbf16>, vector<256x256xbf16>, vector<16x256xf32> -> vector<16x256xf32>
    %220 = arith.addf %212, %219 : vector<16x256xf32>
    %c2_183 = arith.constant 2 : index
    %c0_184 = arith.constant 0 : index
    %c0_185 = arith.constant 0 : index
    %221 = vector.load %arg15[%c2_183, %c0_184, %c0_185] : memref<4x16x8xbf16, #tpu.memory_space<vmem>>, vector<1x16x8xbf16>
    %222 = vector.shape_cast %221 : vector<1x16x8xbf16> to vector<16x8xbf16>
    %cst_186 = arith.constant dense<0.000000e+00> : vector<16x256xf32>
    %223 = tpu.matmul %222, %203, %cst_186 {dimension_numbers = #tpu.dot_dimension_numbers<[1], [0], [0], [1], [0, 0, 1, 1], [], []>} : vector<16x8xbf16>, vector<8x256xbf16>, vector<16x256xf32> -> vector<16x256xf32>
    %224 = arith.truncf %223 : vector<16x256xf32> to vector<16x256xbf16>
    %c2_187 = arith.constant 2 : index
    %c0_188 = arith.constant 0 : index
    %c0_189 = arith.constant 0 : index
    %225 = vector.load %arg16[%c2_187, %c0_188, %c0_189] : memref<4x256x256xbf16, #tpu.memory_space<vmem>>, vector<1x256x256xbf16>
    %226 = vector.shape_cast %225 : vector<1x256x256xbf16> to vector<256x256xbf16>
    %cst_190 = arith.constant dense<0.000000e+00> : vector<16x256xf32>
    %227 = tpu.matmul %224, %226, %cst_190 {dimension_numbers = #tpu.dot_dimension_numbers<[1], [0], [0], [1], [0, 0, 1, 1], [], []>} : vector<16x256xbf16>, vector<256x256xbf16>, vector<16x256xf32> -> vector<16x256xf32>
    %228 = arith.addf %220, %227 : vector<16x256xf32>
    %c3_191 = arith.constant 3 : index
    %c0_192 = arith.constant 0 : index
    %c0_193 = arith.constant 0 : index
    %229 = vector.load %arg15[%c3_191, %c0_192, %c0_193] : memref<4x16x8xbf16, #tpu.memory_space<vmem>>, vector<1x16x8xbf16>
    %230 = vector.shape_cast %229 : vector<1x16x8xbf16> to vector<16x8xbf16>
    %cst_194 = arith.constant dense<0.000000e+00> : vector<16x256xf32>
    %231 = tpu.matmul %230, %203, %cst_194 {dimension_numbers = #tpu.dot_dimension_numbers<[1], [0], [0], [1], [0, 0, 1, 1], [], []>} : vector<16x8xbf16>, vector<8x256xbf16>, vector<16x256xf32> -> vector<16x256xf32>
    %232 = arith.truncf %231 : vector<16x256xf32> to vector<16x256xbf16>
    %c3_195 = arith.constant 3 : index
    %c0_196 = arith.constant 0 : index
    %c0_197 = arith.constant 0 : index
    %233 = vector.load %arg16[%c3_195, %c0_196, %c0_197] : memref<4x256x256xbf16, #tpu.memory_space<vmem>>, vector<1x256x256xbf16>
    %234 = vector.shape_cast %233 : vector<1x256x256xbf16> to vector<256x256xbf16>
    %cst_198 = arith.constant dense<0.000000e+00> : vector<16x256xf32>
    %235 = tpu.matmul %232, %234, %cst_198 {dimension_numbers = #tpu.dot_dimension_numbers<[1], [0], [0], [1], [0, 0, 1, 1], [], []>} : vector<16x256xbf16>, vector<256x256xbf16>, vector<16x256xf32> -> vector<16x256xf32>
    %236 = arith.addf %228, %235 : vector<16x256xf32>
    %c0_199 = arith.constant 0 : index
    %c0_200 = arith.constant 0 : index
    %237 = vector.load %arg17[%c0_199, %c0_200] : memref<256x32xf32, #tpu.memory_space<vmem>>, vector<256x32xf32>
    %c0_201 = arith.constant 0 : index
    %c0_202 = arith.constant 0 : index
    %238 = vector.load %arg18[%c0_201, %c0_202] : memref<32x256xf32, #tpu.memory_space<vmem>>, vector<32x256xf32>
    %cst_203 = arith.constant dense<0.000000e+00> : vector<256xf32>
    %239 = vector.multi_reduction <add>, %236, %cst_203 [0] : vector<16x256xf32> to vector<256xf32>
    %240 = vector.shape_cast %239 : vector<256xf32> to vector<1x256xf32>
    %241 = arith.mulf %236, %236 : vector<16x256xf32>
    %cst_204 = arith.constant dense<0.000000e+00> : vector<256xf32>
    %242 = vector.multi_reduction <add>, %241, %cst_204 [0] : vector<16x256xf32> to vector<256xf32>
    %243 = vector.shape_cast %242 : vector<256xf32> to vector<1x256xf32>
    %cst_205 = arith.constant dense<0.000000e+00> : vector<1x32xf32>
    %244 = tpu.matmul %240, %237, %cst_205 {dimension_numbers = #tpu.dot_dimension_numbers<[1], [0], [0], [1], [0, 0, 1, 1], [], []>} : vector<1x256xf32>, vector<256x32xf32>, vector<1x32xf32> -> vector<1x32xf32>
    %cst_206 = arith.constant 7.812500e-03 : f32
    %245 = vector.broadcast %cst_206 : f32 to vector<1x32xf32>
    %246 = arith.mulf %244, %245 : vector<1x32xf32>
    %cst_207 = arith.constant dense<0.000000e+00> : vector<1x32xf32>
    %247 = tpu.matmul %243, %237, %cst_207 {dimension_numbers = #tpu.dot_dimension_numbers<[1], [0], [0], [1], [0, 0, 1, 1], [], []>} : vector<1x256xf32>, vector<256x32xf32>, vector<1x32xf32> -> vector<1x32xf32>
    %cst_208 = arith.constant 7.812500e-03 : f32
    %248 = vector.broadcast %cst_208 : f32 to vector<1x32xf32>
    %249 = arith.mulf %247, %248 : vector<1x32xf32>
    %250 = arith.mulf %246, %246 : vector<1x32xf32>
    %251 = arith.subf %249, %250 : vector<1x32xf32>
    %cst_209 = arith.constant 9.99999974E-6 : f32
    %252 = vector.broadcast %cst_209 : f32 to vector<1x32xf32>
    %253 = arith.addf %251, %252 : vector<1x32xf32>
    %254 = math.rsqrt %253 : vector<1x32xf32>
    %cst_210 = arith.constant dense<0.000000e+00> : vector<1x256xf32>
    %255 = tpu.matmul %246, %238, %cst_210 {dimension_numbers = #tpu.dot_dimension_numbers<[1], [0], [0], [1], [0, 0, 1, 1], [], []>} : vector<1x32xf32>, vector<32x256xf32>, vector<1x256xf32> -> vector<1x256xf32>
    %cst_211 = arith.constant dense<0.000000e+00> : vector<1x256xf32>
    %256 = tpu.matmul %254, %238, %cst_211 {dimension_numbers = #tpu.dot_dimension_numbers<[1], [0], [0], [1], [0, 0, 1, 1], [], []>} : vector<1x32xf32>, vector<32x256xf32>, vector<1x256xf32> -> vector<1x256xf32>
    %257 = vector.broadcast %255 : vector<1x256xf32> to vector<16x256xf32>
    %258 = arith.subf %236, %257 : vector<16x256xf32>
    %259 = vector.broadcast %256 : vector<1x256xf32> to vector<16x256xf32>
    %260 = arith.mulf %258, %259 : vector<16x256xf32>
    %cst_212 = arith.constant 0.000000e+00 : f32
    %261 = vector.broadcast %cst_212 : f32 to vector<16x256xf32>
    %262 = arith.maximumf %260, %261 : vector<16x256xf32>
    %263 = arith.truncf %262 : vector<16x256xf32> to vector<16x256xbf16>
    %cst_213 = arith.constant 0.000000e+00 : f32
    %264 = vector.broadcast %cst_213 : f32 to vector<32x64xf32>
    %c0_214 = arith.constant 0 : index
    %c0_215 = arith.constant 0 : index
    %c0_216 = arith.constant 0 : index
    %265 = vector.load %arg19[%c0_214, %c0_215, %c0_216] : memref<4x32x16xbf16, #tpu.memory_space<vmem>>, vector<1x32x16xbf16>
    %266 = vector.shape_cast %265 : vector<1x32x16xbf16> to vector<32x16xbf16>
    %cst_217 = arith.constant dense<0.000000e+00> : vector<32x256xf32>
    %267 = tpu.matmul %266, %263, %cst_217 {dimension_numbers = #tpu.dot_dimension_numbers<[1], [0], [0], [1], [0, 0, 1, 1], [], []>} : vector<32x16xbf16>, vector<16x256xbf16>, vector<32x256xf32> -> vector<32x256xf32>
    %268 = arith.truncf %267 : vector<32x256xf32> to vector<32x256xbf16>
    %c0_218 = arith.constant 0 : index
    %c0_219 = arith.constant 0 : index
    %c0_220 = arith.constant 0 : index
    %269 = vector.load %arg20[%c0_218, %c0_219, %c0_220] : memref<4x256x64xbf16, #tpu.memory_space<vmem>>, vector<1x256x64xbf16>
    %270 = vector.shape_cast %269 : vector<1x256x64xbf16> to vector<256x64xbf16>
    %cst_221 = arith.constant dense<0.000000e+00> : vector<32x64xf32>
    %271 = tpu.matmul %268, %270, %cst_221 {dimension_numbers = #tpu.dot_dimension_numbers<[1], [0], [0], [1], [0, 0, 1, 1], [], []>} : vector<32x256xbf16>, vector<256x64xbf16>, vector<32x64xf32> -> vector<32x64xf32>
    %272 = arith.addf %264, %271 : vector<32x64xf32>
    %c1_222 = arith.constant 1 : index
    %c0_223 = arith.constant 0 : index
    %c0_224 = arith.constant 0 : index
    %273 = vector.load %arg19[%c1_222, %c0_223, %c0_224] : memref<4x32x16xbf16, #tpu.memory_space<vmem>>, vector<1x32x16xbf16>
    %274 = vector.shape_cast %273 : vector<1x32x16xbf16> to vector<32x16xbf16>
    %cst_225 = arith.constant dense<0.000000e+00> : vector<32x256xf32>
    %275 = tpu.matmul %274, %263, %cst_225 {dimension_numbers = #tpu.dot_dimension_numbers<[1], [0], [0], [1], [0, 0, 1, 1], [], []>} : vector<32x16xbf16>, vector<16x256xbf16>, vector<32x256xf32> -> vector<32x256xf32>
    %276 = arith.truncf %275 : vector<32x256xf32> to vector<32x256xbf16>
    %c1_226 = arith.constant 1 : index
    %c0_227 = arith.constant 0 : index
    %c0_228 = arith.constant 0 : index
    %277 = vector.load %arg20[%c1_226, %c0_227, %c0_228] : memref<4x256x64xbf16, #tpu.memory_space<vmem>>, vector<1x256x64xbf16>
    %278 = vector.shape_cast %277 : vector<1x256x64xbf16> to vector<256x64xbf16>
    %cst_229 = arith.constant dense<0.000000e+00> : vector<32x64xf32>
    %279 = tpu.matmul %276, %278, %cst_229 {dimension_numbers = #tpu.dot_dimension_numbers<[1], [0], [0], [1], [0, 0, 1, 1], [], []>} : vector<32x256xbf16>, vector<256x64xbf16>, vector<32x64xf32> -> vector<32x64xf32>
    %280 = arith.addf %272, %279 : vector<32x64xf32>
    %c2_230 = arith.constant 2 : index
    %c0_231 = arith.constant 0 : index
    %c0_232 = arith.constant 0 : index
    %281 = vector.load %arg19[%c2_230, %c0_231, %c0_232] : memref<4x32x16xbf16, #tpu.memory_space<vmem>>, vector<1x32x16xbf16>
    %282 = vector.shape_cast %281 : vector<1x32x16xbf16> to vector<32x16xbf16>
    %cst_233 = arith.constant dense<0.000000e+00> : vector<32x256xf32>
    %283 = tpu.matmul %282, %263, %cst_233 {dimension_numbers = #tpu.dot_dimension_numbers<[1], [0], [0], [1], [0, 0, 1, 1], [], []>} : vector<32x16xbf16>, vector<16x256xbf16>, vector<32x256xf32> -> vector<32x256xf32>
    %284 = arith.truncf %283 : vector<32x256xf32> to vector<32x256xbf16>
    %c2_234 = arith.constant 2 : index
    %c0_235 = arith.constant 0 : index
    %c0_236 = arith.constant 0 : index
    %285 = vector.load %arg20[%c2_234, %c0_235, %c0_236] : memref<4x256x64xbf16, #tpu.memory_space<vmem>>, vector<1x256x64xbf16>
    %286 = vector.shape_cast %285 : vector<1x256x64xbf16> to vector<256x64xbf16>
    %cst_237 = arith.constant dense<0.000000e+00> : vector<32x64xf32>
    %287 = tpu.matmul %284, %286, %cst_237 {dimension_numbers = #tpu.dot_dimension_numbers<[1], [0], [0], [1], [0, 0, 1, 1], [], []>} : vector<32x256xbf16>, vector<256x64xbf16>, vector<32x64xf32> -> vector<32x64xf32>
    %288 = arith.addf %280, %287 : vector<32x64xf32>
    %c3_238 = arith.constant 3 : index
    %c0_239 = arith.constant 0 : index
    %c0_240 = arith.constant 0 : index
    %289 = vector.load %arg19[%c3_238, %c0_239, %c0_240] : memref<4x32x16xbf16, #tpu.memory_space<vmem>>, vector<1x32x16xbf16>
    %290 = vector.shape_cast %289 : vector<1x32x16xbf16> to vector<32x16xbf16>
    %cst_241 = arith.constant dense<0.000000e+00> : vector<32x256xf32>
    %291 = tpu.matmul %290, %263, %cst_241 {dimension_numbers = #tpu.dot_dimension_numbers<[1], [0], [0], [1], [0, 0, 1, 1], [], []>} : vector<32x16xbf16>, vector<16x256xbf16>, vector<32x256xf32> -> vector<32x256xf32>
    %292 = arith.truncf %291 : vector<32x256xf32> to vector<32x256xbf16>
    %c3_242 = arith.constant 3 : index
    %c0_243 = arith.constant 0 : index
    %c0_244 = arith.constant 0 : index
    %293 = vector.load %arg20[%c3_242, %c0_243, %c0_244] : memref<4x256x64xbf16, #tpu.memory_space<vmem>>, vector<1x256x64xbf16>
    %294 = vector.shape_cast %293 : vector<1x256x64xbf16> to vector<256x64xbf16>
    %cst_245 = arith.constant dense<0.000000e+00> : vector<32x64xf32>
    %295 = tpu.matmul %292, %294, %cst_245 {dimension_numbers = #tpu.dot_dimension_numbers<[1], [0], [0], [1], [0, 0, 1, 1], [], []>} : vector<32x256xbf16>, vector<256x64xbf16>, vector<32x64xf32> -> vector<32x64xf32>
    %296 = arith.addf %288, %295 : vector<32x64xf32>
    %c0_246 = arith.constant 0 : index
    %c0_247 = arith.constant 0 : index
    %297 = vector.load %arg21[%c0_246, %c0_247] : memref<1x64xf32, #tpu.memory_space<vmem>>, vector<1x64xf32>
    %298 = vector.broadcast %297 : vector<1x64xf32> to vector<32x64xf32>
    %299 = arith.addf %296, %298 : vector<32x64xf32>
    %300 = math.tanh %299 : vector<32x64xf32>
    %c0_248 = arith.constant 0 : index
    %c0_249 = arith.constant 0 : index
    %301 = vector.load %arg32[%c0_248, %c0_249] : memref<32x64xf32, #tpu.memory_space<vmem>>, vector<32x64xf32>
    tpu.vector_store %arg32[%c0_248, %c0_249], %300 {strides = array<i32>} : memref<32x64xf32, #tpu.memory_space<vmem>>, vector<32x64xf32>,
    %302 = arith.truncf %300 : vector<32x64xf32> to vector<32x64xbf16>
    %cst_250 = arith.constant 0.000000e+00 : f32
    %303 = vector.broadcast %cst_250 : f32 to vector<16x256xf32>
    %c0_251 = arith.constant 0 : index
    %c0_252 = arith.constant 0 : index
    %c0_253 = arith.constant 0 : index
    %304 = vector.load %arg22[%c0_251, %c0_252, %c0_253] : memref<4x16x32xbf16, #tpu.memory_space<vmem>>, vector<1x16x32xbf16>
    %305 = vector.shape_cast %304 : vector<1x16x32xbf16> to vector<16x32xbf16>
    %cst_254 = arith.constant dense<0.000000e+00> : vector<16x64xf32>
    %306 = tpu.matmul %305, %302, %cst_254 {dimension_numbers = #tpu.dot_dimension_numbers<[1], [0], [0], [1], [0, 0, 1, 1], [], []>} : vector<16x32xbf16>, vector<32x64xbf16>, vector<16x64xf32> -> vector<16x64xf32>
    %307 = arith.truncf %306 : vector<16x64xf32> to vector<16x64xbf16>
    %c0_255 = arith.constant 0 : index
    %c0_256 = arith.constant 0 : index
    %c0_257 = arith.constant 0 : index
    %308 = vector.load %arg23[%c0_255, %c0_256, %c0_257] : memref<4x64x256xbf16, #tpu.memory_space<vmem>>, vector<1x64x256xbf16>
    %309 = vector.shape_cast %308 : vector<1x64x256xbf16> to vector<64x256xbf16>
    %cst_258 = arith.constant dense<0.000000e+00> : vector<16x256xf32>
    %310 = tpu.matmul %307, %309, %cst_258 {dimension_numbers = #tpu.dot_dimension_numbers<[1], [0], [0], [1], [0, 0, 1, 1], [], []>} : vector<16x64xbf16>, vector<64x256xbf16>, vector<16x256xf32> -> vector<16x256xf32>
    %311 = arith.addf %303, %310 : vector<16x256xf32>
    %c1_259 = arith.constant 1 : index
    %c0_260 = arith.constant 0 : index
    %c0_261 = arith.constant 0 : index
    %312 = vector.load %arg22[%c1_259, %c0_260, %c0_261] : memref<4x16x32xbf16, #tpu.memory_space<vmem>>, vector<1x16x32xbf16>
    %313 = vector.shape_cast %312 : vector<1x16x32xbf16> to vector<16x32xbf16>
    %cst_262 = arith.constant dense<0.000000e+00> : vector<16x64xf32>
    %314 = tpu.matmul %313, %302, %cst_262 {dimension_numbers = #tpu.dot_dimension_numbers<[1], [0], [0], [1], [0, 0, 1, 1], [], []>} : vector<16x32xbf16>, vector<32x64xbf16>, vector<16x64xf32> -> vector<16x64xf32>
    %315 = arith.truncf %314 : vector<16x64xf32> to vector<16x64xbf16>
    %c1_263 = arith.constant 1 : index
    %c0_264 = arith.constant 0 : index
    %c0_265 = arith.constant 0 : index
    %316 = vector.load %arg23[%c1_263, %c0_264, %c0_265] : memref<4x64x256xbf16, #tpu.memory_space<vmem>>, vector<1x64x256xbf16>
    %317 = vector.shape_cast %316 : vector<1x64x256xbf16> to vector<64x256xbf16>
    %cst_266 = arith.constant dense<0.000000e+00> : vector<16x256xf32>
    %318 = tpu.matmul %315, %317, %cst_266 {dimension_numbers = #tpu.dot_dimension_numbers<[1], [0], [0], [1], [0, 0, 1, 1], [], []>} : vector<16x64xbf16>, vector<64x256xbf16>, vector<16x256xf32> -> vector<16x256xf32>
    %319 = arith.addf %311, %318 : vector<16x256xf32>
    %c2_267 = arith.constant 2 : index
    %c0_268 = arith.constant 0 : index
    %c0_269 = arith.constant 0 : index
    %320 = vector.load %arg22[%c2_267, %c0_268, %c0_269] : memref<4x16x32xbf16, #tpu.memory_space<vmem>>, vector<1x16x32xbf16>
    %321 = vector.shape_cast %320 : vector<1x16x32xbf16> to vector<16x32xbf16>
    %cst_270 = arith.constant dense<0.000000e+00> : vector<16x64xf32>
    %322 = tpu.matmul %321, %302, %cst_270 {dimension_numbers = #tpu.dot_dimension_numbers<[1], [0], [0], [1], [0, 0, 1, 1], [], []>} : vector<16x32xbf16>, vector<32x64xbf16>, vector<16x64xf32> -> vector<16x64xf32>
    %323 = arith.truncf %322 : vector<16x64xf32> to vector<16x64xbf16>
    %c2_271 = arith.constant 2 : index
    %c0_272 = arith.constant 0 : index
    %c0_273 = arith.constant 0 : index
    %324 = vector.load %arg23[%c2_271, %c0_272, %c0_273] : memref<4x64x256xbf16, #tpu.memory_space<vmem>>, vector<1x64x256xbf16>
    %325 = vector.shape_cast %324 : vector<1x64x256xbf16> to vector<64x256xbf16>
    %cst_274 = arith.constant dense<0.000000e+00> : vector<16x256xf32>
    %326 = tpu.matmul %323, %325, %cst_274 {dimension_numbers = #tpu.dot_dimension_numbers<[1], [0], [0], [1], [0, 0, 1, 1], [], []>} : vector<16x64xbf16>, vector<64x256xbf16>, vector<16x256xf32> -> vector<16x256xf32>
    %327 = arith.addf %319, %326 : vector<16x256xf32>
    %c3_275 = arith.constant 3 : index
    %c0_276 = arith.constant 0 : index
    %c0_277 = arith.constant 0 : index
    %328 = vector.load %arg22[%c3_275, %c0_276, %c0_277] : memref<4x16x32xbf16, #tpu.memory_space<vmem>>, vector<1x16x32xbf16>
    %329 = vector.shape_cast %328 : vector<1x16x32xbf16> to vector<16x32xbf16>
    %cst_278 = arith.constant dense<0.000000e+00> : vector<16x64xf32>
    %330 = tpu.matmul %329, %302, %cst_278 {dimension_numbers = #tpu.dot_dimension_numbers<[1], [0], [0], [1], [0, 0, 1, 1], [], []>} : vector<16x32xbf16>, vector<32x64xbf16>, vector<16x64xf32> -> vector<16x64xf32>
    %331 = arith.truncf %330 : vector<16x64xf32> to vector<16x64xbf16>
    %c3_279 = arith.constant 3 : index
    %c0_280 = arith.constant 0 : index
    %c0_281 = arith.constant 0 : index
    %332 = vector.load %arg23[%c3_279, %c0_280, %c0_281] : memref<4x64x256xbf16, #tpu.memory_space<vmem>>, vector<1x64x256xbf16>
    %333 = vector.shape_cast %332 : vector<1x64x256xbf16> to vector<64x256xbf16>
    %cst_282 = arith.constant dense<0.000000e+00> : vector<16x256xf32>
    %334 = tpu.matmul %331, %333, %cst_282 {dimension_numbers = #tpu.dot_dimension_numbers<[1], [0], [0], [1], [0, 0, 1, 1], [], []>} : vector<16x64xbf16>, vector<64x256xbf16>, vector<16x256xf32> -> vector<16x256xf32>
    %335 = arith.addf %327, %334 : vector<16x256xf32>
    %c0_283 = arith.constant 0 : index
    %c0_284 = arith.constant 0 : index
    %336 = vector.load %arg24[%c0_283, %c0_284] : memref<1x256xf32, #tpu.memory_space<vmem>>, vector<1x256xf32>
    %337 = vector.broadcast %336 : vector<1x256xf32> to vector<16x256xf32>
    %338 = arith.addf %335, %337 : vector<16x256xf32>
    %cst_285 = arith.constant 0.000000e+00 : f32
    %339 = vector.broadcast %cst_285 : f32 to vector<16x256xf32>
    %340 = arith.cmpf ogt, %338, %339 : vector<16x256xf32>
    %cst_286 = arith.constant 2.000000e-01 : f32
    %341 = vector.broadcast %cst_286 : f32 to vector<16x256xf32>
    %342 = arith.mulf %341, %338 : vector<16x256xf32>
    %343 = arith.select %340, %338, %342 : vector<16x256xi1>, vector<16x256xf32>
    %344 = arith.truncf %343 : vector<16x256xf32> to vector<16x256xbf16>
    %cst_287 = arith.constant 0.000000e+00 : f32
    %345 = vector.broadcast %cst_287 : f32 to vector<8x256xf32>
    %c0_288 = arith.constant 0 : index
    %c0_289 = arith.constant 0 : index
    %c0_290 = arith.constant 0 : index
    %346 = vector.load %arg25[%c0_288, %c0_289, %c0_290] : memref<4x8x16xbf16, #tpu.memory_space<vmem>>, vector<1x8x16xbf16>
    %347 = vector.shape_cast %346 : vector<1x8x16xbf16> to vector<8x16xbf16>
    %cst_291 = arith.constant dense<0.000000e+00> : vector<8x256xf32>
    %348 = tpu.matmul %347, %344, %cst_291 {dimension_numbers = #tpu.dot_dimension_numbers<[1], [0], [0], [1], [0, 0, 1, 1], [], []>} : vector<8x16xbf16>, vector<16x256xbf16>, vector<8x256xf32> -> vector<8x256xf32>
    %349 = arith.truncf %348 : vector<8x256xf32> to vector<8x256xbf16>
    %c0_292 = arith.constant 0 : index
    %c0_293 = arith.constant 0 : index
    %c0_294 = arith.constant 0 : index
    %350 = vector.load %arg26[%c0_292, %c0_293, %c0_294] : memref<4x256x256xbf16, #tpu.memory_space<vmem>>, vector<1x256x256xbf16>
    %351 = vector.shape_cast %350 : vector<1x256x256xbf16> to vector<256x256xbf16>
    %cst_295 = arith.constant dense<0.000000e+00> : vector<8x256xf32>
    %352 = tpu.matmul %349, %351, %cst_295 {dimension_numbers = #tpu.dot_dimension_numbers<[1], [0], [0], [1], [0, 0, 1, 1], [], []>} : vector<8x256xbf16>, vector<256x256xbf16>, vector<8x256xf32> -> vector<8x256xf32>
    %353 = arith.addf %345, %352 : vector<8x256xf32>
    %c1_296 = arith.constant 1 : index
    %c0_297 = arith.constant 0 : index
    %c0_298 = arith.constant 0 : index
    %354 = vector.load %arg25[%c1_296, %c0_297, %c0_298] : memref<4x8x16xbf16, #tpu.memory_space<vmem>>, vector<1x8x16xbf16>
    %355 = vector.shape_cast %354 : vector<1x8x16xbf16> to vector<8x16xbf16>
    %cst_299 = arith.constant dense<0.000000e+00> : vector<8x256xf32>
    %356 = tpu.matmul %355, %344, %cst_299 {dimension_numbers = #tpu.dot_dimension_numbers<[1], [0], [0], [1], [0, 0, 1, 1], [], []>} : vector<8x16xbf16>, vector<16x256xbf16>, vector<8x256xf32> -> vector<8x256xf32>
    %357 = arith.truncf %356 : vector<8x256xf32> to vector<8x256xbf16>
    %c1_300 = arith.constant 1 : index
    %c0_301 = arith.constant 0 : index
    %c0_302 = arith.constant 0 : index
    %358 = vector.load %arg26[%c1_300, %c0_301, %c0_302] : memref<4x256x256xbf16, #tpu.memory_space<vmem>>, vector<1x256x256xbf16>
    %359 = vector.shape_cast %358 : vector<1x256x256xbf16> to vector<256x256xbf16>
    %cst_303 = arith.constant dense<0.000000e+00> : vector<8x256xf32>
    %360 = tpu.matmul %357, %359, %cst_303 {dimension_numbers = #tpu.dot_dimension_numbers<[1], [0], [0], [1], [0, 0, 1, 1], [], []>} : vector<8x256xbf16>, vector<256x256xbf16>, vector<8x256xf32> -> vector<8x256xf32>
    %361 = arith.addf %353, %360 : vector<8x256xf32>
    %c2_304 = arith.constant 2 : index
    %c0_305 = arith.constant 0 : index
    %c0_306 = arith.constant 0 : index
    %362 = vector.load %arg25[%c2_304, %c0_305, %c0_306] : memref<4x8x16xbf16, #tpu.memory_space<vmem>>, vector<1x8x16xbf16>
    %363 = vector.shape_cast %362 : vector<1x8x16xbf16> to vector<8x16xbf16>
    %cst_307 = arith.constant dense<0.000000e+00> : vector<8x256xf32>
    %364 = tpu.matmul %363, %344, %cst_307 {dimension_numbers = #tpu.dot_dimension_numbers<[1], [0], [0], [1], [0, 0, 1, 1], [], []>} : vector<8x16xbf16>, vector<16x256xbf16>, vector<8x256xf32> -> vector<8x256xf32>
    %365 = arith.truncf %364 : vector<8x256xf32> to vector<8x256xbf16>
    %c2_308 = arith.constant 2 : index
    %c0_309 = arith.constant 0 : index
    %c0_310 = arith.constant 0 : index
    %366 = vector.load %arg26[%c2_308, %c0_309, %c0_310] : memref<4x256x256xbf16, #tpu.memory_space<vmem>>, vector<1x256x256xbf16>
    %367 = vector.shape_cast %366 : vector<1x256x256xbf16> to vector<256x256xbf16>
    %cst_311 = arith.constant dense<0.000000e+00> : vector<8x256xf32>
    %368 = tpu.matmul %365, %367, %cst_311 {dimension_numbers = #tpu.dot_dimension_numbers<[1], [0], [0], [1], [0, 0, 1, 1], [], []>} : vector<8x256xbf16>, vector<256x256xbf16>, vector<8x256xf32> -> vector<8x256xf32>
    %369 = arith.addf %361, %368 : vector<8x256xf32>
    %c3_312 = arith.constant 3 : index
    %c0_313 = arith.constant 0 : index
    %c0_314 = arith.constant 0 : index
    %370 = vector.load %arg25[%c3_312, %c0_313, %c0_314] : memref<4x8x16xbf16, #tpu.memory_space<vmem>>, vector<1x8x16xbf16>
    %371 = vector.shape_cast %370 : vector<1x8x16xbf16> to vector<8x16xbf16>
    %cst_315 = arith.constant dense<0.000000e+00> : vector<8x256xf32>
    %372 = tpu.matmul %371, %344, %cst_315 {dimension_numbers = #tpu.dot_dimension_numbers<[1], [0], [0], [1], [0, 0, 1, 1], [], []>} : vector<8x16xbf16>, vector<16x256xbf16>, vector<8x256xf32> -> vector<8x256xf32>
    %373 = arith.truncf %372 : vector<8x256xf32> to vector<8x256xbf16>
    %c3_316 = arith.constant 3 : index
    %c0_317 = arith.constant 0 : index
    %c0_318 = arith.constant 0 : index
    %374 = vector.load %arg26[%c3_316, %c0_317, %c0_318] : memref<4x256x256xbf16, #tpu.memory_space<vmem>>, vector<1x256x256xbf16>
    %375 = vector.shape_cast %374 : vector<1x256x256xbf16> to vector<256x256xbf16>
    %cst_319 = arith.constant dense<0.000000e+00> : vector<8x256xf32>
    %376 = tpu.matmul %373, %375, %cst_319 {dimension_numbers = #tpu.dot_dimension_numbers<[1], [0], [0], [1], [0, 0, 1, 1], [], []>} : vector<8x256xbf16>, vector<256x256xbf16>, vector<8x256xf32> -> vector<8x256xf32>
    %377 = arith.addf %369, %376 : vector<8x256xf32>
    %c0_320 = arith.constant 0 : index
    %c0_321 = arith.constant 0 : index
    %378 = vector.load %arg27[%c0_320, %c0_321] : memref<256x64xf32, #tpu.memory_space<vmem>>, vector<256x64xf32>
    %c0_322 = arith.constant 0 : index
    %c0_323 = arith.constant 0 : index
    %379 = vector.load %arg28[%c0_322, %c0_323] : memref<64x256xf32, #tpu.memory_space<vmem>>, vector<64x256xf32>
    %cst_324 = arith.constant dense<0.000000e+00> : vector<256xf32>
    %380 = vector.multi_reduction <add>, %377, %cst_324 [0] : vector<8x256xf32> to vector<256xf32>
    %381 = vector.shape_cast %380 : vector<256xf32> to vector<1x256xf32>
    %382 = arith.mulf %377, %377 : vector<8x256xf32>
    %cst_325 = arith.constant dense<0.000000e+00> : vector<256xf32>
    %383 = vector.multi_reduction <add>, %382, %cst_325 [0] : vector<8x256xf32> to vector<256xf32>
    %384 = vector.shape_cast %383 : vector<256xf32> to vector<1x256xf32>
    %cst_326 = arith.constant dense<0.000000e+00> : vector<1x64xf32>
    %385 = tpu.matmul %381, %378, %cst_326 {dimension_numbers = #tpu.dot_dimension_numbers<[1], [0], [0], [1], [0, 0, 1, 1], [], []>} : vector<1x256xf32>, vector<256x64xf32>, vector<1x64xf32> -> vector<1x64xf32>
    %cst_327 = arith.constant 3.125000e-02 : f32
    %386 = vector.broadcast %cst_327 : f32 to vector<1x64xf32>
    %387 = arith.mulf %385, %386 : vector<1x64xf32>
    %cst_328 = arith.constant dense<0.000000e+00> : vector<1x64xf32>
    %388 = tpu.matmul %384, %378, %cst_328 {dimension_numbers = #tpu.dot_dimension_numbers<[1], [0], [0], [1], [0, 0, 1, 1], [], []>} : vector<1x256xf32>, vector<256x64xf32>, vector<1x64xf32> -> vector<1x64xf32>
    %cst_329 = arith.constant 3.125000e-02 : f32
    %389 = vector.broadcast %cst_329 : f32 to vector<1x64xf32>
    %390 = arith.mulf %388, %389 : vector<1x64xf32>
    %391 = arith.mulf %387, %387 : vector<1x64xf32>
    %392 = arith.subf %390, %391 : vector<1x64xf32>
    %cst_330 = arith.constant 9.99999974E-6 : f32
    %393 = vector.broadcast %cst_330 : f32 to vector<1x64xf32>
    %394 = arith.addf %392, %393 : vector<1x64xf32>
    %395 = math.rsqrt %394 : vector<1x64xf32>
    %cst_331 = arith.constant dense<0.000000e+00> : vector<1x256xf32>
    %396 = tpu.matmul %387, %379, %cst_331 {dimension_numbers = #tpu.dot_dimension_numbers<[1], [0], [0], [1], [0, 0, 1, 1], [], []>} : vector<1x64xf32>, vector<64x256xf32>, vector<1x256xf32> -> vector<1x256xf32>
    %cst_332 = arith.constant dense<0.000000e+00> : vector<1x256xf32>
    %397 = tpu.matmul %395, %379, %cst_332 {dimension_numbers = #tpu.dot_dimension_numbers<[1], [0], [0], [1], [0, 0, 1, 1], [], []>} : vector<1x64xf32>, vector<64x256xf32>, vector<1x256xf32> -> vector<1x256xf32>
    %398 = vector.broadcast %396 : vector<1x256xf32> to vector<8x256xf32>
    %399 = arith.subf %377, %398 : vector<8x256xf32>
    %400 = vector.broadcast %397 : vector<1x256xf32> to vector<8x256xf32>
    %401 = arith.mulf %399, %400 : vector<8x256xf32>
    %cst_333 = arith.constant 0.000000e+00 : f32
    %402 = vector.broadcast %cst_333 : f32 to vector<8x256xf32>
    %403 = arith.cmpf ogt, %401, %402 : vector<8x256xf32>
    %cst_334 = arith.constant 2.000000e-01 : f32
    %404 = vector.broadcast %cst_334 : f32 to vector<8x256xf32>
    %405 = arith.mulf %404, %401 : vector<8x256xf32>
    %406 = arith.select %403, %401, %405 : vector<8x256xi1>, vector<8x256xf32>
    %407 = arith.truncf %406 : vector<8x256xf32> to vector<8x256xbf16>
    %cst_335 = arith.constant 0.000000e+00 : f32
    %408 = vector.broadcast %cst_335 : f32 to vector<2x32xf32>
    %c0_336 = arith.constant 0 : index
    %c0_337 = arith.constant 0 : index
    %c0_338 = arith.constant 0 : index
    %409 = vector.load %arg29[%c0_336, %c0_337, %c0_338] : memref<4x2x8xbf16, #tpu.memory_space<vmem>>, vector<1x2x8xbf16>
    %410 = vector.shape_cast %409 : vector<1x2x8xbf16> to vector<2x8xbf16>
    %cst_339 = arith.constant dense<0.000000e+00> : vector<2x256xf32>
    %411 = tpu.matmul %410, %407, %cst_339 {dimension_numbers = #tpu.dot_dimension_numbers<[1], [0], [0], [1], [0, 0, 1, 1], [], []>} : vector<2x8xbf16>, vector<8x256xbf16>, vector<2x256xf32> -> vector<2x256xf32>
    %412 = arith.truncf %411 : vector<2x256xf32> to vector<2x256xbf16>
    %c0_340 = arith.constant 0 : index
    %c0_341 = arith.constant 0 : index
    %c0_342 = arith.constant 0 : index
    %413 = vector.load %arg30[%c0_340, %c0_341, %c0_342] : memref<4x256x32xbf16, #tpu.memory_space<vmem>>, vector<1x256x32xbf16>
    %414 = vector.shape_cast %413 : vector<1x256x32xbf16> to vector<256x32xbf16>
    %cst_343 = arith.constant dense<0.000000e+00> : vector<2x32xf32>
    %415 = tpu.matmul %412, %414, %cst_343 {dimension_numbers = #tpu.dot_dimension_numbers<[1], [0], [0], [1], [0, 0, 1, 1], [], []>} : vector<2x256xbf16>, vector<256x32xbf16>, vector<2x32xf32> -> vector<2x32xf32>
    %416 = arith.addf %408, %415 : vector<2x32xf32>
    %c1_344 = arith.constant 1 : index
    %c0_345 = arith.constant 0 : index
    %c0_346 = arith.constant 0 : index
    %417 = vector.load %arg29[%c1_344, %c0_345, %c0_346] : memref<4x2x8xbf16, #tpu.memory_space<vmem>>, vector<1x2x8xbf16>
    %418 = vector.shape_cast %417 : vector<1x2x8xbf16> to vector<2x8xbf16>
    %cst_347 = arith.constant dense<0.000000e+00> : vector<2x256xf32>
    %419 = tpu.matmul %418, %407, %cst_347 {dimension_numbers = #tpu.dot_dimension_numbers<[1], [0], [0], [1], [0, 0, 1, 1], [], []>} : vector<2x8xbf16>, vector<8x256xbf16>, vector<2x256xf32> -> vector<2x256xf32>
    %420 = arith.truncf %419 : vector<2x256xf32> to vector<2x256xbf16>
    %c1_348 = arith.constant 1 : index
    %c0_349 = arith.constant 0 : index
    %c0_350 = arith.constant 0 : index
    %421 = vector.load %arg30[%c1_348, %c0_349, %c0_350] : memref<4x256x32xbf16, #tpu.memory_space<vmem>>, vector<1x256x32xbf16>
    %422 = vector.shape_cast %421 : vector<1x256x32xbf16> to vector<256x32xbf16>
    %cst_351 = arith.constant dense<0.000000e+00> : vector<2x32xf32>
    %423 = tpu.matmul %420, %422, %cst_351 {dimension_numbers = #tpu.dot_dimension_numbers<[1], [0], [0], [1], [0, 0, 1, 1], [], []>} : vector<2x256xbf16>, vector<256x32xbf16>, vector<2x32xf32> -> vector<2x32xf32>
    %424 = arith.addf %416, %423 : vector<2x32xf32>
    %c2_352 = arith.constant 2 : index
    %c0_353 = arith.constant 0 : index
    %c0_354 = arith.constant 0 : index
    %425 = vector.load %arg29[%c2_352, %c0_353, %c0_354] : memref<4x2x8xbf16, #tpu.memory_space<vmem>>, vector<1x2x8xbf16>
    %426 = vector.shape_cast %425 : vector<1x2x8xbf16> to vector<2x8xbf16>
    %cst_355 = arith.constant dense<0.000000e+00> : vector<2x256xf32>
    %427 = tpu.matmul %426, %407, %cst_355 {dimension_numbers = #tpu.dot_dimension_numbers<[1], [0], [0], [1], [0, 0, 1, 1], [], []>} : vector<2x8xbf16>, vector<8x256xbf16>, vector<2x256xf32> -> vector<2x256xf32>
    %428 = arith.truncf %427 : vector<2x256xf32> to vector<2x256xbf16>
    %c2_356 = arith.constant 2 : index
    %c0_357 = arith.constant 0 : index
    %c0_358 = arith.constant 0 : index
    %429 = vector.load %arg30[%c2_356, %c0_357, %c0_358] : memref<4x256x32xbf16, #tpu.memory_space<vmem>>, vector<1x256x32xbf16>
    %430 = vector.shape_cast %429 : vector<1x256x32xbf16> to vector<256x32xbf16>
    %cst_359 = arith.constant dense<0.000000e+00> : vector<2x32xf32>
    %431 = tpu.matmul %428, %430, %cst_359 {dimension_numbers = #tpu.dot_dimension_numbers<[1], [0], [0], [1], [0, 0, 1, 1], [], []>} : vector<2x256xbf16>, vector<256x32xbf16>, vector<2x32xf32> -> vector<2x32xf32>
    %432 = arith.addf %424, %431 : vector<2x32xf32>
    %c3_360 = arith.constant 3 : index
    %c0_361 = arith.constant 0 : index
    %c0_362 = arith.constant 0 : index
    %433 = vector.load %arg29[%c3_360, %c0_361, %c0_362] : memref<4x2x8xbf16, #tpu.memory_space<vmem>>, vector<1x2x8xbf16>
    %434 = vector.shape_cast %433 : vector<1x2x8xbf16> to vector<2x8xbf16>
    %cst_363 = arith.constant dense<0.000000e+00> : vector<2x256xf32>
    %435 = tpu.matmul %434, %407, %cst_363 {dimension_numbers = #tpu.dot_dimension_numbers<[1], [0], [0], [1], [0, 0, 1, 1], [], []>} : vector<2x8xbf16>, vector<8x256xbf16>, vector<2x256xf32> -> vector<2x256xf32>
    %436 = arith.truncf %435 : vector<2x256xf32> to vector<2x256xbf16>
    %c3_364 = arith.constant 3 : index
    %c0_365 = arith.constant 0 : index
    %c0_366 = arith.constant 0 : index
    %437 = vector.load %arg30[%c3_364, %c0_365, %c0_366] : memref<4x256x32xbf16, #tpu.memory_space<vmem>>, vector<1x256x32xbf16>
    %438 = vector.shape_cast %437 : vector<1x256x32xbf16> to vector<256x32xbf16>
    %cst_367 = arith.constant dense<0.000000e+00> : vector<2x32xf32>
    %439 = tpu.matmul %436, %438, %cst_367 {dimension_numbers = #tpu.dot_dimension_numbers<[1], [0], [0], [1], [0, 0, 1, 1], [], []>} : vector<2x256xbf16>, vector<256x32xbf16>, vector<2x32xf32> -> vector<2x32xf32>
    %440 = arith.addf %432, %439 : vector<2x32xf32>
    %c0_368 = arith.constant 0 : index
    %c0_369 = arith.constant 0 : index
    %441 = vector.load %arg31[%c0_368, %c0_369] : memref<1x32xf32, #tpu.memory_space<vmem>>, vector<1x32xf32>
    %442 = vector.broadcast %441 : vector<1x32xf32> to vector<2x32xf32>
    %443 = arith.addf %440, %442 : vector<2x32xf32>
    %c0_370 = arith.constant 0 : index
    %c0_371 = arith.constant 0 : index
    %444 = vector.load %arg34[%c0_370, %c0_371] : memref<2x32xf32, #tpu.memory_space<vmem>>, vector<2x32xf32>
    tpu.vector_store %arg34[%c0_370, %c0_371], %443 {strides = array<i32>} : memref<2x32xf32, #tpu.memory_space<vmem>>, vector<2x32xf32>,
    return
  }
}

</mosaic_0001>

<bundles_post_ra>
// kernel: reconstructor_fwd.1
= control target key start
LH: loop header
LB: loop body
LE: loop exit
PB: predicated region body
PF: predicated region fallthrough
CT: control target
= control target key end

     0   :  { %s12578_s6 = smov 1   ;;  %s12579_s10 = smov 2   ;;  %s14028_s0 = inlined_call_operand.smem [shape: u32[35], index: -1, kind: input, shape index: {}] }
   0x1   :  { %s12626_s5 = sld [smem:[%s14028_s0]]   ;;  %s12580_s14 = smov 3  }
   0x2   :  { %s12631_s9 = sld [smem:[%s14028_s0 + %s12578_s6]]   ;;  %s12581_s18 = smov 4  }
   0x3   :  { %s12636_s13 = sld [smem:[%s14028_s0 + %s12579_s10]]   ;;  %s12582_s22 = smov 5  }
   0x4   :  { %s12641_s17 = sld [smem:[%s14028_s0 + %s12580_s14]]   ;;  %s12583_s26 = smov 6  }
   0x5   :  { %s12646_s21 = sld [smem:[%s14028_s0 + %s12581_s18]]   ;;  %s12584_s30 = smov 7  }
   0x6   :  { %s12651_s25 = sld [smem:[%s14028_s0 + %s12582_s22]]   ;;  %s12585_s4 = smov 8  }
   0x7   :  { %s12656_s29 = sld [smem:[%s14028_s0 + %s12583_s26]]   ;;  %s12586_s10 = smov 9  }
   0x8   :  { %s12661_s3 = sld [smem:[%s14028_s0 + %s12584_s30]]   ;;  %s12587_s15 = smov 10  }
   0x9   :  { %s12666_s8 = sld [smem:[%s14028_s0 + %s12585_s4]]   ;;  %s12588_s20 = smov 11  }
   0xa   :  { %s12671_s14 = sld [smem:[%s14028_s0 + %s12586_s10]]   ;;  %s12589_s26 = smov 12  }
   0xb   :  { %s12676_s19 = sld [smem:[%s14028_s0 + %s12587_s15]]   ;;  %s12590_s1 = smov 13  }
   0xc   :  { %s12681_s24 = sld [smem:[%s14028_s0 + %s12588_s20]]   ;;  %s12591_s7 = smov 14  }
   0xd   :  { %s12686_s30 = sld [smem:[%s14028_s0 + %s12589_s26]]   ;;  %s12592_s15 = smov 15  }
   0xe   :  { %s12691_s6 = sld [smem:[%s14028_s0 + %s12590_s1]]   ;;  %s12593_s22 = smov 16  }
   0xf   :  { %s12696_s12 = sld [smem:[%s14028_s0 + %s12591_s7]]   ;;  %s12594_s28 = smov 17  }
  0x10   :  { %s12701_s20 = sld [smem:[%s14028_s0 + %s12592_s15]]   ;;  %s12595_s7 = smov 18  }
  0x11   :  { %s12706_s27 = sld [smem:[%s14028_s0 + %s12593_s22]]   ;;  %s12596_s15 = smov 19  }
  0x12   :  { %14044 = sst [smem:[#allocation14_spill]] %s12681_s24  ;;  %s12597_s22 = smov 20  }
  0x13   :  { %s12711_s4 = sld [smem:[%s14028_s0 + %s12594_s28]]   ;;  %s12598_s28 = smov 21  }
  0x14   :  { %14045 = sst [smem:[#allocation15_spill]] %s12691_s6 }
  0x15   :  { %14046 = sst [smem:[#allocation16_spill]] %s12696_s12 }
  0x16   :  { %14047 = sst [smem:[#allocation17_spill]] %s12701_s20 }
  0x17   :  { %s12716_s12 = sld [smem:[%s14028_s0 + %s12595_s7]]   ;;  %s12599_s7 = smov 22  }
  0x18   :  { %s12721_s20 = sld [smem:[%s14028_s0 + %s12596_s15]]   ;;  %s12600_s15 = smov 23  }
  0x19   :  { %14048 = sst [smem:[#allocation18_spill]] %s12711_s4 }
  0x1a   :  { %s12726_s6 = sld [smem:[%s14028_s0 + %s12597_s22]]   ;;  %s12601_s22 = smov 24  }
  0x1b   :  { %s12731_s4 = sld [smem:[%s14028_s0 + %s12598_s28]]   ;;  %s12602_s28 = smov 25  }
  0x1d   :  { %14049 = sst [smem:[#allocation19_spill]] %s12716_s12 }
  0x1e   :  { %14050 = sst [smem:[#allocation20_spill]] %s12721_s20 }
  0x1f   :  { %s12736_s12 = sld [smem:[%s14028_s0 + %s12599_s7]]   ;;  %s12603_s7 = smov 26  }
  0x20   :  { %14051 = sst [smem:[#allocation21_spill]] %s12726_s6 }
  0x21   :  { %14052 = sst [smem:[#allocation22_spill]] %s12731_s4 }
  0x22   :  { %s12741_s20 = sld [smem:[%s14028_s0 + %s12600_s15]]   ;;  %s12604_s15 = smov 27  }
  0x23   :  { %s12746_s6 = sld [smem:[%s14028_s0 + %s12601_s22]]   ;;  %s12605_s22 = smov 28  }
  0x24   :  { %s12751_s4 = sld [smem:[%s14028_s0 + %s12602_s28]]   ;;  %s12606_s28 = smov 29  }
  0x25   :  { %14053 = sst [smem:[#allocation23_spill]] %s12736_s12 }
  0x26   :  { %s12756_s12 = sld [smem:[%s14028_s0 + %s12603_s7]]   ;;  %s12607_s7 = smov 30  }
  0x27   :  { %s12776_s24 = sld [smem:[%s14028_s0 + %s12607_s7]]   ;;  %s12611_s7 = smov 34  }
  0x28   :  { %14054 = sst [smem:[#allocation24_spill]] %s12741_s20 }
  0x29   :  { %14055 = sst [smem:[#allocation25_spill]] %s12746_s6 }
  0x2a   :  { %14056 = sst [smem:[#allocation26_spill]] %s12751_s4 }
  0x2b   :  { %s12761_s20 = sld [smem:[%s14028_s0 + %s12604_s15]]   ;;  %s12608_s15 = smov 31  }
  0x2c   :  { %s12766_s6 = sld [smem:[%s14028_s0 + %s12605_s22]]   ;;  %s12609_s22 = smov 32  }
  0x2d   :  { %s12771_s4 = sld [smem:[%s14028_s0 + %s12606_s28]]   ;;  %s12610_s28 = smov 33  }
  0x2e   :  { %14060 = sst [smem:[#allocation30_spill]] %s12776_s24 }
  0x2f   :  { %s12796_s24 = sld [smem:[%s14028_s0 + %s12611_s7]]  }
  0x31   :  { %14057 = sst [smem:[#allocation27_spill]] %s12761_s20 }
  0x32   :  { %14058 = sst [smem:[#allocation28_spill]] %s12766_s6 }
  0x33   :  { %14059 = sst [smem:[#allocation29_spill]] %s12771_s4 }
  0x34   :  { %s12781_s20 = sld [smem:[%s14028_s0 + %s12608_s15]]  }
  0x35   :  { %s12786_s6 = sld [smem:[%s14028_s0 + %s12609_s22]]  }
  0x36   :  { %s12791_s4 = sld [smem:[%s14028_s0 + %s12610_s28]]  }
  0x37   :  { %75 = vsyncpa [#allocation3], 0 }
  0x38   :  { %76 = vsyncpa [#allocation6], 0 }
  0x39   :  { %77 = vsyncpa [#allocation4], 0 }
  0x3a   :  { %78 = vsyncpa [#allocation9], 0  ;;  %s115_s15 = sshll.u32 %s12706_s27, 4  ;;  %s12612_s16 = smov [#allocation2]   ;;  %s116_s15 = int_to_ptr.hbm [resolvable:$true] %s115_s15 }
  0x3b   :  { %s117_s18 = sshll.u32 %s12612_s16, 4  ;;  %s146_s22 = sshll.u32 %s12756_s12, 4  ;;  %s118_s18 = int_to_ptr.vmem [resolvable:$true] %s117_s18  ;;  %s147_s22 = int_to_ptr.hbm [resolvable:$true] %s146_s22 }
  0x3c   :  { %s12474_s23 = sshra.s32 %s116_s15, 4  ;;  %s12478_s0 = scalar_lea.hbm %s12706_s27, 1024  ;;  %s12475_s23 = int_to_ptr.hbm [resolvable:$true] %s12474_s23 }
  0x3d   :  { %s12476_s26 = scalar_lea.hbm %s12475_s23, 1024  ;;  %p12479_p1 = scmp.lt.s32.totalorder %s12475_s23, %s12706_s27 }
  0x3e   :  { %p12477_p0 = scmp.ne.s32.totalorder %s12475_s23, %s12476_s26  ;;  %p12480_p2 = scmp.lt.s32.totalorder %s12478_s0, %s12476_s26 }
  0x40   :  { %p12481_p3 = por %p12480_p2, %p12479_p1 }
  0x42   :  { %p12482_p4 = pnand %p12481_p3, %p12477_p0 }
  0x44   :  { %12485 = shalt.err (!%p12482_p4)
}
  0x45   :  { %s12613_s28 = smov 128   ;;  %s12614_s1 = smov 8  }
  0x46   :  { %123 = dma.hbm_to_vmem [thread:$0]  %s116_s15, 16384, %s118_s18, [#allocation3], %s12613_s28, %s12613_s28, %s12614_s1  }
  0x47   :  { %s12615_s2 = smov [#allocation5]   ;;  %s12498_s10 = sshra.s32 %s147_s22, 4  ;;  %s12499_s10 = int_to_ptr.hbm [resolvable:$true] %s12498_s10 }
  0x48   :  { %s148_s7 = sshll.u32 %s12615_s2, 4  ;;  %s12500_s11 = scalar_lea.hbm %s12499_s10, 1024  ;;  %s149_s7 = int_to_ptr.vmem [resolvable:$true] %s148_s7 }
  0x49   :  { %p12501_p5 = scmp.ne.s32.totalorder %s12499_s10, %s12500_s11  ;;  %s12502_s16 = scalar_lea.hbm %s12756_s12, 1024 }
  0x4a   :  { %p12503_p6 = scmp.lt.s32.totalorder %s12499_s10, %s12756_s12  ;;  %p12504_p7 = scmp.lt.s32.totalorder %s12502_s16, %s12500_s11 }
  0x4c   :  { %p12505_p8 = por %p12504_p7, %p12503_p6 }
  0x4e   :  { %p12506_p9 = pnand %p12505_p8, %p12501_p5 }
  0x50   :  { %12509 = shalt.err (!%p12506_p9)
}
  0x51   :  { %154 = dma.hbm_to_vmem [thread:$0]  %s147_s22, 16384, %s149_s7, [#allocation6], %s12613_s28, %s12613_s28, %s12614_s1  }
  0x52   :  { %12570 = dma.done.wait [#allocation3], 16384  }
  0x53   :  { %12571 = vsyncadd [#allocation3], 4294950912 }
  0x54   :  { %12572 = dma.done.wait [#allocation6], 16384  }
  0x55   :  { %12573 = vsyncadd [#allocation6], 4294950912  ;;  %v12805_v0 = vld [vmem:[%s12626_s5 + $0x8] sm:$0xff]  ;;  %v12808_v1 = vld [vmem:[%s12626_s5] sm:$0xff]  ;;  %vm197_vm0 = vcmask 261120   ;;  %vm299_vm1 = vcmask 523264  }
  0x56   :  { %v8482_v2 = vld [vmem:[%s12636_s13 + $0x70] sm:$0xf]  ;;  %241 = vmatpush.bf16.msra.mxu1 %v12805_v0  ;;  %419 = vmatpush.bf16.msra.mxu2 %v12805_v0  ;;  %v11756_v3 = vld [vmem:[%s12636_s13 + $0x74] sm:$0xf0]  ;;  %v11755_v4 = vld [vmem:[%s12636_s13 + $0x74] sm:$0xf] }
  0x57   :  { %v8484_v5 = vld [vmem:[%s12636_s13 + $0x78] sm:$0xf0]  ;;  %207 = vmatpush.bf16.msra.mxu0 %v12805_v0  ;;  %v8483_v7 = vor.u32 %v11756_v3, %v8482_v2  ;;  %v11748_v8 = vld [vmem:[%s12631_s9 + $0x8] sm:$0xff]  ;;  %v11757_v9 = vld [vmem:[%s12631_s9 + $0x10] sm:$0xff]  ;;  %vm647_vm6 = vcmask 130048   ;;  %vm2037_vm12 = vcmask 1043456  }
  0x58   :  { %v8487_v6 = vor.u32 %v11755_v4, %v8484_v5  ;;  %v11739_v10 = vld [vmem:[%s12631_s9] sm:$0xff]  ;;  %v11754_v12 = vld [vmem:[%s12636_s13 + $0x64] sm:$0xf0]  ;;  %v8476_v15 = vld [vmem:[%s12636_s13 + $0x68] sm:$0xf0]  ;;  %vm2033_vm13 = vcmask 64512  }
  0x59   :  { %v8474_v11 = vld [vmem:[%s12636_s13 + $0x60] sm:$0xf]  ;;  %v11753_v13 = vld [vmem:[%s12636_s13 + $0x64] sm:$0xf]  ;;  %v8466_v17 = vld [vmem:[%s12636_s13 + $0x50] sm:$0xf] }
  0x5a   :  { %242 = vmatpush.bf16.msra.mxu1 %v12808_v1  ;;  %420 = vmatpush.bf16.msra.mxu2 %v12808_v1  ;;  %v8475_v14 = vor.u32 %v11754_v12, %v8474_v11  ;;  %v8479_v16 = vor.u32 %v11753_v13, %v8476_v15  ;;  %v11752_v18 = vld [vmem:[%s12636_s13 + $0x54] sm:$0xf0]  ;;  %v11751_v19 = vld [vmem:[%s12636_s13 + $0x54] sm:$0xf]  ;;  %v8468_v21 = vld [vmem:[%s12636_s13 + $0x58] sm:$0xf0] }
  0x5b   :  { %208 = vmatpush.bf16.msra.mxu0 %v12808_v1  ;;  %v8467_v20 = vor.u32 %v11752_v18, %v8466_v17  ;;  %v8471_v22 = vor.u32 %v11751_v19, %v8468_v21  ;;  %v8458_v23 = vld [vmem:[%s12636_s13 + $0x40] sm:$0xf]  ;;  %v11750_v24 = vld [vmem:[%s12636_s13 + $0x44] sm:$0xf0]  ;;  %v11749_v25 = vld [vmem:[%s12636_s13 + $0x44] sm:$0xf] }
  0x5c   :  { %v8459_v26 = vor.u32 %v11750_v24, %v8458_v23  ;;  %v8460_v27 = vld [vmem:[%s12636_s13 + $0x48] sm:$0xf0]  ;;  %v8565_v28 = vld [vmem:[%s12636_s13 + $0xb0] sm:$0xf]  ;;  %v11765_v29 = vld [vmem:[%s12636_s13 + $0xb4] sm:$0xf0] }
  0x5d   :  { %8447 = vmatmul.msk.bf16.vlgmr.msra.gmra.mxu1 %vm197_vm0, %v11748_v8  ;;  %8530 = vmatmul.msk.bf16.vlgmr.msra.gmra.mxu2 %vm197_vm0, %v11757_v9  ;;  %v8463_v30 = vor.u32 %v11749_v25, %v8460_v27  ;;  %v8566_v31 = vor.u32 %v11765_v29, %v8565_v28  ;;  %v8516_v32 = vld [vmem:[%s12636_s13 + $0x30] sm:$0xf]  ;;  %v11747_v33 = vld [vmem:[%s12636_s13 + $0x34] sm:$0xf0]  ;;  %v11746_v35 = vld [vmem:[%s12636_s13 + $0x34] sm:$0xf] }
  0x5e   :  { %321 = vmatpush.bf16.msrb.mxu1 %v8487_v6  ;;  %8440 = vmatmul.msk.bf16.vlgmr.msra.gmra.mxu0 %vm197_vm0, %v11739_v10  ;;  %v8517_v34 = vor.u32 %v11747_v33, %v8516_v32  ;;  %v8518_v36 = vld [vmem:[%s12636_s13 + $0x38] sm:$0xf0]  ;;  %v8557_v37 = vld [vmem:[%s12636_s13 + $0xa0] sm:$0xf]  ;;  %v11763_v39 = vld [vmem:[%s12636_s13 + $0xa4] sm:$0xf0] }
  0x5f   :  { %307 = vmatpush.bf16.msrb.mxu0 %v8483_v7  ;;  %484 = vmatpush.bf16.msra.mxu3 %v8566_v31  ;;  %v8521_v38 = vor.u32 %v11746_v35, %v8518_v36  ;;  %v8508_v40 = vld [vmem:[%s12636_s13 + $0x20] sm:$0xf]  ;;  %v11745_v41 = vld [vmem:[%s12636_s13 + $0x24] sm:$0xf0]  ;;  %v8558_v42 = vor.u32 %v11763_v39, %v8557_v37  ;;  %v11744_v44 = vld [vmem:[%s12636_s13 + $0x24] sm:$0xf] }
  0x60   :  { %v8509_v43 = vor.u32 %v11745_v41, %v8508_v40  ;;  %v8510_v45 = vld [vmem:[%s12636_s13 + $0x28] sm:$0xf0]  ;;  %v8549_v46 = vld [vmem:[%s12636_s13 + $0x90] sm:$0xf]  ;;  %v11761_v48 = vld [vmem:[%s12636_s13 + $0x94] sm:$0xf0] }
  0x61   :  { %v8513_v47 = vor.u32 %v11744_v44, %v8510_v45  ;;  %v8500_v49 = vld [vmem:[%s12636_s13 + $0x10] sm:$0xf]  ;;  %v11743_v50 = vld [vmem:[%s12636_s13 + $0x14] sm:$0xf0]  ;;  %v8550_v51 = vor.u32 %v11761_v48, %v8549_v46  ;;  %v11742_v52 = vld [vmem:[%s12636_s13 + $0x14] sm:$0xf] }
  0x62   :  { %322 = vmatpush.bf16.msrb.mxu1 %v8479_v16  ;;  %v8502_v53 = vld [vmem:[%s12636_s13 + $0x18] sm:$0xf0]  ;;  %v8541_v54 = vld [vmem:[%s12636_s13 + $0x80] sm:$0xf]  ;;  %v11759_v55 = vld [vmem:[%s12636_s13 + $0x84] sm:$0xf0]  ;;  %v8501_v56 = vor.u32 %v11743_v50, %v8500_v49 }
  0x63   :  { %308 = vmatpush.bf16.msrb.mxu0 %v8475_v14  ;;  %485 = vmatpush.bf16.msra.mxu3 %v8558_v42  ;;  %v8505_v57 = vor.u32 %v11742_v52, %v8502_v53  ;;  %v8492_v58 = vld [vmem:[%s12636_s13] sm:$0xf]  ;;  %v11741_v59 = vld [vmem:[%s12636_s13 + $0x4] sm:$0xf0]  ;;  %v8542_v60 = vor.u32 %v11759_v55, %v8541_v54  ;;  %v11740_v61 = vld [vmem:[%s12636_s13 + $0x4] sm:$0xf] }
  0x64   :  { %v8494_v62 = vld [vmem:[%s12636_s13 + $0x8] sm:$0xf0]  ;;  %v8493_v63 = vor.u32 %v11741_v59, %v8492_v58  ;;  %v11764_v4 = vld [vmem:[%s12636_s13 + $0xb4] sm:$0xf]  ;;  %v8567_v5 = vld [vmem:[%s12636_s13 + $0xb8] sm:$0xf0] }
  0x65   :  { %v8497_v2 = vor.u32 %v11740_v61, %v8494_v62  ;;  %v8570_v8 = vor.u32 %v11764_v4, %v8567_v5  ;;  %v11762_v10 = vld [vmem:[%s12636_s13 + $0xa4] sm:$0xf]  ;;  %v8559_v11 = vld [vmem:[%s12636_s13 + $0xa8] sm:$0xf0]  ;;  %v11760_v14 = vld [vmem:[%s12636_s13 + $0x94] sm:$0xf] }
  0x66   :  { %323 = vmatpush.bf16.msrb.mxu1 %v8471_v22  ;;  %v8562_v13 = vor.u32 %v11762_v10, %v8559_v11  ;;  %v8551_v15 = vld [vmem:[%s12636_s13 + $0x98] sm:$0xf0]  ;;  %v11758_v19 = vld [vmem:[%s12636_s13 + $0x84] sm:$0xf]  ;;  %v8614_v23 = vld [vmem:[%s12636_s13 + $0xf0] sm:$0xf] }
  0x67   :  { %309 = vmatpush.bf16.msrb.mxu0 %v8467_v20  ;;  %486 = vmatpush.bf16.msra.mxu3 %v8550_v51  ;;  %v8554_v18 = vor.u32 %v11760_v14, %v8551_v15  ;;  %v8543_v20 = vld [vmem:[%s12636_s13 + $0x88] sm:$0xf0]  ;;  %v11774_v24 = vld [vmem:[%s12636_s13 + $0xf4] sm:$0xf0]  ;;  %v11773_v25 = vld [vmem:[%s12636_s13 + $0xf4] sm:$0xf] }
  0x68   :  { %v8546_v21 = vor.u32 %v11758_v19, %v8543_v20  ;;  %v8616_v27 = vld [vmem:[%s12636_s13 + $0xf8] sm:$0xf0]  ;;  %v8606_v29 = vld [vmem:[%s12636_s13 + $0xe0] sm:$0xf]  ;;  %v11771_v31 = vld [vmem:[%s12636_s13 + $0xe4] sm:$0xf] }
  0x69   :  { %v8619_v28 = vor.u32 %v11773_v25, %v8616_v27  ;;  %v8608_v33 = vld [vmem:[%s12636_s13 + $0xe8] sm:$0xf0]  ;;  %v8598_v36 = vld [vmem:[%s12636_s13 + $0xd0] sm:$0xf]  ;;  %v11770_v37 = vld [vmem:[%s12636_s13 + $0xd4] sm:$0xf0] }
  0x6a   :  { %324 = vmatpush.bf16.msrb.mxu1 %v8463_v30  ;;  %v11772_v30 = vld [vmem:[%s12636_s13 + $0xe4] sm:$0xf0]  ;;  %v8599_v39 = vor.u32 %v11770_v37, %v8598_v36  ;;  %v8600_v40 = vld [vmem:[%s12636_s13 + $0xd8] sm:$0xf0]  ;;  %v8590_v42 = vld [vmem:[%s12636_s13 + $0xc0] sm:$0xf] }
  0x6b   :  { %310 = vmatpush.bf16.msrb.mxu0 %v8459_v26  ;;  %487 = vmatpush.bf16.msra.mxu3 %v8542_v60  ;;  %v8615_v26 = vor.u32 %v11774_v24, %v8614_v23  ;;  %v8607_v32 = vor.u32 %v11772_v30, %v8606_v29  ;;  %v11767_v44 = vld [vmem:[%s12636_s13 + $0xc4] sm:$0xf]  ;;  %v8592_v46 = vld [vmem:[%s12636_s13 + $0xc8] sm:$0xf0]  ;;  %v8717_v23 = vld [vmem:[%s12651_s25 + $0x170] sm:$0xf] }
  0x6c   :  { %v11822_v24 = vld [vmem:[%s12651_s25 + $0x174] sm:$0xf0]  ;;  %v8781_v25 = vld [vmem:[%s12651_s25 + $0x1f0] sm:$0xf]  ;;  %vm2797_vm14 = vcmask 254976   ;;  %s14061_s5 = sld [smem:[#allocation14_spill]] }
  0x6d   :  { %594 = vmatpush.bf16.msrb.mxu2 %v8615_v26  ;;  %v11838_v26 = vld [vmem:[%s12651_s25 + $0x1f4] sm:$0xf0]  ;;  %v8718_v37 = vor.u32 %v11822_v24, %v8717_v23  ;;  %vm2805_vm15 = vcmask 1040384   ;;  %s14074_s12 = sld [smem:[#allocation27_spill]]  ;;  %s12616_s22 = smov [#allocation7]  }
  0x6e   :  { %392 = vmatpush.bf16.msra.mxu1 %v8521_v38  ;;  %v11769_v38 = vld [vmem:[%s12636_s13 + $0xd4] sm:$0xf]  ;;  %s14075_s27 = sld [smem:[#allocation28_spill]]  ;;  %s8363_s23 = sshll.u32 %s12616_s22, 4  ;;  %s8364_s23 = int_to_ptr.vmem [resolvable:$true] %s8363_s23 }
  0x6f   :  { %378 = vmatpush.bf16.msra.mxu0 %v8517_v34  ;;  %608 = vmatpush.bf16.msrb.mxu3 %v8619_v28  ;;  %v8611_v34 = vor.u32 %v11771_v31, %v8608_v33  ;;  %v8603_v41 = vor.u32 %v11769_v38, %v8600_v40  ;;  %v11821_v33 = vld [vmem:[%s12651_s25 + $0x174] sm:$0xf]  ;;  %v8782_v38 = vor.u32 %v11838_v26, %v8781_v25  ;;  %v8783_v40 = vld [vmem:[%s12651_s25 + $0x1f8] sm:$0xf0]  ;;  %s14076_s15 = sld [smem:[#allocation30_spill]]  ;;  %s8365_s26 = sshll.u32 %s12791_s4, 4  ;;  %s8366_s26 = int_to_ptr.hbm [resolvable:$true] %s8365_s26 }
  0x70   :  { %v11829_v25 = vld [vmem:[%s12651_s25 + $0x1b4] sm:$0xf]  ;;  %v8751_v26 = vld [vmem:[%s12651_s25 + $0x1b8] sm:$0xf0]  ;;  %s14077_s18 = sld [smem:[#allocation29_spill]]  ;;  %s12534_s0 = sshra.s32 %s8366_s26, 4  ;;  %s12535_s0 = int_to_ptr.hbm [resolvable:$true] %s12534_s0 }
  0x71   :  { %595 = vmatpush.bf16.msrb.mxu2 %v8607_v32  ;;  %s12536_s28 = scalar_lea.hbm %s12535_s0, 2  ;;  %s12538_s1 = scalar_lea.hbm %s12791_s4, 2 }
  0x72   :  { %393 = vmatpush.bf16.msra.mxu1 %v8513_v47  ;;  %v8595_v47 = vor.u32 %v11767_v44, %v8592_v46  ;;  %v11836_v44 = vld [vmem:[%s12651_s25 + $0x1e4] sm:$0xf0]  ;;  %v8624_v46 = vld [vmem:[%s12646_s21 + $0x4] sm:$0xf]  ;;  %p12537_p10 = scmp.ne.s32.totalorder %s12535_s0, %s12536_s28  ;;  %p12539_p11 = scmp.lt.s32.totalorder %s12535_s0, %s12791_s4 }
  0x73   :  { %379 = vmatpush.bf16.msra.mxu0 %v8509_v43  ;;  %609 = vmatpush.bf16.msrb.mxu3 %v8611_v34  ;;  %v11768_v43 = vld [vmem:[%s12636_s13 + $0xc4] sm:$0xf0]  ;;  %v8719_v34 = vld [vmem:[%s12651_s25 + $0x178] sm:$0xf0]  ;;  %s14063_s13 = sld [smem:[#allocation16_spill]]  ;;  %p12540_p12 = scmp.lt.s32.totalorder %s12538_s1, %s12536_s28 }
  0x74   :  { %v8591_v45 = vor.u32 %v11768_v43, %v8590_v42  ;;  %v11820_v42 = vld [vmem:[%s12651_s25 + $0x164] sm:$0xf0]  ;;  %v8773_v43 = vld [vmem:[%s12651_s25 + $0x1e0] sm:$0xf] }
  0x75   :  { %596 = vmatpush.bf16.msrb.mxu2 %v8599_v39  ;;  %v11837_v39 = vld [vmem:[%s12651_s25 + $0x1f4] sm:$0xf]  ;;  %p12541_p13 = por %p12540_p12, %p12539_p11 }
  0x76   :  { %394 = vmatpush.bf16.msra.mxu1 %v8505_v57 }
  0x77   :  { %380 = vmatpush.bf16.msra.mxu0 %v8501_v56  ;;  %610 = vmatpush.bf16.msrb.mxu3 %v8603_v41  ;;  %v8709_v41 = vld [vmem:[%s12651_s25 + $0x160] sm:$0xf]  ;;  %p12542_p0 = pnand %p12541_p13, %p12537_p10 }
  0x79   :  { %597 = vmatpush.bf16.msrb.mxu2 %v8591_v45  ;;  %v646_v45 = vld [vmem:[%s12646_s21] sm:$0xf] }
  0x7a   :  { %395 = vmatpush.bf16.msra.mxu1 %v8497_v2  ;;  %v622_v2 = vld [vmem:[%s12641_s17] sm:$0x3]  ;;  %s14064_s17 = sld [smem:[#allocation17_spill]] }
  0x7b   :  { %381 = vmatpush.bf16.msra.mxu0 %v8493_v63  ;;  %611 = vmatpush.bf16.msrb.mxu3 %v8595_v47  ;;  %v625_v10 = vperm.slane %v622_v2, 1  ;;  %v8722_v47 = vor.u32 %v11821_v33, %v8719_v34  ;;  %v11811_v33 = vld [vmem:[%s12651_s25 + $0x124] sm:$0xf]  ;;  %v8679_v34 = vld [vmem:[%s12651_s25 + $0x128] sm:$0xf0] }
  0xda   :  { %v244_v3 = vpop.f32.mrf.mxu1 }
  0xdb   :  { %v210_v12 = vpop.f32.mrf.mxu0 }
  0xe0   :  { %v422_v6 = vpop.f32.mrf.mxu2 }
  0xe2   :  { %v246_v7 = vpop.f32.mrf.mxu1 }
  0xe3   :  { %v249_v9 = vpack.c.bf16 %v246_v7, %v244_v3 }
  0xe5   :  { %8488 = vmatmul.msk.bf16.vlgmr.msrb.gmra.mxu0 %vm299_vm1, %v249_v9  ;;  %8489 = vmatmul.msk.bf16.vlgmr.msrb.gmra.mxu1 %vm299_vm1, %v249_v9 }
  0xe6   :  { %498 = vmatpush.bf16.msrb.mxu0 %v8570_v8  ;;  %529 = vmatpush.bf16.msrb.mxu1 %v12805_v0  ;;  %v212_v0 = vpop.f32.mrf.mxu0  ;;  %v624_v8 = vperm.slane %v622_v2, 0 }
  0xe7   :  { %v215_v22 = vpack.c.bf16 %v212_v0, %v210_v12 }
  0xe8   :  { %v424_v16 = vpop.f32.mrf.mxu2 }
  0xe9   :  { %v427_v17 = vpack.c.bf16 %v424_v16, %v422_v6 }
  0xea   :  { %499 = vmatpush.bf16.msrb.mxu0 %v8562_v13  ;;  %530 = vmatpush.bf16.msrb.mxu1 %v12808_v1  ;;  %v11766_v1 = vld [vmem:[%s12631_s9 + $0x18] sm:$0xff]  ;;  %s14062_s9 = sld [smem:[#allocation15_spill]] }
  0xeb   :  { %8571 = vmatmul.msk.bf16.vlgmr.msra.gmra.mxu3 %vm299_vm1, %v427_v17 }
  0xee   :  { %500 = vmatpush.bf16.msrb.mxu0 %v8554_v18 }
  0xf2   :  { %501 = vmatpush.bf16.msrb.mxu0 %v8546_v21 }
  0xf5   :  { %8522 = vmatmul.msk.bf16.vlgmr.msra.gmra.mxu0 %vm299_vm1, %v215_v22  ;;  %8523 = vmatmul.msk.bf16.vlgmr.msra.gmra.mxu1 %vm299_vm1, %v215_v22 }
 0x105   :  { %8572 = vmatmul.msk.bf16.vlgmr.msrb.gmra.mxu0 %vm299_vm1, %v427_v17  ;;  %8579 = vmatmul.msk.bf16.vlgmr.msrb.gmra.mxu1 %vm197_vm0, %v11766_v1 }
 0x162   :  { %v326_v35 = vpop.f32.mrf.mxu1  ;;  %v312_v55 = vpop.f32.mrf.mxu0 }
 0x16a   :  { %v328_v48 = vpop.f32.mrf.mxu1  ;;  %v314_v56 = vpop.f32.mrf.mxu0 }
 0x16e   :  { %v489_v58 = vpop.f32.mrf.mxu3 }
 0x172   :  { %v397_v49 = vpop.f32.mrf.mxu1  ;;  %v383_v57 = vpop.f32.mrf.mxu0 }
 0x173   :  { %v398_v50 = vadd.f32 %v397_v49, %v326_v35  ;;  %v384_v62 = vadd.f32 %v383_v57, %v312_v55  ;;  %v11819_v49 = vld [vmem:[%s12651_s25 + $0x164] sm:$0xf]  ;;  %v8701_v55 = vld [vmem:[%s12651_s25 + $0x150] sm:$0xf] }
 0x174   :  { %v8765_v57 = vld [vmem:[%s12651_s25 + $0x1d0] sm:$0xf] }
 0x175   :  { %v508_v4 = vadd.f32 %v489_v58, %v384_v62  ;;  %v11834_v58 = vld [vmem:[%s12651_s25 + $0x1d4] sm:$0xf0]  ;;  %v8703_v62 = vld [vmem:[%s12651_s25 + $0x158] sm:$0xf0] }
 0x176   :  { %v491_v60 = vpop.f32.mrf.mxu3  ;;  %v8766_v2 = vor.u32 %v11834_v58, %v8765_v57  ;;  %v8845_v57 = vld [vmem:[%s12651_s25 + $0x70] sm:$0xf]  ;;  %v11790_v58 = vld [vmem:[%s12651_s25 + $0x74] sm:$0xf0] }
 0x17a   :  { %v399_v51 = vpop.f32.mrf.mxu1  ;;  %v385_v59 = vpop.f32.mrf.mxu0 }
 0x17b   :  { %v386_v6 = vadd.f32 %v385_v59, %v314_v56  ;;  %v400_v12 = vadd.f32 %v399_v51, %v328_v48  ;;  %v8786_v48 = vor.u32 %v11837_v39, %v8783_v40  ;;  %v8710_v51 = vor.u32 %v11820_v42, %v8709_v41  ;;  %v11818_v56 = vld [vmem:[%s12651_s25 + $0x154] sm:$0xf0]  ;;  %v11827_v39 = vld [vmem:[%s12651_s25 + $0x1a4] sm:$0xf]  ;;  %v8743_v40 = vld [vmem:[%s12651_s25 + $0x1a8] sm:$0xf0] }
 0x17c   :  { %v8669_v41 = vld [vmem:[%s12651_s25 + $0x110] sm:$0xf]  ;;  %v11810_v42 = vld [vmem:[%s12651_s25 + $0x114] sm:$0xf0] }
 0x17d   :  { %v510_v13 = vadd.f32 %v491_v60, %v386_v6  ;;  %v11816_v6 = vld [vmem:[%s12651_s25 + $0x144] sm:$0xf0] }
 0x182   :  { %v532_v52 = vpop.f32.mrf.mxu1  ;;  %v503_v61 = vpop.f32.mrf.mxu0 }
 0x183   :  { %v509_v5 = vadd.f32 %v503_v61, %v398_v50  ;;  %v8711_v50 = vld [vmem:[%s12651_s25 + $0x168] sm:$0xf0]  ;;  %v11817_v61 = vld [vmem:[%s12651_s25 + $0x154] sm:$0xf] }
 0x184   :  { %v8714_v59 = vor.u32 %v11819_v49, %v8711_v50  ;;  %v11825_v49 = vld [vmem:[%s12651_s25 + $0x194] sm:$0xf]  ;;  %v8670_v50 = vor.u32 %v11810_v42, %v8669_v41  ;;  %v8885_v41 = vld [vmem:[%s12651_s25 + $0xc0] sm:$0xf]  ;;  %v11800_v42 = vld [vmem:[%s12651_s25 + $0xc4] sm:$0xf0] }
 0x18a   :  { %v534_v53 = vpop.f32.mrf.mxu1  ;;  %v505_v11 = vpop.f32.mrf.mxu0 }
 0x18b   :  { %v537_v54 = vpack.c.bf16 %v534_v53, %v532_v52  ;;  %v511_v14 = vadd.f32 %v505_v11, %v400_v12  ;;  %v8774_v52 = vor.u32 %v11836_v44, %v8773_v43  ;;  %v11835_v53 = vld [vmem:[%s12651_s25 + $0x1e4] sm:$0xf]  ;;  %v8695_v12 = vld [vmem:[%s12651_s25 + $0x148] sm:$0xf0]  ;;  %v8733_v43 = vld [vmem:[%s12651_s25 + $0x190] sm:$0xf] }
 0x18c   :  { %v11815_v11 = vld [vmem:[%s12651_s25 + $0x144] sm:$0xf]  ;;  %v11826_v44 = vld [vmem:[%s12651_s25 + $0x194] sm:$0xf0] }
 0x18d   :  { %8620 = vmatmul.msk.bf16.vlgmr.msrb.gmra.mxu2 %vm299_vm1, %v537_v54  ;;  %8621 = vmatmul.msk.bf16.vlgmr.msrb.gmra.mxu3 %vm299_vm1, %v537_v54  ;;  %v8775_v54 = vld [vmem:[%s12651_s25 + $0x1e8] sm:$0xf0] }
 0x18e   :  { %v8778_v60 = vor.u32 %v11835_v53, %v8775_v54  ;;  %v8661_v53 = vld [vmem:[%s12651_s25 + $0x100] sm:$0xf]  ;;  %v11808_v54 = vld [vmem:[%s12651_s25 + $0x104] sm:$0xf0] }
 0x210   :  { %v599_v63 = vpop.f32.mrf.mxu2  ;;  %v613_v3 = vpop.f32.mrf.mxu3 }
 0x211   :  { %v618_v7 = vadd.f32 %v599_v63, %v508_v4  ;;  %v619_v9 = vadd.f32 %v613_v3, %v509_v5  ;;  %v8702_v63 = vor.u32 %v11818_v56, %v8701_v55  ;;  %v11833_v3 = vld [vmem:[%s12651_s25 + $0x1d4] sm:$0xf]  ;;  %v8767_v4 = vld [vmem:[%s12651_s25 + $0x1d8] sm:$0xf0]  ;;  %v8693_v5 = vld [vmem:[%s12651_s25 + $0x140] sm:$0xf] }
 0x212   :  { %v8725_v55 = vld [vmem:[%s12651_s25 + $0x180] sm:$0xf]  ;;  %v11824_v56 = vld [vmem:[%s12651_s25 + $0x184] sm:$0xf0] }
 0x213   :  { %v628_v15 = vadd.f32 %v624_v8, %v618_v7  ;;  %v629_v16 = vadd.f32 %v625_v10, %v619_v9  ;;  %v8757_v7 = vld [vmem:[%s12651_s25 + $0x1c0] sm:$0xf]  ;;  %v8706_v9 = vor.u32 %v11817_v61, %v8703_v62 }
 0x215   :  { %v636_v21 = vmul.f32 0.2, %v628_v15  ;;  %v637_v0 = vmul.f32 0.2, %v629_v16  ;;  %vm632_vm2 = vcmp.gt.f32.partialorder %v628_v15, 0.0  ;;  %vm633_vm3 = vcmp.gt.f32.partialorder %v629_v16, 0.0 }
 0x217   :  { %v640_v29 = vsel %vm632_vm2, %v628_v15, %v636_v21  ;;  %v641_v30 = vsel %vm633_vm3, %v629_v16, %v637_v0  ;;  %v11831_v15 = vld [vmem:[%s12651_s25 + $0x1c4] sm:$0xf]  ;;  %v8759_v16 = vld [vmem:[%s12651_s25 + $0x1c8] sm:$0xf0]  ;;  %v8698_v21 = vor.u32 %v11815_v11, %v8695_v12  ;;  %v11805_v11 = vld [vmem:[%s12651_s25 + $0xf4] sm:$0xf] }
 0x218   :  { %v601_v17 = vpop.f32.mrf.mxu2  ;;  %v615_v18 = vpop.f32.mrf.mxu3  ;;  %v8762_v0 = vor.u32 %v11831_v15, %v8759_v16  ;;  %v8911_v12 = vld [vmem:[%s12651_s25 + $0xf8] sm:$0xf0]  ;;  %v8901_v15 = vld [vmem:[%s12651_s25 + $0xe0] sm:$0xf]  ;;  %v11804_v16 = vld [vmem:[%s12651_s25 + $0xe4] sm:$0xf0] }
 0x219   :  { %v620_v19 = vadd.f32 %v601_v17, %v510_v13  ;;  %v621_v20 = vadd.f32 %v615_v18, %v511_v14  ;;  %v8694_v13 = vor.u32 %v11816_v6, %v8693_v5  ;;  %v8685_v17 = vld [vmem:[%s12651_s25 + $0x130] sm:$0xf]  ;;  %v11814_v18 = vld [vmem:[%s12651_s25 + $0x134] sm:$0xf0]  ;;  %v8726_v5 = vor.u32 %v11824_v56, %v8725_v55  ;;  %v8727_v6 = vld [vmem:[%s12651_s25 + $0x188] sm:$0xf0] }
 0x21a   :  { %v8686_v23 = vor.u32 %v11814_v18, %v8685_v17  ;;  %vm2801_vm2 = vcmask 15360  }
 0x21b   :  { %v630_v22 = vadd.f32 %v624_v8, %v620_v19  ;;  %v631_v1 = vadd.f32 %v625_v10, %v621_v20  ;;  %v11832_v8 = vld [vmem:[%s12651_s25 + $0x1c4] sm:$0xf0]  ;;  %v8770_v10 = vor.u32 %v11833_v3, %v8767_v4  ;;  %v8749_v19 = vld [vmem:[%s12651_s25 + $0x1b0] sm:$0xf]  ;;  %v11830_v20 = vld [vmem:[%s12651_s25 + $0x1b4] sm:$0xf0]  ;;  %v8662_v4 = vor.u32 %v11808_v54, %v8661_v53 }
 0x21c   :  { %v8758_v14 = vor.u32 %v11832_v8, %v8757_v7  ;;  %v8750_v24 = vor.u32 %v11830_v20, %v8749_v19  ;;  %v11823_v3 = vld [vmem:[%s12651_s25 + $0x184] sm:$0xf]  ;;  %v11789_v7 = vld [vmem:[%s12651_s25 + $0x74] sm:$0xf]  ;;  %v8847_v8 = vld [vmem:[%s12651_s25 + $0x78] sm:$0xf0]  ;;  %v8914_v20 = vor.u32 %v11805_v11, %v8911_v12 }
 0x21d   :  { %vm634_vm4 = vcmp.gt.f32.partialorder %v630_v22, 0.0  ;;  %v638_v27 = vmul.f32 0.2, %v630_v22  ;;  %vm635_vm5 = vcmp.gt.f32.partialorder %v631_v1, 0.0  ;;  %v639_v28 = vmul.f32 0.2, %v631_v1 }
 0x21e   :  { %v8730_v18 = vor.u32 %v11823_v3, %v8727_v6  ;;  %v8850_v19 = vor.u32 %v11789_v7, %v8847_v8  ;;  %v8877_v53 = vld [vmem:[%s12651_s25 + $0xb0] sm:$0xf]  ;;  %v11798_v54 = vld [vmem:[%s12651_s25 + $0xb4] sm:$0xf0]  ;;  %v8869_v3 = vld [vmem:[%s12651_s25 + $0xa0] sm:$0xf] }
 0x21f   :  { %v642_v31 = vsel %vm634_vm4, %v630_v22, %v638_v27  ;;  %v643_v32 = vsel %vm635_vm5, %v631_v1, %v639_v28  ;;  %v11813_v22 = vld [vmem:[%s12651_s25 + $0x134] sm:$0xf]  ;;  %v8687_v1 = vld [vmem:[%s12651_s25 + $0x138] sm:$0xf0]  ;;  %v8677_v27 = vld [vmem:[%s12651_s25 + $0x120] sm:$0xf] }
 0x220   :  { %v12905_v35 = vpack.c.bf16 %v642_v31, %v640_v29  ;;  %v12907_v36 = vpack.c.bf16 %v643_v32, %v641_v30  ;;  %v11812_v28 = vld [vmem:[%s12651_s25 + $0x124] sm:$0xf0]  ;;  %v8741_v29 = vld [vmem:[%s12651_s25 + $0x1a0] sm:$0xf]  ;;  %v8690_v31 = vor.u32 %v11813_v22, %v8687_v1  ;;  %v8754_v32 = vor.u32 %v11829_v25, %v8751_v26  ;;  %v8829_v25 = vld [vmem:[%s12651_s25 + $0x50] sm:$0xf] }
 0x221   :  { %v11828_v30 = vld [vmem:[%s12651_s25 + $0x1a4] sm:$0xf0]  ;;  %v8902_v1 = vor.u32 %v11804_v16, %v8901_v15  ;;  %v11786_v26 = vld [vmem:[%s12651_s25 + $0x54] sm:$0xf0]  ;;  %v11779_v7 = vld [vmem:[%s12651_s25 + $0x24] sm:$0xf] }
 0x222   :  { %658 = vmatpush.bf16.msra.mxu0 %v12905_v35  ;;  %671 = vmatpush.bf16.msra.mxu1 %v12907_v36  ;;  %v8807_v8 = vld [vmem:[%s12651_s25 + $0x28] sm:$0xf0]  ;;  %v11795_v11 = vld [vmem:[%s12651_s25 + $0xa4] sm:$0xf]  ;;  %v8861_v15 = vld [vmem:[%s12651_s25 + $0x90] sm:$0xf] }
 0x223   :  { %723 = vmatpush.bf16.msra.mxu2 %v12905_v35  ;;  %736 = vmatpush.bf16.msra.mxu3 %v12907_v36  ;;  %v8871_v12 = vld [vmem:[%s12651_s25 + $0xa8] sm:$0xf0]  ;;  %v11794_v16 = vld [vmem:[%s12651_s25 + $0x94] sm:$0xf0] }
 0x225   :  { %8622 = vmatmul.msk.bf16.vlgmr.msra.gmra.mxu0 %vm647_vm6, %v646_v45  ;;  %8623 = vmatmul.msk.bf16.vlgmr.msra.gmra.mxu1 %vm647_vm6, %v646_v45  ;;  %v8682_v45 = vor.u32 %v11811_v33, %v8679_v34  ;;  %v8830_v33 = vor.u32 %v11786_v26, %v8829_v25  ;;  %v8789_v25 = vld [vmem:[%s12651_s25] sm:$0xf]  ;;  %v11776_v26 = vld [vmem:[%s12651_s25 + $0x4] sm:$0xf0] }
 0x226   :  { %937 = vmatpush.bf16.msrb.mxu0 %v8718_v37  ;;  %950 = vmatpush.bf16.msrb.mxu1 %v8782_v38  ;;  %v8678_v37 = vor.u32 %v11812_v28, %v8677_v27  ;;  %v8742_v38 = vor.u32 %v11828_v30, %v8741_v29  ;;  %v8893_v27 = vld [vmem:[%s12651_s25 + $0xd0] sm:$0xf]  ;;  %v11802_v28 = vld [vmem:[%s12651_s25 + $0xd4] sm:$0xf0] }
 0x227   :  { %8625 = vmatmul.msk.bf16.vlgmr.msra.gmra.mxu2 %vm647_vm6, %v8624_v46  ;;  %8626 = vmatmul.msk.bf16.vlgmr.msra.gmra.mxu3 %vm647_vm6, %v8624_v46  ;;  %v8746_v46 = vor.u32 %v11827_v39, %v8743_v40  ;;  %v8894_v34 = vor.u32 %v11802_v28, %v8893_v27  ;;  %v8821_v39 = vld [vmem:[%s12651_s25 + $0x40] sm:$0xf]  ;;  %v11784_v40 = vld [vmem:[%s12651_s25 + $0x44] sm:$0xf0]  ;;  %v8790_v28 = vor.u32 %v11776_v26, %v8789_v25  ;;  %v9024_v25 = vld [vmem:[%s12651_s25 + $0x290] sm:$0xf] }
 0x228   :  { %963 = vmatpush.bf16.msrb.mxu2 %v8722_v47  ;;  %976 = vmatpush.bf16.msrb.mxu3 %v8786_v48  ;;  %v11809_v47 = vld [vmem:[%s12651_s25 + $0x114] sm:$0xf]  ;;  %v8671_v48 = vld [vmem:[%s12651_s25 + $0x118] sm:$0xf0]  ;;  %v8853_v27 = vld [vmem:[%s12651_s25 + $0x80] sm:$0xf] }
 0x229   :  { %v8674_v61 = vor.u32 %v11809_v47, %v8671_v48  ;;  %v8822_v47 = vor.u32 %v11784_v40, %v8821_v39  ;;  %v8886_v48 = vor.u32 %v11800_v42, %v8885_v41  ;;  %v9008_v41 = vld [vmem:[%s12651_s25 + $0x270] sm:$0xf]  ;;  %v11854_v42 = vld [vmem:[%s12651_s25 + $0x274] sm:$0xf0] }
 0x22a   :  { %938 = vmatpush.bf16.msrb.mxu0 %v8710_v51  ;;  %951 = vmatpush.bf16.msrb.mxu1 %v8774_v52  ;;  %v8734_v51 = vor.u32 %v11826_v44, %v8733_v43  ;;  %v8735_v52 = vld [vmem:[%s12651_s25 + $0x198] sm:$0xf0]  ;;  %v11858_v26 = vld [vmem:[%s12651_s25 + $0x294] sm:$0xf0] }
 0x22b   :  { %v8738_v62 = vor.u32 %v11825_v49, %v8735_v52  ;;  %v11799_v49 = vld [vmem:[%s12651_s25 + $0xc4] sm:$0xf]  ;;  %v11782_v52 = vld [vmem:[%s12651_s25 + $0x34] sm:$0xf0] }
 0x22c   :  { %964 = vmatpush.bf16.msrb.mxu2 %v8714_v59  ;;  %977 = vmatpush.bf16.msrb.mxu3 %v8778_v60  ;;  %v8909_v59 = vld [vmem:[%s12651_s25 + $0xf0] sm:$0xf]  ;;  %v11806_v60 = vld [vmem:[%s12651_s25 + $0xf4] sm:$0xf0] }
 0x22e   :  { %939 = vmatpush.bf16.msrb.mxu0 %v8702_v63  ;;  %952 = vmatpush.bf16.msrb.mxu1 %v8766_v2  ;;  %v11807_v63 = vld [vmem:[%s12651_s25 + $0x104] sm:$0xf]  ;;  %v8663_v2 = vld [vmem:[%s12651_s25 + $0x108] sm:$0xf0] }
 0x22f   :  { %v8666_v17 = vor.u32 %v11807_v63, %v8663_v2  ;;  %v8805_v63 = vld [vmem:[%s12651_s25 + $0x20] sm:$0xf]  ;;  %v11780_v2 = vld [vmem:[%s12651_s25 + $0x24] sm:$0xf0] }
 0x230   :  { %965 = vmatpush.bf16.msrb.mxu2 %v8706_v9  ;;  %978 = vmatpush.bf16.msrb.mxu3 %v8770_v10  ;;  %v8846_v9 = vor.u32 %v11790_v58, %v8845_v57  ;;  %v8910_v10 = vor.u32 %v11806_v60, %v8909_v59  ;;  %v11781_v57 = vld [vmem:[%s12651_s25 + $0x34] sm:$0xf]  ;;  %v8815_v58 = vld [vmem:[%s12651_s25 + $0x38] sm:$0xf0]  ;;  %v8878_v60 = vor.u32 %v11798_v54, %v8877_v53  ;;  %v9000_v53 = vld [vmem:[%s12651_s25 + $0x260] sm:$0xf] }
 0x231   :  { %v11852_v54 = vld [vmem:[%s12651_s25 + $0x264] sm:$0xf0] }
 0x232   :  { %940 = vmatpush.bf16.msrb.mxu0 %v8694_v13  ;;  %953 = vmatpush.bf16.msrb.mxu1 %v8758_v14  ;;  %v8837_v13 = vld [vmem:[%s12651_s25 + $0x60] sm:$0xf]  ;;  %v11788_v14 = vld [vmem:[%s12651_s25 + $0x64] sm:$0xf0] }
 0x233   :  { %v8838_v22 = vor.u32 %v11788_v14, %v8837_v13  ;;  %v8797_v13 = vld [vmem:[%s12651_s25 + $0x10] sm:$0xf]  ;;  %v11778_v14 = vld [vmem:[%s12651_s25 + $0x14] sm:$0xf0] }
 0x234   :  { %966 = vmatpush.bf16.msrb.mxu2 %v8698_v21  ;;  %979 = vmatpush.bf16.msrb.mxu3 %v8762_v0  ;;  %v11787_v21 = vld [vmem:[%s12651_s25 + $0x64] sm:$0xf]  ;;  %v8839_v0 = vld [vmem:[%s12651_s25 + $0x68] sm:$0xf0] }
 0x235   :  { %v8842_v29 = vor.u32 %v11787_v21, %v8839_v0  ;;  %v8862_v21 = vor.u32 %v11794_v16, %v8861_v15  ;;  %v8799_v0 = vld [vmem:[%s12651_s25 + $0x18] sm:$0xf0]  ;;  %v9040_v15 = vld [vmem:[%s12651_s25 + $0x2b0] sm:$0xf]  ;;  %v11862_v16 = vld [vmem:[%s12651_s25 + $0x2b4] sm:$0xf0] }
 0x236   :  { %941 = vmatpush.bf16.msrb.mxu0 %v8686_v23  ;;  %954 = vmatpush.bf16.msrb.mxu1 %v8750_v24  ;;  %v11803_v23 = vld [vmem:[%s12651_s25 + $0xe4] sm:$0xf]  ;;  %v8903_v24 = vld [vmem:[%s12651_s25 + $0xe8] sm:$0xf0] }
 0x237   :  { %v8906_v30 = vor.u32 %v11803_v23, %v8903_v24 }
 0x238   :  { %967 = vmatpush.bf16.msrb.mxu2 %v8690_v31  ;;  %980 = vmatpush.bf16.msrb.mxu3 %v8754_v32  ;;  %v11785_v31 = vld [vmem:[%s12651_s25 + $0x54] sm:$0xf]  ;;  %v8831_v32 = vld [vmem:[%s12651_s25 + $0x58] sm:$0xf0] }
 0x239   :  { %v8834_v43 = vor.u32 %v11785_v31, %v8831_v32  ;;  %v8791_v31 = vld [vmem:[%s12651_s25 + $0x8] sm:$0xf0] }
 0x23a   :  { %942 = vmatpush.bf16.msrb.mxu0 %v8678_v37  ;;  %955 = vmatpush.bf16.msrb.mxu1 %v8742_v38  ;;  %v11801_v37 = vld [vmem:[%s12651_s25 + $0xd4] sm:$0xf]  ;;  %v8895_v38 = vld [vmem:[%s12651_s25 + $0xd8] sm:$0xf0] }
 0x23b   :  { %v8898_v44 = vor.u32 %v11801_v37, %v8895_v38  ;;  %v8855_v37 = vld [vmem:[%s12651_s25 + $0x88] sm:$0xf0] }
 0x23c   :  { %968 = vmatpush.bf16.msrb.mxu2 %v8682_v45  ;;  %981 = vmatpush.bf16.msrb.mxu3 %v8746_v46  ;;  %v11783_v45 = vld [vmem:[%s12651_s25 + $0x44] sm:$0xf]  ;;  %v8823_v46 = vld [vmem:[%s12651_s25 + $0x48] sm:$0xf0] }
 0x23d   :  { %v8826_v55 = vor.u32 %v11783_v45, %v8823_v46 }
 0x23e   :  { %943 = vmatpush.bf16.msrb.mxu0 %v8670_v50  ;;  %956 = vmatpush.bf16.msrb.mxu1 %v8734_v51  ;;  %v8887_v50 = vld [vmem:[%s12651_s25 + $0xc8] sm:$0xf0]  ;;  %v8813_v51 = vld [vmem:[%s12651_s25 + $0x30] sm:$0xf] }
 0x23f   :  { %v8890_v56 = vor.u32 %v11799_v49, %v8887_v50  ;;  %v8814_v59 = vor.u32 %v11782_v52, %v8813_v51  ;;  %v9009_v51 = vor.u32 %v11854_v42, %v9008_v41  ;;  %v9074_v42 = vld [vmem:[%s12651_s25 + $0x2f8] sm:$0xf0] }
 0x240   :  { %969 = vmatpush.bf16.msrb.mxu2 %v8674_v61  ;;  %982 = vmatpush.bf16.msrb.mxu3 %v8738_v62  ;;  %v11797_v61 = vld [vmem:[%s12651_s25 + $0xb4] sm:$0xf]  ;;  %v8879_v62 = vld [vmem:[%s12651_s25 + $0xb8] sm:$0xf0] }
 0x241   :  { %v8882_v6 = vor.u32 %v11797_v61, %v8879_v62  ;;  %v9056_v61 = vld [vmem:[%s12651_s25 + $0x2d0] sm:$0xf]  ;;  %v11866_v62 = vld [vmem:[%s12651_s25 + $0x2d4] sm:$0xf0] }
 0x242   :  { %944 = vmatpush.bf16.msrb.mxu0 %v8662_v4  ;;  %957 = vmatpush.bf16.msrb.mxu1 %v8726_v5  ;;  %v11796_v4 = vld [vmem:[%s12651_s25 + $0xa4] sm:$0xf0]  ;;  %v8818_v5 = vor.u32 %v11781_v57, %v8815_v58  ;;  %v9001_v57 = vor.u32 %v11852_v54, %v9000_v53  ;;  %v11847_v54 = vld [vmem:[%s12651_s25 + $0x244] sm:$0xf] }
 0x244   :  { %970 = vmatpush.bf16.msrb.mxu2 %v8666_v17  ;;  %983 = vmatpush.bf16.msrb.mxu3 %v8730_v18  ;;  %v8810_v17 = vor.u32 %v11779_v7, %v8807_v8  ;;  %v8874_v18 = vor.u32 %v11795_v11, %v8871_v12  ;;  %v9048_v7 = vld [vmem:[%s12651_s25 + $0x2c0] sm:$0xf]  ;;  %v11864_v8 = vld [vmem:[%s12651_s25 + $0x2c4] sm:$0xf0]  ;;  %v8976_v11 = vld [vmem:[%s12651_s25 + $0x230] sm:$0xf] }
 0x246   :  { %1149 = vmatpush.bf16.msra.mxu0 %v8846_v9  ;;  %1162 = vmatpush.bf16.msra.mxu1 %v8910_v10  ;;  %v8806_v9 = vor.u32 %v11780_v2, %v8805_v63  ;;  %v8870_v10 = vor.u32 %v11796_v4, %v8869_v3  ;;  %v9057_v4 = vor.u32 %v11866_v62, %v9056_v61  ;;  %v8978_v61 = vld [vmem:[%s12651_s25 + $0x238] sm:$0xf0]  ;;  %v11861_v62 = vld [vmem:[%s12651_s25 + $0x2b4] sm:$0xf] }
 0x248   :  { %1175 = vmatpush.bf16.msra.mxu2 %v8850_v19  ;;  %1188 = vmatpush.bf16.msra.mxu3 %v8914_v20  ;;  %v11777_v19 = vld [vmem:[%s12651_s25 + $0x14] sm:$0xf]  ;;  %v8798_v20 = vor.u32 %v11778_v14, %v8797_v13  ;;  %v11846_v14 = vld [vmem:[%s12651_s25 + $0x234] sm:$0xf0] }
 0x249   :  { %v8802_v23 = vor.u32 %v11777_v19, %v8799_v0  ;;  %v8968_v19 = vld [vmem:[%s12651_s25 + $0x220] sm:$0xf]  ;;  %v11860_v0 = vld [vmem:[%s12651_s25 + $0x2a4] sm:$0xf0] }
 0x24a   :  { %1150 = vmatpush.bf16.msra.mxu0 %v8838_v22  ;;  %1163 = vmatpush.bf16.msra.mxu1 %v8902_v1  ;;  %v11793_v22 = vld [vmem:[%s12651_s25 + $0x94] sm:$0xf]  ;;  %v8863_v1 = vld [vmem:[%s12651_s25 + $0x98] sm:$0xf0] }
 0x24b   :  { %v8866_v24 = vor.u32 %v11793_v22, %v8863_v1 }
 0x24c   :  { %1176 = vmatpush.bf16.msra.mxu2 %v8842_v29  ;;  %1189 = vmatpush.bf16.msra.mxu3 %v8906_v30  ;;  %v11792_v29 = vld [vmem:[%s12651_s25 + $0x84] sm:$0xf0]  ;;  %v11775_v30 = vld [vmem:[%s12651_s25 + $0x4] sm:$0xf] }
 0x24d   :  { %v8854_v32 = vor.u32 %v11792_v29, %v8853_v27  ;;  %v8952_v29 = vld [vmem:[%s12651_s25 + $0x200] sm:$0xf] }
 0x24e   :  { %1151 = vmatpush.bf16.msra.mxu0 %v8830_v33  ;;  %1164 = vmatpush.bf16.msra.mxu1 %v8894_v34  ;;  %v8794_v33 = vor.u32 %v11775_v30, %v8791_v31  ;;  %v11791_v34 = vld [vmem:[%s12651_s25 + $0x84] sm:$0xf]  ;;  %v11840_v30 = vld [vmem:[%s12651_s25 + $0x204] sm:$0xf0]  ;;  %v9016_v31 = vld [vmem:[%s12651_s25 + $0x280] sm:$0xf] }
 0x24f   :  { %v8858_v38 = vor.u32 %v11791_v34, %v8855_v37  ;;  %v8915_v37 = vld [vmem:[%s12646_s21 + $0x8] sm:$0xf] }
 0x250   :  { %1177 = vmatpush.bf16.msra.mxu2 %v8834_v43  ;;  %1190 = vmatpush.bf16.msra.mxu3 %v8898_v44  ;;  %v9072_v43 = vld [vmem:[%s12651_s25 + $0x2f0] sm:$0xf]  ;;  %v11870_v44 = vld [vmem:[%s12651_s25 + $0x2f4] sm:$0xf0] }
 0x251   :  { %v9073_v52 = vor.u32 %v11870_v44, %v9072_v43  ;;  %v9002_v44 = vld [vmem:[%s12651_s25 + $0x268] sm:$0xf0] }
 0x252   :  { %1152 = vmatpush.bf16.msra.mxu0 %v8822_v47  ;;  %1165 = vmatpush.bf16.msra.mxu1 %v8886_v48 }
 0x254   :  { %1178 = vmatpush.bf16.msra.mxu2 %v8826_v55  ;;  %1191 = vmatpush.bf16.msra.mxu3 %v8890_v56  ;;  %v9064_v55 = vld [vmem:[%s12651_s25 + $0x2e0] sm:$0xf]  ;;  %v11868_v56 = vld [vmem:[%s12651_s25 + $0x2e4] sm:$0xf0] }
 0x255   :  { %v9065_v58 = vor.u32 %v11868_v56, %v9064_v55  ;;  %v8986_v55 = vld [vmem:[%s12651_s25 + $0x248] sm:$0xf0]  ;;  %v11863_v56 = vld [vmem:[%s12651_s25 + $0x2c4] sm:$0xf] }
 0x256   :  { %1153 = vmatpush.bf16.msra.mxu0 %v8814_v59  ;;  %1166 = vmatpush.bf16.msra.mxu1 %v8878_v60  ;;  %v8992_v59 = vld [vmem:[%s12651_s25 + $0x250] sm:$0xf]  ;;  %v11850_v60 = vld [vmem:[%s12651_s25 + $0x254] sm:$0xf0] }
 0x257   :  { %v8993_v3 = vor.u32 %v11850_v60, %v8992_v59  ;;  %v11845_v60 = vld [vmem:[%s12651_s25 + $0x234] sm:$0xf] }
 0x258   :  { %1179 = vmatpush.bf16.msra.mxu2 %v8818_v5  ;;  %1192 = vmatpush.bf16.msra.mxu3 %v8882_v6  ;;  %v8984_v5 = vld [vmem:[%s12651_s25 + $0x240] sm:$0xf]  ;;  %v11848_v6 = vld [vmem:[%s12651_s25 + $0x244] sm:$0xf0] }
 0x25a   :  { %1154 = vmatpush.bf16.msra.mxu0 %v8806_v9  ;;  %1167 = vmatpush.bf16.msra.mxu1 %v8870_v10  ;;  %v8985_v9 = vor.u32 %v11848_v6, %v8984_v5  ;;  %v9049_v10 = vor.u32 %v11864_v8, %v9048_v7  ;;  %v8970_v5 = vld [vmem:[%s12651_s25 + $0x228] sm:$0xf0]  ;;  %v11859_v6 = vld [vmem:[%s12651_s25 + $0x2a4] sm:$0xf] }
 0x25b   :  { %v9034_v8 = vld [vmem:[%s12651_s25 + $0x2a8] sm:$0xf0] }
 0x25c   :  { %1180 = vmatpush.bf16.msra.mxu2 %v8810_v17  ;;  %1193 = vmatpush.bf16.msra.mxu3 %v8874_v18  ;;  %v8977_v17 = vor.u32 %v11846_v14, %v8976_v11  ;;  %v9041_v18 = vor.u32 %v11862_v16, %v9040_v15  ;;  %v8962_v11 = vld [vmem:[%s12651_s25 + $0x218] sm:$0xf0] }
 0x25d   :  { %v9026_v14 = vld [vmem:[%s12651_s25 + $0x298] sm:$0xf0] }
 0x25e   :  { %1155 = vmatpush.bf16.msra.mxu0 %v8798_v20  ;;  %1168 = vmatpush.bf16.msra.mxu1 %v8862_v21  ;;  %v11844_v20 = vld [vmem:[%s12651_s25 + $0x224] sm:$0xf0]  ;;  %v9032_v21 = vld [vmem:[%s12651_s25 + $0x2a0] sm:$0xf] }
 0x25f   :  { %v8969_v22 = vor.u32 %v11844_v20, %v8968_v19  ;;  %v9033_v1 = vor.u32 %v11860_v0, %v9032_v21  ;;  %v8954_v19 = vld [vmem:[%s12651_s25 + $0x208] sm:$0xf0]  ;;  %v11855_v20 = vld [vmem:[%s12651_s25 + $0x284] sm:$0xf] }
 0x260   :  { %1181 = vmatpush.bf16.msra.mxu2 %v8802_v23  ;;  %1194 = vmatpush.bf16.msra.mxu3 %v8866_v24  ;;  %v8960_v23 = vld [vmem:[%s12651_s25 + $0x210] sm:$0xf]  ;;  %v11842_v24 = vld [vmem:[%s12651_s25 + $0x214] sm:$0xf0] }
 0x261   :  { %v8961_v27 = vor.u32 %v11842_v24, %v8960_v23 }
 0x262   :  { %1156 = vmatpush.bf16.msra.mxu0 %v8790_v28  ;;  %1169 = vmatpush.bf16.msra.mxu1 %v8854_v32  ;;  %v9025_v28 = vor.u32 %v11858_v26, %v9024_v25  ;;  %v11856_v32 = vld [vmem:[%s12651_s25 + $0x284] sm:$0xf0] }
 0x263   :  { %v9017_v34 = vor.u32 %v11856_v32, %v9016_v31  ;;  %v9171_v32 = vld [vmem:[%s12651_s25 + $0x370] sm:$0xf] }
 0x264   :  { %1182 = vmatpush.bf16.msra.mxu2 %v8794_v33  ;;  %1195 = vmatpush.bf16.msra.mxu3 %v8858_v38  ;;  %v8953_v33 = vor.u32 %v11840_v30, %v8952_v29  ;;  %v11853_v38 = vld [vmem:[%s12651_s25 + $0x274] sm:$0xf] }
 0x2a2   :  { %v660_v39 = vpop.f32.mrf.mxu0  ;;  %v673_v40 = vpop.f32.mrf.mxu1 }
 0x2a3   :  { %v677_v12 = vpack.c.bf16 %v660_v39, %v660_v39  ;;  %v678_v13 = vpack.c.bf16 %v673_v40, %v673_v40  ;;  %v9010_v39 = vld [vmem:[%s12651_s25 + $0x278] sm:$0xf0]  ;;  %v11869_v40 = vld [vmem:[%s12651_s25 + $0x2f4] sm:$0xf] }
 0x2a4   :  { %v9013_v41 = vor.u32 %v11853_v38, %v9010_v39  ;;  %v9077_v43 = vor.u32 %v11869_v40, %v9074_v42  ;;  %v11902_v38 = vld [vmem:[%s12651_s25 + $0x3f4] sm:$0xf0]  ;;  %v9163_v40 = vld [vmem:[%s12651_s25 + $0x360] sm:$0xf] }
 0x2aa   :  { %v725_v45 = vpop.f32.mrf.mxu2  ;;  %v738_v46 = vpop.f32.mrf.mxu3 }
 0x2ab   :  { %v742_v47 = vpack.c.bf16 %v725_v45, %v725_v45  ;;  %v743_v48 = vpack.c.bf16 %v738_v46, %v738_v46  ;;  %v662_v49 = vpop.f32.mrf.mxu0  ;;  %v675_v50 = vpop.f32.mrf.mxu1  ;;  %v9066_v46 = vld [vmem:[%s12651_s25 + $0x2e8] sm:$0xf0] }
 0x2ac   :  { %v11865_v50 = vld [vmem:[%s12651_s25 + $0x2d4] sm:$0xf] }
 0x2ad   :  { %945 = vmatmul.bf16.vlgmr.msrb.gmra.mxu0 %v742_v47  ;;  %958 = vmatmul.bf16.vlgmr.msrb.gmra.mxu1 %v743_v48 }
 0x2ae   :  { %971 = vmatmul.bf16.vlgmr.msrb.gmra.mxu2 %v742_v47  ;;  %984 = vmatmul.bf16.vlgmr.msrb.gmra.mxu3 %v743_v48  ;;  %v11849_v47 = vld [vmem:[%s12651_s25 + $0x254] sm:$0xf]  ;;  %v8994_v48 = vld [vmem:[%s12651_s25 + $0x258] sm:$0xf0] }
 0x2af   :  { %1213 = vmatpush.bf16.msrb.mxu0 %v12905_v35  ;;  %1226 = vmatpush.bf16.msrb.mxu1 %v12907_v36 }
 0x2b0   :  { %1427 = vmatpush.bf16.msrb.mxu2 %v9009_v51  ;;  %1440 = vmatpush.bf16.msrb.mxu3 %v9073_v52  ;;  %v9058_v51 = vld [vmem:[%s12651_s25 + $0x2d8] sm:$0xf0]  ;;  %v8997_v52 = vor.u32 %v11849_v47, %v8994_v48  ;;  %v11885_v48 = vld [vmem:[%s12651_s25 + $0x374] sm:$0xf] }
 0x2b1   :  { %v9061_v53 = vor.u32 %v11865_v50, %v9058_v51  ;;  %v9173_v51 = vld [vmem:[%s12651_s25 + $0x378] sm:$0xf0] }
 0x2b2   :  { %v727_v63 = vpop.f32.mrf.mxu2  ;;  %v740_v2 = vpop.f32.mrf.mxu3 }
 0x2b3   :  { %v8981_v63 = vor.u32 %v11845_v60, %v8978_v61  ;;  %v9042_v2 = vld [vmem:[%s12651_s25 + $0x2b8] sm:$0xf0]  ;;  %v11883_v60 = vld [vmem:[%s12651_s25 + $0x364] sm:$0xf]  ;;  %v9165_v61 = vld [vmem:[%s12651_s25 + $0x368] sm:$0xf0] }
 0x2b4   :  { %1428 = vmatpush.bf16.msrb.mxu2 %v9001_v57  ;;  %1441 = vmatpush.bf16.msrb.mxu3 %v9065_v58  ;;  %v8989_v57 = vor.u32 %v11847_v54, %v8986_v55  ;;  %v9050_v58 = vld [vmem:[%s12651_s25 + $0x2c8] sm:$0xf0] }
 0x2b5   :  { %v9053_v59 = vor.u32 %v11863_v56, %v9050_v58  ;;  %v9176_v58 = vor.u32 %v11885_v48, %v9173_v51  ;;  %v11876_v48 = vld [vmem:[%s12651_s25 + $0x324] sm:$0xf0] }
 0x2b6   :  { %v11892_v51 = vld [vmem:[%s12651_s25 + $0x3a4] sm:$0xf0] }
 0x2b8   :  { %1429 = vmatpush.bf16.msrb.mxu2 %v8993_v3  ;;  %1442 = vmatpush.bf16.msrb.mxu3 %v9057_v4  ;;  %v9045_v3 = vor.u32 %v11861_v62, %v9042_v2  ;;  %v11843_v4 = vld [vmem:[%s12651_s25 + $0x224] sm:$0xf]  ;;  %v9168_v2 = vor.u32 %v11883_v60, %v9165_v61  ;;  %v11874_v60 = vld [vmem:[%s12651_s25 + $0x314] sm:$0xf0]  ;;  %v9187_v61 = vld [vmem:[%s12651_s25 + $0x390] sm:$0xf] }
 0x2b9   :  { %v8973_v7 = vor.u32 %v11843_v4, %v8970_v5  ;;  %v11899_v62 = vld [vmem:[%s12651_s25 + $0x3e4] sm:$0xf] }
 0x2bc   :  { %1430 = vmatpush.bf16.msrb.mxu2 %v8985_v9  ;;  %1443 = vmatpush.bf16.msrb.mxu3 %v9049_v10  ;;  %v9037_v9 = vor.u32 %v11859_v6, %v9034_v8  ;;  %v11841_v10 = vld [vmem:[%s12651_s25 + $0x214] sm:$0xf]  ;;  %v9078_v6 = vld [vmem:[%s12646_s21 + $0xc] sm:$0xf]  ;;  %v11882_v8 = vld [vmem:[%s12651_s25 + $0x354] sm:$0xf0] }
 0x2bd   :  { %1157 = vmatmul.bf16.vlgmr.msra.gmra.mxu0 %v677_v12  ;;  %1170 = vmatmul.bf16.vlgmr.msra.gmra.mxu1 %v678_v13  ;;  %s14065_s21 = sld [smem:[#allocation18_spill]] }
 0x2be   :  { %1183 = vmatmul.bf16.vlgmr.msra.gmra.mxu2 %v677_v12  ;;  %1196 = vmatmul.bf16.vlgmr.msra.gmra.mxu3 %v678_v13  ;;  %v11857_v12 = vld [vmem:[%s12651_s25 + $0x294] sm:$0xf]  ;;  %v8965_v13 = vor.u32 %v11841_v10, %v8962_v11  ;;  %v11898_v11 = vld [vmem:[%s12651_s25 + $0x3d4] sm:$0xf0] }
 0x2bf   :  { %1453 = vmatpush.bf16.msra.mxu0 %v9013_v41  ;;  %1466 = vmatpush.bf16.msra.mxu1 %v9077_v43  ;;  %v9029_v15 = vor.u32 %v11857_v12, %v9026_v14  ;;  %v11884_v43 = vld [vmem:[%s12651_s25 + $0x364] sm:$0xf0]  ;;  %v11881_v12 = vld [vmem:[%s12651_s25 + $0x354] sm:$0xf] }
 0x2c0   :  { %1431 = vmatpush.bf16.msrb.mxu2 %v8977_v17  ;;  %1444 = vmatpush.bf16.msrb.mxu3 %v9041_v18  ;;  %v11839_v18 = vld [vmem:[%s12651_s25 + $0x204] sm:$0xf] }
 0x2c1   :  { %v8957_v0 = vor.u32 %v11839_v18, %v8954_v19  ;;  %v9147_v19 = vld [vmem:[%s12651_s25 + $0x340] sm:$0xf] }
 0x2c4   :  { %1432 = vmatpush.bf16.msrb.mxu2 %v8969_v22  ;;  %1445 = vmatpush.bf16.msrb.mxu3 %v9033_v1  ;;  %v9018_v22 = vld [vmem:[%s12651_s25 + $0x288] sm:$0xf0] }
 0x2c5   :  { %v9021_v1 = vor.u32 %v11855_v20, %v9018_v22  ;;  %v11880_v20 = vld [vmem:[%s12651_s25 + $0x344] sm:$0xf0] }
 0x2c6   :  { %v9148_v22 = vor.u32 %v11880_v20, %v9147_v19  ;;  %v9181_v19 = vld [vmem:[%s12651_s25 + $0x388] sm:$0xf0] }
 0x2c8   :  { %1433 = vmatpush.bf16.msrb.mxu2 %v8961_v27  ;;  %1446 = vmatpush.bf16.msrb.mxu3 %v9025_v28 }
 0x2cc   :  { %1434 = vmatpush.bf16.msrb.mxu2 %v8953_v33  ;;  %1447 = vmatpush.bf16.msrb.mxu3 %v9017_v34  ;;  %v11886_v33 = vld [vmem:[%s12651_s25 + $0x374] sm:$0xf0]  ;;  %v9235_v34 = vld [vmem:[%s12651_s25 + $0x3f0] sm:$0xf] }
 0x2cd   :  { %8916 = vmatmul.msk.bf16.vlgmr.msrb.gmra.mxu0 %vm647_vm6, %v8915_v37  ;;  %8917 = vmatmul.msk.bf16.vlgmr.msrb.gmra.mxu1 %vm647_vm6, %v8915_v37  ;;  %v9172_v37 = vor.u32 %v11886_v33, %v9171_v32  ;;  %v9236_v39 = vor.u32 %v11902_v38, %v9235_v34  ;;  %v9139_v33 = vld [vmem:[%s12651_s25 + $0x330] sm:$0xf]  ;;  %v11878_v34 = vld [vmem:[%s12651_s25 + $0x334] sm:$0xf0] }
 0x2ce   :  { %v9140_v38 = vor.u32 %v11878_v34, %v9139_v33  ;;  %v1789_v34 = vld [vmem:[%s12656_s29 + $0xe0] sm:$0xff] }
 0x2d0   :  { %1493 = vmatpush.bf16.msra.mxu2 %v12905_v35  ;;  %1506 = vmatpush.bf16.msra.mxu3 %v12907_v36  ;;  %v11851_v35 = vld [vmem:[%s12651_s25 + $0x264] sm:$0xf] }
 0x2d1   :  { %v11867_v36 = vld [vmem:[%s12651_s25 + $0x2e4] sm:$0xf]  ;;  %v9005_v45 = vor.u32 %v11851_v35, %v9002_v44  ;;  %v9227_v35 = vld [vmem:[%s12651_s25 + $0x3e0] sm:$0xf]  ;;  %v11900_v44 = vld [vmem:[%s12651_s25 + $0x3e4] sm:$0xf0] }
 0x2d2   :  { %v9069_v49 = vor.u32 %v11867_v36, %v9066_v46  ;;  %v9164_v46 = vor.u32 %v11884_v43, %v9163_v40  ;;  %v9228_v47 = vor.u32 %v11900_v44, %v9227_v35  ;;  %v11877_v40 = vld [vmem:[%s12651_s25 + $0x334] sm:$0xf]  ;;  %v9141_v43 = vld [vmem:[%s12651_s25 + $0x338] sm:$0xf0] }
 0x2d3   :  { %1454 = vmatpush.bf16.msra.mxu0 %v9005_v45  ;;  %v9144_v44 = vor.u32 %v11877_v40, %v9141_v43  ;;  %v1771_v40 = vld [vmem:[%s12656_s29 + $0x50] sm:$0xff] }
 0x2d4   :  { %1467 = vmatpush.bf16.msra.mxu1 %v9069_v49 }
 0x2d7   :  { %1455 = vmatpush.bf16.msra.mxu0 %v8997_v52  ;;  %v11901_v52 = vld [vmem:[%s12651_s25 + $0x3f4] sm:$0xf] }
 0x2d8   :  { %1468 = vmatpush.bf16.msra.mxu1 %v9061_v53  ;;  %v9237_v53 = vld [vmem:[%s12651_s25 + $0x3f8] sm:$0xf0] }
 0x2db   :  { %1456 = vmatpush.bf16.msra.mxu0 %v8989_v57 }
 0x2dc   :  { %1469 = vmatpush.bf16.msra.mxu1 %v9053_v59  ;;  %v9240_v59 = vor.u32 %v11901_v52, %v9237_v53  ;;  %v11875_v52 = vld [vmem:[%s12651_s25 + $0x324] sm:$0xf]  ;;  %v9133_v53 = vld [vmem:[%s12651_s25 + $0x328] sm:$0xf0] }
 0x2df   :  { %1457 = vmatpush.bf16.msra.mxu0 %v8981_v63  ;;  %v9229_v63 = vld [vmem:[%s12651_s25 + $0x3e8] sm:$0xf0] }
 0x2e0   :  { %1470 = vmatpush.bf16.msra.mxu1 %v9045_v3  ;;  %v9232_v3 = vor.u32 %v11899_v62, %v9229_v63  ;;  %v11890_v62 = vld [vmem:[%s12651_s25 + $0x394] sm:$0xf0] }
 0x2e3   :  { %1458 = vmatpush.bf16.msra.mxu0 %v8973_v7  ;;  %v9155_v7 = vld [vmem:[%s12651_s25 + $0x350] sm:$0xf] }
 0x2e4   :  { %1471 = vmatpush.bf16.msra.mxu1 %v9037_v9  ;;  %v9219_v9 = vld [vmem:[%s12651_s25 + $0x3d0] sm:$0xf]  ;;  %v9156_v10 = vor.u32 %v11882_v8, %v9155_v7  ;;  %v9189_v7 = vld [vmem:[%s12651_s25 + $0x398] sm:$0xf0] }
 0x2e5   :  { %v9220_v14 = vor.u32 %v11898_v11, %v9219_v9  ;;  %v9115_v9 = vld [vmem:[%s12651_s25 + $0x300] sm:$0xf] }
 0x2e6   :  { %v9179_v11 = vld [vmem:[%s12651_s25 + $0x380] sm:$0xf] }
 0x2e7   :  { %1459 = vmatpush.bf16.msra.mxu0 %v8965_v13  ;;  %v9157_v13 = vld [vmem:[%s12651_s25 + $0x358] sm:$0xf0] }
 0x2e8   :  { %1472 = vmatpush.bf16.msra.mxu1 %v9029_v15  ;;  %v9160_v15 = vor.u32 %v11881_v12, %v9157_v13  ;;  %v11888_v13 = vld [vmem:[%s12651_s25 + $0x384] sm:$0xf0] }
 0x2eb   :  { %1460 = vmatpush.bf16.msra.mxu0 %v8957_v0  ;;  %v9211_v0 = vld [vmem:[%s12651_s25 + $0x3c0] sm:$0xf] }
 0x2ec   :  { %1473 = vmatpush.bf16.msra.mxu1 %v9021_v1  ;;  %v11896_v1 = vld [vmem:[%s12651_s25 + $0x3c4] sm:$0xf0] }
 0x2ef   :  { %1707 = vmatpush.bf16.msrb.mxu0 %v9172_v37  ;;  %v9203_v37 = vld [vmem:[%s12651_s25 + $0x3b0] sm:$0xf] }
 0x2f0   :  { %1720 = vmatpush.bf16.msrb.mxu1 %v9236_v39  ;;  %v11894_v39 = vld [vmem:[%s12651_s25 + $0x3b4] sm:$0xf0] }
 0x2f1   :  { %v9204_v35 = vor.u32 %v11894_v39, %v9203_v37 }
 0x2f3   :  { %1708 = vmatpush.bf16.msrb.mxu0 %v9164_v46 }
 0x2f4   :  { %1721 = vmatpush.bf16.msrb.mxu1 %v9228_v47  ;;  %v9131_v47 = vld [vmem:[%s12651_s25 + $0x320] sm:$0xf] }
 0x2f7   :  { %1709 = vmatpush.bf16.msrb.mxu0 %v9156_v10  ;;  %v11872_v10 = vld [vmem:[%s12651_s25 + $0x304] sm:$0xf0] }
 0x2f8   :  { %1722 = vmatpush.bf16.msrb.mxu1 %v9220_v14  ;;  %v9116_v12 = vor.u32 %v11872_v10, %v9115_v9  ;;  %v11871_v14 = vld [vmem:[%s12651_s25 + $0x304] sm:$0xf]  ;;  %v1778_v9 = vld [vmem:[%s12656_s29 + $0x88] sm:$0xff] }
 0x2f9   :  { %v1777_v10 = vld [vmem:[%s12656_s29 + $0x80] sm:$0xff] }
 0x2fb   :  { %1710 = vmatpush.bf16.msrb.mxu0 %v9148_v22  ;;  %v1776_v22 = vld [vmem:[%s12656_s29 + $0x78] sm:$0xff] }
 0x2ff   :  { %1711 = vmatpush.bf16.msrb.mxu0 %v9140_v38  ;;  %v1772_v38 = vld [vmem:[%s12656_s29 + $0x58] sm:$0xff] }
 0x32a   :  { %v946_v16 = vpop.f32.mrf.mxu0  ;;  %v959_v17 = vpop.f32.mrf.mxu1 }
 0x32b   :  { %v13111_v21 = vadd.f32 %v959_v17, %v946_v16  ;;  %v11897_v16 = vld [vmem:[%s12651_s25 + $0x3d4] sm:$0xf]  ;;  %v9221_v17 = vld [vmem:[%s12651_s25 + $0x3d8] sm:$0xf0] }
 0x32c   :  { %v9224_v18 = vor.u32 %v11897_v16, %v9221_v17  ;;  %v9180_v16 = vor.u32 %v11888_v13, %v9179_v11  ;;  %v1807_v11 = vld [vmem:[%s12661_s3 + $0x70] sm:$0xff]  ;;  %v1805_v13 = vld [vmem:[%s12661_s3 + $0x60] sm:$0xff] }
 0x331   :  { %v972_v23 = vpop.f32.mrf.mxu2  ;;  %v985_v24 = vpop.f32.mrf.mxu3 }
 0x332   :  { %v13114_v25 = vadd.f32 %v985_v24, %v972_v23  ;;  %v948_v26 = vpop.f32.mrf.mxu0  ;;  %v961_v27 = vpop.f32.mrf.mxu1  ;;  %v11879_v23 = vld [vmem:[%s12651_s25 + $0x344] sm:$0xf]  ;;  %v9149_v24 = vld [vmem:[%s12651_s25 + $0x348] sm:$0xf0] }
 0x333   :  { %v9212_v26 = vor.u32 %v11896_v1, %v9211_v0  ;;  %v9152_v27 = vor.u32 %v11879_v23, %v9149_v24  ;;  %v1775_v1 = vld [vmem:[%s12656_s29 + $0x70] sm:$0xff]  ;;  %v1792_v23 = vld [vmem:[%s12656_s29 + $0xf8] sm:$0xff]  ;;  %v1774_v24 = vld [vmem:[%s12656_s29 + $0x68] sm:$0xff] }
 0x335   :  { %1723 = vmatpush.bf16.msrb.mxu1 %v9212_v26  ;;  %v1791_v26 = vld [vmem:[%s12656_s29 + $0xf0] sm:$0xff] }
 0x339   :  { %v974_v28 = vpop.f32.mrf.mxu2  ;;  %v987_v29 = vpop.f32.mrf.mxu3  ;;  %1724 = vmatpush.bf16.msrb.mxu1 %v9204_v35 }
 0x33a   :  { %v13116_v30 = vpop.f32.mrf.mxu0  ;;  %v13118_v31 = vpop.f32.mrf.mxu1  ;;  %v11895_v28 = vld [vmem:[%s12651_s25 + $0x3c4] sm:$0xf]  ;;  %v9213_v29 = vld [vmem:[%s12651_s25 + $0x3c8] sm:$0xf0] }
 0x33b   :  { %v9216_v32 = vor.u32 %v11895_v28, %v9213_v29  ;;  %v1790_v29 = vld [vmem:[%s12656_s29 + $0xe8] sm:$0xff]  ;;  %v1159_v33 = vadd.f32 %v13116_v30, %v13111_v21 }
 0x33c   :  { %v1770_v21 = vld [vmem:[%s12656_s29 + $0x48] sm:$0xff] }
 0x33d   :  { %v1172_v43 = vadd.f32 %v13118_v31, %v1159_v33 }
 0x341   :  { %v13125_v41 = vpop.f32.mrf.mxu2  ;;  %v13127_v42 = vpop.f32.mrf.mxu3 }
 0x342   :  { %v1160_v36 = vpop.f32.mrf.mxu0  ;;  %v1173_v45 = vpop.f32.mrf.mxu1  ;;  %v1185_v0 = vadd.f32 %v13125_v41, %v13114_v25  ;;  %v1773_v41 = vld [vmem:[%s12656_s29 + $0x60] sm:$0xff] }
 0x343   :  { %v11893_v36 = vld [vmem:[%s12651_s25 + $0x3b4] sm:$0xf]  ;;  %v9205_v45 = vld [vmem:[%s12651_s25 + $0x3b8] sm:$0xf0] }
 0x344   :  { %v9208_v46 = vor.u32 %v11893_v36, %v9205_v45 }
 0x349   :  { %v1186_v49 = vpop.f32.mrf.mxu2  ;;  %v1199_v50 = vpop.f32.mrf.mxu3 }
 0x34a   :  { %v1215_v54 = vpop.f32.mrf.mxu0  ;;  %v1228_v55 = vpop.f32.mrf.mxu1  ;;  %v9195_v49 = vld [vmem:[%s12651_s25 + $0x3a0] sm:$0xf]  ;;  %v9132_v50 = vor.u32 %v11876_v48, %v9131_v47 }
 0x34b   :  { %v1232_v56 = vpack.c.bf16 %v1215_v54, %v1215_v54  ;;  %v1233_v57 = vpack.c.bf16 %v1228_v55, %v1228_v55  ;;  %v9196_v54 = vor.u32 %v11892_v51, %v9195_v49  ;;  %v9136_v55 = vor.u32 %v11875_v52, %v9133_v53  ;;  %v1769_v52 = vld [vmem:[%s12656_s29 + $0x40] sm:$0xff]  ;;  %v1788_v53 = vld [vmem:[%s12656_s29 + $0xd8] sm:$0xff] }
 0x34c   :  { %1712 = vmatpush.bf16.msrb.mxu0 %v9132_v50 }
 0x34d   :  { %1435 = vmatmul.bf16.vlgmr.msrb.gmra.mxu2 %v1232_v56  ;;  %1448 = vmatmul.bf16.vlgmr.msrb.gmra.mxu3 %v1233_v57 }
 0x34e   :  { %1461 = vmatmul.bf16.vlgmr.msra.gmra.mxu0 %v1232_v56  ;;  %1474 = vmatmul.bf16.vlgmr.msra.gmra.mxu1 %v1233_v57  ;;  %v11891_v56 = vld [vmem:[%s12651_s25 + $0x3a4] sm:$0xf]  ;;  %v9197_v57 = vld [vmem:[%s12651_s25 + $0x3a8] sm:$0xf0] }
 0x34f   :  { %1733 = vmatpush.bf16.msrb.mxu2 %v9176_v58  ;;  %1746 = vmatpush.bf16.msrb.mxu3 %v9240_v59  ;;  %v9123_v58 = vld [vmem:[%s12651_s25 + $0x310] sm:$0xf]  ;;  %v9200_v59 = vor.u32 %v11891_v56, %v9197_v57  ;;  %v1786_v57 = vld [vmem:[%s12656_s29 + $0xc8] sm:$0xff] }
 0x350   :  { %1725 = vmatpush.bf16.msrb.mxu1 %v9196_v54  ;;  %v9124_v63 = vor.u32 %v11874_v60, %v9123_v58  ;;  %v1768_v54 = vld [vmem:[%s12656_s29 + $0x38] sm:$0xff]  ;;  %v1767_v56 = vld [vmem:[%s12656_s29 + $0x30] sm:$0xff]  ;;  %v1766_v58 = vld [vmem:[%s12656_s29 + $0x28] sm:$0xff] }
 0x351   :  { %v1765_v60 = vld [vmem:[%s12656_s29 + $0x20] sm:$0xff] }
 0x352   :  { %v1217_v4 = vpop.f32.mrf.mxu0  ;;  %v1230_v5 = vpop.f32.mrf.mxu1  ;;  %1713 = vmatpush.bf16.msrb.mxu0 %v9124_v63  ;;  %v1783_v63 = vld [vmem:[%s12656_s29 + $0xb0] sm:$0xff] }
 0x353   :  { %1734 = vmatpush.bf16.msrb.mxu2 %v9168_v2  ;;  %1747 = vmatpush.bf16.msrb.mxu3 %v9232_v3  ;;  %v9188_v2 = vor.u32 %v11890_v62, %v9187_v61  ;;  %v11873_v3 = vld [vmem:[%s12651_s25 + $0x314] sm:$0xf]  ;;  %v9125_v4 = vld [vmem:[%s12651_s25 + $0x318] sm:$0xf0] }
 0x354   :  { %v11889_v5 = vld [vmem:[%s12651_s25 + $0x394] sm:$0xf]  ;;  %v1784_v61 = vld [vmem:[%s12656_s29 + $0xb8] sm:$0xff] }
 0x355   :  { %v9192_v8 = vor.u32 %v11889_v5, %v9189_v7  ;;  %1726 = vmatpush.bf16.msrb.mxu1 %v9188_v2  ;;  %v1764_v62 = vld [vmem:[%s12656_s29 + $0x18] sm:$0xff]  ;;  %v1763_v2 = vld [vmem:[%s12656_s29 + $0x10] sm:$0xff]  ;;  %v1781_v5 = vld [vmem:[%s12656_s29 + $0xa0] sm:$0xff] }
 0x356   :  { %1714 = vmatpush.bf16.msrb.mxu0 %v9116_v12  ;;  %v1780_v7 = vld [vmem:[%s12656_s29 + $0x98] sm:$0xff] }
 0x357   :  { %1735 = vmatpush.bf16.msrb.mxu2 %v9160_v15  ;;  %1748 = vmatpush.bf16.msrb.mxu3 %v9224_v18  ;;  %v9117_v15 = vld [vmem:[%s12651_s25 + $0x308] sm:$0xf0]  ;;  %v11887_v18 = vld [vmem:[%s12651_s25 + $0x384] sm:$0xf]  ;;  %v1808_v12 = vld [vmem:[%s12661_s3 + $0x78] sm:$0xff]  ;;  %s14066_s25 = sld [smem:[#allocation19_spill]] }
 0x358   :  { %v9120_v17 = vor.u32 %v11871_v14, %v9117_v15  ;;  %v9184_v20 = vor.u32 %v11887_v18, %v9181_v19  ;;  %v1806_v14 = vld [vmem:[%s12661_s3 + $0x68] sm:$0xff] }
 0x359   :  { %1727 = vmatpush.bf16.msrb.mxu1 %v9180_v16 }
 0x35a   :  { %1835 = vmatpush.msra.mxu0 %v1776_v22 }
 0x35b   :  { %1736 = vmatpush.bf16.msrb.mxu2 %v9152_v27  ;;  %1749 = vmatpush.bf16.msrb.mxu3 %v9216_v32  ;;  %v1198_v32 = vadd.f32 %v13127_v42, %v1185_v0 }
 0x35c   :  { %1836 = vmatpush.msra.mxu0 %v1775_v1 }
 0x35d   :  { %9079 = vmatmul.msk.bf16.vlgmr.msra.gmra.mxu2 %vm647_vm6, %v9078_v6  ;;  %9080 = vmatmul.msk.bf16.vlgmr.msra.gmra.mxu3 %vm647_vm6, %v9078_v6  ;;  %v9128_v6 = vor.u32 %v11873_v3, %v9125_v4  ;;  %v1782_v3 = vld [vmem:[%s12656_s29 + $0xa8] sm:$0xff] }
 0x35e   :  { %1855 = vmatpush.msra.mxu1 %v1792_v23  ;;  %1837 = vmatpush.msra.mxu0 %v1774_v24  ;;  %v1762_v4 = vld [vmem:[%s12656_s29 + $0x8] sm:$0xff] }
 0x35f   :  { %1737 = vmatpush.bf16.msrb.mxu2 %v9144_v44  ;;  %1750 = vmatpush.bf16.msrb.mxu3 %v9208_v46 }
 0x360   :  { %1856 = vmatpush.msra.mxu1 %v1791_v26  ;;  %1838 = vmatpush.msra.mxu0 %v1773_v41 }
 0x362   :  { %1857 = vmatpush.msra.mxu1 %v1790_v29  ;;  %1839 = vmatpush.msra.mxu0 %v1772_v38 }
 0x363   :  { %1738 = vmatpush.bf16.msrb.mxu2 %v9136_v55  ;;  %1751 = vmatpush.bf16.msrb.mxu3 %v9200_v59  ;;  %v1787_v55 = vld [vmem:[%s12656_s29 + $0xd0] sm:$0xff]  ;;  %v1785_v59 = vld [vmem:[%s12656_s29 + $0xc0] sm:$0xff] }
 0x364   :  { %1858 = vmatpush.msra.mxu1 %v1789_v34  ;;  %1840 = vmatpush.msra.mxu0 %v1771_v40 }
 0x366   :  { %1841 = vmatpush.msra.mxu0 %v1770_v21  ;;  %1859 = vmatpush.msra.mxu1 %v1788_v53 }
 0x367   :  { %1739 = vmatpush.bf16.msrb.mxu2 %v9128_v6  ;;  %1752 = vmatpush.bf16.msrb.mxu3 %v9192_v8  ;;  %v1761_v6 = vld [vmem:[%s12656_s29] sm:$0xff]  ;;  %v1779_v8 = vld [vmem:[%s12656_s29 + $0x90] sm:$0xff]  ;;  %s14067_s29 = sld [smem:[#allocation21_spill]] }
 0x368   :  { %1842 = vmatpush.msra.mxu0 %v1769_v52  ;;  %1860 = vmatpush.msra.mxu1 %v1787_v55 }
 0x36a   :  { %1843 = vmatpush.msra.mxu0 %v1768_v54  ;;  %1861 = vmatpush.msra.mxu1 %v1786_v57 }
 0x36b   :  { %1740 = vmatpush.bf16.msrb.mxu2 %v9120_v17  ;;  %1753 = vmatpush.bf16.msrb.mxu3 %v9184_v20 }
 0x36c   :  { %1844 = vmatpush.msra.mxu0 %v1767_v56  ;;  %1862 = vmatpush.msra.mxu1 %v1785_v59 }
 0x36e   :  { %1845 = vmatpush.msra.mxu0 %v1766_v58  ;;  %1863 = vmatpush.msra.mxu1 %v1784_v61 }
 0x36f   :  { %1876 = vmatpush.msra.mxu2 %v1776_v22  ;;  %1896 = vmatpush.msra.mxu3 %v1792_v23 }
 0x370   :  { %1846 = vmatpush.msra.mxu0 %v1765_v60  ;;  %1864 = vmatpush.msra.mxu1 %v1783_v63 }
 0x371   :  { %1877 = vmatpush.msra.mxu2 %v1775_v1  ;;  %1897 = vmatpush.msra.mxu3 %v1791_v26 }
 0x372   :  { %1847 = vmatpush.msra.mxu0 %v1764_v62  ;;  %1865 = vmatpush.msra.mxu1 %v1782_v3 }
 0x373   :  { %1878 = vmatpush.msra.mxu2 %v1774_v24  ;;  %1898 = vmatpush.msra.mxu3 %v1790_v29 }
 0x374   :  { %1848 = vmatpush.msra.mxu0 %v1763_v2  ;;  %1866 = vmatpush.msra.mxu1 %v1781_v5 }
 0x375   :  { %1879 = vmatpush.msra.mxu2 %v1773_v41  ;;  %1899 = vmatpush.msra.mxu3 %v1789_v34 }
 0x376   :  { %1849 = vmatpush.msra.mxu0 %v1762_v4  ;;  %1867 = vmatpush.msra.mxu1 %v1780_v7 }
 0x377   :  { %1880 = vmatpush.msra.mxu2 %v1772_v38  ;;  %1900 = vmatpush.msra.mxu3 %v1788_v53  ;;  %v1801_v53 = vld [vmem:[%s12661_s3 + $0x40] sm:$0xff] }
 0x378   :  { %1850 = vmatpush.msra.mxu0 %v1761_v6  ;;  %1868 = vmatpush.msra.mxu1 %v1779_v8 }
 0x379   :  { %1881 = vmatpush.msra.mxu2 %v1771_v40  ;;  %1901 = vmatpush.msra.mxu3 %v1787_v55  ;;  %v1799_v55 = vld [vmem:[%s12661_s3 + $0x30] sm:$0xff] }
 0x37a   :  { %1869 = vmatpush.msra.mxu1 %v1778_v9 }
 0x37b   :  { %1882 = vmatpush.msra.mxu2 %v1770_v21  ;;  %1902 = vmatpush.msra.mxu3 %v1786_v57  ;;  %v1797_v57 = vld [vmem:[%s12661_s3 + $0x20] sm:$0xff] }
 0x37c   :  { %1870 = vmatpush.msra.mxu1 %v1777_v10 }
 0x37d   :  { %1883 = vmatpush.msra.mxu2 %v1769_v52  ;;  %1903 = vmatpush.msra.mxu3 %v1785_v59  ;;  %v1804_v52 = vld [vmem:[%s12661_s3 + $0x58] sm:$0xff]  ;;  %v1795_v59 = vld [vmem:[%s12661_s3 + $0x10] sm:$0xff] }
 0x37f   :  { %1884 = vmatpush.msra.mxu2 %v1768_v54  ;;  %1904 = vmatpush.msra.mxu3 %v1784_v61  ;;  %v1802_v54 = vld [vmem:[%s12661_s3 + $0x48] sm:$0xff]  ;;  %v1793_v61 = vld [vmem:[%s12661_s3] sm:$0xff] }
 0x381   :  { %1885 = vmatpush.msra.mxu2 %v1767_v56  ;;  %1905 = vmatpush.msra.mxu3 %v1783_v63  ;;  %v1800_v56 = vld [vmem:[%s12661_s3 + $0x38] sm:$0xff] }
 0x383   :  { %1886 = vmatpush.msra.mxu2 %v1766_v58  ;;  %1906 = vmatpush.msra.mxu3 %v1782_v3  ;;  %v1798_v58 = vld [vmem:[%s12661_s3 + $0x28] sm:$0xff] }
 0x385   :  { %1887 = vmatpush.msra.mxu2 %v1765_v60  ;;  %1907 = vmatpush.msra.mxu3 %v1781_v5  ;;  %v1796_v60 = vld [vmem:[%s12661_s3 + $0x18] sm:$0xff] }
 0x387   :  { %1888 = vmatpush.msra.mxu2 %v1764_v62  ;;  %1908 = vmatpush.msra.mxu3 %v1780_v7  ;;  %v1794_v62 = vld [vmem:[%s12661_s3 + $0x8] sm:$0xff] }
 0x389   :  { %1889 = vmatpush.msra.mxu2 %v1763_v2  ;;  %1909 = vmatpush.msra.mxu3 %v1779_v8 }
 0x38b   :  { %1890 = vmatpush.msra.mxu2 %v1762_v4  ;;  %1910 = vmatpush.msra.mxu3 %v1778_v9 }
 0x38d   :  { %1891 = vmatpush.msra.mxu2 %v1761_v6  ;;  %1911 = vmatpush.msra.mxu3 %v1777_v10 }
 0x3cb   :  { %v1462_v27 = vpop.f32.mrf.mxu0  ;;  %v1475_v28 = vpop.f32.mrf.mxu1 }
 0x3cc   :  { %v1476_v25 = vadd.f32 %v1475_v28, %v1462_v27 }
 0x3ce   :  { %v13204_v37 = vadd.f32 %v1476_v25, %v1198_v32 }
 0x3d0   :  { %v1436_v42 = vpop.f32.mrf.mxu2  ;;  %v1449_v39 = vpop.f32.mrf.mxu3 }
 0x3d1   :  { %v1450_v35 = vadd.f32 %v1449_v39, %v1436_v42 }
 0x3d3   :  { %v13210_v30 = vadd.f32 %v1450_v35, %v1172_v43  ;;  %v1464_v44 = vpop.f32.mrf.mxu0  ;;  %v1477_v36 = vpop.f32.mrf.mxu1 }
 0x3d8   :  { %v1438_v45 = vpop.f32.mrf.mxu2  ;;  %v1451_v46 = vpop.f32.mrf.mxu3 }
 0x3e0   :  { %v1495_v47 = vpop.f32.mrf.mxu2  ;;  %v1508_v31 = vpop.f32.mrf.mxu3 }
 0x3e1   :  { %v1512_v48 = vpack.c.bf16 %v1495_v47, %v1495_v47  ;;  %v1513_v49 = vpack.c.bf16 %v1508_v31, %v1508_v31 }
 0x3e3   :  { %1715 = vmatmul.bf16.vlgmr.msrb.gmra.mxu0 %v1512_v48  ;;  %1728 = vmatmul.bf16.vlgmr.msrb.gmra.mxu1 %v1513_v49 }
 0x3e4   :  { %1741 = vmatmul.bf16.vlgmr.msrb.gmra.mxu2 %v1512_v48  ;;  %1754 = vmatmul.bf16.vlgmr.msrb.gmra.mxu3 %v1513_v49 }
 0x3e5   :  { %1941 = vmatpush.msrb.mxu0 %v1807_v11  ;;  %1961 = vmatpush.msrb.mxu1 %v1808_v12 }
 0x3e6   :  { %1984 = vmatpush.msrb.mxu2 %v1807_v11  ;;  %2004 = vmatpush.msrb.mxu3 %v1808_v12 }
 0x3e7   :  { %1942 = vmatpush.msrb.mxu0 %v1805_v13  ;;  %1962 = vmatpush.msrb.mxu1 %v1806_v14 }
 0x3e8   :  { %v1497_v50 = vpop.f32.mrf.mxu2  ;;  %v1510_v51 = vpop.f32.mrf.mxu3  ;;  %1985 = vmatpush.msrb.mxu2 %v1805_v13  ;;  %2005 = vmatpush.msrb.mxu3 %v1806_v14 }
 0x3e9   :  { %v1803_v51 = vld [vmem:[%s12661_s3 + $0x50] sm:$0xff]  ;;  %1963 = vmatpush.msrb.mxu1 %v1804_v52  ;;  %s14068_s3 = sld [smem:[#allocation20_spill]] }
 0x3ea   :  { %1943 = vmatpush.msrb.mxu0 %v1803_v51  ;;  %1986 = vmatpush.msrb.mxu2 %v1803_v51  ;;  %v11923_v51 = vld [vmem:[%s12671_s14 + $0xa0] sm:$0xff] }
 0x3eb   :  { %2006 = vmatpush.msrb.mxu3 %v1804_v52  ;;  %1964 = vmatpush.msrb.mxu1 %v1802_v54  ;;  %v11931_v52 = vld [vmem:[%s12671_s14 + $0xe0] sm:$0xff] }
 0x3ec   :  { %1944 = vmatpush.msrb.mxu0 %v1801_v53  ;;  %1987 = vmatpush.msrb.mxu2 %v1801_v53  ;;  %v11907_v53 = vld [vmem:[%s12671_s14 + $0x20] sm:$0xff] }
 0x3ed   :  { %2007 = vmatpush.msrb.mxu3 %v1802_v54  ;;  %1965 = vmatpush.msrb.mxu1 %v1800_v56  ;;  %v11915_v54 = vld [vmem:[%s12671_s14 + $0x60] sm:$0xff] }
 0x3ee   :  { %1945 = vmatpush.msrb.mxu0 %v1799_v55  ;;  %1988 = vmatpush.msrb.mxu2 %v1799_v55  ;;  %v11922_v55 = vld [vmem:[%s12671_s14 + $0x98] sm:$0xff] }
 0x3ef   :  { %2008 = vmatpush.msrb.mxu3 %v1800_v56  ;;  %1966 = vmatpush.msrb.mxu1 %v1798_v58  ;;  %v11930_v56 = vld [vmem:[%s12671_s14 + $0xd8] sm:$0xff] }
 0x3f0   :  { %1946 = vmatpush.msrb.mxu0 %v1797_v57  ;;  %1989 = vmatpush.msrb.mxu2 %v1797_v57  ;;  %v11906_v57 = vld [vmem:[%s12671_s14 + $0x18] sm:$0xff] }
 0x3f1   :  { %2009 = vmatpush.msrb.mxu3 %v1798_v58  ;;  %1967 = vmatpush.msrb.mxu1 %v1796_v60  ;;  %v11914_v58 = vld [vmem:[%s12671_s14 + $0x58] sm:$0xff] }
 0x3f2   :  { %1947 = vmatpush.msrb.mxu0 %v1795_v59  ;;  %1990 = vmatpush.msrb.mxu2 %v1795_v59  ;;  %v11921_v59 = vld [vmem:[%s12671_s14 + $0x90] sm:$0xff] }
 0x3f3   :  { %2010 = vmatpush.msrb.mxu3 %v1796_v60  ;;  %1968 = vmatpush.msrb.mxu1 %v1794_v62  ;;  %v11929_v60 = vld [vmem:[%s12671_s14 + $0xd0] sm:$0xff] }
 0x3f4   :  { %1948 = vmatpush.msrb.mxu0 %v1793_v61  ;;  %1991 = vmatpush.msrb.mxu2 %v1793_v61  ;;  %v11905_v61 = vld [vmem:[%s12671_s14 + $0x10] sm:$0xff] }
 0x3f5   :  { %2011 = vmatpush.msrb.mxu3 %v1794_v62  ;;  %v11913_v62 = vld [vmem:[%s12671_s14 + $0x50] sm:$0xff] }
 0x460   :  { %v1716_v15 = vpop.f32.mrf.mxu0  ;;  %v1729_v16 = vpop.f32.mrf.mxu1 }
 0x461   :  { %v1730_v17 = vadd.f32 %v1729_v16, %v1716_v15 }
 0x463   :  { %v13238_v18 = vadd.f32 %v1730_v17, %v13210_v30 }
 0x465   :  { %v1809_v19 = vrot.slane %v13238_v18, 4  ;;  %v1821_v20 = vmul.f32 %v13238_v18, %v13238_v18 }
 0x467   :  { %v1810_v0 = vadd.f32 %v1809_v19, %v13238_v18  ;;  %v1823_v22 = vrot.slane %v1821_v20, 4  ;;  %v1742_v1 = vpop.f32.mrf.mxu2  ;;  %v1755_v23 = vpop.f32.mrf.mxu3 }
 0x468   :  { %v1756_v24 = vadd.f32 %v1755_v23, %v1742_v1  ;;  %v1718_v26 = vpop.f32.mrf.mxu0  ;;  %v1731_v27 = vpop.f32.mrf.mxu1 }
 0x469   :  { %v1811_v28 = vrot.slane %v1810_v0, 2  ;;  %v1824_v29 = vadd.f32 %v1823_v22, %v1821_v20 }
 0x46a   :  { %v13245_v32 = vadd.f32 %v1756_v24, %v13204_v37 }
 0x46b   :  { %v1812_v25 = vadd.f32 %v1811_v28, %v1810_v0  ;;  %v1825_v41 = vrot.slane %v1824_v29, 2 }
 0x46c   :  { %v1815_v33 = vrot.slane %v13245_v32, 4  ;;  %v1822_v34 = vmul.f32 %v13245_v32, %v13245_v32 }
 0x46d   :  { %v1813_v38 = vrot.slane %v1812_v25, 1  ;;  %v1826_v42 = vadd.f32 %v1825_v41, %v1824_v29 }
 0x46e   :  { %v1816_v39 = vadd.f32 %v1815_v33, %v13245_v32  ;;  %v1829_v40 = vrot.slane %v1822_v34, 4 }
 0x46f   :  { %v1744_v43 = vpop.f32.mrf.mxu2  ;;  %v1757_v35 = vpop.f32.mrf.mxu3  ;;  %v1814_v21 = vadd.f32 %v1813_v38, %v1812_v25  ;;  %v1827_v30 = vrot.slane %v1826_v42, 1 }
 0x470   :  { %v1817_v37 = vrot.slane %v1816_v39, 2  ;;  %v1830_v44 = vadd.f32 %v1829_v40, %v1822_v34  ;;  %v11926_v40 = vld [vmem:[%s12671_s14 + $0xb8] sm:$0xff] }
 0x471   :  { %1851 = vmatmul.f32.vlgmr.msra.gmra.mxu0 %v1814_v21  ;;  %v1828_v36 = vadd.f32 %v1827_v30, %v1826_v42  ;;  %v2032_v21 = vld [vmem:[%s12666_s8] sm:$0x1]  ;;  %v9247_v30 = vld [vmem:[%s12666_s8 + $0x1] sm:$0x1] }
 0x472   :  { %v1818_v45 = vadd.f32 %v1817_v37, %v1816_v39  ;;  %v1831_v46 = vrot.slane %v1830_v44, 2  ;;  %v11910_v37 = vld [vmem:[%s12671_s14 + $0x38] sm:$0xff] }
 0x473   :  { %1892 = vmatmul.f32.vlgmr.msra.gmra.mxu2 %v1828_v36  ;;  %v11925_v36 = vld [vmem:[%s12671_s14 + $0xb0] sm:$0xff] }
 0x474   :  { %v1819_v47 = vrot.slane %v1818_v45, 1  ;;  %v1832_v31 = vadd.f32 %v1831_v46, %v1830_v44  ;;  %v11918_v44 = vld [vmem:[%s12671_s14 + $0x78] sm:$0xff]  ;;  %v11909_v46 = vld [vmem:[%s12671_s14 + $0x30] sm:$0xff] }
 0x476   :  { %v1820_v48 = vadd.f32 %v1819_v47, %v1818_v45  ;;  %v1833_v49 = vrot.slane %v1832_v31, 1  ;;  %v11933_v45 = vld [vmem:[%s12671_s14 + $0xf0] sm:$0xff] }
 0x477   :  { %v11917_v47 = vld [vmem:[%s12671_s14 + $0x70] sm:$0xff] }
 0x478   :  { %1871 = vmatmul.f32.vlgmr.msra.gmra.mxu1 %v1820_v48  ;;  %v1834_v50 = vadd.f32 %v1833_v49, %v1832_v31  ;;  %v11924_v31 = vld [vmem:[%s12671_s14 + $0xa8] sm:$0xff] }
 0x479   :  { %v11932_v48 = vld [vmem:[%s12671_s14 + $0xe8] sm:$0xff] }
 0x47a   :  { %1912 = vmatmul.f32.vlgmr.msra.gmra.mxu3 %v1834_v50  ;;  %v11908_v49 = vld [vmem:[%s12671_s14 + $0x28] sm:$0xff] }
 0x47b   :  { %v11916_v50 = vld [vmem:[%s12671_s14 + $0x68] sm:$0xff] }
 0x4ee   :  { %v1852_v63 = vpop.f32.mrf.mxu0 }
 0x4f5   :  { %v1872_v2 = vpop.f32.mrf.mxu1 }
 0x4f6   :  { %v1873_v3 = vadd.f32 %v1872_v2, %v1852_v63  ;;  %v1893_v5 = vpop.f32.mrf.mxu2  ;;  %v11920_v63 = vld [vmem:[%s12671_s14 + $0x88] sm:$0xff] }
 0x4f7   :  { %v11928_v2 = vld [vmem:[%s12671_s14 + $0xc8] sm:$0xff] }
 0x4f8   :  { %v1875_v4 = vmul.f32 0.03125, %v1873_v3  ;;  %v11904_v3 = vld [vmem:[%s12671_s14 + $0x8] sm:$0xff] }
 0x4fa   :  { %9241 = vmatmul.msk.f32.vlgmr.msrb.gmra.mxu0 %vm299_vm1, %v1875_v4  ;;  %9242 = vmatmul.msk.f32.vlgmr.msrb.gmra.mxu1 %vm299_vm1, %v1875_v4  ;;  %v1917_v9 = vmul.f32 %v1875_v4, %v1875_v4  ;;  %v11912_v4 = vld [vmem:[%s12671_s14 + $0x48] sm:$0xff] }
 0x4fd   :  { %v1913_v6 = vpop.f32.mrf.mxu3 }
 0x4fe   :  { %v1914_v7 = vadd.f32 %v1913_v6, %v1893_v5  ;;  %v11919_v5 = vld [vmem:[%s12671_s14 + $0x80] sm:$0xff] }
 0x4ff   :  { %v11927_v6 = vld [vmem:[%s12671_s14 + $0xc0] sm:$0xff] }
 0x500   :  { %v1916_v8 = vmul.f32 0.03125, %v1914_v7  ;;  %v11903_v7 = vld [vmem:[%s12671_s14] sm:$0xff] }
 0x502   :  { %v1918_v10 = vsub.f32 %v1916_v8, %v1917_v9  ;;  %v11911_v8 = vld [vmem:[%s12671_s14 + $0x40] sm:$0xff] }
 0x504   :  { %v1919_v11 = vadd.f32 1e-05, %v1918_v10 }
 0x506   :  { %12458 = vrsqrt.f32 %v1919_v11  ;;  %vm1926_vm8 = vweird.f32 %v1919_v11 }
 0x50c   :  { %v12459_v12 = vpop.eup %12458 }
 0x50d   :  { %v1921_v13 = vmul.f32 %v12459_v12, %v1919_v11  ;;  %vm1927_vm7 = vweird.f32 %v12459_v12 }
 0x50e   :  { %vm1928_vm9 = vmor %vm1926_vm8, %vm1927_vm7 }
 0x50f   :  { %v1922_v14 = vmul.f32 %v12459_v12, %v1921_v13 }
 0x511   :  { %v1923_v15 = vmul.f32 0.5, %v1922_v14 }
 0x513   :  { %v1924_v16 = vsub.f32 1.5, %v1923_v15 }
 0x515   :  { %v1925_v17 = vmul.f32 %v12459_v12, %v1924_v16 }
 0x517   :  { %v1929_v19 = vsel %vm1928_vm9, %v12459_v12, %v1925_v17 }
 0x518   :  { %9243 = vmatmul.msk.f32.vlgmr.msrb.gmra.mxu2 %vm299_vm1, %v1929_v19  ;;  %9244 = vmatmul.msk.f32.vlgmr.msrb.gmra.mxu3 %vm299_vm1, %v1929_v19 }
 0x577   :  { %v1950_v20 = vpop.f32.mrf.mxu0  ;;  %v1970_v0 = vpop.f32.mrf.mxu1 }
 0x578   :  { %v2016_v22 = vperm.slane %v1950_v20, 0  ;;  %v2017_v1 = vperm.slane %v1970_v0, 0  ;;  %v11942_v20 = vld [vmem:[%s12671_s14 + $0x138] sm:$0xff] }
 0x579   :  { %v11950_v0 = vld [vmem:[%s12671_s14 + $0x178] sm:$0xff] }
 0x57a   :  { %v2018_v26 = vsub.f32 %v13238_v18, %v2016_v22  ;;  %v2019_v27 = vsub.f32 %v13245_v32, %v2017_v1  ;;  %v11934_v32 = vld [vmem:[%s12671_s14 + $0xf8] sm:$0xff]  ;;  %v11941_v22 = vld [vmem:[%s12671_s14 + $0x130] sm:$0xff] }
 0x57b   :  { %v11949_v1 = vld [vmem:[%s12671_s14 + $0x170] sm:$0xff] }
 0x59b   :  { %v1993_v23 = vpop.f32.mrf.mxu2  ;;  %v2013_v24 = vpop.f32.mrf.mxu3 }
 0x59c   :  { %v2020_v28 = vperm.slane %v1993_v23, 0  ;;  %v2021_v29 = vperm.slane %v2013_v24, 0 }
 0x59e   :  { %v2022_v25 = vmul.f32 %v2020_v28, %v2018_v26  ;;  %v2023_v41 = vmul.f32 %v2021_v29, %v2019_v27  ;;  %v11940_v26 = vld [vmem:[%s12671_s14 + $0x128] sm:$0xff]  ;;  %v9410_v28 = vld [vmem:[%s12666_s8 + $0x2] sm:$0x1]  ;;  %v9509_v29 = vld [vmem:[%s12666_s8 + $0x3] sm:$0x1]  ;;  %s14069_s8 = sld [smem:[#allocation24_spill]] }
 0x59f   :  { %v11948_v27 = vld [vmem:[%s12671_s14 + $0x168] sm:$0xff] }
 0x5a0   :  { %v2026_v33 = vmul.f32 0.2, %v2022_v25  ;;  %v2027_v34 = vmul.f32 0.2, %v2023_v41  ;;  %vm2024_vm10 = vcmp.gt.f32.partialorder %v2022_v25, 0.0  ;;  %vm2025_vm11 = vcmp.gt.f32.partialorder %v2023_v41, 0.0 }
 0x5a2   :  { %v2028_v38 = vsel %vm2024_vm10, %v2022_v25, %v2026_v33  ;;  %v2029_v42 = vsel %vm2025_vm11, %v2023_v41, %v2027_v34  ;;  %v11939_v25 = vld [vmem:[%s12671_s14 + $0x120] sm:$0xff]  ;;  %v11938_v33 = vld [vmem:[%s12671_s14 + $0x118] sm:$0xff] }
 0x5a3   :  { %v2030_v39 = vpack.c.bf16 %v2028_v38, %v2028_v38  ;;  %v2031_v18 = vpack.c.bf16 %v2029_v42, %v2029_v42  ;;  %v11947_v41 = vld [vmem:[%s12671_s14 + $0x160] sm:$0xff]  ;;  %v11946_v34 = vld [vmem:[%s12671_s14 + $0x158] sm:$0xff] }
 0x5a4   :  { %v11958_v38 = vld [vmem:[%s12671_s14 + $0x1b8] sm:$0xff] }
 0x5a5   :  { %v13272_v43 = vsel %vm2037_vm12, %v2030_v39, 0  ;;  %v13275_v35 = vsel %vm2037_vm12, %v2031_v18, 0  ;;  %v11966_v42 = vld [vmem:[%s12671_s14 + $0x1f8] sm:$0xff]  ;;  %v11937_v39 = vld [vmem:[%s12671_s14 + $0x110] sm:$0xff] }
 0x5a6   :  { %2051 = vmatpush.bf16.msra.mxu0 %v13272_v43  ;;  %2064 = vmatpush.bf16.msra.mxu1 %v13275_v35  ;;  %v11945_v18 = vld [vmem:[%s12671_s14 + $0x150] sm:$0xff] }
 0x5a7   :  { %2116 = vmatpush.bf16.msra.mxu2 %v13272_v43  ;;  %2129 = vmatpush.bf16.msra.mxu3 %v13275_v35 }
 0x5a9   :  { %9245 = vmatmul.msk.bf16.vlgmr.msra.gmra.mxu0 %vm2033_vm13, %v2032_v21  ;;  %9246 = vmatmul.msk.bf16.vlgmr.msra.gmra.mxu1 %vm2033_vm13, %v2032_v21  ;;  %v11956_v21 = vld [vmem:[%s12671_s14 + $0x1a8] sm:$0xff] }
 0x5aa   :  { %2266 = vmatpush.bf16.msrb.mxu0 %v11926_v40  ;;  %2279 = vmatpush.bf16.msrb.mxu1 %v11934_v32  ;;  %v11957_v40 = vld [vmem:[%s12671_s14 + $0x1b0] sm:$0xff] }
 0x5ab   :  { %9248 = vmatmul.msk.bf16.vlgmr.msra.gmra.mxu2 %vm2033_vm13, %v9247_v30  ;;  %9249 = vmatmul.msk.bf16.vlgmr.msra.gmra.mxu3 %vm2033_vm13, %v9247_v30  ;;  %v11965_v32 = vld [vmem:[%s12671_s14 + $0x1f0] sm:$0xff]  ;;  %v11964_v30 = vld [vmem:[%s12671_s14 + $0x1e8] sm:$0xff] }
 0x5ac   :  { %2388 = vmatpush.bf16.msrb.mxu2 %v11910_v37  ;;  %2401 = vmatpush.bf16.msrb.mxu3 %v11918_v44  ;;  %v11935_v37 = vld [vmem:[%s12671_s14 + $0x100] sm:$0xff] }
 0x5ad   :  { %v11943_v44 = vld [vmem:[%s12671_s14 + $0x140] sm:$0xff] }
 0x5ae   :  { %2267 = vmatpush.bf16.msrb.mxu0 %v11925_v36  ;;  %2280 = vmatpush.bf16.msrb.mxu1 %v11933_v45  ;;  %v11955_v36 = vld [vmem:[%s12671_s14 + $0x1a0] sm:$0xff] }
 0x5af   :  { %v11963_v45 = vld [vmem:[%s12671_s14 + $0x1e0] sm:$0xff] }
 0x5b0   :  { %2389 = vmatpush.bf16.msrb.mxu2 %v11909_v46  ;;  %2402 = vmatpush.bf16.msrb.mxu3 %v11917_v47  ;;  %v11954_v46 = vld [vmem:[%s12671_s14 + $0x198] sm:$0xff] }
 0x5b1   :  { %v11962_v47 = vld [vmem:[%s12671_s14 + $0x1d8] sm:$0xff] }
 0x5b2   :  { %2268 = vmatpush.bf16.msrb.mxu0 %v11924_v31  ;;  %2281 = vmatpush.bf16.msrb.mxu1 %v11932_v48  ;;  %v11953_v31 = vld [vmem:[%s12671_s14 + $0x190] sm:$0xff] }
 0x5b3   :  { %v11961_v48 = vld [vmem:[%s12671_s14 + $0x1d0] sm:$0xff] }
 0x5b4   :  { %2390 = vmatpush.bf16.msrb.mxu2 %v11908_v49  ;;  %2403 = vmatpush.bf16.msrb.mxu3 %v11916_v50  ;;  %v11952_v49 = vld [vmem:[%s12671_s14 + $0x188] sm:$0xff] }
 0x5b5   :  { %v11960_v50 = vld [vmem:[%s12671_s14 + $0x1c8] sm:$0xff] }
 0x5b6   :  { %2269 = vmatpush.bf16.msrb.mxu0 %v11923_v51  ;;  %2282 = vmatpush.bf16.msrb.mxu1 %v11931_v52 }
 0x5b8   :  { %2391 = vmatpush.bf16.msrb.mxu2 %v11907_v53  ;;  %2404 = vmatpush.bf16.msrb.mxu3 %v11915_v54  ;;  %v11951_v53 = vld [vmem:[%s12671_s14 + $0x180] sm:$0xff] }
 0x5b9   :  { %v11959_v54 = vld [vmem:[%s12671_s14 + $0x1c0] sm:$0xff] }
 0x5ba   :  { %2270 = vmatpush.bf16.msrb.mxu0 %v11922_v55  ;;  %2283 = vmatpush.bf16.msrb.mxu1 %v11930_v56 }
 0x5bc   :  { %2392 = vmatpush.bf16.msrb.mxu2 %v11906_v57  ;;  %2405 = vmatpush.bf16.msrb.mxu3 %v11914_v58 }
 0x5be   :  { %2271 = vmatpush.bf16.msrb.mxu0 %v11921_v59  ;;  %2284 = vmatpush.bf16.msrb.mxu1 %v11929_v60 }
 0x5c0   :  { %2393 = vmatpush.bf16.msrb.mxu2 %v11905_v61  ;;  %2406 = vmatpush.bf16.msrb.mxu3 %v11913_v62 }
 0x5c2   :  { %2272 = vmatpush.bf16.msrb.mxu0 %v11920_v63  ;;  %2285 = vmatpush.bf16.msrb.mxu1 %v11928_v2 }
 0x5c4   :  { %2394 = vmatpush.bf16.msrb.mxu2 %v11904_v3  ;;  %2407 = vmatpush.bf16.msrb.mxu3 %v11912_v4 }
 0x5c6   :  { %2273 = vmatpush.bf16.msrb.mxu0 %v11919_v5  ;;  %2286 = vmatpush.bf16.msrb.mxu1 %v11927_v6 }
 0x5c8   :  { %2395 = vmatpush.bf16.msrb.mxu2 %v11903_v7  ;;  %2408 = vmatpush.bf16.msrb.mxu3 %v11911_v8 }
 0x5ca   :  { %2426 = vmatpush.bf16.msra.mxu0 %v13272_v43  ;;  %2439 = vmatpush.bf16.msra.mxu1 %v13275_v35 }
 0x5cc   :  { %2576 = vmatpush.bf16.msra.mxu2 %v11942_v20  ;;  %2589 = vmatpush.bf16.msra.mxu3 %v11950_v0 }
 0x5d0   :  { %2577 = vmatpush.bf16.msra.mxu2 %v11941_v22  ;;  %2590 = vmatpush.bf16.msra.mxu3 %v11949_v1 }
 0x5d4   :  { %2578 = vmatpush.bf16.msra.mxu2 %v11940_v26  ;;  %2591 = vmatpush.bf16.msra.mxu3 %v11948_v27 }
 0x5d8   :  { %2579 = vmatpush.bf16.msra.mxu2 %v11939_v25  ;;  %2592 = vmatpush.bf16.msra.mxu3 %v11947_v41  ;;  %v12455_v25 = vld [vmem:[%s12676_s19] ss:$0 sm:$0xff]  ;;  %s14071_s19 = sld [smem:[#allocation23_spill]] }
 0x5dc   :  { %2580 = vmatpush.bf16.msra.mxu2 %v11938_v33  ;;  %2593 = vmatpush.bf16.msra.mxu3 %v11946_v34  ;;  %v9625_v33 = vld [vmem:[%s12686_s30 + $0x30] sm:$0xf]  ;;  %v11974_v34 = vld [vmem:[%s12686_s30 + $0x34] sm:$0xf0] }
 0x5e0   :  { %2581 = vmatpush.bf16.msra.mxu2 %v11937_v39  ;;  %2594 = vmatpush.bf16.msra.mxu3 %v11945_v18  ;;  %v9627_v39 = vld [vmem:[%s12686_s30 + $0x38] sm:$0xf0] }
 0x626   :  { %v2053_v9 = vpop.f32.mrf.mxu0  ;;  %v2066_v10 = vpop.f32.mrf.mxu1 }
 0x627   :  { %v2070_v11 = vpack.c.bf16 %v2053_v9, %v2053_v9  ;;  %v2071_v12 = vpack.c.bf16 %v2066_v10, %v2066_v10 }
 0x629   :  { %2396 = vmatmul.bf16.vlgmr.msrb.gmra.mxu2 %v2070_v11  ;;  %2409 = vmatmul.bf16.vlgmr.msrb.gmra.mxu3 %v2071_v12 }
 0x62e   :  { %v2118_v13 = vpop.f32.mrf.mxu2  ;;  %v2131_v14 = vpop.f32.mrf.mxu3 }
 0x62f   :  { %v2135_v15 = vpack.c.bf16 %v2118_v13, %v2118_v13  ;;  %v2136_v16 = vpack.c.bf16 %v2131_v14, %v2131_v14  ;;  %v2055_v17 = vpop.f32.mrf.mxu0  ;;  %v2068_v19 = vpop.f32.mrf.mxu1  ;;  %v11969_v14 = vld [vmem:[%s12686_s30 + $0x14] sm:$0xf] }
 0x630   :  { %v11967_v17 = vld [vmem:[%s12686_s30 + $0x4] sm:$0xf]  ;;  %v9637_v19 = vld [vmem:[%s12686_s30 + $0x8] sm:$0xf0] }
 0x631   :  { %2274 = vmatmul.bf16.vlgmr.msrb.gmra.mxu0 %v2135_v15  ;;  %2287 = vmatmul.bf16.vlgmr.msrb.gmra.mxu1 %v2136_v16  ;;  %v9645_v15 = vld [vmem:[%s12686_s30 + $0x18] sm:$0xf0]  ;;  %v9640_v20 = vor.u32 %v11967_v17, %v9637_v19  ;;  %v11981_v19 = vld [vmem:[%s12686_s30 + $0x74] sm:$0xf] }
 0x632   :  { %2615 = vmatpush.bf16.msrb.mxu0 %v13272_v43  ;;  %2628 = vmatpush.bf16.msrb.mxu1 %v13275_v35  ;;  %v11936_v43 = vld [vmem:[%s12671_s14 + $0x108] sm:$0xff]  ;;  %v9648_v16 = vor.u32 %v11969_v14, %v9645_v15  ;;  %v9683_v15 = vld [vmem:[%s12686_s30 + $0x60] sm:$0xf] }
 0x633   :  { %v11944_v35 = vld [vmem:[%s12671_s14 + $0x148] sm:$0xff]  ;;  %2582 = vmatpush.bf16.msra.mxu2 %v11936_v43  ;;  %s14070_s14 = sld [smem:[#allocation22_spill]] }
 0x634   :  { %2595 = vmatpush.bf16.msra.mxu3 %v11944_v35  ;;  %v9617_v35 = vld [vmem:[%s12686_s30 + $0x20] sm:$0xf] }
 0x636   :  { %v2120_v23 = vpop.f32.mrf.mxu2  ;;  %v2133_v24 = vpop.f32.mrf.mxu3 }
 0x637   :  { %2583 = vmatpush.bf16.msra.mxu2 %v11935_v37 }
 0x638   :  { %2596 = vmatpush.bf16.msra.mxu3 %v11943_v44  ;;  %v9609_v44 = vld [vmem:[%s14061_s5 + $0x4] sm:$0xf] }
 0x641   :  { %9411 = vmatmul.msk.bf16.vlgmr.msra.gmra.mxu0 %vm2033_vm13, %v9410_v28  ;;  %9412 = vmatmul.msk.bf16.vlgmr.msra.gmra.mxu1 %vm2033_vm13, %v9410_v28 }
 0x642   :  { %2765 = vmatpush.bf16.msra.mxu0 %v11958_v38  ;;  %2778 = vmatpush.bf16.msra.mxu1 %v11966_v42  ;;  %v11973_v42 = vld [vmem:[%s12686_s30 + $0x34] sm:$0xf] }
 0x646   :  { %2766 = vmatpush.bf16.msra.mxu0 %v11957_v40  ;;  %2779 = vmatpush.bf16.msra.mxu1 %v11965_v32  ;;  %v9626_v40 = vor.u32 %v11974_v34, %v9625_v33  ;;  %v3114_v33 = vld [vmem:[%s14062_s9 + $0x78] sm:$0xff]  ;;  %v3113_v34 = vld [vmem:[%s14062_s9 + $0x70] sm:$0xff] }
 0x64a   :  { %2767 = vmatpush.bf16.msra.mxu0 %v11956_v21  ;;  %2780 = vmatpush.bf16.msra.mxu1 %v11964_v30  ;;  %v11972_v21 = vld [vmem:[%s12686_s30 + $0x24] sm:$0xf0]  ;;  %v9630_v30 = vor.u32 %v11973_v42, %v9627_v39  ;;  %v3111_v42 = vld [vmem:[%s14062_s9 + $0x60] sm:$0xff] }
 0x64e   :  { %2768 = vmatpush.bf16.msra.mxu0 %v11955_v36  ;;  %2781 = vmatpush.bf16.msra.mxu1 %v11963_v45  ;;  %v2800_v36 = vld [vmem:[%s14061_s5] sm:$0xf]  ;;  %v9618_v45 = vor.u32 %v11972_v21, %v9617_v35 }
 0x651   :  { %9510 = vmatmul.msk.bf16.vlgmr.msrb.gmra.mxu0 %vm2033_vm13, %v9509_v29  ;;  %9511 = vmatmul.msk.bf16.vlgmr.msrb.gmra.mxu1 %vm2033_vm13, %v9509_v29 }
 0x652   :  { %2769 = vmatpush.bf16.msra.mxu0 %v11954_v46  ;;  %2782 = vmatpush.bf16.msra.mxu1 %v11962_v47  ;;  %v11971_v46 = vld [vmem:[%s12686_s30 + $0x24] sm:$0xf]  ;;  %v9619_v47 = vld [vmem:[%s12686_s30 + $0x28] sm:$0xf0] }
 0x656   :  { %2770 = vmatpush.bf16.msra.mxu0 %v11953_v31  ;;  %2783 = vmatpush.bf16.msra.mxu1 %v11961_v48  ;;  %v9622_v31 = vor.u32 %v11971_v46, %v9619_v47  ;;  %v9643_v48 = vld [vmem:[%s12686_s30 + $0x10] sm:$0xf]  ;;  %v3130_v46 = vld [vmem:[%s14062_s9 + $0xf8] sm:$0xff] }
 0x657   :  { %v3106_v47 = vld [vmem:[%s14062_s9 + $0x38] sm:$0xff] }
 0x65a   :  { %2771 = vmatpush.bf16.msra.mxu0 %v11952_v49  ;;  %2784 = vmatpush.bf16.msra.mxu1 %v11960_v50  ;;  %v11970_v49 = vld [vmem:[%s12686_s30 + $0x14] sm:$0xf0] }
 0x65b   :  { %v9644_v50 = vor.u32 %v11970_v49, %v9643_v48  ;;  %v3105_v48 = vld [vmem:[%s14062_s9 + $0x30] sm:$0xff]  ;;  %v3128_v49 = vld [vmem:[%s14062_s9 + $0xe8] sm:$0xff] }
 0x65e   :  { %2772 = vmatpush.bf16.msra.mxu0 %v11951_v53  ;;  %2785 = vmatpush.bf16.msra.mxu1 %v11959_v54 }
 0x662   :  { %2942 = vmatpush.bf16.msrb.mxu1 %v9648_v16  ;;  %2929 = vmatpush.bf16.msrb.mxu0 %v9644_v50  ;;  %v11980_v16 = vld [vmem:[%s12686_s30 + $0x64] sm:$0xf0] }
 0x663   :  { %v9684_v17 = vor.u32 %v11980_v16, %v9683_v15  ;;  %v3104_v50 = vld [vmem:[%s14062_s9 + $0x28] sm:$0xff] }
 0x666   :  { %2943 = vmatpush.bf16.msrb.mxu1 %v9640_v20  ;;  %v9693_v20 = vld [vmem:[%s12686_s30 + $0x78] sm:$0xf0] }
 0x6ac   :  { %v2397_v51 = vpop.f32.mrf.mxu2  ;;  %v2410_v52 = vpop.f32.mrf.mxu3 }
 0x6ae   :  { %v2275_v55 = vpop.f32.mrf.mxu0  ;;  %v2288_v56 = vpop.f32.mrf.mxu1 }
 0x6af   :  { %v2289_v57 = vadd.f32 %v2288_v56, %v2275_v55 }
 0x6b1   :  { %v2398_v58 = vadd.f32 %v2397_v51, %v2289_v57  ;;  %v9635_v51 = vld [vmem:[%s12686_s30] sm:$0xf] }
 0x6b3   :  { %v2411_v59 = vadd.f32 %v2410_v52, %v2398_v58  ;;  %v11968_v52 = vld [vmem:[%s12686_s30 + $0x4] sm:$0xf0] }
 0x6b4   :  { %v2399_v60 = vpop.f32.mrf.mxu2  ;;  %v2412_v61 = vpop.f32.mrf.mxu3  ;;  %v9636_v53 = vor.u32 %v11968_v52, %v9635_v51  ;;  %v3127_v51 = vld [vmem:[%s14062_s9 + $0xe0] sm:$0xff] }
 0x6b5   :  { %v9651_v60 = vld [vmem:[%s14061_s5 + $0x8] sm:$0xf]  ;;  %v9675_v61 = vld [vmem:[%s14061_s5 + $0xc] sm:$0xf]  ;;  %v3103_v52 = vld [vmem:[%s14062_s9 + $0x20] sm:$0xff] }
 0x6b6   :  { %v2277_v62 = vpop.f32.mrf.mxu0  ;;  %v2290_v63 = vpop.f32.mrf.mxu1  ;;  %2930 = vmatpush.bf16.msrb.mxu0 %v9636_v53  ;;  %v3126_v53 = vld [vmem:[%s14062_s9 + $0xd8] sm:$0xff] }
 0x6b7   :  { %v9667_v62 = vld [vmem:[%s12686_s30 + $0x50] sm:$0xf]  ;;  %v11978_v63 = vld [vmem:[%s12686_s30 + $0x54] sm:$0xf0] }
 0x6be   :  { %v2428_v2 = vpop.f32.mrf.mxu0  ;;  %v2441_v3 = vpop.f32.mrf.mxu1 }
 0x6bf   :  { %v2445_v4 = vpack.c.bf16 %v2428_v2, %v2428_v2  ;;  %v2446_v5 = vpack.c.bf16 %v2441_v3, %v2441_v3  ;;  %v11977_v2 = vld [vmem:[%s12686_s30 + $0x54] sm:$0xf]  ;;  %v9668_v3 = vor.u32 %v11978_v63, %v9667_v62  ;;  %v3120_v63 = vld [vmem:[%s14062_s9 + $0xa8] sm:$0xff] }
 0x6c0   :  { %v3121_v62 = vld [vmem:[%s14062_s9 + $0xb0] sm:$0xff] }
 0x6c1   :  { %2584 = vmatmul.bf16.vlgmr.msra.gmra.mxu2 %v2445_v4  ;;  %2597 = vmatmul.bf16.vlgmr.msra.gmra.mxu3 %v2446_v5  ;;  %v9669_v4 = vld [vmem:[%s12686_s30 + $0x58] sm:$0xf0]  ;;  %v9691_v5 = vld [vmem:[%s12686_s30 + $0x70] sm:$0xf] }
 0x6c6   :  { %v2430_v6 = vpop.f32.mrf.mxu0  ;;  %v2443_v7 = vpop.f32.mrf.mxu1 }
 0x6c7   :  { %v11982_v6 = vld [vmem:[%s12686_s30 + $0x74] sm:$0xf0]  ;;  %v9672_v7 = vor.u32 %v11977_v2, %v9669_v4  ;;  %v3119_v2 = vld [vmem:[%s14062_s9 + $0xa0] sm:$0xff] }
 0x6ce   :  { %v2617_v8 = vpop.f32.mrf.mxu0  ;;  %v2630_v9 = vpop.f32.mrf.mxu1 }
 0x6cf   :  { %v2634_v10 = vpack.c.bf16 %v2617_v8, %v2617_v8  ;;  %v2635_v11 = vpack.c.bf16 %v2630_v9, %v2630_v9  ;;  %v9692_v8 = vor.u32 %v11982_v6, %v9691_v5  ;;  %v9659_v9 = vld [vmem:[%s12686_s30 + $0x40] sm:$0xf]  ;;  %v3117_v5 = vld [vmem:[%s14062_s9 + $0x90] sm:$0xff] }
 0x6d1   :  { %2773 = vmatmul.bf16.vlgmr.msra.gmra.mxu0 %v2634_v10  ;;  %2786 = vmatmul.bf16.vlgmr.msra.gmra.mxu1 %v2635_v11  ;;  %v11976_v10 = vld [vmem:[%s12686_s30 + $0x44] sm:$0xf0]  ;;  %v11975_v11 = vld [vmem:[%s12686_s30 + $0x44] sm:$0xf] }
 0x6d2   :  { %3015 = vmatpush.bf16.msra.mxu0 %v9672_v7  ;;  %v3116_v7 = vld [vmem:[%s14062_s9 + $0x88] sm:$0xff] }
 0x6d6   :  { %v2619_v12 = vpop.f32.mrf.mxu0  ;;  %v2632_v13 = vpop.f32.mrf.mxu1 }
 0x6d7   :  { %v9660_v12 = vor.u32 %v11976_v10, %v9659_v9  ;;  %v9661_v13 = vld [vmem:[%s12686_s30 + $0x48] sm:$0xf0] }
 0x6d8   :  { %v9664_v14 = vor.u32 %v11975_v11, %v9661_v13 }
 0x6da   :  { %3016 = vmatpush.bf16.msra.mxu0 %v9664_v14 }
 0x744   :  { %v2585_v0 = vpop.f32.mrf.mxu2  ;;  %v2598_v22 = vpop.f32.mrf.mxu3 }
 0x745   :  { %v2599_v1 = vadd.f32 %v2598_v22, %v2585_v0  ;;  %v11979_v0 = vld [vmem:[%s12686_s30 + $0x64] sm:$0xf]  ;;  %v9696_v22 = vor.u32 %v11981_v19, %v9693_v20 }
 0x747   :  { %v2602_v28 = vadd.f32 %v2599_v1, %v2411_v59  ;;  %v9685_v1 = vld [vmem:[%s12686_s30 + $0x68] sm:$0xf0]  ;;  %s14072_s30 = sld [smem:[#allocation25_spill]] }
 0x74c   :  { %v2587_v23 = vpop.f32.mrf.mxu2  ;;  %v2600_v24 = vpop.f32.mrf.mxu3 }
 0x74e   :  { %v2774_v26 = vpop.f32.mrf.mxu0  ;;  %v2787_v27 = vpop.f32.mrf.mxu1 }
 0x74f   :  { %v2788_v29 = vadd.f32 %v2787_v27, %v2774_v26  ;;  %v9688_v26 = vor.u32 %v11979_v0, %v9685_v1 }
 0x751   :  { %v2791_v41 = vadd.f32 %v2788_v29, %v2602_v28 }
 0x753   :  { %v2796_v38 = vadd.f32 %v12455_v25, %v2791_v41 }
 0x755   :  { %v2799_v18 = vpack.c.bf16 %v2796_v38, %v2796_v38  ;;  %2798 = vst.msk [vmem:[#allocation7] sm:$0x3] %vm2797_vm14, %v2796_v38  ;;  %v3112_v38 = vld [vmem:[%s14062_s9 + $0x68] sm:$0xff] }
 0x756   :  { %v2776_v32 = vpop.f32.mrf.mxu0  ;;  %v2789_v43 = vpop.f32.mrf.mxu1 }
 0x757   :  { %v2807_v37 = vsel %vm2805_vm15, %v2799_v18, 0 }
 0x758   :  { %2816 = vmatpush.bf16.msrb.mxu2 %v2807_v37  ;;  %2839 = vmatpush.bf16.msrb.mxu3 %v2807_v37 }
 0x759   :  { %3036 = vmatpush.bf16.msra.mxu1 %v2807_v37 }
 0x75b   :  { %9610 = vmatmul.msk.bf16.vlgmr.msrb.gmra.mxu3 %vm2801_vm2, %v9609_v44  ;;  %9608 = vmatmul.msk.bf16.vlgmr.msrb.gmra.mxu2 %vm2801_vm2, %v2800_v36  ;;  %v3109_v44 = vld [vmem:[%s14062_s9 + $0x50] sm:$0xff]  ;;  %v3108_v36 = vld [vmem:[%s14062_s9 + $0x48] sm:$0xff] }
 0x75c   :  { %2880 = vmatpush.bf16.msra.mxu2 %v9626_v40  ;;  %2893 = vmatpush.bf16.msra.mxu3 %v9630_v30 }
 0x760   :  { %2881 = vmatpush.bf16.msra.mxu2 %v9618_v45  ;;  %2894 = vmatpush.bf16.msra.mxu3 %v9622_v31  ;;  %v3107_v45 = vld [vmem:[%s14062_s9 + $0x40] sm:$0xff]  ;;  %v3129_v31 = vld [vmem:[%s14062_s9 + $0xf0] sm:$0xff] }
 0x764   :  { %2961 = vmatpush.bf16.msrb.mxu2 %v2807_v37  ;;  %3002 = vmatpush.bf16.msrb.mxu3 %v9668_v3  ;;  %v3110_v37 = vld [vmem:[%s14062_s9 + $0x58] sm:$0xff] }
 0x765   :  { %v3118_v3 = vld [vmem:[%s14062_s9 + $0x98] sm:$0xff] }
 0x768   :  { %3003 = vmatpush.bf16.msrb.mxu3 %v9660_v12 }
 0x7de   :  { %v2841_v54 = vpop.f32.mrf.mxu3  ;;  %v2818_v55 = vpop.f32.mrf.mxu2 }
 0x7df   :  { %v2845_v56 = vpack.c.bf16 %v2841_v54, %v2841_v54  ;;  %v2822_v57 = vpack.c.bf16 %v2818_v55, %v2818_v55  ;;  %v3102_v54 = vld [vmem:[%s14062_s9 + $0x18] sm:$0xff]  ;;  %v3125_v55 = vld [vmem:[%s14062_s9 + $0xd0] sm:$0xff] }
 0x7e1   :  { %9631 = vmatmul.msk.bf16.vlgmr.msra.gmra.mxu2 %vm197_vm0, %v2845_v56  ;;  %9632 = vmatmul.msk.bf16.vlgmr.msra.gmra.mxu3 %vm197_vm0, %v2845_v56  ;;  %v3101_v56 = vld [vmem:[%s14062_s9 + $0x10] sm:$0xff] }
 0x7e2   :  { %9649 = vmatmul.msk.bf16.vlgmr.msrb.gmra.mxu0 %vm197_vm0, %v2822_v57  ;;  %9650 = vmatmul.msk.bf16.vlgmr.msrb.gmra.mxu1 %vm197_vm0, %v2822_v57  ;;  %v3124_v57 = vld [vmem:[%s14062_s9 + $0xc8] sm:$0xff] }
 0x7e3   :  { %3077 = vmatpush.bf16.msra.mxu2 %v9692_v8  ;;  %3090 = vmatpush.bf16.msra.mxu3 %v9696_v22  ;;  %v3115_v8 = vld [vmem:[%s14062_s9 + $0x80] sm:$0xff] }
 0x7e4   :  { %3173 = vmatpush.msrb.mxu0 %v3114_v33  ;;  %3193 = vmatpush.msrb.mxu1 %v3130_v46 }
 0x7e6   :  { %v2843_v58 = vpop.f32.mrf.mxu3  ;;  %v2820_v59 = vpop.f32.mrf.mxu2  ;;  %3174 = vmatpush.msrb.mxu0 %v3113_v34  ;;  %3194 = vmatpush.msrb.mxu1 %v3129_v31 }
 0x7e7   :  { %3078 = vmatpush.bf16.msra.mxu2 %v9684_v17  ;;  %3091 = vmatpush.bf16.msra.mxu3 %v9688_v26  ;;  %v3100_v58 = vld [vmem:[%s14062_s9 + $0x8] sm:$0xff]  ;;  %v3123_v59 = vld [vmem:[%s14062_s9 + $0xc0] sm:$0xff] }
 0x7e8   :  { %3175 = vmatpush.msrb.mxu0 %v3112_v38  ;;  %3195 = vmatpush.msrb.mxu1 %v3128_v49 }
 0x7ea   :  { %3176 = vmatpush.msrb.mxu0 %v3111_v42  ;;  %3196 = vmatpush.msrb.mxu1 %v3127_v51 }
 0x7ec   :  { %3177 = vmatpush.msrb.mxu0 %v3110_v37  ;;  %3197 = vmatpush.msrb.mxu1 %v3126_v53 }
 0x7ee   :  { %3178 = vmatpush.msrb.mxu0 %v3109_v44  ;;  %3198 = vmatpush.msrb.mxu1 %v3125_v55 }
 0x7f0   :  { %3179 = vmatpush.msrb.mxu0 %v3108_v36  ;;  %3199 = vmatpush.msrb.mxu1 %v3124_v57 }
 0x7f1   :  { %9652 = vmatmul.msk.bf16.vlgmr.msrb.gmra.mxu2 %vm2801_vm2, %v9651_v60  ;;  %v3099_v60 = vld [vmem:[%s14062_s9] sm:$0xff] }
 0x7f2   :  { %9676 = vmatmul.msk.bf16.vlgmr.msra.gmra.mxu1 %vm2801_vm2, %v9675_v61  ;;  %3214 = vmatpush.msrb.mxu2 %v3114_v33  ;;  %v3122_v61 = vld [vmem:[%s14062_s9 + $0xb8] sm:$0xff] }
 0x7f3   :  { %3180 = vmatpush.msrb.mxu0 %v3107_v45  ;;  %3200 = vmatpush.msrb.mxu1 %v3123_v59 }
 0x7f4   :  { %3215 = vmatpush.msrb.mxu2 %v3113_v34 }
 0x7f5   :  { %3181 = vmatpush.msrb.mxu0 %v3106_v47  ;;  %3201 = vmatpush.msrb.mxu1 %v3122_v61 }
 0x7f6   :  { %3216 = vmatpush.msrb.mxu2 %v3112_v38 }
 0x7f7   :  { %3182 = vmatpush.msrb.mxu0 %v3105_v48  ;;  %3202 = vmatpush.msrb.mxu1 %v3121_v62 }
 0x7f8   :  { %3217 = vmatpush.msrb.mxu2 %v3111_v42 }
 0x7f9   :  { %3183 = vmatpush.msrb.mxu0 %v3104_v50  ;;  %3203 = vmatpush.msrb.mxu1 %v3120_v63 }
 0x7fa   :  { %3218 = vmatpush.msrb.mxu2 %v3110_v37 }
 0x7fb   :  { %3184 = vmatpush.msrb.mxu0 %v3103_v52  ;;  %3204 = vmatpush.msrb.mxu1 %v3119_v2 }
 0x7fc   :  { %3219 = vmatpush.msrb.mxu2 %v3109_v44 }
 0x7fd   :  { %3185 = vmatpush.msrb.mxu0 %v3102_v54  ;;  %3205 = vmatpush.msrb.mxu1 %v3118_v3 }
 0x7fe   :  { %3220 = vmatpush.msrb.mxu2 %v3108_v36 }
 0x7ff   :  { %3186 = vmatpush.msrb.mxu0 %v3101_v56  ;;  %3206 = vmatpush.msrb.mxu1 %v3117_v5 }
 0x800   :  { %3221 = vmatpush.msrb.mxu2 %v3107_v45  ;;  %v3145_v45 = vld [vmem:[%s14063_s13 + $0x70] sm:$0xff] }
 0x801   :  { %3187 = vmatpush.msrb.mxu0 %v3100_v58  ;;  %3207 = vmatpush.msrb.mxu1 %v3116_v7 }
 0x802   :  { %3222 = vmatpush.msrb.mxu2 %v3106_v47  ;;  %v3143_v47 = vld [vmem:[%s14063_s13 + $0x60] sm:$0xff] }
 0x803   :  { %3188 = vmatpush.msrb.mxu0 %v3099_v60  ;;  %3208 = vmatpush.msrb.mxu1 %v3115_v8 }
 0x804   :  { %3223 = vmatpush.msrb.mxu2 %v3105_v48  ;;  %v3141_v48 = vld [vmem:[%s14063_s13 + $0x50] sm:$0xff] }
 0x806   :  { %3224 = vmatpush.msrb.mxu2 %v3104_v50  ;;  %v3139_v50 = vld [vmem:[%s14063_s13 + $0x40] sm:$0xff] }
 0x808   :  { %3225 = vmatpush.msrb.mxu2 %v3103_v52  ;;  %v3137_v52 = vld [vmem:[%s14063_s13 + $0x30] sm:$0xff] }
 0x80a   :  { %3226 = vmatpush.msrb.mxu2 %v3102_v54  ;;  %v3135_v54 = vld [vmem:[%s14063_s13 + $0x20] sm:$0xff] }
 0x80c   :  { %3227 = vmatpush.msrb.mxu2 %v3101_v56  ;;  %v3133_v56 = vld [vmem:[%s14063_s13 + $0x10] sm:$0xff] }
 0x80e   :  { %3228 = vmatpush.msrb.mxu2 %v3100_v58  ;;  %v3131_v58 = vld [vmem:[%s14063_s13] sm:$0xff] }
 0x810   :  { %3229 = vmatpush.msrb.mxu2 %v3099_v60 }
 0x85f   :  { %v2932_v23 = vpop.f32.mrf.mxu0  ;;  %v13405_v24 = vpop.f32.mrf.mxu1 }
 0x864   :  { %v2883_v27 = vpop.f32.mrf.mxu2  ;;  %v13407_v28 = vpop.f32.mrf.mxu3 }
 0x865   :  { %v13409_v29 = vadd.f32 %v2932_v23, %v2883_v27  ;;  %v2946_v23 = vadd.f32 %v13405_v24, %v13407_v28 }
 0x867   :  { %v2947_v25 = vpop.f32.mrf.mxu1  ;;  %v2934_v41 = vpop.f32.mrf.mxu0 }
 0x86c   :  { %v2885_v39 = vpop.f32.mrf.mxu2  ;;  %v2898_v18 = vpop.f32.mrf.mxu3 }
 0x86f   :  { %v3038_v40 = vpop.f32.mrf.mxu1 }
 0x870   :  { %v3042_v32 = vpack.c.bf16 %v3038_v40, %v3038_v40 }
 0x872   :  { %9697 = vmatmul.msk.bf16.vlgmr.msra.gmra.mxu2 %vm197_vm0, %v3042_v32 }
 0x873   :  { %3322 = vmatpush.msra.mxu2 %v3145_v45 }
 0x874   :  { %v2963_v43 = vpop.f32.mrf.mxu2 }
 0x875   :  { %v2967_v35 = vpack.c.bf16 %v2963_v43, %v2963_v43  ;;  %3323 = vmatpush.msra.mxu2 %v3143_v47 }
 0x877   :  { %9673 = vmatmul.msk.bf16.vlgmr.msrb.gmra.mxu3 %vm197_vm0, %v2967_v35  ;;  %9674 = vmatmul.msk.bf16.vlgmr.msra.gmra.mxu0 %vm197_vm0, %v2967_v35  ;;  %v3040_v21 = vpop.f32.mrf.mxu1 }
 0x878   :  { %3234 = vmatpush.msrb.mxu3 %v3130_v46  ;;  %v3146_v46 = vld [vmem:[%s14063_s13 + $0x78] sm:$0xff]  ;;  %3279 = vmatpush.msra.mxu0 %v3145_v45 }
 0x879   :  { %3299 = vmatpush.msra.mxu1 %v3146_v46  ;;  %3324 = vmatpush.msra.mxu2 %v3141_v48 }
 0x87a   :  { %3235 = vmatpush.msrb.mxu3 %v3129_v31  ;;  %v3144_v31 = vld [vmem:[%s14063_s13 + $0x68] sm:$0xff]  ;;  %3280 = vmatpush.msra.mxu0 %v3143_v47 }
 0x87b   :  { %3300 = vmatpush.msra.mxu1 %v3144_v31  ;;  %3325 = vmatpush.msra.mxu2 %v3139_v50  ;;  %v12046_v47 = vld [vmem:[#allocation2 + $0x1e4] sm:$0xf0] }
 0x87c   :  { %v2965_v30 = vpop.f32.mrf.mxu2  ;;  %3236 = vmatpush.msrb.mxu3 %v3128_v49  ;;  %v3142_v49 = vld [vmem:[%s14063_s13 + $0x58] sm:$0xff]  ;;  %3281 = vmatpush.msra.mxu0 %v3141_v48 }
 0x87d   :  { %3301 = vmatpush.msra.mxu1 %v3142_v49  ;;  %3326 = vmatpush.msra.mxu2 %v3137_v52 }
 0x87e   :  { %3237 = vmatpush.msrb.mxu3 %v3127_v51  ;;  %v3140_v51 = vld [vmem:[%s14063_s13 + $0x48] sm:$0xff]  ;;  %3282 = vmatpush.msra.mxu0 %v3139_v50  ;;  %v12029_v50 = vld [vmem:[#allocation2 + $0x164] sm:$0xf] }
 0x87f   :  { %3302 = vmatpush.msra.mxu1 %v3140_v51  ;;  %3327 = vmatpush.msra.mxu2 %v3135_v54 }
 0x880   :  { %3238 = vmatpush.msrb.mxu3 %v3126_v53  ;;  %v3138_v53 = vld [vmem:[%s14063_s13 + $0x38] sm:$0xff]  ;;  %3283 = vmatpush.msra.mxu0 %v3137_v52 }
 0x881   :  { %3303 = vmatpush.msra.mxu1 %v3138_v53  ;;  %3328 = vmatpush.msra.mxu2 %v3133_v56 }
 0x882   :  { %3239 = vmatpush.msrb.mxu3 %v3125_v55  ;;  %v3136_v55 = vld [vmem:[%s14063_s13 + $0x28] sm:$0xff]  ;;  %3284 = vmatpush.msra.mxu0 %v3135_v54  ;;  %v12045_v54 = vld [vmem:[#allocation2 + $0x1e4] sm:$0xf] }
 0x883   :  { %3304 = vmatpush.msra.mxu1 %v3136_v55  ;;  %3329 = vmatpush.msra.mxu2 %v3131_v58 }
 0x884   :  { %3240 = vmatpush.msrb.mxu3 %v3124_v57  ;;  %v3134_v57 = vld [vmem:[%s14063_s13 + $0x18] sm:$0xff]  ;;  %3285 = vmatpush.msra.mxu0 %v3133_v56  ;;  %v9759_v56 = vld [vmem:[#allocation2 + $0x150] sm:$0xf] }
 0x885   :  { %3305 = vmatpush.msra.mxu1 %v3134_v57 }
 0x886   :  { %3241 = vmatpush.msrb.mxu3 %v3123_v59  ;;  %v3132_v59 = vld [vmem:[%s14063_s13 + $0x8] sm:$0xff]  ;;  %3286 = vmatpush.msra.mxu0 %v3131_v58  ;;  %v9823_v58 = vld [vmem:[#allocation2 + $0x1d0] sm:$0xf] }
 0x887   :  { %9698 = vmatmul.msk.bf16.vlgmr.msra.gmra.mxu3 %vm197_vm0, %v3042_v32  ;;  %3306 = vmatpush.msra.mxu1 %v3132_v59 }
 0x888   :  { %3242 = vmatpush.msrb.mxu3 %v3122_v61 }
 0x88a   :  { %3243 = vmatpush.msrb.mxu3 %v3121_v62 }
 0x88c   :  { %3244 = vmatpush.msrb.mxu3 %v3120_v63 }
 0x88e   :  { %3245 = vmatpush.msrb.mxu3 %v3119_v2 }
 0x890   :  { %3246 = vmatpush.msrb.mxu3 %v3118_v3 }
 0x892   :  { %3247 = vmatpush.msrb.mxu3 %v3117_v5 }
 0x894   :  { %3248 = vmatpush.msrb.mxu3 %v3116_v7 }
 0x896   :  { %3249 = vmatpush.msrb.mxu3 %v3115_v8 }
 0x898   :  { %3342 = vmatpush.msra.mxu3 %v3146_v46  ;;  %v9831_v46 = vld [vmem:[#allocation2 + $0x1e0] sm:$0xf] }
 0x89a   :  { %3343 = vmatpush.msra.mxu3 %v3144_v31  ;;  %v12016_v31 = vld [vmem:[%s14064_s17 + $0x8] sm:$0xff] }
 0x89c   :  { %3344 = vmatpush.msra.mxu3 %v3142_v49 }
 0x89e   :  { %3345 = vmatpush.msra.mxu3 %v3140_v51  ;;  %v9769_v51 = vld [vmem:[#allocation2 + $0x168] sm:$0xf0] }
 0x8a0   :  { %3346 = vmatpush.msra.mxu3 %v3138_v53  ;;  %v9832_v53 = vor.u32 %v12046_v47, %v9831_v46  ;;  %v12036_v46 = vld [vmem:[#allocation2 + $0x194] sm:$0xf0] }
 0x8a2   :  { %3347 = vmatpush.msra.mxu3 %v3136_v55  ;;  %v9833_v55 = vld [vmem:[#allocation2 + $0x1e8] sm:$0xf0] }
 0x8a4   :  { %3348 = vmatpush.msra.mxu3 %v3134_v57  ;;  %v12028_v57 = vld [vmem:[#allocation2 + $0x154] sm:$0xf0] }
 0x8a6   :  { %3349 = vmatpush.msra.mxu3 %v3132_v59  ;;  %v12044_v59 = vld [vmem:[#allocation2 + $0x1d4] sm:$0xf0] }
 0x8f4   :  { %v3018_v4 = vpop.f32.mrf.mxu0 }
 0x8f5   :  { %v3080_v6 = vpop.f32.mrf.mxu2 }
 0x8fa   :  { %v3005_v9 = vpop.f32.mrf.mxu3 }
 0x8fb   :  { %v3022_v10 = vadd.f32 %v3005_v9, %v13409_v29  ;;  %v3023_v29 = vadd.f32 %v3018_v4, %v2946_v23 }
 0x8fc   :  { %v3020_v11 = vpop.f32.mrf.mxu0 }
 0x8fd   :  { %v13448_v12 = vadd.f32 %v3080_v6, %v3022_v10  ;;  %v3082_v13 = vpop.f32.mrf.mxu2 }
 0x8ff   :  { %v3147_v14 = vrot.slane %v13448_v12, 4  ;;  %v3159_v15 = vmul.f32 %v13448_v12, %v13448_v12 }
 0x901   :  { %v3148_v16 = vadd.f32 %v3147_v14, %v13448_v12  ;;  %v3161_v17 = vrot.slane %v3159_v15, 4 }
 0x902   :  { %v3007_v19 = vpop.f32.mrf.mxu3 }
 0x903   :  { %v3149_v20 = vrot.slane %v3148_v16, 2  ;;  %v3162_v0 = vadd.f32 %v3161_v17, %v3159_v15 }
 0x905   :  { %v3150_v22 = vadd.f32 %v3149_v20, %v3148_v16  ;;  %v3163_v1 = vrot.slane %v3162_v0, 2 }
 0x907   :  { %v3151_v26 = vrot.slane %v3150_v22, 1  ;;  %v3164_v27 = vadd.f32 %v3163_v1, %v3162_v0 }
 0x909   :  { %v3152_v25 = vadd.f32 %v3151_v26, %v3150_v22  ;;  %v3165_v41 = vrot.slane %v3164_v27, 1 }
 0x90a   :  { %v3093_v33 = vpop.f32.mrf.mxu3 }
 0x90b   :  { %v13456_v34 = vadd.f32 %v3093_v33, %v3023_v29  ;;  %3189 = vmatmul.f32.vlgmr.msrb.gmra.mxu0 %v3152_v25  ;;  %v3166_v38 = vadd.f32 %v3165_v41, %v3164_v27  ;;  %v9775_v33 = vld [vmem:[#allocation2 + $0x170] sm:$0xf] }
 0x90d   :  { %v3153_v42 = vrot.slane %v13456_v34, 4  ;;  %v3160_v39 = vmul.f32 %v13456_v34, %v13456_v34  ;;  %3230 = vmatmul.f32.vlgmr.msrb.gmra.mxu2 %v3166_v38  ;;  %v12032_v38 = vld [vmem:[#allocation2 + $0x174] sm:$0xf0] }
 0x90f   :  { %v3154_v24 = vadd.f32 %v3153_v42, %v13456_v34  ;;  %v3167_v28 = vrot.slane %v3160_v39, 4 }
 0x911   :  { %v3155_v18 = vrot.slane %v3154_v24, 2  ;;  %v3168_v40 = vadd.f32 %v3167_v28, %v3160_v39  ;;  %v12048_v28 = vld [vmem:[#allocation2 + $0x1f4] sm:$0xf0] }
 0x912   :  { %v3095_v32 = vpop.f32.mrf.mxu3 }
 0x913   :  { %v3156_v43 = vadd.f32 %v3155_v18, %v3154_v24  ;;  %v3169_v35 = vrot.slane %v3168_v40, 2  ;;  %v9839_v24 = vld [vmem:[#allocation2 + $0x1f0] sm:$0xf]  ;;  %v11983_v32 = vld [vmem:[%s14064_s17] sm:$0xff] }
 0x915   :  { %v3157_v21 = vrot.slane %v3156_v43, 1  ;;  %v3170_v30 = vadd.f32 %v3169_v35, %v3168_v40  ;;  %v9777_v35 = vld [vmem:[#allocation2 + $0x178] sm:$0xf0] }
 0x917   :  { %v3158_v37 = vadd.f32 %v3157_v21, %v3156_v43  ;;  %v3171_v44 = vrot.slane %v3170_v30, 1  ;;  %v12031_v43 = vld [vmem:[#allocation2 + $0x174] sm:$0xf] }
 0x918   :  { %v12047_v21 = vld [vmem:[#allocation2 + $0x1f4] sm:$0xf]  ;;  %v9780_v48 = vor.u32 %v12031_v43, %v9777_v35  ;;  %v9737_v43 = vld [vmem:[#allocation2 + $0x128] sm:$0xf0] }
 0x919   :  { %3209 = vmatmul.f32.vlgmr.msrb.gmra.mxu1 %v3158_v37  ;;  %v3172_v36 = vadd.f32 %v3171_v44, %v3170_v30  ;;  %v9840_v30 = vor.u32 %v12048_v28, %v9839_v24  ;;  %v9767_v37 = vld [vmem:[#allocation2 + $0x160] sm:$0xf]  ;;  %v12030_v44 = vld [vmem:[#allocation2 + $0x164] sm:$0xf0] }
 0x91a   :  { %v9768_v52 = vor.u32 %v12030_v44, %v9767_v37  ;;  %v9799_v24 = vld [vmem:[#allocation2 + $0x1a0] sm:$0xf]  ;;  %v12038_v28 = vld [vmem:[#allocation2 + $0x1a4] sm:$0xf0]  ;;  %v12020_v37 = vld [vmem:[#allocation2 + $0x114] sm:$0xf0] }
 0x91b   :  { %3250 = vmatmul.f32.vlgmr.msrb.gmra.mxu3 %v3172_v36  ;;  %v9791_v44 = vld [vmem:[#allocation2 + $0x190] sm:$0xf] }
 0x988   :  { %v3190_v60 = vpop.f32.mrf.mxu0 }
 0x990   :  { %v3231_v2 = vpop.f32.mrf.mxu2 }
 0x996   :  { %v3210_v61 = vpop.f32.mrf.mxu1 }
 0x997   :  { %v3211_v62 = vadd.f32 %v3210_v61, %v3190_v60  ;;  %v9772_v60 = vor.u32 %v12029_v50, %v9769_v51  ;;  %v9836_v61 = vor.u32 %v12045_v54, %v9833_v55  ;;  %v12035_v50 = vld [vmem:[#allocation2 + $0x194] sm:$0xf]  ;;  %v9719_v54 = vld [vmem:[#allocation2 + $0x100] sm:$0xf]  ;;  %v12018_v55 = vld [vmem:[#allocation2 + $0x104] sm:$0xf0] }
 0x999   :  { %v3213_v63 = vmul.f32 0.03125, %v3211_v62  ;;  %v12027_v62 = vld [vmem:[#allocation2 + $0x154] sm:$0xf] }
 0x99b   :  { %9699 = vmatmul.msk.f32.vlgmr.msra.gmra.mxu0 %vm299_vm1, %v3213_v63  ;;  %9700 = vmatmul.msk.f32.vlgmr.msra.gmra.mxu1 %vm299_vm1, %v3213_v63  ;;  %v3255_v6 = vmul.f32 %v3213_v63, %v3213_v63  ;;  %v9761_v63 = vld [vmem:[#allocation2 + $0x158] sm:$0xf0] }
 0x99e   :  { %v3251_v3 = vpop.f32.mrf.mxu3 }
 0x99f   :  { %v3252_v4 = vadd.f32 %v3251_v3, %v3231_v2  ;;  %v9760_v2 = vor.u32 %v12028_v57, %v9759_v56  ;;  %v9824_v3 = vor.u32 %v12044_v59, %v9823_v58  ;;  %v9783_v56 = vld [vmem:[#allocation2 + $0x180] sm:$0xf]  ;;  %v12034_v57 = vld [vmem:[#allocation2 + $0x184] sm:$0xf0]  ;;  %v9903_v58 = vld [vmem:[#allocation2 + $0x70] sm:$0xf] }
 0x9a0   :  { %v11999_v59 = vld [vmem:[#allocation2 + $0x74] sm:$0xf0] }
 0x9a1   :  { %v3254_v5 = vmul.f32 0.03125, %v3252_v4  ;;  %v12043_v4 = vld [vmem:[#allocation2 + $0x1d4] sm:$0xf] }
 0x9a3   :  { %v3256_v7 = vsub.f32 %v3254_v5, %v3255_v6  ;;  %v9825_v5 = vld [vmem:[#allocation2 + $0x1d8] sm:$0xf0]  ;;  %v9751_v6 = vld [vmem:[#allocation2 + $0x140] sm:$0xf] }
 0x9a5   :  { %v3257_v8 = vadd.f32 1e-05, %v3256_v7  ;;  %v12026_v7 = vld [vmem:[#allocation2 + $0x144] sm:$0xf0] }
 0x9a7   :  { %12460 = vrsqrt.f32 %v3257_v8  ;;  %vm3264_vm4 = vweird.f32 %v3257_v8 }
 0x9ad   :  { %v12461_v9 = vpop.eup %12460 }
 0x9ae   :  { %v3259_v10 = vmul.f32 %v12461_v9, %v3257_v8  ;;  %vm3265_vm3 = vweird.f32 %v12461_v9  ;;  %v9815_v8 = vld [vmem:[#allocation2 + $0x1c0] sm:$0xf] }
 0x9af   :  { %vm3266_vm5 = vmor %vm3264_vm4, %vm3265_vm3 }
 0x9b0   :  { %v3260_v11 = vmul.f32 %v12461_v9, %v3259_v10  ;;  %v9764_v10 = vor.u32 %v12027_v62, %v9761_v63 }
 0x9b2   :  { %v3261_v13 = vmul.f32 0.5, %v3260_v11  ;;  %v9828_v11 = vor.u32 %v12043_v4, %v9825_v5  ;;  %v12033_v4 = vld [vmem:[#allocation2 + $0x184] sm:$0xf]  ;;  %v9720_v5 = vor.u32 %v12018_v55, %v9719_v54  ;;  %v9935_v54 = vld [vmem:[#allocation2 + $0xb0] sm:$0xf] }
 0x9b3   :  { %v12007_v55 = vld [vmem:[#allocation2 + $0xb4] sm:$0xf0] }
 0x9b4   :  { %v3262_v14 = vsub.f32 1.5, %v3261_v13  ;;  %v12025_v13 = vld [vmem:[#allocation2 + $0x144] sm:$0xf] }
 0x9b6   :  { %v3263_v15 = vmul.f32 %v12461_v9, %v3262_v14  ;;  %v9753_v14 = vld [vmem:[#allocation2 + $0x148] sm:$0xf0] }
 0x9b8   :  { %v3267_v16 = vsel %vm3266_vm5, %v12461_v9, %v3263_v15  ;;  %v12042_v9 = vld [vmem:[#allocation2 + $0x1c4] sm:$0xf0]  ;;  %v9752_v15 = vor.u32 %v12026_v7, %v9751_v6  ;;  %v9784_v6 = vor.u32 %v12034_v57, %v9783_v56  ;;  %v9785_v7 = vld [vmem:[#allocation2 + $0x188] sm:$0xf0] }
 0x9b9   :  { %9701 = vmatmul.msk.f32.vlgmr.msra.gmra.mxu2 %vm299_vm1, %v3267_v16  ;;  %9702 = vmatmul.msk.f32.vlgmr.msra.gmra.mxu3 %vm299_vm1, %v3267_v16  ;;  %v9816_v16 = vor.u32 %v12042_v9, %v9815_v8  ;;  %v11998_v8 = vld [vmem:[#allocation2 + $0x74] sm:$0xf]  ;;  %v9905_v9 = vld [vmem:[#allocation2 + $0x78] sm:$0xf0] }
 0xa18   :  { %v3288_v17 = vpop.f32.mrf.mxu0  ;;  %v3308_v19 = vpop.f32.mrf.mxu1 }
 0xa19   :  { %v3354_v20 = vperm.slane %v3288_v17, 0  ;;  %v3355_v0 = vperm.slane %v3308_v19, 0  ;;  %v12041_v17 = vld [vmem:[#allocation2 + $0x1c4] sm:$0xf]  ;;  %v9817_v19 = vld [vmem:[#allocation2 + $0x1c8] sm:$0xf0] }
 0xa1b   :  { %v3356_v23 = vsub.f32 %v13448_v12, %v3354_v20  ;;  %v3357_v26 = vsub.f32 %v13456_v34, %v3355_v0  ;;  %v9776_v12 = vor.u32 %v12032_v38, %v9775_v33  ;;  %v9841_v34 = vld [vmem:[#allocation2 + $0x1f8] sm:$0xf0]  ;;  %v9743_v20 = vld [vmem:[#allocation2 + $0x130] sm:$0xf]  ;;  %v12024_v0 = vld [vmem:[#allocation2 + $0x134] sm:$0xf0] }
 0xa1c   :  { %v9844_v49 = vor.u32 %v12047_v21, %v9841_v34  ;;  %v12039_v33 = vld [vmem:[#allocation2 + $0x1b4] sm:$0xf]  ;;  %v9809_v38 = vld [vmem:[#allocation2 + $0x1b8] sm:$0xf0]  ;;  %v9800_v21 = vor.u32 %v12038_v28, %v9799_v24  ;;  %v9727_v34 = vld [vmem:[#allocation2 + $0x110] sm:$0xf] }
 0xa1d   :  { %v9728_v51 = vor.u32 %v12020_v37, %v9727_v34  ;;  %v9943_v34 = vld [vmem:[#allocation2 + $0xc0] sm:$0xf]  ;;  %v12009_v37 = vld [vmem:[#allocation2 + $0xc4] sm:$0xf0] }
 0xa3c   :  { %v3331_v22 = vpop.f32.mrf.mxu2  ;;  %v3351_v1 = vpop.f32.mrf.mxu3 }
 0xa3d   :  { %v3358_v27 = vperm.slane %v3331_v22, 0  ;;  %v3359_v29 = vperm.slane %v3351_v1, 0  ;;  %v9807_v22 = vld [vmem:[#allocation2 + $0x1b0] sm:$0xf]  ;;  %v12040_v1 = vld [vmem:[#allocation2 + $0x1b4] sm:$0xf0] }
 0xa3f   :  { %v3360_v25 = vmul.f32 %v3358_v27, %v3356_v23  ;;  %v3361_v41 = vmul.f32 %v3359_v29, %v3357_v26  ;;  %v9756_v23 = vor.u32 %v12025_v13, %v9753_v14  ;;  %v9820_v26 = vor.u32 %v12041_v17, %v9817_v19  ;;  %v12023_v27 = vld [vmem:[#allocation2 + $0x134] sm:$0xf]  ;;  %v9745_v29 = vld [vmem:[#allocation2 + $0x138] sm:$0xf0]  ;;  %v9959_v17 = vld [vmem:[#allocation2 + $0xe0] sm:$0xf] }
 0xa40   :  { %v12014_v13 = vld [vmem:[#allocation2 + $0xf4] sm:$0xf]  ;;  %v9969_v14 = vld [vmem:[#allocation2 + $0xf8] sm:$0xf0]  ;;  %v12013_v19 = vld [vmem:[#allocation2 + $0xe4] sm:$0xf0] }
 0xa41   :  { %v3362_v42 = vmax.f32 %v3360_v25, 0.0  ;;  %v3363_v39 = vmax.f32 %v3361_v41, 0.0  ;;  %v9744_v25 = vor.u32 %v12024_v0, %v9743_v20  ;;  %v9808_v41 = vor.u32 %v12040_v1, %v9807_v22 }
 0xa42   :  { %v9788_v0 = vor.u32 %v12033_v4, %v9785_v7  ;;  %v9908_v22 = vor.u32 %v11998_v8, %v9905_v9  ;;  %v9972_v1 = vor.u32 %v12014_v13, %v9969_v14  ;;  %v9863_v4 = vld [vmem:[#allocation2 + $0x20] sm:$0xf]  ;;  %v12005_v8 = vld [vmem:[#allocation2 + $0xa4] sm:$0xf0]  ;;  %v11988_v9 = vld [vmem:[#allocation2 + $0x24] sm:$0xf] }
 0xa43   :  { %v3364_v18 = vpack.c.bf16 %v3362_v42, %v3362_v42  ;;  %v3365_v40 = vpack.c.bf16 %v3363_v39, %v3363_v39  ;;  %v9735_v42 = vld [vmem:[#allocation2 + $0x120] sm:$0xf]  ;;  %v12022_v39 = vld [vmem:[#allocation2 + $0x124] sm:$0xf0]  ;;  %v12004_v14 = vld [vmem:[#allocation2 + $0xa4] sm:$0xf] }
 0xa44   :  { %v9736_v35 = vor.u32 %v12022_v39, %v9735_v42  ;;  %v9951_v42 = vld [vmem:[#allocation2 + $0xd0] sm:$0xf]  ;;  %v12011_v39 = vld [vmem:[#allocation2 + $0xd4] sm:$0xf0] }
 0xa45   :  { %v13486_v36 = vsel %vm2037_vm12, %v3364_v18, 0  ;;  %v13489_v45 = vsel %vm2037_vm12, %v3365_v40, 0  ;;  %v9748_v18 = vor.u32 %v12023_v27, %v9745_v29  ;;  %v9812_v40 = vor.u32 %v12039_v33, %v9809_v38  ;;  %v9887_v33 = vld [vmem:[#allocation2 + $0x50] sm:$0xf]  ;;  %v11995_v38 = vld [vmem:[#allocation2 + $0x54] sm:$0xf0] }
 0xa46   :  { %3389 = vmatpush.bf16.msrb.mxu0 %v13486_v36  ;;  %3403 = vmatpush.bf16.msrb.mxu1 %v13489_v45  ;;  %v9960_v29 = vor.u32 %v12013_v19, %v9959_v17  ;;  %v11987_v19 = vld [vmem:[#allocation2 + $0x14] sm:$0xf0] }
 0xa47   :  { %3462 = vmatpush.bf16.msrb.mxu2 %v13486_v36  ;;  %3476 = vmatpush.bf16.msrb.mxu3 %v13489_v45 }
 0xa49   :  { %9707 = vmatmul.msk.bf16.vlgmr.msrb.gmra.mxu0 %vm2033_vm13, %v11983_v32  ;;  %9708 = vmatmul.msk.bf16.vlgmr.msrb.gmra.mxu1 %vm2033_vm13, %v11983_v32  ;;  %v12021_v32 = vld [vmem:[#allocation2 + $0x124] sm:$0xf] }
 0xa4a   :  { %3678 = vmatpush.bf16.msra.mxu0 %v9776_v12  ;;  %3692 = vmatpush.bf16.msra.mxu1 %v9840_v30  ;;  %v12037_v12 = vld [vmem:[#allocation2 + $0x1a4] sm:$0xf]  ;;  %v9801_v30 = vld [vmem:[#allocation2 + $0x1a8] sm:$0xf0]  ;;  %v9740_v47 = vor.u32 %v12021_v32, %v9737_v43  ;;  %v9888_v32 = vor.u32 %v11995_v38, %v9887_v33  ;;  %v9952_v43 = vor.u32 %v12011_v39, %v9951_v42  ;;  %v9847_v33 = vld [vmem:[#allocation2] sm:$0xf] }
 0xa4b   :  { %9715 = vmatmul.msk.bf16.vlgmr.msrb.gmra.mxu2 %vm2033_vm13, %v12016_v31  ;;  %9716 = vmatmul.msk.bf16.vlgmr.msrb.gmra.mxu3 %vm2033_vm13, %v12016_v31  ;;  %v9804_v31 = vor.u32 %v12037_v12, %v9801_v30  ;;  %v9879_v12 = vld [vmem:[#allocation2 + $0x40] sm:$0xf]  ;;  %v11993_v30 = vld [vmem:[#allocation2 + $0x44] sm:$0xf0] }
 0xa4c   :  { %3706 = vmatpush.bf16.msra.mxu2 %v9780_v48  ;;  %3720 = vmatpush.bf16.msra.mxu3 %v9844_v49  ;;  %v12019_v48 = vld [vmem:[#allocation2 + $0x114] sm:$0xf]  ;;  %v9729_v49 = vld [vmem:[#allocation2 + $0x118] sm:$0xf0]  ;;  %v11985_v38 = vld [vmem:[#allocation2 + $0x4] sm:$0xf0] }
 0xa4d   :  { %v9732_v62 = vor.u32 %v12019_v48, %v9729_v49  ;;  %v9880_v48 = vor.u32 %v11993_v30, %v9879_v12  ;;  %v9944_v49 = vor.u32 %v12009_v37, %v9943_v34  ;;  %v9911_v42 = vld [vmem:[#allocation2 + $0x80] sm:$0xf]  ;;  %v9848_v39 = vor.u32 %v11985_v38, %v9847_v33  ;;  %v10039_v34 = vld [vmem:[#allocation2 + $0x270] sm:$0xf]  ;;  %v12065_v37 = vld [vmem:[#allocation2 + $0x274] sm:$0xf0] }
 0xa4e   :  { %3679 = vmatpush.bf16.msra.mxu0 %v9768_v52  ;;  %3693 = vmatpush.bf16.msra.mxu1 %v9832_v53  ;;  %v9792_v52 = vor.u32 %v12036_v46, %v9791_v44  ;;  %v9793_v53 = vld [vmem:[#allocation2 + $0x198] sm:$0xf0]  ;;  %v10055_v33 = vld [vmem:[#allocation2 + $0x290] sm:$0xf]  ;;  %v12069_v38 = vld [vmem:[#allocation2 + $0x294] sm:$0xf0] }
 0xa4f   :  { %v9796_v63 = vor.u32 %v12035_v50, %v9793_v53  ;;  %v12008_v50 = vld [vmem:[#allocation2 + $0xc4] sm:$0xf]  ;;  %v11991_v53 = vld [vmem:[#allocation2 + $0x34] sm:$0xf0] }
 0xa50   :  { %3707 = vmatpush.bf16.msra.mxu2 %v9772_v60  ;;  %3721 = vmatpush.bf16.msra.mxu3 %v9836_v61  ;;  %v9967_v60 = vld [vmem:[#allocation2 + $0xf0] sm:$0xf]  ;;  %v12015_v61 = vld [vmem:[#allocation2 + $0xf4] sm:$0xf0] }
 0xa52   :  { %3680 = vmatpush.bf16.msra.mxu0 %v9760_v2  ;;  %3694 = vmatpush.bf16.msra.mxu1 %v9824_v3  ;;  %v12017_v2 = vld [vmem:[#allocation2 + $0x104] sm:$0xf]  ;;  %v9721_v3 = vld [vmem:[#allocation2 + $0x108] sm:$0xf0] }
 0xa53   :  { %v9724_v20 = vor.u32 %v12017_v2, %v9721_v3 }
 0xa54   :  { %3708 = vmatpush.bf16.msra.mxu2 %v9764_v10  ;;  %3722 = vmatpush.bf16.msra.mxu3 %v9828_v11  ;;  %v9904_v10 = vor.u32 %v11999_v59, %v9903_v58  ;;  %v9968_v11 = vor.u32 %v12015_v61, %v9967_v60  ;;  %v11990_v58 = vld [vmem:[#allocation2 + $0x34] sm:$0xf]  ;;  %v9936_v60 = vor.u32 %v12007_v55, %v9935_v54  ;;  %v9873_v61 = vld [vmem:[#allocation2 + $0x38] sm:$0xf0]  ;;  %v10095_v54 = vld [vmem:[#allocation2 + $0x2e0] sm:$0xf] }
 0xa55   :  { %v9876_v2 = vor.u32 %v11990_v58, %v9873_v61  ;;  %v12079_v55 = vld [vmem:[#allocation2 + $0x2e4] sm:$0xf0]  ;;  %v12061_v61 = vld [vmem:[#allocation2 + $0x254] sm:$0xf0] }
 0xa56   :  { %3681 = vmatpush.bf16.msra.mxu0 %v9752_v15  ;;  %3695 = vmatpush.bf16.msra.mxu1 %v9816_v16  ;;  %v9895_v15 = vld [vmem:[#allocation2 + $0x60] sm:$0xf]  ;;  %v11997_v16 = vld [vmem:[#allocation2 + $0x64] sm:$0xf0] }
 0xa57   :  { %v9896_v27 = vor.u32 %v11997_v16, %v9895_v15  ;;  %v9929_v15 = vld [vmem:[#allocation2 + $0xa8] sm:$0xf0]  ;;  %v9855_v16 = vld [vmem:[#allocation2 + $0x10] sm:$0xf] }
 0xa58   :  { %3709 = vmatpush.bf16.msra.mxu2 %v9756_v23  ;;  %3723 = vmatpush.bf16.msra.mxu3 %v9820_v26  ;;  %v11996_v23 = vld [vmem:[#allocation2 + $0x64] sm:$0xf]  ;;  %v9897_v26 = vld [vmem:[#allocation2 + $0x68] sm:$0xf0]  ;;  %v9932_v17 = vor.u32 %v12004_v14, %v9929_v15  ;;  %v12057_v14 = vld [vmem:[#allocation2 + $0x234] sm:$0xf0] }
 0xa59   :  { %v9900_v24 = vor.u32 %v11996_v23, %v9897_v26  ;;  %v11986_v23 = vld [vmem:[#allocation2 + $0x14] sm:$0xf]  ;;  %v9857_v26 = vld [vmem:[#allocation2 + $0x18] sm:$0xf0]  ;;  %v10071_v15 = vld [vmem:[#allocation2 + $0x2b0] sm:$0xf] }
 0xa5a   :  { %3682 = vmatpush.bf16.msra.mxu0 %v9744_v25  ;;  %3696 = vmatpush.bf16.msra.mxu1 %v9808_v41  ;;  %v12012_v25 = vld [vmem:[#allocation2 + $0xe4] sm:$0xf]  ;;  %v9961_v41 = vld [vmem:[#allocation2 + $0xe8] sm:$0xf0] }
 0xa5b   :  { %v9964_v28 = vor.u32 %v12012_v25, %v9961_v41  ;;  %v9921_v25 = vld [vmem:[#allocation2 + $0x98] sm:$0xf0] }
 0xa5c   :  { %3710 = vmatpush.bf16.msra.mxu2 %v9748_v18  ;;  %3724 = vmatpush.bf16.msra.mxu3 %v9812_v40  ;;  %v11994_v18 = vld [vmem:[#allocation2 + $0x54] sm:$0xf]  ;;  %v9889_v40 = vld [vmem:[#allocation2 + $0x58] sm:$0xf0] }
 0xa5d   :  { %v9892_v44 = vor.u32 %v11994_v18, %v9889_v40  ;;  %v9849_v18 = vld [vmem:[#allocation2 + $0x8] sm:$0xf0] }
 0xa5e   :  { %3683 = vmatpush.bf16.msra.mxu0 %v9736_v35  ;;  %3697 = vmatpush.bf16.msra.mxu1 %v9800_v21  ;;  %v12010_v35 = vld [vmem:[#allocation2 + $0xd4] sm:$0xf]  ;;  %v9953_v21 = vld [vmem:[#allocation2 + $0xd8] sm:$0xf0] }
 0xa5f   :  { %v9956_v46 = vor.u32 %v12010_v35, %v9953_v21  ;;  %v9913_v35 = vld [vmem:[#allocation2 + $0x88] sm:$0xf0] }
 0xa60   :  { %3711 = vmatpush.bf16.msra.mxu2 %v9740_v47  ;;  %3725 = vmatpush.bf16.msra.mxu3 %v9804_v31  ;;  %v11992_v47 = vld [vmem:[#allocation2 + $0x44] sm:$0xf]  ;;  %v9881_v31 = vld [vmem:[#allocation2 + $0x48] sm:$0xf0] }
 0xa61   :  { %v9884_v56 = vor.u32 %v11992_v47, %v9881_v31 }
 0xa62   :  { %3684 = vmatpush.bf16.msra.mxu0 %v9728_v51  ;;  %3698 = vmatpush.bf16.msra.mxu1 %v9792_v52  ;;  %v9945_v51 = vld [vmem:[#allocation2 + $0xc8] sm:$0xf0]  ;;  %v9871_v52 = vld [vmem:[#allocation2 + $0x30] sm:$0xf] }
 0xa63   :  { %v9948_v57 = vor.u32 %v12008_v50, %v9945_v51  ;;  %v9872_v59 = vor.u32 %v11991_v53, %v9871_v52  ;;  %v10040_v50 = vor.u32 %v12065_v37, %v10039_v34  ;;  %v10031_v52 = vld [vmem:[#allocation2 + $0x260] sm:$0xf]  ;;  %v12063_v53 = vld [vmem:[#allocation2 + $0x264] sm:$0xf0]  ;;  %v10105_v37 = vld [vmem:[#allocation2 + $0x2f8] sm:$0xf0] }
 0xa64   :  { %3712 = vmatpush.bf16.msra.mxu2 %v9732_v62  ;;  %3726 = vmatpush.bf16.msra.mxu3 %v9796_v63  ;;  %v12006_v62 = vld [vmem:[#allocation2 + $0xb4] sm:$0xf]  ;;  %v9937_v63 = vld [vmem:[#allocation2 + $0xb8] sm:$0xf0]  ;;  %v10032_v58 = vor.u32 %v12063_v53, %v10031_v52 }
 0xa65   :  { %v9940_v3 = vor.u32 %v12006_v62, %v9937_v63  ;;  %v10087_v62 = vld [vmem:[#allocation2 + $0x2d0] sm:$0xf]  ;;  %v12077_v63 = vld [vmem:[#allocation2 + $0x2d4] sm:$0xf0]  ;;  %v10089_v53 = vld [vmem:[#allocation2 + $0x2d8] sm:$0xf0] }
 0xa66   :  { %3685 = vmatpush.bf16.msra.mxu0 %v9720_v5  ;;  %3699 = vmatpush.bf16.msra.mxu1 %v9784_v6  ;;  %v11989_v5 = vld [vmem:[#allocation2 + $0x24] sm:$0xf0]  ;;  %v9927_v6 = vld [vmem:[#allocation2 + $0xa0] sm:$0xf] }
 0xa67   :  { %v9864_v7 = vor.u32 %v11989_v5, %v9863_v4  ;;  %v10015_v4 = vld [vmem:[#allocation2 + $0x240] sm:$0xf]  ;;  %v12059_v5 = vld [vmem:[#allocation2 + $0x244] sm:$0xf0] }
 0xa68   :  { %3713 = vmatpush.bf16.msra.mxu2 %v9724_v20  ;;  %3727 = vmatpush.bf16.msra.mxu3 %v9788_v0  ;;  %v9919_v20 = vld [vmem:[#allocation2 + $0x90] sm:$0xf]  ;;  %v12003_v0 = vld [vmem:[#allocation2 + $0x94] sm:$0xf0] }
 0xa6a   :  { %3894 = vmatpush.bf16.msrb.mxu0 %v9904_v10  ;;  %3908 = vmatpush.bf16.msrb.mxu1 %v9968_v11  ;;  %v9865_v10 = vld [vmem:[#allocation2 + $0x28] sm:$0xf0]  ;;  %v9928_v11 = vor.u32 %v12005_v8, %v9927_v6  ;;  %v10079_v6 = vld [vmem:[#allocation2 + $0x2c0] sm:$0xf] }
 0xa6b   :  { %v9868_v13 = vor.u32 %v11988_v9, %v9865_v10  ;;  %v10016_v10 = vor.u32 %v12059_v5, %v10015_v4 }
 0xa6c   :  { %3922 = vmatpush.bf16.msrb.mxu2 %v9908_v22  ;;  %3936 = vmatpush.bf16.msrb.mxu3 %v9972_v1  ;;  %v9856_v22 = vor.u32 %v11987_v19, %v9855_v16  ;;  %v9920_v1 = vor.u32 %v12003_v0, %v9919_v20  ;;  %v12073_v16 = vld [vmem:[#allocation2 + $0x2b4] sm:$0xf0] }
 0xa6d   :  { %v10072_v0 = vor.u32 %v12073_v16, %v10071_v15  ;;  %v9993_v15 = vld [vmem:[#allocation2 + $0x218] sm:$0xf0]  ;;  %v12068_v16 = vld [vmem:[#allocation2 + $0x294] sm:$0xf] }
 0xa6e   :  { %3895 = vmatpush.bf16.msrb.mxu0 %v9896_v27  ;;  %3909 = vmatpush.bf16.msrb.mxu1 %v9960_v29  ;;  %v12002_v27 = vld [vmem:[#allocation2 + $0x94] sm:$0xf]  ;;  %v9860_v29 = vor.u32 %v11986_v23, %v9857_v26  ;;  %v10063_v23 = vld [vmem:[#allocation2 + $0x2a0] sm:$0xf]  ;;  %v12071_v26 = vld [vmem:[#allocation2 + $0x2a4] sm:$0xf0] }
 0xa6f   :  { %v9924_v41 = vor.u32 %v12002_v27, %v9921_v25  ;;  %v9991_v25 = vld [vmem:[#allocation2 + $0x210] sm:$0xf] }
 0xa70   :  { %3923 = vmatpush.bf16.msrb.mxu2 %v9900_v24  ;;  %3937 = vmatpush.bf16.msrb.mxu3 %v9964_v28  ;;  %v12001_v24 = vld [vmem:[#allocation2 + $0x84] sm:$0xf0]  ;;  %v11984_v28 = vld [vmem:[#allocation2 + $0x4] sm:$0xf] }
 0xa71   :  { %v9912_v40 = vor.u32 %v12001_v24, %v9911_v42  ;;  %v9983_v24 = vld [vmem:[#allocation2 + $0x200] sm:$0xf] }
 0xa72   :  { %3896 = vmatpush.bf16.msrb.mxu0 %v9888_v32  ;;  %3910 = vmatpush.bf16.msrb.mxu1 %v9952_v43  ;;  %v9852_v32 = vor.u32 %v11984_v28, %v9849_v18  ;;  %v12000_v43 = vld [vmem:[#allocation2 + $0x84] sm:$0xf]  ;;  %v12051_v28 = vld [vmem:[#allocation2 + $0x204] sm:$0xf0]  ;;  %v10047_v18 = vld [vmem:[#allocation2 + $0x280] sm:$0xf] }
 0xa73   :  { %v9916_v21 = vor.u32 %v12000_v43, %v9913_v35  ;;  %v12049_v35 = vld [vmem:[%s14064_s17 + $0x10] sm:$0xff] }
 0xa74   :  { %3924 = vmatpush.bf16.msrb.mxu2 %v9892_v44  ;;  %3938 = vmatpush.bf16.msrb.mxu3 %v9956_v46  ;;  %v10103_v44 = vld [vmem:[#allocation2 + $0x2f0] sm:$0xf]  ;;  %v12081_v46 = vld [vmem:[#allocation2 + $0x2f4] sm:$0xf0] }
 0xa75   :  { %v10104_v51 = vor.u32 %v12081_v46, %v10103_v44  ;;  %v12062_v46 = vld [vmem:[#allocation2 + $0x264] sm:$0xf] }
 0xa76   :  { %3897 = vmatpush.bf16.msrb.mxu0 %v9880_v48  ;;  %3911 = vmatpush.bf16.msrb.mxu1 %v9944_v49 }
 0xa78   :  { %3925 = vmatpush.bf16.msrb.mxu2 %v9884_v56  ;;  %3939 = vmatpush.bf16.msrb.mxu3 %v9948_v57 }
 0xa7a   :  { %3898 = vmatpush.bf16.msrb.mxu0 %v9872_v59  ;;  %3912 = vmatpush.bf16.msrb.mxu1 %v9936_v60  ;;  %v10096_v59 = vor.u32 %v12079_v55, %v10095_v54  ;;  %v10023_v60 = vld [vmem:[#allocation2 + $0x250] sm:$0xf]  ;;  %v12058_v55 = vld [vmem:[#allocation2 + $0x244] sm:$0xf] }
 0xa7c   :  { %3926 = vmatpush.bf16.msrb.mxu2 %v9876_v2  ;;  %3940 = vmatpush.bf16.msrb.mxu3 %v9940_v3  ;;  %v10024_v2 = vor.u32 %v12061_v61, %v10023_v60  ;;  %v10088_v3 = vor.u32 %v12077_v63, %v10087_v62  ;;  %v12056_v61 = vld [vmem:[#allocation2 + $0x234] sm:$0xf]  ;;  %v10009_v62 = vld [vmem:[#allocation2 + $0x238] sm:$0xf0] }
 0xa7d   :  { %v12072_v63 = vld [vmem:[#allocation2 + $0x2b4] sm:$0xf] }
 0xa7e   :  { %3899 = vmatpush.bf16.msrb.mxu0 %v9864_v7  ;;  %3913 = vmatpush.bf16.msrb.mxu1 %v9928_v11  ;;  %v12075_v7 = vld [vmem:[#allocation2 + $0x2c4] sm:$0xf0] }
 0xa7f   :  { %v10080_v11 = vor.u32 %v12075_v7, %v10079_v6  ;;  %v12054_v7 = vld [vmem:[#allocation2 + $0x224] sm:$0xf] }
 0xa80   :  { %3927 = vmatpush.bf16.msrb.mxu2 %v9868_v13  ;;  %3941 = vmatpush.bf16.msrb.mxu3 %v9932_v17  ;;  %v10007_v13 = vld [vmem:[#allocation2 + $0x230] sm:$0xf] }
 0xa81   :  { %v10008_v20 = vor.u32 %v12057_v14, %v10007_v13  ;;  %v12052_v14 = vld [vmem:[#allocation2 + $0x214] sm:$0xf] }
 0xa82   :  { %3900 = vmatpush.bf16.msrb.mxu0 %v9856_v22  ;;  %3914 = vmatpush.bf16.msrb.mxu1 %v9920_v1  ;;  %v9999_v22 = vld [vmem:[#allocation2 + $0x220] sm:$0xf]  ;;  %v12055_v1 = vld [vmem:[#allocation2 + $0x224] sm:$0xf0] }
 0xa83   :  { %v10000_v27 = vor.u32 %v12055_v1, %v9999_v22 }
 0xa84   :  { %3928 = vmatpush.bf16.msrb.mxu2 %v9860_v29  ;;  %3942 = vmatpush.bf16.msrb.mxu3 %v9924_v41  ;;  %v10064_v29 = vor.u32 %v12071_v26, %v10063_v23  ;;  %v12053_v41 = vld [vmem:[#allocation2 + $0x214] sm:$0xf0]  ;;  %v12050_v23 = vld [vmem:[#allocation2 + $0x204] sm:$0xf]  ;;  %v9985_v26 = vld [vmem:[#allocation2 + $0x208] sm:$0xf0] }
 0xa85   :  { %v9992_v42 = vor.u32 %v12053_v41, %v9991_v25  ;;  %v10049_v25 = vld [vmem:[#allocation2 + $0x288] sm:$0xf0] }
 0xa86   :  { %3901 = vmatpush.bf16.msrb.mxu0 %v9848_v39  ;;  %3915 = vmatpush.bf16.msrb.mxu1 %v9912_v40  ;;  %v10056_v39 = vor.u32 %v12069_v38, %v10055_v33  ;;  %v12067_v40 = vld [vmem:[#allocation2 + $0x284] sm:$0xf0] }
 0xa87   :  { %v10048_v43 = vor.u32 %v12067_v40, %v10047_v18 }
 0xa88   :  { %3929 = vmatpush.bf16.msrb.mxu2 %v9852_v32  ;;  %3943 = vmatpush.bf16.msrb.mxu3 %v9916_v21  ;;  %v9984_v32 = vor.u32 %v12051_v28, %v9983_v24  ;;  %v12064_v21 = vld [vmem:[#allocation2 + $0x274] sm:$0xf] }
 0xac6   :  { %v3391_v56 = vpop.f32.mrf.mxu0  ;;  %v3405_v57 = vpop.f32.mrf.mxu1 }
 0xace   :  { %v3464_v12 = vpop.f32.mrf.mxu2  ;;  %v3478_v30 = vpop.f32.mrf.mxu3 }
 0xacf   :  { %v3393_v8 = vpop.f32.mrf.mxu0  ;;  %v3407_v9 = vpop.f32.mrf.mxu1 }
 0xad0   :  { %v3410_v17 = vpack.c.bf16 %v3393_v8, %v3391_v56  ;;  %v3411_v19 = vpack.c.bf16 %v3407_v9, %v3405_v57  ;;  %v10017_v56 = vld [vmem:[#allocation2 + $0x248] sm:$0xf0]  ;;  %v12074_v57 = vld [vmem:[#allocation2 + $0x2c4] sm:$0xf] }
 0xad1   :  { %v10001_v8 = vld [vmem:[#allocation2 + $0x228] sm:$0xf0]  ;;  %v12070_v9 = vld [vmem:[#allocation2 + $0x2a4] sm:$0xf] }
 0xad6   :  { %v3466_v47 = vpop.f32.mrf.mxu2  ;;  %v3480_v31 = vpop.f32.mrf.mxu3 }
 0xad7   :  { %v3483_v48 = vpack.c.bf16 %v3466_v47, %v3464_v12  ;;  %v3484_v49 = vpack.c.bf16 %v3480_v31, %v3478_v30  ;;  %v10041_v12 = vld [vmem:[#allocation2 + $0x278] sm:$0xf0]  ;;  %v12080_v30 = vld [vmem:[#allocation2 + $0x2f4] sm:$0xf]  ;;  %v10033_v47 = vld [vmem:[#allocation2 + $0x268] sm:$0xf0] }
 0xad8   :  { %v10044_v34 = vor.u32 %v12064_v21, %v10041_v12  ;;  %v10108_v44 = vor.u32 %v12080_v30, %v10105_v37  ;;  %v12078_v31 = vld [vmem:[#allocation2 + $0x2e4] sm:$0xf] }
 0xad9   :  { %3686 = vmatmul.bf16.vlgmr.msra.gmra.mxu0 %v3483_v48  ;;  %3700 = vmatmul.bf16.vlgmr.msra.gmra.mxu1 %v3484_v49 }
 0xada   :  { %3714 = vmatmul.bf16.vlgmr.msra.gmra.mxu2 %v3483_v48  ;;  %3728 = vmatmul.bf16.vlgmr.msra.gmra.mxu3 %v3484_v49  ;;  %v10036_v48 = vor.u32 %v12062_v46, %v10033_v47  ;;  %v10097_v49 = vld [vmem:[#allocation2 + $0x2e8] sm:$0xf0] }
 0xadb   :  { %3968 = vmatpush.bf16.msra.mxu0 %v13486_v36  ;;  %3982 = vmatpush.bf16.msra.mxu1 %v13489_v45 }
 0xadc   :  { %4184 = vmatpush.bf16.msra.mxu2 %v10040_v50  ;;  %4198 = vmatpush.bf16.msra.mxu3 %v10104_v51  ;;  %v10025_v50 = vld [vmem:[#allocation2 + $0x258] sm:$0xf0]  ;;  %v12076_v51 = vld [vmem:[#allocation2 + $0x2d4] sm:$0xf] }
 0xadd   :  { %v10092_v54 = vor.u32 %v12076_v51, %v10089_v53  ;;  %v12114_v51 = vld [vmem:[#allocation2 + $0x3f4] sm:$0xf0]  ;;  %v10177_v53 = vld [vmem:[#allocation2 + $0x378] sm:$0xf0] }
 0xae0   :  { %4185 = vmatpush.bf16.msra.mxu2 %v10032_v58  ;;  %4199 = vmatpush.bf16.msra.mxu3 %v10096_v59  ;;  %v10020_v58 = vor.u32 %v12058_v55, %v10017_v56  ;;  %v10081_v59 = vld [vmem:[#allocation2 + $0x2c8] sm:$0xf0]  ;;  %v12113_v56 = vld [vmem:[#allocation2 + $0x3f4] sm:$0xf] }
 0xae1   :  { %v10084_v60 = vor.u32 %v12074_v57, %v10081_v59  ;;  %v10241_v57 = vld [vmem:[#allocation2 + $0x3f8] sm:$0xf0]  ;;  %v10167_v59 = vld [vmem:[#allocation2 + $0x360] sm:$0xf] }
 0xae4   :  { %4186 = vmatpush.bf16.msra.mxu2 %v10024_v2  ;;  %4200 = vmatpush.bf16.msra.mxu3 %v10088_v3  ;;  %v10012_v2 = vor.u32 %v12056_v61, %v10009_v62  ;;  %v10073_v3 = vld [vmem:[#allocation2 + $0x2b8] sm:$0xf0]  ;;  %v10231_v61 = vld [vmem:[#allocation2 + $0x3e0] sm:$0xf] }
 0xae5   :  { %v10076_v4 = vor.u32 %v12072_v63, %v10073_v3  ;;  %v12112_v63 = vld [vmem:[#allocation2 + $0x3e4] sm:$0xf0]  ;;  %v10169_v3 = vld [vmem:[#allocation2 + $0x368] sm:$0xf0] }
 0xae8   :  { %4187 = vmatpush.bf16.msra.mxu2 %v10016_v10  ;;  %4201 = vmatpush.bf16.msra.mxu3 %v10080_v11  ;;  %v10004_v10 = vor.u32 %v12054_v7, %v10001_v8  ;;  %v10065_v11 = vld [vmem:[#allocation2 + $0x2a8] sm:$0xf0] }
 0xae9   :  { %3902 = vmatmul.bf16.vlgmr.msrb.gmra.mxu0 %v3410_v17  ;;  %3916 = vmatmul.bf16.vlgmr.msrb.gmra.mxu1 %v3411_v19  ;;  %v10068_v13 = vor.u32 %v12070_v9, %v10065_v11  ;;  %v10233_v7 = vld [vmem:[#allocation2 + $0x3e8] sm:$0xf0]  ;;  %v10159_v9 = vld [vmem:[#allocation2 + $0x350] sm:$0xf] }
 0xaea   :  { %3930 = vmatmul.bf16.vlgmr.msrb.gmra.mxu2 %v3410_v17  ;;  %3944 = vmatmul.bf16.vlgmr.msrb.gmra.mxu3 %v3411_v19  ;;  %v9996_v17 = vor.u32 %v12052_v14, %v9993_v15  ;;  %v10057_v19 = vld [vmem:[#allocation2 + $0x298] sm:$0xf0]  ;;  %v10223_v11 = vld [vmem:[#allocation2 + $0x3d0] sm:$0xf]  ;;  %v12110_v15 = vld [vmem:[#allocation2 + $0x3d4] sm:$0xf0] }
 0xaeb   :  { %4212 = vmatpush.bf16.msrb.mxu0 %v10044_v34  ;;  %4226 = vmatpush.bf16.msrb.mxu1 %v10108_v44 }
 0xaec   :  { %4188 = vmatpush.bf16.msra.mxu2 %v10008_v20  ;;  %4202 = vmatpush.bf16.msra.mxu3 %v10072_v0  ;;  %v10060_v20 = vor.u32 %v12068_v16, %v10057_v19  ;;  %v12093_v16 = vld [vmem:[#allocation2 + $0x354] sm:$0xf]  ;;  %v10224_v19 = vor.u32 %v12110_v15, %v10223_v11  ;;  %v12084_v15 = vld [vmem:[#allocation2 + $0x304] sm:$0xf0] }
 0xaef   :  { %4213 = vmatpush.bf16.msrb.mxu0 %v10036_v48  ;;  %v12082_v48 = vld [vmem:[%s14064_s17 + $0x18] sm:$0xff] }
 0xaf0   :  { %4189 = vmatpush.bf16.msra.mxu2 %v10000_v27  ;;  %4203 = vmatpush.bf16.msra.mxu3 %v10064_v29  ;;  %v12066_v27 = vld [vmem:[#allocation2 + $0x284] sm:$0xf]  ;;  %v9988_v29 = vor.u32 %v12050_v23, %v9985_v26  ;;  %v10151_v23 = vld [vmem:[#allocation2 + $0x340] sm:$0xf]  ;;  %v12092_v26 = vld [vmem:[#allocation2 + $0x344] sm:$0xf0] }
 0xaf1   :  { %v10052_v41 = vor.u32 %v12066_v27, %v10049_v25  ;;  %v10215_v27 = vld [vmem:[#allocation2 + $0x3c0] sm:$0xf]  ;;  %v12108_v25 = vld [vmem:[#allocation2 + $0x3c4] sm:$0xf0] }
 0xaf4   :  { %4190 = vmatpush.bf16.msra.mxu2 %v9992_v42  ;;  %4204 = vmatpush.bf16.msra.mxu3 %v10056_v39 }
 0xaf8   :  { %4191 = vmatpush.bf16.msra.mxu2 %v9984_v32  ;;  %4205 = vmatpush.bf16.msra.mxu3 %v10048_v43 }
 0xaf9   :  { %9979 = vmatmul.msk.bf16.vlgmr.msra.gmra.mxu0 %vm2033_vm13, %v12049_v35  ;;  %9980 = vmatmul.msk.bf16.vlgmr.msra.gmra.mxu1 %vm2033_vm13, %v12049_v35 }
 0xafc   :  { %4262 = vmatpush.bf16.msrb.mxu2 %v13486_v36  ;;  %4276 = vmatpush.bf16.msrb.mxu3 %v13489_v45  ;;  %v10100_v36 = vor.u32 %v12078_v31, %v10097_v49  ;;  %v12060_v45 = vld [vmem:[#allocation2 + $0x254] sm:$0xf]  ;;  %v10175_v49 = vld [vmem:[#allocation2 + $0x370] sm:$0xf] }
 0xafd   :  { %v10028_v52 = vor.u32 %v12060_v45, %v10025_v50  ;;  %v10239_v45 = vld [vmem:[#allocation2 + $0x3f0] sm:$0xf] }
 0xafe   :  { %4227 = vmatpush.bf16.msrb.mxu1 %v10100_v36  ;;  %v12098_v36 = vld [vmem:[#allocation2 + $0x374] sm:$0xf0] }
 0xaff   :  { %4214 = vmatpush.bf16.msrb.mxu0 %v10028_v52  ;;  %v10176_v50 = vor.u32 %v12098_v36, %v10175_v49  ;;  %v12097_v52 = vld [vmem:[#allocation2 + $0x374] sm:$0xf]  ;;  %v10209_v49 = vld [vmem:[#allocation2 + $0x3b8] sm:$0xf0] }
 0xb00   :  { %v10180_v55 = vor.u32 %v12097_v52, %v10177_v53  ;;  %v10199_v52 = vld [vmem:[#allocation2 + $0x3a0] sm:$0xf] }
 0xb02   :  { %4228 = vmatpush.bf16.msrb.mxu1 %v10092_v54  ;;  %v10240_v54 = vor.u32 %v12114_v51, %v10239_v45  ;;  %v12088_v51 = vld [vmem:[#allocation2 + $0x324] sm:$0xf0] }
 0xb03   :  { %4215 = vmatpush.bf16.msrb.mxu0 %v10020_v58  ;;  %v10244_v58 = vor.u32 %v12113_v56, %v10241_v57  ;;  %v10137_v56 = vld [vmem:[#allocation2 + $0x328] sm:$0xf0] }
 0xb06   :  { %4229 = vmatpush.bf16.msrb.mxu1 %v10084_v60  ;;  %v12096_v60 = vld [vmem:[#allocation2 + $0x364] sm:$0xf0] }
 0xb07   :  { %4216 = vmatpush.bf16.msrb.mxu0 %v10012_v2  ;;  %v10168_v62 = vor.u32 %v12096_v60, %v10167_v59  ;;  %v12095_v2 = vld [vmem:[#allocation2 + $0x364] sm:$0xf]  ;;  %v10201_v60 = vld [vmem:[#allocation2 + $0x3a8] sm:$0xf0] }
 0xb08   :  { %v12103_v59 = vld [vmem:[#allocation2 + $0x3a4] sm:$0xf] }
 0xb0a   :  { %4230 = vmatpush.bf16.msrb.mxu1 %v10076_v4  ;;  %v10232_v4 = vor.u32 %v12112_v63, %v10231_v61  ;;  %v10127_v61 = vld [vmem:[#allocation2 + $0x310] sm:$0xf]  ;;  %v12086_v63 = vld [vmem:[#allocation2 + $0x314] sm:$0xf0] }
 0xb0b   :  { %4217 = vmatpush.bf16.msrb.mxu0 %v10004_v10  ;;  %v12094_v10 = vld [vmem:[#allocation2 + $0x354] sm:$0xf0] }
 0xb0c   :  { %v10160_v14 = vor.u32 %v12094_v10, %v10159_v9  ;;  %v10193_v10 = vld [vmem:[#allocation2 + $0x398] sm:$0xf0] }
 0xb0e   :  { %4231 = vmatpush.bf16.msrb.mxu1 %v10068_v13 }
 0xb0f   :  { %4218 = vmatpush.bf16.msrb.mxu0 %v9996_v17  ;;  %v10161_v17 = vld [vmem:[#allocation2 + $0x358] sm:$0xf0] }
 0xb12   :  { %4232 = vmatpush.bf16.msrb.mxu1 %v10060_v20  ;;  %v10164_v20 = vor.u32 %v12093_v16, %v10161_v17  ;;  %v10183_v16 = vld [vmem:[#allocation2 + $0x380] sm:$0xf] }
 0xb13   :  { %4219 = vmatpush.bf16.msrb.mxu0 %v9988_v29  ;;  %v10152_v29 = vor.u32 %v12092_v26, %v10151_v23 }
 0xb16   :  { %4233 = vmatpush.bf16.msrb.mxu1 %v10052_v41  ;;  %v12091_v41 = vld [vmem:[#allocation2 + $0x344] sm:$0xf] }
 0xb17   :  { %4478 = vmatpush.bf16.msra.mxu0 %v10176_v50  ;;  %v10135_v50 = vld [vmem:[#allocation2 + $0x320] sm:$0xf] }
 0xb18   :  { %v10136_v53 = vor.u32 %v12088_v51, %v10135_v50  ;;  %v4548_v50 = vld [vmem:[%s14065_s21 + $0x50] sm:$0xff]  ;;  %v4567_v51 = vld [vmem:[%s14065_s21 + $0xe8] sm:$0xff] }
 0xb1a   :  { %4492 = vmatpush.bf16.msra.mxu1 %v10240_v54  ;;  %v12104_v54 = vld [vmem:[#allocation2 + $0x3a4] sm:$0xf0] }
 0xb1b   :  { %4479 = vmatpush.bf16.msra.mxu0 %v10168_v62  ;;  %v10200_v57 = vor.u32 %v12104_v54, %v10199_v52  ;;  %v10204_v62 = vor.u32 %v12103_v59, %v10201_v60  ;;  %v4547_v52 = vld [vmem:[%s14065_s21 + $0x48] sm:$0xff]  ;;  %v4546_v54 = vld [vmem:[%s14065_s21 + $0x40] sm:$0xff]  ;;  %v4544_v60 = vld [vmem:[%s14065_s21 + $0x30] sm:$0xff] }
 0xb1e   :  { %4493 = vmatpush.bf16.msra.mxu1 %v10232_v4  ;;  %v10128_v4 = vor.u32 %v12086_v63, %v10127_v61  ;;  %v4563_v61 = vld [vmem:[%s14065_s21 + $0xc8] sm:$0xff]  ;;  %v4562_v63 = vld [vmem:[%s14065_s21 + $0xc0] sm:$0xff] }
 0xb1f   :  { %4480 = vmatpush.bf16.msra.mxu0 %v10160_v14  ;;  %v10119_v14 = vld [vmem:[#allocation2 + $0x300] sm:$0xf] }
 0xb22   :  { %4494 = vmatpush.bf16.msra.mxu1 %v10224_v19 }
 0xb23   :  { %4481 = vmatpush.bf16.msra.mxu0 %v10152_v29  ;;  %v10185_v29 = vld [vmem:[#allocation2 + $0x388] sm:$0xf0] }
 0xb56   :  { %v3687_v5 = vpop.f32.mrf.mxu0  ;;  %v3701_v6 = vpop.f32.mrf.mxu1 }
 0xb57   :  { %v3702_v33 = vadd.f32 %v3701_v6, %v3687_v5  ;;  %v10172_v5 = vor.u32 %v12095_v2, %v10169_v3  ;;  %v12111_v6 = vld [vmem:[#allocation2 + $0x3e4] sm:$0xf]  ;;  %v10191_v2 = vld [vmem:[#allocation2 + $0x390] sm:$0xf]  ;;  %v12102_v3 = vld [vmem:[#allocation2 + $0x394] sm:$0xf0] }
 0xb58   :  { %v10236_v8 = vor.u32 %v12111_v6, %v10233_v7  ;;  %v12085_v6 = vld [vmem:[#allocation2 + $0x314] sm:$0xf]  ;;  %v10129_v7 = vld [vmem:[#allocation2 + $0x318] sm:$0xf0] }
 0xb59   :  { %v10132_v9 = vor.u32 %v12085_v6, %v10129_v7  ;;  %v4540_v6 = vld [vmem:[%s14065_s21 + $0x10] sm:$0xff]  ;;  %v4559_v7 = vld [vmem:[%s14065_s21 + $0xa8] sm:$0xff] }
 0xb5d   :  { %v3715_v0 = vpop.f32.mrf.mxu2  ;;  %v3729_v28 = vpop.f32.mrf.mxu3 }
 0xb5e   :  { %v3689_v22 = vpop.f32.mrf.mxu0  ;;  %v3703_v1 = vpop.f32.mrf.mxu1  ;;  %v3730_v18 = vadd.f32 %v3729_v28, %v3715_v0  ;;  %v12109_v0 = vld [vmem:[#allocation2 + $0x3d4] sm:$0xf] }
 0xb5f   :  { %v3704_v40 = vadd.f32 %v3703_v1, %v3689_v22  ;;  %v10225_v22 = vld [vmem:[#allocation2 + $0x3d8] sm:$0xf0] }
 0xb60   :  { %v10228_v1 = vor.u32 %v12109_v0, %v10225_v22  ;;  %v12100_v0 = vld [vmem:[#allocation2 + $0x384] sm:$0xf0]  ;;  %v12083_v22 = vld [vmem:[#allocation2 + $0x304] sm:$0xf] }
 0xb61   :  { %v10184_v23 = vor.u32 %v12100_v0, %v10183_v16  ;;  %v4556_v16 = vld [vmem:[%s14065_s21 + $0x90] sm:$0xff]  ;;  %v4554_v0 = vld [vmem:[%s14065_s21 + $0x80] sm:$0xff] }
 0xb65   :  { %v13507_v38 = vpop.f32.mrf.mxu2  ;;  %v13520_v13 = vpop.f32.mrf.mxu3 }
 0xb66   :  { %v3903_v42 = vpop.f32.mrf.mxu0  ;;  %v13509_v39 = vpop.f32.mrf.mxu1 }
 0xb67   :  { %v13511_v24 = vadd.f32 %v3903_v42, %v3702_v33  ;;  %v10153_v33 = vld [vmem:[#allocation2 + $0x348] sm:$0xf0]  ;;  %v10216_v42 = vor.u32 %v12108_v25, %v10215_v27  ;;  %v12099_v27 = vld [vmem:[#allocation2 + $0x384] sm:$0xf] }
 0xb68   :  { %v10156_v28 = vor.u32 %v12091_v41, %v10153_v33  ;;  %v10188_v25 = vor.u32 %v12099_v27, %v10185_v29  ;;  %v4553_v41 = vld [vmem:[%s14065_s21 + $0x78] sm:$0xff]  ;;  %v4552_v33 = vld [vmem:[%s14065_s21 + $0x70] sm:$0xff]  ;;  %v3732_v29 = vadd.f32 %v13520_v13, %v13507_v38 }
 0xb69   :  { %4495 = vmatpush.bf16.msra.mxu1 %v10216_v42 }
 0xb6d   :  { %v3931_v32 = vpop.f32.mrf.mxu2  ;;  %v13522_v36 = vpop.f32.mrf.mxu3 }
 0xb6e   :  { %v13513_v43 = vadd.f32 %v3931_v32, %v3730_v18  ;;  %v3905_v35 = vpop.f32.mrf.mxu0  ;;  %v3919_v21 = vpop.f32.mrf.mxu1  ;;  %v12107_v18 = vld [vmem:[#allocation2 + $0x3c4] sm:$0xf] }
 0xb6f   :  { %v3906_v12 = vadd.f32 %v3905_v35, %v3704_v40  ;;  %v10217_v40 = vld [vmem:[#allocation2 + $0x3c8] sm:$0xf0]  ;;  %v10143_v35 = vld [vmem:[#allocation2 + $0x330] sm:$0xf] }
 0xb70   :  { %v10220_v32 = vor.u32 %v12107_v18, %v10217_v40  ;;  %v3918_v18 = vadd.f32 %v13509_v39, %v13511_v24  ;;  %v4551_v24 = vld [vmem:[%s14065_s21 + $0x68] sm:$0xff] }
 0xb71   :  { %v13515_v30 = vadd.f32 %v3919_v21, %v3906_v12  ;;  %v12090_v21 = vld [vmem:[#allocation2 + $0x334] sm:$0xf0]  ;;  %v10207_v12 = vld [vmem:[#allocation2 + $0x3b0] sm:$0xf] }
 0xb75   :  { %v13524_v17 = vpop.f32.mrf.mxu2  ;;  %v13526_v19 = vpop.f32.mrf.mxu3 }
 0xb76   :  { %v3970_v34 = vpop.f32.mrf.mxu0  ;;  %v3984_v37 = vpop.f32.mrf.mxu1 }
 0xb7e   :  { %v3972_v44 = vpop.f32.mrf.mxu0  ;;  %v3986_v46 = vpop.f32.mrf.mxu1 }
 0xb7f   :  { %v3989_v47 = vpack.c.bf16 %v3972_v44, %v3970_v34  ;;  %v3990_v31 = vpack.c.bf16 %v3986_v46, %v3984_v37  ;;  %v10144_v34 = vor.u32 %v12090_v21, %v10143_v35  ;;  %v12106_v37 = vld [vmem:[#allocation2 + $0x3b4] sm:$0xf0]  ;;  %v12089_v44 = vld [vmem:[#allocation2 + $0x334] sm:$0xf]  ;;  %v10145_v46 = vld [vmem:[#allocation2 + $0x338] sm:$0xf0] }
 0xb81   :  { %4192 = vmatmul.bf16.vlgmr.msra.gmra.mxu2 %v3989_v47  ;;  %4206 = vmatmul.bf16.vlgmr.msra.gmra.mxu3 %v3990_v31 }
 0xb82   :  { %4220 = vmatmul.bf16.vlgmr.msrb.gmra.mxu0 %v3989_v47  ;;  %4234 = vmatmul.bf16.vlgmr.msrb.gmra.mxu1 %v3990_v31  ;;  %v10208_v47 = vor.u32 %v12106_v37, %v10207_v12  ;;  %v10148_v31 = vor.u32 %v12089_v44, %v10145_v46 }
 0xb83   :  { %4506 = vmatpush.bf16.msra.mxu2 %v10180_v55  ;;  %4520 = vmatpush.bf16.msra.mxu3 %v10244_v58  ;;  %v12087_v55 = vld [vmem:[#allocation2 + $0x324] sm:$0xf] }
 0xb84   :  { %4482 = vmatpush.bf16.msra.mxu0 %v10144_v34  ;;  %4496 = vmatpush.bf16.msra.mxu1 %v10208_v47  ;;  %v10140_v58 = vor.u32 %v12087_v55, %v10137_v56  ;;  %v4565_v55 = vld [vmem:[%s14065_s21 + $0xd8] sm:$0xff] }
 0xb85   :  { %v4545_v56 = vld [vmem:[%s14065_s21 + $0x38] sm:$0xff] }
 0xb87   :  { %4507 = vmatpush.bf16.msra.mxu2 %v10172_v5  ;;  %4521 = vmatpush.bf16.msra.mxu3 %v10236_v8  ;;  %v10192_v5 = vor.u32 %v12102_v3, %v10191_v2  ;;  %v12101_v8 = vld [vmem:[#allocation2 + $0x394] sm:$0xf]  ;;  %v4542_v2 = vld [vmem:[%s14065_s21 + $0x20] sm:$0xff]  ;;  %v4561_v3 = vld [vmem:[%s14065_s21 + $0xb8] sm:$0xff] }
 0xb88   :  { %4483 = vmatpush.bf16.msra.mxu0 %v10136_v53  ;;  %4497 = vmatpush.bf16.msra.mxu1 %v10200_v57  ;;  %v10196_v11 = vor.u32 %v12101_v8, %v10193_v10  ;;  %v4566_v53 = vld [vmem:[%s14065_s21 + $0xe0] sm:$0xff]  ;;  %v4564_v57 = vld [vmem:[%s14065_s21 + $0xd0] sm:$0xff]  ;;  %v4539_v10 = vld [vmem:[%s14065_s21 + $0x8] sm:$0xff] }
 0xb8b   :  { %4508 = vmatpush.bf16.msra.mxu2 %v10164_v20  ;;  %4522 = vmatpush.bf16.msra.mxu3 %v10228_v1  ;;  %v10120_v20 = vor.u32 %v12084_v15, %v10119_v14  ;;  %v10121_v1 = vld [vmem:[#allocation2 + $0x308] sm:$0xf0]  ;;  %v4538_v14 = vld [vmem:[%s14065_s21] sm:$0xff]  ;;  %v4557_v15 = vld [vmem:[%s14065_s21 + $0x98] sm:$0xff] }
 0xb8c   :  { %4484 = vmatpush.bf16.msra.mxu0 %v10128_v4  ;;  %4498 = vmatpush.bf16.msra.mxu1 %v10192_v5  ;;  %v10124_v26 = vor.u32 %v12083_v22, %v10121_v1  ;;  %v4541_v4 = vld [vmem:[%s14065_s21 + $0x18] sm:$0xff]  ;;  %v4560_v5 = vld [vmem:[%s14065_s21 + $0xb0] sm:$0xff] }
 0xb8f   :  { %4509 = vmatpush.bf16.msra.mxu2 %v10156_v28  ;;  %4523 = vmatpush.bf16.msra.mxu3 %v10220_v32 }
 0xb90   :  { %4485 = vmatpush.bf16.msra.mxu0 %v10120_v20  ;;  %4499 = vmatpush.bf16.msra.mxu1 %v10184_v23  ;;  %v4555_v20 = vld [vmem:[%s14065_s21 + $0x88] sm:$0xff] }
 0xb91   :  { %10115 = vmatmul.msk.bf16.vlgmr.msrb.gmra.mxu2 %vm2033_vm13, %v12082_v48  ;;  %10116 = vmatmul.msk.bf16.vlgmr.msrb.gmra.mxu3 %vm2033_vm13, %v12082_v48  ;;  %v12105_v48 = vld [vmem:[#allocation2 + $0x3b4] sm:$0xf] }
 0xb92   :  { %v10212_v45 = vor.u32 %v12105_v48, %v10209_v49  ;;  %v4550_v48 = vld [vmem:[%s14065_s21 + $0x60] sm:$0xff]  ;;  %v4549_v49 = vld [vmem:[%s14065_s21 + $0x58] sm:$0xff] }
 0xb93   :  { %4510 = vmatpush.bf16.msra.mxu2 %v10148_v31 }
 0xb94   :  { %4524 = vmatpush.bf16.msra.mxu3 %v10212_v45  ;;  %4610 = vmatpush.msrb.mxu0 %v4553_v41  ;;  %v4568_v45 = vld [vmem:[%s14065_s21 + $0xf0] sm:$0xff] }
 0xb96   :  { %4611 = vmatpush.msrb.mxu0 %v4552_v33 }
 0xb97   :  { %4511 = vmatpush.bf16.msra.mxu2 %v10140_v58 }
 0xb98   :  { %4525 = vmatpush.bf16.msra.mxu3 %v10204_v62  ;;  %4612 = vmatpush.msrb.mxu0 %v4551_v24  ;;  %v4543_v62 = vld [vmem:[%s14065_s21 + $0x28] sm:$0xff] }
 0xb9a   :  { %4613 = vmatpush.msrb.mxu0 %v4550_v48 }
 0xb9b   :  { %4512 = vmatpush.bf16.msra.mxu2 %v10132_v9 }
 0xb9c   :  { %4526 = vmatpush.bf16.msra.mxu3 %v10196_v11  ;;  %4614 = vmatpush.msrb.mxu0 %v4549_v49  ;;  %v4558_v11 = vld [vmem:[%s14065_s21 + $0xa0] sm:$0xff] }
 0xb9e   :  { %4615 = vmatpush.msrb.mxu0 %v4548_v50 }
 0xb9f   :  { %4513 = vmatpush.bf16.msra.mxu2 %v10124_v26 }
 0xba0   :  { %4527 = vmatpush.bf16.msra.mxu3 %v10188_v25  ;;  %4616 = vmatpush.msrb.mxu0 %v4547_v52 }
 0xba2   :  { %4617 = vmatpush.msrb.mxu0 %v4546_v54 }
 0xba3   :  { %4651 = vmatpush.msrb.mxu2 %v4553_v41 }
 0xba4   :  { %4618 = vmatpush.msrb.mxu0 %v4545_v56 }
 0xba5   :  { %4652 = vmatpush.msrb.mxu2 %v4552_v33 }
 0xba6   :  { %4619 = vmatpush.msrb.mxu0 %v4544_v60 }
 0xba7   :  { %4653 = vmatpush.msrb.mxu2 %v4551_v24 }
 0xba8   :  { %4620 = vmatpush.msrb.mxu0 %v4543_v62 }
 0xba9   :  { %4654 = vmatpush.msrb.mxu2 %v4550_v48 }
 0xbaa   :  { %4621 = vmatpush.msrb.mxu0 %v4542_v2 }
 0xbab   :  { %4655 = vmatpush.msrb.mxu2 %v4549_v49 }
 0xbac   :  { %4622 = vmatpush.msrb.mxu0 %v4541_v4 }
 0xbad   :  { %4656 = vmatpush.msrb.mxu2 %v4548_v50 }
 0xbae   :  { %4623 = vmatpush.msrb.mxu0 %v4540_v6 }
 0xbaf   :  { %4657 = vmatpush.msrb.mxu2 %v4547_v52 }
 0xbb0   :  { %4624 = vmatpush.msrb.mxu0 %v4539_v10 }
 0xbb1   :  { %4658 = vmatpush.msrb.mxu2 %v4546_v54 }
 0xbb2   :  { %4625 = vmatpush.msrb.mxu0 %v4538_v14 }
 0xbb3   :  { %4659 = vmatpush.msrb.mxu2 %v4545_v56 }
 0xbb5   :  { %4660 = vmatpush.msrb.mxu2 %v4544_v60 }
 0xbb7   :  { %4661 = vmatpush.msrb.mxu2 %v4543_v62 }
 0xbb9   :  { %4662 = vmatpush.msrb.mxu2 %v4542_v2 }
 0xbbb   :  { %4663 = vmatpush.msrb.mxu2 %v4541_v4 }
 0xbbd   :  { %4664 = vmatpush.msrb.mxu2 %v4540_v6 }
 0xbbf   :  { %4665 = vmatpush.msrb.mxu2 %v4539_v10  ;;  %v4577_v10 = vld [vmem:[%s14066_s25 + $0x38] sm:$0xff] }
 0xbc1   :  { %4666 = vmatpush.msrb.mxu2 %v4538_v14  ;;  %v4575_v14 = vld [vmem:[%s14066_s25 + $0x28] sm:$0xff] }
 0xbff   :  { %v13550_v58 = vpop.f32.mrf.mxu0  ;;  %v13552_v59 = vpop.f32.mrf.mxu1 }
 0xc04   :  { %v4193_v42 = vpop.f32.mrf.mxu2  ;;  %v4207_v28 = vpop.f32.mrf.mxu3 }
 0xc05   :  { %v4208_v40 = vadd.f32 %v4207_v28, %v4193_v42  ;;  %v3934_v28 = vadd.f32 %v13524_v17, %v3732_v29 }
 0xc07   :  { %v13532_v32 = vadd.f32 %v4208_v40, %v3918_v18  ;;  %v4223_v8 = vpop.f32.mrf.mxu0  ;;  %v4237_v9 = vpop.f32.mrf.mxu1  ;;  %v4236_v18 = vadd.f32 %v13552_v59, %v13550_v58 }
 0xc0c   :  { %v4195_v35 = vpop.f32.mrf.mxu2  ;;  %v4209_v21 = vpop.f32.mrf.mxu3 }
 0xc0d   :  { %v4210_v12 = vadd.f32 %v4209_v21, %v4195_v35  ;;  %v3946_v35 = vadd.f32 %v13522_v36, %v13513_v43  ;;  %v4238_v21 = vadd.f32 %v4237_v9, %v4223_v8  ;;  %v4576_v9 = vld [vmem:[%s14066_s25 + $0x30] sm:$0xff] }
 0xc0f   :  { %v13535_v34 = vadd.f32 %v4210_v12, %v13515_v30  ;;  %v4569_v30 = vld [vmem:[%s14065_s21 + $0xf8] sm:$0xff] }
 0xc10   :  { %4630 = vmatpush.msrb.mxu1 %v4569_v30  ;;  %4671 = vmatpush.msrb.mxu3 %v4569_v30 }
 0xc12   :  { %4631 = vmatpush.msrb.mxu1 %v4568_v45  ;;  %4672 = vmatpush.msrb.mxu3 %v4568_v45 }
 0xc14   :  { %v4264_v37 = vpop.f32.mrf.mxu2  ;;  %v4278_v44 = vpop.f32.mrf.mxu3  ;;  %4632 = vmatpush.msrb.mxu1 %v4567_v51  ;;  %4673 = vmatpush.msrb.mxu3 %v4567_v51 }
 0xc16   :  { %4633 = vmatpush.msrb.mxu1 %v4566_v53  ;;  %4674 = vmatpush.msrb.mxu3 %v4566_v53 }
 0xc18   :  { %4634 = vmatpush.msrb.mxu1 %v4565_v55  ;;  %4675 = vmatpush.msrb.mxu3 %v4565_v55 }
 0xc1a   :  { %4635 = vmatpush.msrb.mxu1 %v4564_v57  ;;  %4676 = vmatpush.msrb.mxu3 %v4564_v57 }
 0xc1c   :  { %v4266_v46 = vpop.f32.mrf.mxu2  ;;  %v4280_v47 = vpop.f32.mrf.mxu3  ;;  %4636 = vmatpush.msrb.mxu1 %v4563_v61  ;;  %4677 = vmatpush.msrb.mxu3 %v4563_v61 }
 0xc1d   :  { %v4283_v31 = vpack.c.bf16 %v4266_v46, %v4264_v37  ;;  %v4284_v39 = vpack.c.bf16 %v4280_v47, %v4278_v44  ;;  %v4241_v37 = vadd.f32 %v4236_v18, %v3946_v35 }
 0xc1e   :  { %4637 = vmatpush.msrb.mxu1 %v4562_v63  ;;  %4678 = vmatpush.msrb.mxu3 %v4562_v63 }
 0xc1f   :  { %4486 = vmatmul.bf16.vlgmr.msra.gmra.mxu0 %v4283_v31  ;;  %4500 = vmatmul.bf16.vlgmr.msra.gmra.mxu1 %v4284_v39 }
 0xc20   :  { %4514 = vmatmul.bf16.vlgmr.msra.gmra.mxu2 %v4283_v31  ;;  %4528 = vmatmul.bf16.vlgmr.msra.gmra.mxu3 %v4284_v39 }
 0xc21   :  { %4638 = vmatpush.msrb.mxu1 %v4561_v3  ;;  %4679 = vmatpush.msrb.mxu3 %v4561_v3 }
 0xc22   :  { %4720 = vmatpush.msra.mxu2 %v4576_v9  ;;  %4763 = vmatpush.msra.mxu0 %v4576_v9  ;;  %v12138_v9 = vld [vmem:[%s14067_s29 + $0x98] sm:$0xff] }
 0xc23   :  { %4639 = vmatpush.msrb.mxu1 %v4560_v5  ;;  %4680 = vmatpush.msrb.mxu3 %v4560_v5 }
 0xc25   :  { %4640 = vmatpush.msrb.mxu1 %v4559_v7  ;;  %4681 = vmatpush.msrb.mxu3 %v4559_v7 }
 0xc27   :  { %4641 = vmatpush.msrb.mxu1 %v4558_v11  ;;  %4682 = vmatpush.msrb.mxu3 %v4558_v11  ;;  %v4574_v11 = vld [vmem:[%s14066_s25 + $0x20] sm:$0xff] }
 0xc28   :  { %4721 = vmatpush.msra.mxu2 %v4574_v11  ;;  %4764 = vmatpush.msra.mxu0 %v4574_v11  ;;  %v12116_v11 = vld [vmem:[%s14068_s3 + $0x8] sm:$0xff] }
 0xc29   :  { %4642 = vmatpush.msrb.mxu1 %v4557_v15  ;;  %4683 = vmatpush.msrb.mxu3 %v4557_v15  ;;  %v4572_v15 = vld [vmem:[%s14066_s25 + $0x10] sm:$0xff] }
 0xc2a   :  { %4722 = vmatpush.msra.mxu2 %v4572_v15  ;;  %4765 = vmatpush.msra.mxu0 %v4572_v15  ;;  %v12137_v15 = vld [vmem:[%s14067_s29 + $0x90] sm:$0xff] }
 0xc2b   :  { %4643 = vmatpush.msrb.mxu1 %v4556_v16  ;;  %4684 = vmatpush.msrb.mxu3 %v4556_v16  ;;  %v4573_v16 = vld [vmem:[%s14066_s25 + $0x18] sm:$0xff] }
 0xc2d   :  { %4644 = vmatpush.msrb.mxu1 %v4555_v20  ;;  %4685 = vmatpush.msrb.mxu3 %v4555_v20  ;;  %v4570_v20 = vld [vmem:[%s14066_s25] sm:$0xff] }
 0xc2e   :  { %4723 = vmatpush.msra.mxu2 %v4570_v20  ;;  %4766 = vmatpush.msra.mxu0 %v4570_v20  ;;  %v12136_v20 = vld [vmem:[%s14067_s29 + $0x88] sm:$0xff] }
 0xc2f   :  { %4645 = vmatpush.msrb.mxu1 %v4554_v0  ;;  %4686 = vmatpush.msrb.mxu3 %v4554_v0  ;;  %v4571_v0 = vld [vmem:[%s14066_s25 + $0x8] sm:$0xff] }
 0xc31   :  { %4740 = vmatpush.msra.mxu1 %v4577_v10 }
 0xc33   :  { %4741 = vmatpush.msra.mxu1 %v4575_v14 }
 0xc35   :  { %4742 = vmatpush.msra.mxu1 %v4573_v16 }
 0xc37   :  { %4743 = vmatpush.msra.mxu1 %v4571_v0 }
 0xc9c   :  { %v4487_v22 = vpop.f32.mrf.mxu0  ;;  %v4501_v1 = vpop.f32.mrf.mxu1 }
 0xc9d   :  { %v4502_v23 = vadd.f32 %v4501_v1, %v4487_v22 }
 0xc9f   :  { %v13574_v33 = vadd.f32 %v4502_v23, %v13532_v32  ;;  %v3948_v32 = vadd.f32 %v13526_v19, %v3934_v28 }
 0xca1   :  { %v4592_v38 = vmul.f32 %v13574_v33, %v13574_v33  ;;  %v4243_v31 = vadd.f32 %v4238_v21, %v3948_v32 }
 0xca3   :  { %v4515_v26 = vpop.f32.mrf.mxu2  ;;  %v4529_v27 = vpop.f32.mrf.mxu3 }
 0xca4   :  { %v4489_v25 = vpop.f32.mrf.mxu0  ;;  %v4503_v41 = vpop.f32.mrf.mxu1  ;;  %v4530_v12 = vadd.f32 %v4529_v27, %v4515_v26 }
 0xca5   :  { %v4504_v42 = vadd.f32 %v4503_v41, %v4489_v25 }
 0xca6   :  { %v13591_v43 = vadd.f32 %v4530_v12, %v4241_v37 }
 0xca7   :  { %v13580_v40 = vadd.f32 %v4504_v42, %v13535_v34 }
 0xca8   :  { %v4593_v45 = vmul.f32 %v13591_v43, %v13591_v43 }
 0xca9   :  { %v4578_v13 = vadd.f32 %v13580_v40, %v13574_v33  ;;  %v4594_v17 = vmul.f32 %v13580_v40, %v13580_v40 }
 0xcab   :  { %v4579_v44 = vrot.slane %v4578_v13, 4  ;;  %v4596_v34 = vadd.f32 %v4594_v17, %v4592_v38  ;;  %v4517_v46 = vpop.f32.mrf.mxu2  ;;  %v4531_v47 = vpop.f32.mrf.mxu3 }
 0xcac   :  { %v4532_v36 = vadd.f32 %v4531_v47, %v4517_v46 }
 0xcad   :  { %v4580_v39 = vadd.f32 %v4579_v44, %v4578_v13  ;;  %v4597_v24 = vrot.slane %v4596_v34, 4 }
 0xcae   :  { %v13593_v48 = vadd.f32 %v4532_v36, %v4243_v31 }
 0xcaf   :  { %v4581_v30 = vrot.slane %v4580_v39, 2  ;;  %v4598_v49 = vadd.f32 %v4597_v24, %v4596_v34 }
 0xcb0   :  { %v4585_v19 = vadd.f32 %v13593_v48, %v13591_v43  ;;  %v4595_v50 = vmul.f32 %v13593_v48, %v13593_v48 }
 0xcb1   :  { %v4582_v51 = vadd.f32 %v4581_v30, %v4580_v39  ;;  %v4599_v52 = vrot.slane %v4598_v49, 2 }
 0xcb2   :  { %v4586_v53 = vrot.slane %v4585_v19, 4  ;;  %v4603_v54 = vadd.f32 %v4595_v50, %v4593_v45 }
 0xcb3   :  { %v4583_v55 = vrot.slane %v4582_v51, 1  ;;  %v4600_v56 = vadd.f32 %v4599_v52, %v4598_v49 }
 0xcb4   :  { %v4587_v57 = vadd.f32 %v4586_v53, %v4585_v19  ;;  %v4604_v58 = vrot.slane %v4603_v54, 4 }
 0xcb5   :  { %v4584_v59 = vadd.f32 %v4583_v55, %v4582_v51  ;;  %v4601_v60 = vrot.slane %v4600_v56, 1 }
 0xcb6   :  { %v4588_v61 = vrot.slane %v4587_v57, 2  ;;  %v4605_v62 = vadd.f32 %v4604_v58, %v4603_v54  ;;  %v12133_v58 = vld [vmem:[%s14068_s3 + $0x10] sm:$0xff] }
 0xcb7   :  { %4626 = vmatmul.f32.vlgmr.msrb.gmra.mxu0 %v4584_v59  ;;  %v4602_v63 = vadd.f32 %v4601_v60, %v4600_v56  ;;  %v12150_v56 = vld [vmem:[%s14067_s29 + $0xf8] sm:$0xff] }
 0xcb8   :  { %v4589_v2 = vadd.f32 %v4588_v61, %v4587_v57  ;;  %v4606_v3 = vrot.slane %v4605_v62, 2  ;;  %v12115_v57 = vld [vmem:[%s14068_s3] sm:$0xff]  ;;  %v12124_v59 = vld [vmem:[%s14067_s29 + $0x38] sm:$0xff]  ;;  %v12141_v61 = vld [vmem:[%s14067_s29 + $0xb0] sm:$0xff] }
 0xcb9   :  { %4667 = vmatmul.f32.vlgmr.msrb.gmra.mxu2 %v4602_v63  ;;  %v12132_v60 = vld [vmem:[%s14067_s29 + $0x78] sm:$0xff]  ;;  %v12123_v63 = vld [vmem:[%s14067_s29 + $0x30] sm:$0xff] }
 0xcba   :  { %v4590_v4 = vrot.slane %v4589_v2, 1  ;;  %v4607_v5 = vadd.f32 %v4606_v3, %v4605_v62  ;;  %v12149_v62 = vld [vmem:[%s14067_s29 + $0xf0] sm:$0xff]  ;;  %v12140_v3 = vld [vmem:[%s14067_s29 + $0xa8] sm:$0xff] }
 0xcbc   :  { %v4591_v6 = vadd.f32 %v4590_v4, %v4589_v2  ;;  %v4608_v7 = vrot.slane %v4607_v5, 1  ;;  %v12131_v2 = vld [vmem:[%s14067_s29 + $0x70] sm:$0xff]  ;;  %v12148_v4 = vld [vmem:[%s14067_s29 + $0xe8] sm:$0xff] }
 0xcbe   :  { %4646 = vmatmul.f32.vlgmr.msrb.gmra.mxu1 %v4591_v6  ;;  %v4609_v8 = vadd.f32 %v4608_v7, %v4607_v5  ;;  %v12122_v5 = vld [vmem:[%s14067_s29 + $0x28] sm:$0xff]  ;;  %v12139_v7 = vld [vmem:[%s14067_s29 + $0xa0] sm:$0xff] }
 0xcbf   :  { %4783 = vmatpush.msrb.mxu1 %v4577_v10  ;;  %v12130_v6 = vld [vmem:[%s14067_s29 + $0x68] sm:$0xff]  ;;  %v12146_v10 = vld [vmem:[%s14067_s29 + $0xd8] sm:$0xff] }
 0xcc0   :  { %4687 = vmatmul.f32.vlgmr.msrb.gmra.mxu3 %v4609_v8  ;;  %v12147_v8 = vld [vmem:[%s14067_s29 + $0xe0] sm:$0xff] }
 0xcc1   :  { %4784 = vmatpush.msrb.mxu1 %v4575_v14  ;;  %v12134_v14 = vld [vmem:[%s14068_s3 + $0x18] sm:$0xff] }
 0xcc3   :  { %4785 = vmatpush.msrb.mxu1 %v4573_v16  ;;  %v12145_v16 = vld [vmem:[%s14067_s29 + $0xd0] sm:$0xff] }
 0xcc5   :  { %4786 = vmatpush.msrb.mxu1 %v4571_v0  ;;  %v12144_v0 = vld [vmem:[%s14067_s29 + $0xc8] sm:$0xff] }
 0xd34   :  { %v4627_v22 = vpop.f32.mrf.mxu0 }
 0xd3b   :  { %v4647_v1 = vpop.f32.mrf.mxu1 }
 0xd3c   :  { %v4648_v23 = vadd.f32 %v4647_v1, %v4627_v22  ;;  %v4668_v27 = vpop.f32.mrf.mxu2  ;;  %v12135_v22 = vld [vmem:[%s14067_s29 + $0x80] sm:$0xff] }
 0xd3d   :  { %v12143_v1 = vld [vmem:[%s14067_s29 + $0xc0] sm:$0xff] }
 0xd3e   :  { %v4650_v26 = vmul.f32 0.0078125, %v4648_v23  ;;  %v12121_v23 = vld [vmem:[%s14067_s29 + $0x20] sm:$0xff] }
 0xd40   :  { %10245 = vmatmul.msk.f32.vlgmr.msra.gmra.mxu2 %vm197_vm0, %v4650_v26  ;;  %10246 = vmatmul.msk.f32.vlgmr.msra.gmra.mxu1 %vm197_vm0, %v4650_v26  ;;  %v4692_v42 = vmul.f32 %v4650_v26, %v4650_v26  ;;  %v12129_v26 = vld [vmem:[%s14067_s29 + $0x60] sm:$0xff] }
 0xd43   :  { %v4688_v29 = vpop.f32.mrf.mxu3 }
 0xd44   :  { %v4689_v25 = vadd.f32 %v4688_v29, %v4668_v27  ;;  %v12120_v27 = vld [vmem:[%s14067_s29 + $0x18] sm:$0xff] }
 0xd45   :  { %v12128_v29 = vld [vmem:[%s14067_s29 + $0x58] sm:$0xff] }
 0xd46   :  { %v4691_v41 = vmul.f32 0.0078125, %v4689_v25  ;;  %v12119_v25 = vld [vmem:[%s14067_s29 + $0x10] sm:$0xff] }
 0xd48   :  { %v4693_v28 = vsub.f32 %v4691_v41, %v4692_v42  ;;  %v12127_v41 = vld [vmem:[%s14067_s29 + $0x50] sm:$0xff]  ;;  %v12118_v42 = vld [vmem:[%s14067_s29 + $0x8] sm:$0xff] }
 0xd4a   :  { %v4694_v18 = vadd.f32 1e-05, %v4693_v28  ;;  %v12126_v28 = vld [vmem:[%s14067_s29 + $0x48] sm:$0xff] }
 0xd4c   :  { %12462 = vrsqrt.f32 %v4694_v18  ;;  %vm4701_vm8 = vweird.f32 %v4694_v18 }
 0xd52   :  { %v12463_v35 = vpop.eup %12462 }
 0xd53   :  { %v4696_v21 = vmul.f32 %v12463_v35, %v4694_v18  ;;  %vm4702_vm7 = vweird.f32 %v12463_v35  ;;  %v12117_v18 = vld [vmem:[%s14067_s29] sm:$0xff] }
 0xd54   :  { %vm4703_vm9 = vmor %vm4701_vm8, %vm4702_vm7 }
 0xd55   :  { %v4697_v12 = vmul.f32 %v12463_v35, %v4696_v21 }
 0xd57   :  { %v4698_v38 = vmul.f32 0.5, %v4697_v12 }
 0xd59   :  { %v4699_v13 = vsub.f32 1.5, %v4698_v38 }
 0xd5b   :  { %v4700_v17 = vmul.f32 %v12463_v35, %v4699_v13 }
 0xd5d   :  { %v4704_v32 = vsel %vm4703_vm9, %v12463_v35, %v4700_v17  ;;  %v12125_v35 = vld [vmem:[%s14067_s29 + $0x40] sm:$0xff] }
 0xd5e   :  { %10247 = vmatmul.msk.f32.vlgmr.msra.gmra.mxu0 %vm197_vm0, %v4704_v32  ;;  %10248 = vmatmul.msk.f32.vlgmr.msrb.gmra.mxu1 %vm197_vm0, %v4704_v32 }
 0xdbd   :  { %v4745_v37 = vpop.f32.mrf.mxu1 }
 0xdbe   :  { %v4792_v34 = vperm.slane %v4745_v37, 0 }
 0xdc0   :  { %v4794_v47 = vsub.f32 %v13591_v43, %v4792_v34  ;;  %v4796_v31 = vsub.f32 %v13593_v48, %v4792_v34 }
 0xdc3   :  { %v4725_v44 = vpop.f32.mrf.mxu2 }
 0xdc4   :  { %v4791_v46 = vperm.slane %v4725_v44, 0 }
 0xdc6   :  { %v4793_v24 = vsub.f32 %v13574_v33, %v4791_v46  ;;  %v4795_v30 = vsub.f32 %v13580_v40, %v4791_v46  ;;  %v12142_v40 = vld [vmem:[%s14067_s29 + $0xb8] sm:$0xff] }
 0xddb   :  { %v4768_v36 = vpop.f32.mrf.mxu0  ;;  %v4788_v39 = vpop.f32.mrf.mxu1 }
 0xddc   :  { %v4797_v49 = vperm.slane %v4768_v36, 0  ;;  %v4798_v45 = vperm.slane %v4788_v39, 0 }
 0xdde   :  { %v4799_v19 = vmul.f32 %v4797_v49, %v4793_v24  ;;  %v4801_v50 = vmul.f32 %v4797_v49, %v4795_v30  ;;  %v4800_v51 = vmul.f32 %v4798_v45, %v4794_v47  ;;  %v4802_v52 = vmul.f32 %v4798_v45, %v4796_v31 }
 0xde0   :  { %v4803_v43 = vmax.f32 %v4799_v19, 0.0  ;;  %v4805_v48 = vmax.f32 %v4801_v50, 0.0  ;;  %v4804_v53 = vmax.f32 %v4800_v51, 0.0  ;;  %v4806_v54 = vmax.f32 %v4802_v52, 0.0 }
 0xde2   :  { %v13617_v55 = vpack.c.bf16 %v4805_v48, %v4803_v43  ;;  %v13619_v33 = vpack.c.bf16 %v4806_v54, %v4804_v53  ;;  %v12151_v53 = vld [vmem:[%s14068_s3 + $0x20] sm:$0xff]  ;;  %v12152_v54 = vld [vmem:[%s14068_s3 + $0x28] sm:$0xff] }
 0xde4   :  { %4836 = vmatpush.bf16.msrb.mxu2 %v13617_v55  ;;  %4855 = vmatpush.bf16.msra.mxu3 %v13619_v33 }
 0xde5   :  { %4931 = vmatpush.bf16.msrb.mxu0 %v13617_v55  ;;  %4950 = vmatpush.bf16.msra.mxu1 %v13619_v33 }
 0xde7   :  { %10257 = vmatmul.msk.bf16.vlgmr.msrb.gmra.mxu2 %vm647_vm6, %v12115_v57  ;;  %10259 = vmatmul.msk.bf16.vlgmr.msra.gmra.mxu3 %vm647_vm6, %v12115_v57  ;;  %v12159_v57 = vld [vmem:[%s14067_s29 + $0x130] sm:$0xff] }
 0xde8   :  { %5095 = vmatpush.bf16.msra.mxu2 %v12142_v40  ;;  %5114 = vmatpush.bf16.msrb.mxu3 %v12150_v56  ;;  %v12160_v40 = vld [vmem:[%s14067_s29 + $0x138] sm:$0xff] }
 0xde9   :  { %10273 = vmatmul.msk.bf16.vlgmr.msrb.gmra.mxu0 %vm647_vm6, %v12133_v58  ;;  %10275 = vmatmul.msk.bf16.vlgmr.msra.gmra.mxu1 %vm647_vm6, %v12133_v58  ;;  %v12168_v56 = vld [vmem:[%s14067_s29 + $0x178] sm:$0xff]  ;;  %v12167_v58 = vld [vmem:[%s14067_s29 + $0x170] sm:$0xff] }
 0xdea   :  { %5229 = vmatpush.bf16.msra.mxu0 %v12124_v59  ;;  %5248 = vmatpush.bf16.msrb.mxu1 %v12132_v60  ;;  %v12158_v59 = vld [vmem:[%s14067_s29 + $0x128] sm:$0xff] }
 0xdeb   :  { %v12166_v60 = vld [vmem:[%s14067_s29 + $0x168] sm:$0xff] }
 0xdec   :  { %5096 = vmatpush.bf16.msra.mxu2 %v12141_v61  ;;  %5115 = vmatpush.bf16.msrb.mxu3 %v12149_v62  ;;  %v12157_v61 = vld [vmem:[%s14067_s29 + $0x120] sm:$0xff] }
 0xded   :  { %v12165_v62 = vld [vmem:[%s14067_s29 + $0x160] sm:$0xff] }
 0xdee   :  { %5230 = vmatpush.bf16.msra.mxu0 %v12123_v63  ;;  %5249 = vmatpush.bf16.msrb.mxu1 %v12131_v2  ;;  %v12156_v63 = vld [vmem:[%s14067_s29 + $0x118] sm:$0xff] }
 0xdef   :  { %v12164_v2 = vld [vmem:[%s14067_s29 + $0x158] sm:$0xff] }
 0xdf0   :  { %5097 = vmatpush.bf16.msra.mxu2 %v12140_v3  ;;  %5116 = vmatpush.bf16.msrb.mxu3 %v12148_v4  ;;  %v12155_v3 = vld [vmem:[%s14067_s29 + $0x110] sm:$0xff] }
 0xdf1   :  { %v12163_v4 = vld [vmem:[%s14067_s29 + $0x150] sm:$0xff] }
 0xdf2   :  { %5231 = vmatpush.bf16.msra.mxu0 %v12122_v5  ;;  %5250 = vmatpush.bf16.msrb.mxu1 %v12130_v6 }
 0xdf4   :  { %5098 = vmatpush.bf16.msra.mxu2 %v12139_v7  ;;  %5117 = vmatpush.bf16.msrb.mxu3 %v12147_v8  ;;  %v12154_v8 = vld [vmem:[%s14067_s29 + $0x108] sm:$0xff] }
 0xdf6   :  { %5232 = vmatpush.bf16.msra.mxu0 %v12121_v23  ;;  %5251 = vmatpush.bf16.msrb.mxu1 %v12129_v26 }
 0xdf7   :  { %10258 = vmatmul.msk.bf16.gmra.mxu2 %vm647_vm6, %v12116_v11  ;;  %10260 = vmatmul.msk.bf16.gmra.mxu3 %vm647_vm6, %v12116_v11  ;;  %v12161_v11 = vld [vmem:[%s14067_s29 + $0x140] sm:$0xff] }
 0xdf8   :  { %5099 = vmatpush.bf16.msra.mxu2 %v12138_v9  ;;  %5118 = vmatpush.bf16.msrb.mxu3 %v12146_v10  ;;  %v12162_v9 = vld [vmem:[%s14067_s29 + $0x148] sm:$0xff]  ;;  %v12153_v10 = vld [vmem:[%s14067_s29 + $0x100] sm:$0xff] }
 0xdf9   :  { %10274 = vmatmul.msk.bf16.gmra.mxu0 %vm647_vm6, %v12134_v14  ;;  %10276 = vmatmul.msk.bf16.gmra.mxu1 %vm647_vm6, %v12134_v14 }
 0xdfa   :  { %5233 = vmatpush.bf16.msra.mxu0 %v12120_v27  ;;  %5252 = vmatpush.bf16.msrb.mxu1 %v12128_v29  ;;  %v12176_v27 = vld [vmem:[%s14067_s29 + $0x1a8] sm:$0xff] }
 0xdfb   :  { %v12184_v29 = vld [vmem:[%s14067_s29 + $0x1e8] sm:$0xff] }
 0xdfc   :  { %5100 = vmatpush.bf16.msra.mxu2 %v12137_v15  ;;  %5119 = vmatpush.bf16.msrb.mxu3 %v12145_v16  ;;  %v12178_v16 = vld [vmem:[%s14067_s29 + $0x1b8] sm:$0xff] }
 0xdfe   :  { %5234 = vmatpush.bf16.msra.mxu0 %v12119_v25  ;;  %5253 = vmatpush.bf16.msrb.mxu1 %v12127_v41  ;;  %v12175_v25 = vld [vmem:[%s14067_s29 + $0x1a0] sm:$0xff] }
 0xdff   :  { %v12183_v41 = vld [vmem:[%s14067_s29 + $0x1e0] sm:$0xff] }
 0xe00   :  { %5101 = vmatpush.bf16.msra.mxu2 %v12136_v20  ;;  %5120 = vmatpush.bf16.msrb.mxu3 %v12144_v0  ;;  %v12186_v20 = vld [vmem:[%s14067_s29 + $0x1f8] sm:$0xff]  ;;  %v12177_v0 = vld [vmem:[%s14067_s29 + $0x1b0] sm:$0xff] }
 0xe02   :  { %5235 = vmatpush.bf16.msra.mxu0 %v12118_v42  ;;  %5254 = vmatpush.bf16.msrb.mxu1 %v12126_v28 }
 0xe04   :  { %5102 = vmatpush.bf16.msra.mxu2 %v12135_v22  ;;  %5121 = vmatpush.bf16.msrb.mxu3 %v12143_v1  ;;  %v12185_v22 = vld [vmem:[%s14067_s29 + $0x1f0] sm:$0xff] }
 0xe06   :  { %5236 = vmatpush.bf16.msra.mxu0 %v12117_v18  ;;  %5255 = vmatpush.bf16.msrb.mxu1 %v12125_v35  ;;  %v12174_v18 = vld [vmem:[%s14067_s29 + $0x198] sm:$0xff] }
 0xe07   :  { %v12182_v35 = vld [vmem:[%s14067_s29 + $0x1d8] sm:$0xff] }
 0xe08   :  { %5295 = vmatpush.bf16.msrb.mxu2 %v13617_v55  ;;  %5314 = vmatpush.bf16.msra.mxu3 %v13619_v33 }
 0xe0a   :  { %5459 = vmatpush.bf16.msrb.mxu0 %v12160_v40  ;;  %5478 = vmatpush.bf16.msra.mxu1 %v12168_v56 }
 0xe0e   :  { %5460 = vmatpush.bf16.msrb.mxu0 %v12159_v57  ;;  %5479 = vmatpush.bf16.msra.mxu1 %v12167_v58 }
 0xe12   :  { %5461 = vmatpush.bf16.msrb.mxu0 %v12158_v59  ;;  %5480 = vmatpush.bf16.msra.mxu1 %v12166_v60 }
 0xe16   :  { %5462 = vmatpush.bf16.msrb.mxu0 %v12157_v61  ;;  %5481 = vmatpush.bf16.msra.mxu1 %v12165_v62 }
 0xe1a   :  { %5463 = vmatpush.bf16.msrb.mxu0 %v12156_v63  ;;  %5482 = vmatpush.bf16.msra.mxu1 %v12164_v2 }
 0xe1e   :  { %5464 = vmatpush.bf16.msrb.mxu0 %v12155_v3  ;;  %5483 = vmatpush.bf16.msra.mxu1 %v12163_v4 }
 0xe22   :  { %5465 = vmatpush.bf16.msrb.mxu0 %v12154_v8  ;;  %5484 = vmatpush.bf16.msra.mxu1 %v12162_v9 }
 0xe26   :  { %5466 = vmatpush.bf16.msrb.mxu0 %v12153_v10  ;;  %5485 = vmatpush.bf16.msra.mxu1 %v12161_v11 }
 0xe66   :  { %v4933_v21 = vpop.f32.mrf.mxu0  ;;  %v4952_v12 = vpop.f32.mrf.mxu1 }
 0xe6a   :  { %v4838_v38 = vpop.f32.mrf.mxu2  ;;  %v4857_v13 = vpop.f32.mrf.mxu3 }
 0xe6e   :  { %v4935_v17 = vpop.f32.mrf.mxu0  ;;  %v4954_v32 = vpop.f32.mrf.mxu1 }
 0xe6f   :  { %v4962_v37 = vpack.c.bf16 %v4935_v17, %v4933_v21  ;;  %v4963_v44 = vpack.c.bf16 %v4954_v32, %v4952_v12  ;;  %v12173_v21 = vld [vmem:[%s14067_s29 + $0x190] sm:$0xff]  ;;  %v12172_v17 = vld [vmem:[%s14067_s29 + $0x188] sm:$0xff] }
 0xe70   :  { %v12181_v12 = vld [vmem:[%s14067_s29 + $0x1d0] sm:$0xff]  ;;  %v12180_v32 = vld [vmem:[%s14067_s29 + $0x1c8] sm:$0xff] }
 0xe71   :  { %5103 = vmatmul.bf16.vlgmr.msra.gmra.mxu2 %v4962_v37  ;;  %5122 = vmatmul.bf16.vlgmr.msrb.gmra.mxu3 %v4963_v44  ;;  %v12171_v37 = vld [vmem:[%s14067_s29 + $0x180] sm:$0xff] }
 0xe72   :  { %5529 = vmatpush.bf16.msra.mxu2 %v13617_v55  ;;  %5548 = vmatpush.bf16.msrb.mxu3 %v13619_v33  ;;  %v4840_v34 = vpop.f32.mrf.mxu2  ;;  %v4859_v46 = vpop.f32.mrf.mxu3  ;;  %v12169_v55 = vld [vmem:[%s14068_s3 + $0x30] sm:$0xff]  ;;  %v12170_v33 = vld [vmem:[%s14068_s3 + $0x38] sm:$0xff]  ;;  %v12179_v44 = vld [vmem:[%s14067_s29 + $0x1c0] sm:$0xff] }
 0xe73   :  { %v4867_v47 = vpack.c.bf16 %v4840_v34, %v4838_v38  ;;  %v4868_v31 = vpack.c.bf16 %v4859_v46, %v4857_v13 }
 0xe75   :  { %5237 = vmatmul.bf16.vlgmr.msra.gmra.mxu0 %v4867_v47  ;;  %5256 = vmatmul.bf16.vlgmr.msrb.gmra.mxu1 %v4868_v31 }
 0xe76   :  { %v4938_v36 = vpop.f32.mrf.mxu0  ;;  %v4957_v39 = vpop.f32.mrf.mxu1  ;;  %5693 = vmatpush.bf16.msra.mxu0 %v12178_v16  ;;  %5712 = vmatpush.bf16.msrb.mxu1 %v12186_v20  ;;  %v10707_v16 = vld [vmem:[%s14069_s8 + $0x70] sm:$0xf]  ;;  %v12204_v20 = vld [vmem:[%s14069_s8 + $0x74] sm:$0xf0] }
 0xe7a   :  { %v4843_v24 = vpop.f32.mrf.mxu2  ;;  %v4862_v30 = vpop.f32.mrf.mxu3  ;;  %5694 = vmatpush.bf16.msra.mxu0 %v12177_v0  ;;  %5713 = vmatpush.bf16.msrb.mxu1 %v12185_v22  ;;  %v10708_v0 = vor.u32 %v12204_v20, %v10707_v16  ;;  %v12192_v20 = vld [vmem:[%s14069_s8 + $0x24] sm:$0xf] }
 0xe7e   :  { %v4940_v49 = vpop.f32.mrf.mxu0  ;;  %v4959_v45 = vpop.f32.mrf.mxu1  ;;  %5695 = vmatpush.bf16.msra.mxu0 %v12176_v27  ;;  %5714 = vmatpush.bf16.msrb.mxu1 %v12184_v29  ;;  %v12202_v27 = vld [vmem:[%s14069_s8 + $0x64] sm:$0xf0] }
 0xe7f   :  { %v4964_v19 = vpack.c.bf16 %v4940_v49, %v4938_v36  ;;  %v4965_v50 = vpack.c.bf16 %v4959_v45, %v4957_v39 }
 0xe81   :  { %5108 = vmatmul.bf16.gmra.mxu2 %v4964_v19  ;;  %5127 = vmatmul.bf16.gmra.mxu3 %v4965_v50 }
 0xe82   :  { %v4845_v51 = vpop.f32.mrf.mxu2  ;;  %v4864_v52 = vpop.f32.mrf.mxu3  ;;  %5696 = vmatpush.bf16.msra.mxu0 %v12175_v25  ;;  %5715 = vmatpush.bf16.msrb.mxu1 %v12183_v41 }
 0xe83   :  { %v4869_v43 = vpack.c.bf16 %v4845_v51, %v4843_v24  ;;  %v4870_v48 = vpack.c.bf16 %v4864_v52, %v4862_v30 }
 0xe85   :  { %5242 = vmatmul.bf16.gmra.mxu0 %v4869_v43  ;;  %5261 = vmatmul.bf16.gmra.mxu1 %v4870_v48 }
 0xe86   :  { %5697 = vmatpush.bf16.msra.mxu0 %v12174_v18  ;;  %5716 = vmatpush.bf16.msrb.mxu1 %v12182_v35 }
 0xe8a   :  { %5698 = vmatpush.bf16.msra.mxu0 %v12173_v21  ;;  %5717 = vmatpush.bf16.msrb.mxu1 %v12181_v12 }
 0xe8e   :  { %5699 = vmatpush.bf16.msra.mxu0 %v12172_v17  ;;  %5718 = vmatpush.bf16.msrb.mxu1 %v12180_v32  ;;  %v12200_v17 = vld [vmem:[%s14069_s8 + $0x54] sm:$0xf0] }
 0xe91   :  { %10449 = vmatmul.msk.bf16.vlgmr.msrb.gmra.mxu2 %vm647_vm6, %v12151_v53  ;;  %10451 = vmatmul.msk.bf16.vlgmr.msra.gmra.mxu3 %vm647_vm6, %v12151_v53 }
 0xe92   :  { %5700 = vmatpush.bf16.msra.mxu0 %v12171_v37  ;;  %5719 = vmatpush.bf16.msrb.mxu1 %v12179_v44 }
 0xea1   :  { %10450 = vmatmul.msk.bf16.gmra.mxu2 %vm647_vm6, %v12152_v54  ;;  %10452 = vmatmul.msk.bf16.gmra.mxu3 %vm647_vm6, %v12152_v54 }
 0xeb1   :  { %10561 = vmatmul.msk.bf16.vlgmr.msra.gmra.mxu2 %vm647_vm6, %v12169_v55  ;;  %10563 = vmatmul.msk.bf16.vlgmr.msrb.gmra.mxu3 %vm647_vm6, %v12169_v55 }
 0xec1   :  { %10562 = vmatmul.msk.bf16.gmra.mxu2 %vm647_vm6, %v12170_v33  ;;  %10564 = vmatmul.msk.bf16.gmra.mxu3 %vm647_vm6, %v12170_v33 }
 0xef2   :  { %v5238_v57 = vpop.f32.mrf.mxu0  ;;  %v5257_v58 = vpop.f32.mrf.mxu1 }
 0xef4   :  { %v5104_v5 = vpop.f32.mrf.mxu2  ;;  %v5123_v6 = vpop.f32.mrf.mxu3 }
 0xef5   :  { %v13697_v7 = vadd.f32 %v5123_v6, %v5104_v5 }
 0xef7   :  { %v5239_v22 = vadd.f32 %v5238_v57, %v13697_v7 }
 0xef9   :  { %v5258_v25 = vadd.f32 %v5257_v58, %v5239_v22 }
 0xefa   :  { %v5240_v59 = vpop.f32.mrf.mxu0  ;;  %v5259_v60 = vpop.f32.mrf.mxu1 }
 0xefc   :  { %v13703_v14 = vpop.f32.mrf.mxu2  ;;  %v13705_v15 = vpop.f32.mrf.mxu3 }
 0xefd   :  { %v5126_v41 = vadd.f32 %v13705_v15, %v13703_v14 }
 0xeff   :  { %v5241_v32 = vadd.f32 %v5240_v59, %v5126_v41 }
 0xf01   :  { %v5260_v14 = vadd.f32 %v5259_v60, %v5241_v32 }
 0xf02   :  { %v5243_v61 = vpop.f32.mrf.mxu0  ;;  %v5262_v62 = vpop.f32.mrf.mxu1 }
 0xf04   :  { %v5109_v1 = vpop.f32.mrf.mxu2  ;;  %v5128_v23 = vpop.f32.mrf.mxu3 }
 0xf05   :  { %v13711_v26 = vadd.f32 %v5128_v23, %v5109_v1  ;;  %v10699_v23 = vld [vmem:[%s14069_s8 + $0x60] sm:$0xf] }
 0xf06   :  { %v10700_v29 = vor.u32 %v12202_v27, %v10699_v23  ;;  %v12196_v23 = vld [vmem:[%s14071_s19 + $0x8] sm:$0xff] }
 0xf0a   :  { %v5245_v63 = vpop.f32.mrf.mxu0  ;;  %v13729_v2 = vpop.f32.mrf.mxu1 }
 0xf0c   :  { %v13717_v42 = vpop.f32.mrf.mxu2  ;;  %v13719_v28 = vpop.f32.mrf.mxu3 }
 0xf14   :  { %v5297_v38 = vpop.f32.mrf.mxu2  ;;  %v5316_v13 = vpop.f32.mrf.mxu3 }
 0xf1c   :  { %v5299_v34 = vpop.f32.mrf.mxu2  ;;  %v5318_v46 = vpop.f32.mrf.mxu3 }
 0xf1d   :  { %v5326_v47 = vpack.c.bf16 %v5299_v34, %v5297_v38  ;;  %v5327_v31 = vpack.c.bf16 %v5318_v46, %v5316_v13  ;;  %v12456_v38 = vld [vmem:[%s14070_s14] ss:$0 sm:$0xff]  ;;  %v10691_v13 = vld [vmem:[%s14069_s8 + $0x50] sm:$0xf] }
 0xf1e   :  { %v10692_v7 = vor.u32 %v12200_v17, %v10691_v13  ;;  %v10683_v46 = vld [vmem:[%s14069_s8 + $0x40] sm:$0xf] }
 0xf1f   :  { %5467 = vmatmul.bf16.vlgmr.msrb.gmra.mxu0 %v5326_v47  ;;  %5486 = vmatmul.bf16.vlgmr.msra.gmra.mxu1 %v5327_v31  ;;  %v12198_v47 = vld [vmem:[%s14069_s8 + $0x44] sm:$0xf0]  ;;  %v10733_v13 = vld [vmem:[%s14069_s8 + $0x20] sm:$0xf] }
 0xf20   :  { %5868 = vmatpush.bf16.msrb.mxu0 %v10708_v0  ;;  %v10684_v31 = vor.u32 %v12198_v47, %v10683_v46  ;;  %v10735_v0 = vld [vmem:[%s14069_s8 + $0x28] sm:$0xf0]  ;;  %v12191_v47 = vld [vmem:[%s14069_s8 + $0x14] sm:$0xf0] }
 0xf21   :  { %v10738_v27 = vor.u32 %v12192_v20, %v10735_v0  ;;  %v12206_v20 = vld [vmem:[%s14069_s8 + $0x84] sm:$0xf] }
 0xf24   :  { %v5302_v36 = vpop.f32.mrf.mxu2  ;;  %v5321_v39 = vpop.f32.mrf.mxu3  ;;  %5869 = vmatpush.bf16.msrb.mxu0 %v10700_v29  ;;  %v12190_v29 = vld [vmem:[%s14069_s8 + $0x14] sm:$0xf] }
 0xf28   :  { %5870 = vmatpush.bf16.msrb.mxu0 %v10692_v7  ;;  %v12193_v7 = vld [vmem:[%s14069_s8 + $0x24] sm:$0xf0] }
 0xf29   :  { %v10734_v32 = vor.u32 %v12193_v7, %v10733_v13  ;;  %v10833_v13 = vld [vmem:[%s14069_s8 + $0xe8] sm:$0xf0] }
 0xf2c   :  { %v5304_v24 = vpop.f32.mrf.mxu2  ;;  %v5323_v30 = vpop.f32.mrf.mxu3  ;;  %5871 = vmatpush.bf16.msrb.mxu0 %v10684_v31 }
 0xf2d   :  { %v5328_v49 = vpack.c.bf16 %v5304_v24, %v5302_v36  ;;  %v5329_v45 = vpack.c.bf16 %v5323_v30, %v5321_v39  ;;  %v5244_v30 = vadd.f32 %v5243_v61, %v13711_v26 }
 0xf2f   :  { %5472 = vmatmul.bf16.gmra.mxu0 %v5328_v49  ;;  %5491 = vmatmul.bf16.gmra.mxu1 %v5329_v45 }
 0xf34   :  { %v5531_v19 = vpop.f32.mrf.mxu2  ;;  %v5550_v50 = vpop.f32.mrf.mxu3 }
 0xf3c   :  { %v5533_v51 = vpop.f32.mrf.mxu2  ;;  %v5552_v52 = vpop.f32.mrf.mxu3 }
 0xf3d   :  { %v5560_v43 = vpack.c.bf16 %v5533_v51, %v5531_v19  ;;  %v5561_v48 = vpack.c.bf16 %v5552_v52, %v5550_v50  ;;  %v5263_v51 = vadd.f32 %v5262_v62, %v5244_v30  ;;  %v5131_v52 = vadd.f32 %v13719_v28, %v13717_v42 }
 0xf3f   :  { %5701 = vmatmul.bf16.vlgmr.msra.gmra.mxu0 %v5560_v43  ;;  %5720 = vmatmul.bf16.vlgmr.msrb.gmra.mxu1 %v5561_v48 }
 0xf44   :  { %v5536_v53 = vpop.f32.mrf.mxu2  ;;  %v5555_v54 = vpop.f32.mrf.mxu3 }
 0xf4c   :  { %v5538_v55 = vpop.f32.mrf.mxu2  ;;  %v5557_v33 = vpop.f32.mrf.mxu3 }
 0xf4d   :  { %v5562_v40 = vpack.c.bf16 %v5538_v55, %v5536_v53  ;;  %v5563_v56 = vpack.c.bf16 %v5557_v33, %v5555_v54  ;;  %v5246_v55 = vadd.f32 %v5245_v63, %v5131_v52  ;;  %v12203_v63 = vld [vmem:[%s14069_s8 + $0x74] sm:$0xf] }
 0xf4f   :  { %5706 = vmatmul.bf16.gmra.mxu0 %v5562_v40  ;;  %5725 = vmatmul.bf16.gmra.mxu1 %v5563_v56  ;;  %v5265_v57 = vadd.f32 %v13729_v2, %v5246_v55  ;;  %v12212_v55 = vld [vmem:[%s14069_s8 + $0xb4] sm:$0xf] }
 0xf9c   :  { %v5468_v3 = vpop.f32.mrf.mxu0  ;;  %v5487_v4 = vpop.f32.mrf.mxu1 }
 0xf9d   :  { %v5488_v1 = vadd.f32 %v5487_v4, %v5468_v3  ;;  %v10709_v3 = vld [vmem:[%s14069_s8 + $0x78] sm:$0xf0] }
 0xf9e   :  { %v10712_v2 = vor.u32 %v12203_v63, %v10709_v3  ;;  %v12209_v3 = vld [vmem:[%s14069_s8 + $0x94] sm:$0xf0] }
 0xf9f   :  { %v5497_v21 = vadd.f32 %v5488_v1, %v5258_v25  ;;  %v12187_v1 = vld [vmem:[%s14071_s19] sm:$0xff]  ;;  %v10727_v25 = vld [vmem:[%s14069_s8 + $0x18] sm:$0xf0] }
 0xfa0   :  { %5882 = vmatpush.bf16.msra.mxu1 %v10712_v2  ;;  %v10730_v41 = vor.u32 %v12190_v29, %v10727_v25  ;;  %v12208_v2 = vld [vmem:[%s14069_s8 + $0x94] sm:$0xf] }
 0xfa1   :  { %v12221_v25 = vld [vmem:[%s14069_s8 + $0xf4] sm:$0xf] }
 0xfa4   :  { %v5470_v5 = vpop.f32.mrf.mxu0  ;;  %v5489_v6 = vpop.f32.mrf.mxu1 }
 0xfa5   :  { %v5490_v44 = vadd.f32 %v5489_v6, %v5470_v5  ;;  %v12194_v6 = vld [vmem:[%s14069_s8 + $0x34] sm:$0xf] }
 0xfa7   :  { %v5498_v39 = vadd.f32 %v5490_v44, %v5260_v14  ;;  %v10693_v44 = vld [vmem:[%s14069_s8 + $0x58] sm:$0xf0]  ;;  %v12197_v14 = vld [vmem:[%s14069_s8 + $0x44] sm:$0xf] }
 0xfac   :  { %v5473_v8 = vpop.f32.mrf.mxu0  ;;  %v5492_v9 = vpop.f32.mrf.mxu1 }
 0xfad   :  { %v5493_v19 = vadd.f32 %v5492_v9, %v5473_v8  ;;  %v10743_v8 = vld [vmem:[%s14069_s8 + $0x38] sm:$0xf0]  ;;  %v10741_v9 = vld [vmem:[%s14069_s8 + $0x30] sm:$0xf] }
 0xfaf   :  { %v5499_v53 = vadd.f32 %v5493_v19, %v5263_v51 }
 0xfb4   :  { %v5475_v10 = vpop.f32.mrf.mxu0  ;;  %v5494_v11 = vpop.f32.mrf.mxu1 }
 0xfb5   :  { %v5495_v40 = vadd.f32 %v5494_v11, %v5475_v10  ;;  %v12195_v10 = vld [vmem:[%s14069_s8 + $0x34] sm:$0xf0]  ;;  %v10746_v11 = vor.u32 %v12194_v6, %v10743_v8  ;;  %v10831_v8 = vld [vmem:[%s14069_s8 + $0xe0] sm:$0xf] }
 0xfb6   :  { %v10742_v22 = vor.u32 %v12195_v10, %v10741_v9  ;;  %v12220_v9 = vld [vmem:[%s14069_s8 + $0xe4] sm:$0xf0] }
 0xfb7   :  { %v5500_v58 = vadd.f32 %v5495_v40, %v5265_v57  ;;  %v12211_v57 = vld [vmem:[%s14069_s8 + $0xa4] sm:$0xf0]  ;;  %v10832_v10 = vor.u32 %v12220_v9, %v10831_v8  ;;  %v12269_v8 = vld [vmem:[#allocation5 + $0x174] sm:$0xf]  ;;  %v10912_v9 = vld [vmem:[#allocation5 + $0x178] sm:$0xf0] }
 0xfbc   :  { %v5702_v18 = vpop.f32.mrf.mxu0  ;;  %v5721_v35 = vpop.f32.mrf.mxu1 }
 0xfbd   :  { %v5722_v12 = vadd.f32 %v5721_v35, %v5702_v18  ;;  %v12188_v18 = vld [vmem:[%s14069_s8 + $0x4] sm:$0xf]  ;;  %v10719_v35 = vld [vmem:[%s14069_s8 + $0x8] sm:$0xf0] }
 0xfbf   :  { %v5731_v37 = vadd.f32 %v5722_v12, %v5497_v21  ;;  %v10722_v21 = vor.u32 %v12188_v18, %v10719_v35  ;;  %v12201_v12 = vld [vmem:[%s14069_s8 + $0x64] sm:$0xf]  ;;  %v10815_v35 = vld [vmem:[%s14069_s8 + $0xc0] sm:$0xf] }
 0xfc1   :  { %v5739_v34 = vadd.f32 %v12456_v38, %v5731_v37  ;;  %v12199_v37 = vld [vmem:[%s14069_s8 + $0x54] sm:$0xf] }
 0xfc2   :  { %v10696_v46 = vor.u32 %v12199_v37, %v10693_v44  ;;  %v10825_v37 = vld [vmem:[%s14069_s8 + $0xd8] sm:$0xf0]  ;;  %v12215_v44 = vld [vmem:[%s14069_s8 + $0xc4] sm:$0xf] }
 0xfc3   :  { %12464 = vtanh.f32 %v5739_v34  ;;  %v10725_v34 = vld [vmem:[%s14069_s8 + $0x10] sm:$0xf] }
 0xfc4   :  { %v5704_v15 = vpop.f32.mrf.mxu0  ;;  %v5723_v36 = vpop.f32.mrf.mxu1  ;;  %v10726_v31 = vor.u32 %v12191_v47, %v10725_v34 }
 0xfc5   :  { %v5724_v24 = vadd.f32 %v5723_v36, %v5704_v15  ;;  %v10685_v15 = vld [vmem:[%s14069_s8 + $0x48] sm:$0xf0]  ;;  %v10717_v36 = vld [vmem:[%s14069_s8] sm:$0xf] }
 0xfc7   :  { %v5732_v49 = vadd.f32 %v5724_v24, %v5498_v39  ;;  %v10688_v39 = vor.u32 %v12197_v14, %v10685_v15  ;;  %v12189_v24 = vld [vmem:[%s14069_s8 + $0x4] sm:$0xf0] }
 0xfc8   :  { %v10718_v30 = vor.u32 %v12189_v24, %v10717_v36 }
 0xfc9   :  { %v12465_v45 = vpop.eup %12464  ;;  %v5740_v50 = vadd.f32 %v12456_v38, %v5732_v49 }
 0xfca   :  { %5747 = vst.msk [vmem:[%s12786_s6] sm:$0xff] %vm299_vm1, %v12465_v45 }
 0xfcb   :  { %12466 = vtanh.f32 %v5740_v50 }
 0xfcc   :  { %v5707_v43 = vpop.f32.mrf.mxu0  ;;  %v5726_v48 = vpop.f32.mrf.mxu1 }
 0xfcd   :  { %v5727_v54 = vadd.f32 %v5726_v48, %v5707_v43  ;;  %v12205_v43 = vld [vmem:[%s14071_s19 + $0x10] sm:$0xff]  ;;  %v12214_v48 = vld [vmem:[%s14071_s19 + $0x18] sm:$0xff] }
 0xfcf   :  { %v5733_v26 = vadd.f32 %v5727_v54, %v5499_v53  ;;  %v10790_v53 = vld [vmem:[%s14069_s8 + $0xb0] sm:$0xf]  ;;  %v12213_v54 = vld [vmem:[%s14069_s8 + $0xb4] sm:$0xf0] }
 0xfd1   :  { %v12467_v33 = vpop.eup %12466  ;;  %v5741_v56 = vadd.f32 %v12456_v38, %v5733_v26  ;;  %v10791_v26 = vor.u32 %v12213_v54, %v10790_v53  ;;  %v6183_v54 = vld [vmem:[%s14072_s30] sm:$0x3] }
 0xfd2   :  { %5748 = vst.msk [vmem:[%s12786_s6 + $0x8] sm:$0xff] %vm299_vm1, %v12467_v33  ;;  %v5751_v16 = vpack.c.bf16 %v12467_v33, %v12465_v45  ;;  %v10792_v33 = vld [vmem:[%s14069_s8 + $0xb8] sm:$0xf0] }
 0xfd3   :  { %12468 = vtanh.f32 %v5741_v56  ;;  %v10795_v40 = vor.u32 %v12212_v55, %v10792_v33  ;;  %v10782_v56 = vld [vmem:[%s14069_s8 + $0xa0] sm:$0xf] }
 0xfd4   :  { %v5709_v42 = vpop.f32.mrf.mxu0  ;;  %v5728_v28 = vpop.f32.mrf.mxu1 }
 0xfd5   :  { %v5729_v59 = vadd.f32 %v5728_v28, %v5709_v42  ;;  %v12210_v42 = vld [vmem:[%s14069_s8 + $0xa4] sm:$0xf]  ;;  %v10783_v28 = vor.u32 %v12211_v57, %v10782_v56  ;;  %v6185_v56 = vperm.slane %v6183_v54, 0 }
 0xfd7   :  { %v5734_v60 = vadd.f32 %v5729_v59, %v5500_v58  ;;  %v10784_v58 = vld [vmem:[%s14069_s8 + $0xa8] sm:$0xf0] }
 0xfd8   :  { %v10787_v59 = vor.u32 %v12210_v42, %v10784_v58 }
 0xfd9   :  { %v12469_v61 = vpop.eup %12468  ;;  %v5742_v62 = vadd.f32 %v12456_v38, %v5734_v60  ;;  %v10701_v38 = vld [vmem:[%s14069_s8 + $0x68] sm:$0xf0]  ;;  %v10839_v60 = vld [vmem:[%s14069_s8 + $0xf0] sm:$0xf] }
 0xfda   :  { %5749 = vst.msk [vmem:[%s12786_s6 + $0x10] sm:$0xff] %vm299_vm1, %v12469_v61  ;;  %v10704_v17 = vor.u32 %v12201_v12, %v10701_v38  ;;  %v12219_v38 = vld [vmem:[%s14069_s8 + $0xe4] sm:$0xf] }
 0xfdb   :  { %12470 = vtanh.f32 %v5742_v62  ;;  %v10774_v62 = vld [vmem:[%s14069_s8 + $0x90] sm:$0xf] }
 0xfdc   :  { %5883 = vmatpush.bf16.msra.mxu1 %v10704_v17  ;;  %v10836_v17 = vor.u32 %v12219_v38, %v10833_v13 }
 0xfe0   :  { %5884 = vmatpush.bf16.msra.mxu1 %v10696_v46  ;;  %v10817_v46 = vld [vmem:[%s14069_s8 + $0xc8] sm:$0xf0] }
 0xfe1   :  { %v12471_v4 = vpop.eup %12470  ;;  %v10820_v47 = vor.u32 %v12215_v44, %v10817_v46  ;;  %v12265_v44 = vld [vmem:[#allocation5 + $0x154] sm:$0xf] }
 0xfe2   :  { %5750 = vst.msk [vmem:[%s12786_s6 + $0x18] sm:$0xff] %vm299_vm1, %v12471_v4  ;;  %v5752_v5 = vpack.c.bf16 %v12471_v4, %v12469_v61  ;;  %v12222_v61 = vld [vmem:[%s14069_s8 + $0xf4] sm:$0xf0]  ;;  %v10776_v4 = vld [vmem:[%s14069_s8 + $0x98] sm:$0xf0]  ;;  %s14073_s6 = sld [smem:[#allocation26_spill]] }
 0xfe3   :  { %v10840_v63 = vor.u32 %v12222_v61, %v10839_v60  ;;  %v10779_v6 = vor.u32 %v12208_v2, %v10776_v4  ;;  %v10910_v2 = vld [vmem:[#allocation5 + $0x170] sm:$0xf]  ;;  %v12270_v4 = vld [vmem:[#allocation5 + $0x174] sm:$0xf0] }
 0xfe4   :  { %5769 = vmatpush.bf16.msrb.mxu2 %v5752_v5  ;;  %5803 = vmatpush.bf16.msra.mxu3 %v5752_v5 }
 0xfe5   :  { %5980 = vmatpush.bf16.msra.mxu0 %v5752_v5  ;;  %5885 = vmatpush.bf16.msra.mxu1 %v10688_v39 }
 0xfe8   :  { %5770 = vmatpush.bf16.msrb.mxu2 %v5751_v16  ;;  %5804 = vmatpush.bf16.msra.mxu3 %v5751_v16  ;;  %v10849_v38 = vld [vmem:[%s14073_s6 + $0x4] sm:$0xf]  ;;  %v6207_v13 = vld [vmem:[%s14073_s6] sm:$0xf] }
 0xfe9   :  { %5981 = vmatpush.bf16.msra.mxu0 %v5751_v16  ;;  %6045 = vmatpush.bf16.msrb.mxu1 %v10791_v26 }
 0xfeb   :  { %10665 = vmatmul.msk.bf16.vlgmr.msrb.gmra.mxu2 %vm197_vm0, %v12187_v1  ;;  %10672 = vmatmul.msk.bf16.vlgmr.msra.gmra.mxu3 %vm197_vm0, %v12196_v23  ;;  %v10823_v23 = vld [vmem:[%s14069_s8 + $0xd0] sm:$0xf] }
 0xfec   :  { %5953 = vmatpush.bf16.msrb.mxu3 %v10746_v11  ;;  %5939 = vmatpush.bf16.msra.mxu2 %v10742_v22  ;;  %v10766_v11 = vld [vmem:[%s14069_s8 + $0x80] sm:$0xf]  ;;  %v10768_v22 = vld [vmem:[%s14069_s8 + $0x88] sm:$0xf0] }
 0xfed   :  { %6046 = vmatpush.bf16.msrb.mxu1 %v10783_v28  ;;  %v10771_v1 = vor.u32 %v12206_v20, %v10768_v22  ;;  %v10911_v22 = vor.u32 %v12270_v4, %v10910_v2 }
 0xff0   :  { %5954 = vmatpush.bf16.msrb.mxu3 %v10738_v27  ;;  %5940 = vmatpush.bf16.msra.mxu2 %v10734_v32  ;;  %v12218_v27 = vld [vmem:[%s14069_s8 + $0xd4] sm:$0xf0]  ;;  %v12217_v32 = vld [vmem:[%s14069_s8 + $0xd4] sm:$0xf] }
 0xff1   :  { %v10824_v29 = vor.u32 %v12218_v27, %v10823_v23  ;;  %v10828_v34 = vor.u32 %v12217_v32, %v10825_v37  ;;  %v10902_v23 = vld [vmem:[#allocation5 + $0x160] sm:$0xf]  ;;  %v10894_v32 = vld [vmem:[#allocation5 + $0x150] sm:$0xf]  ;;  %v12266_v37 = vld [vmem:[#allocation5 + $0x154] sm:$0xf0] }
 0xff4   :  { %5955 = vmatpush.bf16.msrb.mxu3 %v10730_v41  ;;  %5941 = vmatpush.bf16.msra.mxu2 %v10726_v31  ;;  %v10841_v41 = vld [vmem:[%s14069_s8 + $0xf8] sm:$0xf0] }
 0xff5   :  { %v10844_v18 = vor.u32 %v12221_v25, %v10841_v41  ;;  %v12268_v41 = vld [vmem:[#allocation5 + $0x164] sm:$0xf0] }
 0xff8   :  { %5956 = vmatpush.bf16.msrb.mxu3 %v10722_v21  ;;  %5942 = vmatpush.bf16.msra.mxu2 %v10718_v30  ;;  %v12216_v21 = vld [vmem:[%s14069_s8 + $0xc4] sm:$0xf0] }
 0xff9   :  { %v10816_v12 = vor.u32 %v12216_v21, %v10815_v35  ;;  %v10904_v35 = vld [vmem:[#allocation5 + $0x168] sm:$0xf0] }
 0xffc   :  { %6090 = vmatpush.bf16.msra.mxu3 %v5752_v5  ;;  %6059 = vmatpush.bf16.msrb.mxu2 %v10795_v40  ;;  %v10775_v5 = vor.u32 %v12209_v3, %v10774_v62 }
 0xffe   :  { %6047 = vmatpush.bf16.msrb.mxu1 %v10775_v5 }
0x1000   :  { %6091 = vmatpush.bf16.msra.mxu3 %v5751_v16  ;;  %6060 = vmatpush.bf16.msrb.mxu2 %v10787_v59  ;;  %v12207_v16 = vld [vmem:[%s14069_s8 + $0x84] sm:$0xf0] }
0x1001   :  { %v10767_v0 = vor.u32 %v12207_v16, %v10766_v11 }
0x1003   :  { %6048 = vmatpush.bf16.msrb.mxu1 %v10767_v0 }
0x1004   :  { %6061 = vmatpush.bf16.msrb.mxu2 %v10779_v6  ;;  %v6186_v6 = vperm.slane %v6183_v54, 1  ;;  %v10966_v54 = vld [vmem:[#allocation5 + $0x1e0] sm:$0xf] }
0x1008   :  { %6062 = vmatpush.bf16.msrb.mxu2 %v10771_v1  ;;  %v10915_v1 = vor.u32 %v12269_v8, %v10912_v9 }
0x106e   :  { %v5772_v49 = vpop.f32.mrf.mxu2  ;;  %v5806_v45 = vpop.f32.mrf.mxu3 }
0x1076   :  { %v5774_v19 = vpop.f32.mrf.mxu2  ;;  %v5808_v50 = vpop.f32.mrf.mxu3 }
0x1077   :  { %v5777_v51 = vpack.c.bf16 %v5774_v19, %v5772_v49  ;;  %v5811_v52 = vpack.c.bf16 %v5808_v50, %v5806_v45 }
0x1079   :  { %10713 = vmatmul.msk.bf16.vlgmr.msrb.gmra.mxu0 %vm299_vm1, %v5811_v52  ;;  %10714 = vmatmul.msk.bf16.vlgmr.msra.gmra.mxu1 %vm299_vm1, %v5811_v52 }
0x107a   :  { %10747 = vmatmul.msk.bf16.vlgmr.msra.gmra.mxu2 %vm299_vm1, %v5777_v51  ;;  %10748 = vmatmul.msk.bf16.vlgmr.msrb.gmra.mxu3 %vm299_vm1, %v5777_v51 }
0x107b   :  { %6155 = vmatpush.bf16.msrb.mxu0 %v10840_v63  ;;  %6169 = vmatpush.bf16.msra.mxu1 %v10844_v18  ;;  %v12267_v18 = vld [vmem:[#allocation5 + $0x164] sm:$0xf] }
0x107f   :  { %6156 = vmatpush.bf16.msrb.mxu0 %v10832_v10  ;;  %6170 = vmatpush.bf16.msra.mxu1 %v10836_v17  ;;  %v10903_v17 = vor.u32 %v12268_v41, %v10902_v23 }
0x1083   :  { %6157 = vmatpush.bf16.msrb.mxu0 %v10824_v29  ;;  %6171 = vmatpush.bf16.msra.mxu1 %v10828_v34 }
0x1087   :  { %6158 = vmatpush.bf16.msrb.mxu0 %v10816_v12  ;;  %6172 = vmatpush.bf16.msra.mxu1 %v10820_v47  ;;  %v10896_v47 = vld [vmem:[#allocation5 + $0x158] sm:$0xf0] }
0x1089   :  { %10755 = vmatmul.msk.bf16.vlgmr.msra.gmra.mxu0 %vm197_vm0, %v12205_v43 }
0x108a   :  { %10804 = vmatmul.msk.bf16.vlgmr.msra.gmra.mxu3 %vm197_vm0, %v12214_v48 }
0x10f6   :  { %v5873_v7 = vpop.f32.mrf.mxu0  ;;  %v5887_v19 = vpop.f32.mrf.mxu1 }
0x10fd   :  { %v5958_v31 = vpop.f32.mrf.mxu3  ;;  %v5944_v50 = vpop.f32.mrf.mxu2 }
0x10fe   :  { %v5875_v14 = vpop.f32.mrf.mxu0  ;;  %v5889_v51 = vpop.f32.mrf.mxu1  ;;  %v5945_v48 = vadd.f32 %v5944_v50, %v5873_v7  ;;  %v5959_v58 = vadd.f32 %v5958_v31, %v5887_v19  ;;  %v10907_v7 = vor.u32 %v12267_v18, %v10904_v35  ;;  %v10974_v31 = vld [vmem:[#allocation5 + $0x1f0] sm:$0xf]  ;;  %v10886_v19 = vld [vmem:[#allocation5 + $0x140] sm:$0xf]  ;;  %v12264_v50 = vld [vmem:[#allocation5 + $0x144] sm:$0xf0] }
0x10ff   :  { %v12257_v35 = vld [vmem:[#allocation5 + $0x114] sm:$0xf] }
0x1105   :  { %v5960_v15 = vpop.f32.mrf.mxu3  ;;  %v5946_v43 = vpop.f32.mrf.mxu2 }
0x1106   :  { %v5983_v36 = vpop.f32.mrf.mxu0  ;;  %v5947_v57 = vadd.f32 %v5946_v43, %v5875_v14  ;;  %v5961_v16 = vadd.f32 %v5960_v15, %v5889_v51  ;;  %v12286_v14 = vld [vmem:[#allocation5 + $0x1f4] sm:$0xf0]  ;;  %v12285_v15 = vld [vmem:[#allocation5 + $0x1f4] sm:$0xf] }
0x110d   :  { %v6093_v39 = vpop.f32.mrf.mxu3 }
0x110e   :  { %v5985_v24 = vpop.f32.mrf.mxu0 }
0x110f   :  { %v5988_v30 = vpack.c.bf16 %v5985_v24, %v5983_v36 }
0x1111   :  { %10796 = vmatmul.msk.bf16.vlgmr.msrb.gmra.mxu1 %vm299_vm1, %v5988_v30  ;;  %10797 = vmatmul.msk.bf16.vlgmr.msrb.gmra.mxu2 %vm299_vm1, %v5988_v30 }
0x1115   :  { %v6095_v49 = vpop.f32.mrf.mxu3 }
0x1116   :  { %v6098_v45 = vpack.c.bf16 %v6095_v49, %v6093_v39  ;;  %v10976_v39 = vld [vmem:[#allocation5 + $0x1f8] sm:$0xf0]  ;;  %v10895_v49 = vor.u32 %v12266_v37, %v10894_v32  ;;  %v10854_v37 = vld [vmem:[#allocation5 + $0x100] sm:$0xf] }
0x1117   :  { %v10979_v43 = vor.u32 %v12285_v15, %v10976_v39  ;;  %v12238_v15 = vld [vmem:[#allocation5 + $0x74] sm:$0xf0]  ;;  %v11040_v39 = vld [vmem:[#allocation5 + $0x78] sm:$0xf0] }
0x1118   :  { %10845 = vmatmul.msk.bf16.vlgmr.msrb.gmra.mxu0 %vm299_vm1, %v6098_v45 }
0x1121   :  { %10846 = vmatmul.msk.bf16.vlgmr.msra.gmra.mxu1 %vm299_vm1, %v6098_v45  ;;  %v10899_v45 = vor.u32 %v12265_v44, %v10896_v47  ;;  %v12256_v44 = vld [vmem:[#allocation5 + $0x104] sm:$0xf0] }
0x118e   :  { %v6050_v52 = vpop.f32.mrf.mxu1 }
0x118f   :  { %v6069_v55 = vadd.f32 %v6050_v52, %v5945_v48  ;;  %v10975_v52 = vor.u32 %v12286_v14, %v10974_v31  ;;  %v12263_v48 = vld [vmem:[#allocation5 + $0x144] sm:$0xf]  ;;  %v10856_v31 = vld [vmem:[#allocation5 + $0x108] sm:$0xf0]  ;;  %v11038_v14 = vld [vmem:[#allocation5 + $0x70] sm:$0xf] }
0x1194   :  { %v6064_v33 = vpop.f32.mrf.mxu2 }
0x1195   :  { %v6160_v53 = vpop.f32.mrf.mxu0  ;;  %v6070_v62 = vadd.f32 %v6064_v33, %v5959_v58  ;;  %v10968_v33 = vld [vmem:[#allocation5 + $0x1e8] sm:$0xf0] }
0x1196   :  { %v6052_v26 = vpop.f32.mrf.mxu1  ;;  %v6179_v40 = vadd.f32 %v6160_v53, %v6069_v55  ;;  %v10888_v53 = vld [vmem:[#allocation5 + $0x148] sm:$0xf0]  ;;  %v12284_v55 = vld [vmem:[#allocation5 + $0x1e4] sm:$0xf0] }
0x1197   :  { %v6071_v28 = vadd.f32 %v6052_v26, %v5947_v57  ;;  %v12283_v26 = vld [vmem:[#allocation5 + $0x1e4] sm:$0xf]  ;;  %v10878_v57 = vld [vmem:[#allocation5 + $0x130] sm:$0xf] }
0x1198   :  { %v6189_v42 = vadd.f32 %v6185_v56, %v6179_v40  ;;  %v10887_v40 = vor.u32 %v12264_v50, %v10886_v19  ;;  %v10971_v58 = vor.u32 %v12283_v26, %v10968_v33  ;;  %v10855_v19 = vor.u32 %v12256_v44, %v10854_v37  ;;  %v12235_v26 = vld [vmem:[#allocation5 + $0x64] sm:$0xf]  ;;  %v11032_v33 = vld [vmem:[#allocation5 + $0x68] sm:$0xf0]  ;;  %v12229_v37 = vld [vmem:[#allocation5 + $0x34] sm:$0xf] }
0x1199   :  { %v11008_v44 = vld [vmem:[#allocation5 + $0x38] sm:$0xf0] }
0x119a   :  { %v6197_v63 = vmul.f32 0.2, %v6189_v42  ;;  %vm6193_vm0 = vcmp.gt.f32.partialorder %v6189_v42, 0.0 }
0x119c   :  { %v6066_v10 = vpop.f32.mrf.mxu2  ;;  %v6201_v20 = vsel %vm6193_vm0, %v6189_v42, %v6197_v63  ;;  %v12262_v42 = vld [vmem:[#allocation5 + $0x134] sm:$0xf0]  ;;  %v12281_v63 = vld [vmem:[#allocation5 + $0x1d4] sm:$0xf] }
0x119d   :  { %v6162_v59 = vpop.f32.mrf.mxu0  ;;  %v6072_v27 = vadd.f32 %v6066_v10, %v5961_v16  ;;  %v10879_v2 = vor.u32 %v12262_v42, %v10878_v57  ;;  %v12259_v10 = vld [vmem:[#allocation5 + $0x124] sm:$0xf]  ;;  %v10950_v16 = vld [vmem:[#allocation5 + $0x1c0] sm:$0xf]  ;;  %v12273_v57 = vld [vmem:[#allocation5 + $0x194] sm:$0xf] }
0x119e   :  { %v6181_v60 = vadd.f32 %v6162_v59, %v6071_v28  ;;  %v6174_v61 = vpop.f32.mrf.mxu1  ;;  %v10967_v28 = vor.u32 %v12284_v55, %v10966_v54  ;;  %v12261_v59 = vld [vmem:[#allocation5 + $0x134] sm:$0xf]  ;;  %v10928_v42 = vld [vmem:[#allocation5 + $0x198] sm:$0xf0] }
0x119f   :  { %v6180_v5 = vadd.f32 %v6174_v61, %v6070_v62  ;;  %v10958_v61 = vld [vmem:[#allocation5 + $0x1d0] sm:$0xf]  ;;  %v12282_v62 = vld [vmem:[#allocation5 + $0x1d4] sm:$0xf0] }
0x11a0   :  { %v6191_v3 = vadd.f32 %v6185_v56, %v6181_v60  ;;  %v10891_v56 = vor.u32 %v12263_v48, %v10888_v53  ;;  %v10880_v60 = vld [vmem:[#allocation5 + $0x138] sm:$0xf0]  ;;  %v10959_v8 = vor.u32 %v12282_v62, %v10958_v61  ;;  %v11030_v48 = vld [vmem:[#allocation5 + $0x60] sm:$0xf]  ;;  %v12236_v53 = vld [vmem:[#allocation5 + $0x64] sm:$0xf0] }
0x11a1   :  { %v6190_v29 = vadd.f32 %v6186_v6, %v6180_v5  ;;  %v10883_v4 = vor.u32 %v12261_v59, %v10880_v60  ;;  %v10870_v5 = vld [vmem:[#allocation5 + $0x120] sm:$0xf]  ;;  %v11022_v59 = vld [vmem:[#allocation5 + $0x50] sm:$0xf]  ;;  %v12234_v60 = vld [vmem:[#allocation5 + $0x54] sm:$0xf0] }
0x11a2   :  { %vm6195_vm10 = vcmp.gt.f32.partialorder %v6191_v3, 0.0  ;;  %v6199_v11 = vmul.f32 0.2, %v6191_v3  ;;  %v12233_v61 = vld [vmem:[#allocation5 + $0x54] sm:$0xf] }
0x11a3   :  { %v6198_v34 = vmul.f32 0.2, %v6190_v29  ;;  %vm6194_vm11 = vcmp.gt.f32.partialorder %v6190_v29, 0.0 }
0x11a4   :  { %v6203_v0 = vsel %vm6195_vm10, %v6191_v3, %v6199_v11  ;;  %v10960_v3 = vld [vmem:[#allocation5 + $0x1d8] sm:$0xf0]  ;;  %v10872_v11 = vld [vmem:[#allocation5 + $0x128] sm:$0xf0] }
0x11a5   :  { %v13828_v25 = vpack.c.bf16 %v6203_v0, %v6201_v20  ;;  %v6202_v24 = vsel %vm6194_vm11, %v6190_v29, %v6198_v34  ;;  %v10963_v9 = vor.u32 %v12281_v63, %v10960_v3  ;;  %v12280_v20 = vld [vmem:[#allocation5 + $0x1c4] sm:$0xf0]  ;;  %v12279_v0 = vld [vmem:[#allocation5 + $0x1c4] sm:$0xf]  ;;  %v10875_v23 = vor.u32 %v12259_v10, %v10872_v11  ;;  %v12258_v29 = vld [vmem:[#allocation5 + $0x114] sm:$0xf0] }
0x11a6   :  { %v6176_v21 = vpop.f32.mrf.mxu1  ;;  %v10951_v41 = vor.u32 %v12280_v20, %v10950_v16  ;;  %v12255_v34 = vld [vmem:[#allocation5 + $0x104] sm:$0xf]  ;;  %v10931_v63 = vor.u32 %v12273_v57, %v10928_v42  ;;  %v11024_v3 = vld [vmem:[#allocation5 + $0x58] sm:$0xf0]  ;;  %v12253_v10 = vld [vmem:[#allocation5 + $0xf4] sm:$0xf]  ;;  %v11023_v16 = vor.u32 %v12234_v60, %v11022_v59 }
0x11a7   :  { %v6182_v12 = vadd.f32 %v6176_v21, %v6072_v27  ;;  %6218 = vmatpush.bf16.msra.mxu2 %v13828_v25  ;;  %6283 = vmatpush.bf16.msra.mxu0 %v13828_v25  ;;  %v10862_v27 = vld [vmem:[#allocation5 + $0x110] sm:$0xf]  ;;  %v10864_v21 = vld [vmem:[#allocation5 + $0x118] sm:$0xf0]  ;;  %v10859_v50 = vor.u32 %v12255_v34, %v10856_v31  ;;  %v11027_v20 = vor.u32 %v12233_v61, %v11024_v3  ;;  %v12250_v31 = vld [vmem:[#allocation5 + $0xd4] sm:$0xf0] }
0x11a8   :  { %v10867_v32 = vor.u32 %v12257_v35, %v10864_v21  ;;  %v11104_v11 = vld [vmem:[#allocation5 + $0xf8] sm:$0xf0]  ;;  %v11094_v35 = vld [vmem:[#allocation5 + $0xe0] sm:$0xf]  ;;  %v12252_v21 = vld [vmem:[#allocation5 + $0xe4] sm:$0xf0] }
0x11a9   :  { %v6192_v46 = vadd.f32 %v6186_v6, %v6182_v12  ;;  %v12260_v6 = vld [vmem:[#allocation5 + $0x124] sm:$0xf0]  ;;  %v10942_v12 = vld [vmem:[#allocation5 + $0x1b0] sm:$0xf]  ;;  %v11095_v34 = vor.u32 %v12252_v21, %v11094_v35  ;;  %v12246_v60 = vld [vmem:[#allocation5 + $0xb4] sm:$0xf0] }
0x11aa   :  { %10850 = vmatmul.msk.bf16.vlgmr.msra.gmra.mxu0 %vm647_vm6, %v10849_v38  ;;  %10847 = vmatmul.msk.bf16.vlgmr.msra.gmra.mxu2 %vm647_vm6, %v6207_v13  ;;  %v11070_v59 = vld [vmem:[#allocation5 + $0xb0] sm:$0xf]  ;;  %v12245_v61 = vld [vmem:[#allocation5 + $0xb4] sm:$0xf]  ;;  %v11046_v35 = vld [vmem:[#allocation5 + $0x80] sm:$0xf] }
0x11ab   :  { %6497 = vmatpush.bf16.msrb.mxu2 %v10911_v22  ;;  %6523 = vmatpush.bf16.msrb.mxu0 %v10915_v1  ;;  %vm6196_vm15 = vcmp.gt.f32.partialorder %v6192_v46, 0.0  ;;  %v6200_v36 = vmul.f32 0.2, %v6192_v46  ;;  %v10952_v22 = vld [vmem:[#allocation5 + $0x1c8] sm:$0xf0]  ;;  %v10871_v1 = vor.u32 %v12260_v6, %v10870_v5 }
0x11ac   :  { %v10955_v18 = vor.u32 %v12279_v0, %v10952_v22  ;;  %v12271_v5 = vld [vmem:[#allocation5 + $0x184] sm:$0xf]  ;;  %v10920_v6 = vld [vmem:[#allocation5 + $0x188] sm:$0xf0]  ;;  %v11014_v0 = vld [vmem:[#allocation5 + $0x40] sm:$0xf] }
0x11ad   :  { %v6204_v30 = vsel %vm6196_vm15, %v6192_v46, %v6200_v36  ;;  %v12237_v36 = vld [vmem:[#allocation5 + $0x74] sm:$0xf]  ;;  %v12240_v21 = vld [vmem:[#allocation5 + $0x84] sm:$0xf0] }
0x11ae   :  { %v13836_v51 = vpack.c.bf16 %v6204_v30, %v6202_v24  ;;  %v10934_v24 = vld [vmem:[#allocation5 + $0x1a0] sm:$0xf]  ;;  %v12276_v30 = vld [vmem:[#allocation5 + $0x1a4] sm:$0xf0] }
0x11af   :  { %6498 = vmatpush.bf16.msrb.mxu2 %v10903_v17  ;;  %6524 = vmatpush.bf16.msrb.mxu0 %v10907_v7  ;;  %v10944_v17 = vld [vmem:[#allocation5 + $0x1b8] sm:$0xf0]  ;;  %v10863_v7 = vor.u32 %v12258_v29, %v10862_v27  ;;  %v10935_v54 = vor.u32 %v12276_v30, %v10934_v24  ;;  %v12231_v27 = vld [vmem:[#allocation5 + $0x44] sm:$0xf]  ;;  %v11016_v29 = vld [vmem:[#allocation5 + $0x48] sm:$0xf0] }
0x11b0   :  { %6231 = vmatpush.bf16.msrb.mxu3 %v13836_v51  ;;  %6296 = vmatpush.bf16.msrb.mxu1 %v13836_v51  ;;  %v10998_v24 = vld [vmem:[#allocation5 + $0x20] sm:$0xf]  ;;  %v12228_v30 = vld [vmem:[#allocation5 + $0x24] sm:$0xf0] }
0x11b3   :  { %6499 = vmatpush.bf16.msrb.mxu2 %v10895_v49  ;;  %6525 = vmatpush.bf16.msrb.mxu0 %v10899_v45  ;;  %v12275_v49 = vld [vmem:[#allocation5 + $0x1a4] sm:$0xf]  ;;  %v10936_v45 = vld [vmem:[#allocation5 + $0x1a8] sm:$0xf0] }
0x11b4   :  { %6510 = vmatpush.bf16.msra.mxu3 %v10975_v52  ;;  %6536 = vmatpush.bf16.msra.mxu1 %v10979_v43  ;;  %v11039_v52 = vor.u32 %v12238_v15, %v11038_v14  ;;  %v11043_v43 = vor.u32 %v12237_v36, %v11040_v39  ;;  %v10939_v55 = vor.u32 %v12275_v49, %v10936_v45  ;;  %v12249_v14 = vld [vmem:[#allocation5 + $0xd4] sm:$0xf]  ;;  %v11088_v15 = vld [vmem:[#allocation5 + $0xd8] sm:$0xf0]  ;;  %v12227_v49 = vld [vmem:[#allocation5 + $0x24] sm:$0xf] }
0x11b5   :  { %10851 = vmatmul.msk.bf16.vlgmr.msrb.gmra.mxu1 %vm647_vm6, %v10849_v38  ;;  %10848 = vmatmul.msk.bf16.vlgmr.msrb.gmra.mxu3 %vm647_vm6, %v6207_v13  ;;  %v12278_v38 = vld [vmem:[#allocation5 + $0x1b4] sm:$0xf0]  ;;  %v12277_v13 = vld [vmem:[#allocation5 + $0x1b4] sm:$0xf]  ;;  %v11011_v39 = vor.u32 %v12229_v37, %v11008_v44  ;;  %v11000_v45 = vld [vmem:[#allocation5 + $0x28] sm:$0xf0] }
0x11b6   :  { %v10943_v46 = vor.u32 %v12278_v38, %v10942_v12  ;;  %v10947_v47 = vor.u32 %v12277_v13, %v10944_v17  ;;  %v12251_v12 = vld [vmem:[#allocation5 + $0xe4] sm:$0xf]  ;;  %v11096_v38 = vld [vmem:[#allocation5 + $0xe8] sm:$0xf0]  ;;  %v11019_v17 = vor.u32 %v12231_v27, %v11016_v29  ;;  %v12241_v27 = vld [vmem:[#allocation5 + $0x94] sm:$0xf] }
0x11b7   :  { %6500 = vmatpush.bf16.msrb.mxu2 %v10887_v40  ;;  %6526 = vmatpush.bf16.msrb.mxu0 %v10891_v56  ;;  %v10926_v40 = vld [vmem:[#allocation5 + $0x190] sm:$0xf]  ;;  %v12274_v56 = vld [vmem:[#allocation5 + $0x194] sm:$0xf0] }
0x11b8   :  { %6511 = vmatpush.bf16.msra.mxu3 %v10967_v28  ;;  %6537 = vmatpush.bf16.msra.mxu1 %v10971_v58  ;;  %v11031_v28 = vor.u32 %v12236_v53, %v11030_v48  ;;  %v11035_v58 = vor.u32 %v12235_v26, %v11032_v33  ;;  %v10927_v62 = vor.u32 %v12274_v56, %v10926_v40  ;;  %v12247_v48 = vld [vmem:[#allocation5 + $0xc4] sm:$0xf]  ;;  %v11080_v53 = vld [vmem:[#allocation5 + $0xc8] sm:$0xf0]  ;;  %v10990_v26 = vld [vmem:[#allocation5 + $0x10] sm:$0xf] }
0x11b9   :  { %v12226_v33 = vld [vmem:[#allocation5 + $0x14] sm:$0xf0]  ;;  %v12225_v40 = vld [vmem:[#allocation5 + $0x14] sm:$0xf]  ;;  %v10992_v56 = vld [vmem:[#allocation5 + $0x18] sm:$0xf0]  ;;  %v11083_v42 = vor.u32 %v12247_v48, %v11080_v53 }
0x11ba   :  { %v11225_v48 = vld [vmem:[#allocation5 + $0x2e0] sm:$0xf]  ;;  %v12316_v53 = vld [vmem:[#allocation5 + $0x2e4] sm:$0xf0] }
0x11bb   :  { %6501 = vmatpush.bf16.msrb.mxu2 %v10879_v2  ;;  %6527 = vmatpush.bf16.msrb.mxu0 %v10883_v4  ;;  %v10918_v2 = vld [vmem:[#allocation5 + $0x180] sm:$0xf]  ;;  %v12272_v4 = vld [vmem:[#allocation5 + $0x184] sm:$0xf0] }
0x11bc   :  { %6512 = vmatpush.bf16.msra.mxu3 %v10959_v8  ;;  %6538 = vmatpush.bf16.msra.mxu1 %v10963_v9  ;;  %v11102_v8 = vld [vmem:[#allocation5 + $0xf0] sm:$0xf]  ;;  %v12254_v9 = vld [vmem:[#allocation5 + $0xf4] sm:$0xf0]  ;;  %v10919_v22 = vor.u32 %v12272_v4, %v10918_v2  ;;  %v10982_v2 = vld [vmem:[#allocation5] sm:$0xf] }
0x11bd   :  { %v12224_v4 = vld [vmem:[#allocation5 + $0x4] sm:$0xf0] }
0x11bf   :  { %6502 = vmatpush.bf16.msrb.mxu2 %v10871_v1  ;;  %6528 = vmatpush.bf16.msrb.mxu0 %v10875_v23  ;;  %v10923_v1 = vor.u32 %v12271_v5, %v10920_v6  ;;  %v12232_v23 = vld [vmem:[#allocation5 + $0x44] sm:$0xf0]  ;;  %v12223_v5 = vld [vmem:[#allocation5 + $0x4] sm:$0xf]  ;;  %v10983_v6 = vor.u32 %v12224_v4, %v10982_v2  ;;  %v11121_v4 = vld [vmem:[#allocation5 + $0x210] sm:$0xf] }
0x11c0   :  { %6513 = vmatpush.bf16.msra.mxu3 %v10951_v41  ;;  %6539 = vmatpush.bf16.msra.mxu1 %v10955_v18  ;;  %v11103_v41 = vor.u32 %v12254_v9, %v11102_v8  ;;  %v11107_v18 = vor.u32 %v12253_v10, %v11104_v11  ;;  %v11015_v13 = vor.u32 %v12232_v23, %v11014_v0  ;;  %v10984_v8 = vld [vmem:[#allocation5 + $0x8] sm:$0xf0]  ;;  %v11062_v10 = vld [vmem:[#allocation5 + $0xa0] sm:$0xf]  ;;  %v12244_v11 = vld [vmem:[#allocation5 + $0xa4] sm:$0xf0] }
0x11c1   :  { %v10987_v9 = vor.u32 %v12223_v5, %v10984_v8  ;;  %v11064_v0 = vld [vmem:[#allocation5 + $0xa8] sm:$0xf0]  ;;  %v12242_v23 = vld [vmem:[#allocation5 + $0x94] sm:$0xf0]  ;;  %v11201_v8 = vld [vmem:[#allocation5 + $0x2b0] sm:$0xf] }
0x11c2   :  { %v12290_v5 = vld [vmem:[#allocation5 + $0x214] sm:$0xf0] }
0x11c3   :  { %6503 = vmatpush.bf16.msrb.mxu2 %v10863_v7  ;;  %6529 = vmatpush.bf16.msrb.mxu0 %v10867_v32  ;;  %v11006_v7 = vld [vmem:[#allocation5 + $0x30] sm:$0xf]  ;;  %v12230_v32 = vld [vmem:[#allocation5 + $0x34] sm:$0xf0] }
0x11c4   :  { %6514 = vmatpush.bf16.msra.mxu3 %v10943_v46  ;;  %6540 = vmatpush.bf16.msra.mxu1 %v10947_v47  ;;  %v11099_v46 = vor.u32 %v12251_v12, %v11096_v38  ;;  %v11086_v47 = vld [vmem:[#allocation5 + $0xd0] sm:$0xf]  ;;  %v11007_v36 = vor.u32 %v12230_v32, %v11006_v7  ;;  %v12239_v12 = vld [vmem:[#allocation5 + $0x84] sm:$0xf]  ;;  %v11047_v38 = vor.u32 %v12240_v21, %v11046_v35  ;;  %v12302_v32 = vld [vmem:[#allocation5 + $0x274] sm:$0xf0] }
0x11c5   :  { %v11169_v7 = vld [vmem:[#allocation5 + $0x270] sm:$0xf]  ;;  %v11108_v35 = vld [vmem:[%s14073_s6 + $0x8] sm:$0xf] }
0x11c6   :  { %v11170_v44 = vor.u32 %v12302_v32, %v11169_v7  ;;  %v11171_v7 = vld [vmem:[#allocation5 + $0x278] sm:$0xf0] }
0x11c7   :  { %6504 = vmatpush.bf16.msrb.mxu2 %v10855_v19  ;;  %6530 = vmatpush.bf16.msrb.mxu0 %v10859_v50  ;;  %v11087_v19 = vor.u32 %v12250_v31, %v11086_v47  ;;  %v11091_v50 = vor.u32 %v12249_v14, %v11088_v15  ;;  %v12300_v47 = vld [vmem:[#allocation5 + $0x264] sm:$0xf0]  ;;  %v11153_v14 = vld [vmem:[#allocation5 + $0x250] sm:$0xf]  ;;  %v12298_v15 = vld [vmem:[#allocation5 + $0x254] sm:$0xf0] }
0x11c8   :  { %6515 = vmatpush.bf16.msra.mxu3 %v10935_v54  ;;  %6541 = vmatpush.bf16.msra.mxu1 %v10939_v55  ;;  %v10999_v54 = vor.u32 %v12228_v30, %v10998_v24  ;;  %v11003_v55 = vor.u32 %v12227_v49, %v11000_v45  ;;  %v12318_v24 = vld [vmem:[#allocation5 + $0x2f4] sm:$0xf0]  ;;  %v11154_v30 = vor.u32 %v12298_v15, %v11153_v14  ;;  %v11155_v14 = vld [vmem:[#allocation5 + $0x258] sm:$0xf0] }
0x11cb   :  { %6709 = vmatpush.bf16.msra.mxu2 %v11039_v52  ;;  %6735 = vmatpush.bf16.msra.mxu0 %v11043_v43  ;;  %v11078_v52 = vld [vmem:[#allocation5 + $0xc0] sm:$0xf]  ;;  %v12248_v43 = vld [vmem:[#allocation5 + $0xc4] sm:$0xf0] }
0x11cc   :  { %6516 = vmatpush.bf16.msra.mxu3 %v10927_v62  ;;  %6542 = vmatpush.bf16.msra.mxu1 %v10931_v63  ;;  %v11079_v57 = vor.u32 %v12248_v43, %v11078_v52  ;;  %v11071_v62 = vor.u32 %v12246_v60, %v11070_v59  ;;  %v11072_v63 = vld [vmem:[#allocation5 + $0xb8] sm:$0xf0]  ;;  %v11129_v59 = vld [vmem:[#allocation5 + $0x220] sm:$0xf]  ;;  %v12292_v60 = vld [vmem:[#allocation5 + $0x224] sm:$0xf0] }
0x11cd   :  { %v11075_v3 = vor.u32 %v12245_v61, %v11072_v63  ;;  %v11209_v63 = vld [vmem:[#allocation5 + $0x2c0] sm:$0xf]  ;;  %v11130_v2 = vor.u32 %v12292_v60, %v11129_v59  ;;  %v11123_v59 = vld [vmem:[#allocation5 + $0x218] sm:$0xf0] }
0x11cf   :  { %6710 = vmatpush.bf16.msra.mxu2 %v11031_v28  ;;  %6736 = vmatpush.bf16.msra.mxu0 %v11035_v58  ;;  %v10991_v28 = vor.u32 %v12226_v33, %v10990_v26  ;;  %v10995_v58 = vor.u32 %v12225_v40, %v10992_v56  ;;  %v12294_v26 = vld [vmem:[#allocation5 + $0x234] sm:$0xf0]  ;;  %v11226_v33 = vor.u32 %v12316_v53, %v11225_v48  ;;  %v11217_v56 = vld [vmem:[#allocation5 + $0x2d0] sm:$0xf]  ;;  %v12311_v53 = vld [vmem:[#allocation5 + $0x2c4] sm:$0xf] }
0x11d0   :  { %6517 = vmatpush.bf16.msra.mxu3 %v10919_v22  ;;  %6543 = vmatpush.bf16.msra.mxu1 %v10923_v1  ;;  %v11054_v1 = vld [vmem:[#allocation5 + $0x90] sm:$0xf] }
0x11d1   :  { %v11055_v29 = vor.u32 %v12242_v23, %v11054_v1  ;;  %v11193_v1 = vld [vmem:[#allocation5 + $0x2a0] sm:$0xf]  ;;  %v12308_v23 = vld [vmem:[#allocation5 + $0x2a4] sm:$0xf0] }
0x11d3   :  { %6711 = vmatpush.bf16.msra.mxu2 %v11023_v16  ;;  %6737 = vmatpush.bf16.msra.mxu0 %v11027_v20  ;;  %v12243_v16 = vld [vmem:[#allocation5 + $0xa4] sm:$0xf]  ;;  %v11063_v20 = vor.u32 %v12244_v11, %v11062_v10 }
0x11d4   :  { %6722 = vmatpush.bf16.msrb.mxu3 %v11103_v41  ;;  %6748 = vmatpush.bf16.msrb.mxu1 %v11107_v18  ;;  %v11067_v22 = vor.u32 %v12243_v16, %v11064_v0  ;;  %v11056_v41 = vld [vmem:[#allocation5 + $0x98] sm:$0xf0]  ;;  %v11122_v16 = vor.u32 %v12290_v5, %v11121_v4  ;;  %v12288_v0 = vld [vmem:[#allocation5 + $0x204] sm:$0xf0]  ;;  %v12305_v4 = vld [vmem:[#allocation5 + $0x294] sm:$0xf] }
0x11d5   :  { %v11059_v18 = vor.u32 %v12241_v27, %v11056_v41  ;;  %v11185_v41 = vld [vmem:[#allocation5 + $0x290] sm:$0xf]  ;;  %v11187_v5 = vld [vmem:[#allocation5 + $0x298] sm:$0xf0] }
0x11d7   :  { %6712 = vmatpush.bf16.msra.mxu2 %v11015_v13  ;;  %6738 = vmatpush.bf16.msra.mxu0 %v11019_v17  ;;  %v11048_v13 = vld [vmem:[#allocation5 + $0x88] sm:$0xf0] }
0x11d8   :  { %6723 = vmatpush.bf16.msrb.mxu3 %v11095_v34  ;;  %6749 = vmatpush.bf16.msrb.mxu1 %v11099_v46  ;;  %v11051_v17 = vor.u32 %v12239_v12, %v11048_v13  ;;  %v11161_v46 = vld [vmem:[#allocation5 + $0x260] sm:$0xf] }
0x11d9   :  { %v11162_v31 = vor.u32 %v12300_v47, %v11161_v46  ;;  %v11177_v12 = vld [vmem:[#allocation5 + $0x280] sm:$0xf]  ;;  %v11235_v46 = vld [vmem:[#allocation5 + $0x2f8] sm:$0xf0] }
0x11db   :  { %6713 = vmatpush.bf16.msra.mxu2 %v11007_v36  ;;  %6739 = vmatpush.bf16.msra.mxu0 %v11011_v39  ;;  %v11233_v39 = vld [vmem:[#allocation5 + $0x2f0] sm:$0xf] }
0x11dc   :  { %6724 = vmatpush.bf16.msrb.mxu3 %v11087_v19  ;;  %6750 = vmatpush.bf16.msrb.mxu1 %v11091_v50  ;;  %v11145_v19 = vld [vmem:[#allocation5 + $0x240] sm:$0xf]  ;;  %v12296_v50 = vld [vmem:[#allocation5 + $0x244] sm:$0xf0]  ;;  %v11234_v43 = vor.u32 %v12318_v24, %v11233_v39  ;;  %v12295_v39 = vld [vmem:[#allocation5 + $0x244] sm:$0xf] }
0x11df   :  { %6714 = vmatpush.bf16.msra.mxu2 %v10999_v54  ;;  %6740 = vmatpush.bf16.msra.mxu0 %v11003_v55  ;;  %v11146_v54 = vor.u32 %v12296_v50, %v11145_v19  ;;  %v11137_v55 = vld [vmem:[#allocation5 + $0x230] sm:$0xf] }
0x11e0   :  { %6725 = vmatpush.bf16.msrb.mxu3 %v11079_v57  ;;  %6751 = vmatpush.bf16.msrb.mxu1 %v11083_v42  ;;  %v12314_v57 = vld [vmem:[#allocation5 + $0x2d4] sm:$0xf0] }
0x11e3   :  { %6715 = vmatpush.bf16.msra.mxu2 %v10991_v28  ;;  %6741 = vmatpush.bf16.msra.mxu0 %v10995_v58  ;;  %v11138_v58 = vor.u32 %v12294_v26, %v11137_v55  ;;  %v12291_v55 = vld [vmem:[#allocation5 + $0x224] sm:$0xf] }
0x11e4   :  { %6726 = vmatpush.bf16.msrb.mxu3 %v11071_v62  ;;  %6752 = vmatpush.bf16.msrb.mxu1 %v11075_v3  ;;  %v11218_v62 = vor.u32 %v12314_v57, %v11217_v56  ;;  %v12312_v3 = vld [vmem:[#allocation5 + $0x2c4] sm:$0xf0]  ;;  %v12309_v56 = vld [vmem:[#allocation5 + $0x2b4] sm:$0xf]  ;;  %v11203_v57 = vld [vmem:[#allocation5 + $0x2b8] sm:$0xf0] }
0x11e7   :  { %6716 = vmatpush.bf16.msra.mxu2 %v10983_v6  ;;  %6742 = vmatpush.bf16.msra.mxu0 %v10987_v9  ;;  %v11210_v6 = vor.u32 %v12312_v3, %v11209_v63  ;;  %v12310_v9 = vld [vmem:[#allocation5 + $0x2b4] sm:$0xf0]  ;;  %v11195_v63 = vld [vmem:[#allocation5 + $0x2a8] sm:$0xf0]  ;;  %v12287_v3 = vld [vmem:[#allocation5 + $0x204] sm:$0xf] }
0x11e8   :  { %6727 = vmatpush.bf16.msrb.mxu3 %v11063_v20  ;;  %6753 = vmatpush.bf16.msrb.mxu1 %v11067_v22  ;;  %v11113_v20 = vld [vmem:[#allocation5 + $0x200] sm:$0xf]  ;;  %v11202_v22 = vor.u32 %v12310_v9, %v11201_v8 }
0x11e9   :  { %v11114_v27 = vor.u32 %v12288_v0, %v11113_v20  ;;  %v12303_v0 = vld [vmem:[#allocation5 + $0x284] sm:$0xf] }
0x11ec   :  { %6728 = vmatpush.bf16.msrb.mxu3 %v11055_v29  ;;  %6754 = vmatpush.bf16.msrb.mxu1 %v11059_v18  ;;  %v11194_v29 = vor.u32 %v12308_v23, %v11193_v1  ;;  %v12306_v18 = vld [vmem:[#allocation5 + $0x294] sm:$0xf0] }
0x11ed   :  { %v11186_v21 = vor.u32 %v12306_v18, %v11185_v41 }
0x11f0   :  { %6729 = vmatpush.bf16.msrb.mxu3 %v11047_v38  ;;  %6755 = vmatpush.bf16.msrb.mxu1 %v11051_v17  ;;  %v12304_v38 = vld [vmem:[#allocation5 + $0x284] sm:$0xf0]  ;;  %v12301_v17 = vld [vmem:[#allocation5 + $0x274] sm:$0xf] }
0x11f1   :  { %v11178_v13 = vor.u32 %v12304_v38, %v11177_v12  ;;  %v11174_v32 = vor.u32 %v12301_v17, %v11171_v7 }
0x1227   :  { %v6285_v37 = vpop.f32.mrf.mxu0 }
0x1228   :  { %v6302_v34 = vpack.c.bf16 %v6285_v37, %v6285_v37  ;;  %v12299_v37 = vld [vmem:[#allocation5 + $0x264] sm:$0xf] }
0x122a   :  { %6505 = vmatmul.bf16.vlgmr.msrb.gmra.mxu2 %v6302_v34  ;;  %6531 = vmatmul.bf16.vlgmr.msrb.gmra.mxu0 %v6302_v34  ;;  %v12317_v34 = vld [vmem:[#allocation5 + $0x2f4] sm:$0xf] }
0x122b   :  { %6773 = vmatpush.bf16.msrb.mxu2 %v13828_v25  ;;  %6987 = vmatpush.bf16.msrb.mxu0 %v11170_v44  ;;  %v11163_v44 = vld [vmem:[#allocation5 + $0x268] sm:$0xf0]  ;;  %v11238_v47 = vor.u32 %v12317_v34, %v11235_v46  ;;  %v12334_v34 = vld [vmem:[#allocation5 + $0x374] sm:$0xf0]  ;;  %v11364_v46 = vld [vmem:[#allocation5 + $0x3f0] sm:$0xf] }
0x122d   :  { %v6220_v36 = vpop.f32.mrf.mxu2 }
0x122e   :  { %v6237_v42 = vpack.c.bf16 %v6220_v36, %v6220_v36  ;;  %v12315_v36 = vld [vmem:[#allocation5 + $0x2e4] sm:$0xf] }
0x122f   :  { %6988 = vmatpush.bf16.msrb.mxu0 %v11162_v31  ;;  %v6287_v49 = vpop.f32.mrf.mxu0  ;;  %v12297_v31 = vld [vmem:[#allocation5 + $0x254] sm:$0xf] }
0x1230   :  { %v11158_v15 = vor.u32 %v12297_v31, %v11155_v14  ;;  %v11219_v49 = vld [vmem:[#allocation5 + $0x2d8] sm:$0xf0]  ;;  %v12350_v31 = vld [vmem:[#allocation5 + $0x3f4] sm:$0xf0]  ;;  %v12333_v14 = vld [vmem:[#allocation5 + $0x374] sm:$0xf] }
0x1232   :  { %v6298_v45 = vpop.f32.mrf.mxu1 }
0x1233   :  { %v6303_v52 = vpack.c.bf16 %v6298_v45, %v6298_v45  ;;  %6989 = vmatpush.bf16.msrb.mxu0 %v11154_v30  ;;  %v12313_v30 = vld [vmem:[#allocation5 + $0x2d4] sm:$0xf]  ;;  %v11147_v45 = vld [vmem:[#allocation5 + $0x248] sm:$0xf0] }
0x1234   :  { %v11150_v19 = vor.u32 %v12295_v39, %v11147_v45  ;;  %v11222_v50 = vor.u32 %v12313_v30, %v11219_v49  ;;  %v12332_v39 = vld [vmem:[#allocation5 + $0x364] sm:$0xf0] }
0x1235   :  { %6518 = vmatmul.bf16.vlgmr.msra.gmra.mxu3 %v6303_v52  ;;  %6544 = vmatmul.bf16.vlgmr.msra.gmra.mxu1 %v6303_v52  ;;  %v6222_v40 = vpop.f32.mrf.mxu2  ;;  %v12293_v52 = vld [vmem:[#allocation5 + $0x234] sm:$0xf]  ;;  %v12348_v30 = vld [vmem:[#allocation5 + $0x3e4] sm:$0xf0] }
0x1236   :  { %6786 = vmatpush.bf16.msra.mxu3 %v13836_v51  ;;  %7000 = vmatpush.bf16.msra.mxu1 %v11234_v43  ;;  %v11139_v43 = vld [vmem:[#allocation5 + $0x238] sm:$0xf0] }
0x1237   :  { %6990 = vmatpush.bf16.msrb.mxu0 %v11146_v54  ;;  %v11142_v48 = vor.u32 %v12293_v52, %v11139_v43  ;;  %v11211_v54 = vld [vmem:[#allocation5 + $0x2c8] sm:$0xf0] }
0x1238   :  { %v6233_v28 = vpop.f32.mrf.mxu3  ;;  %v11214_v26 = vor.u32 %v12311_v53, %v11211_v54  ;;  %v11294_v53 = vld [vmem:[#allocation5 + $0x368] sm:$0xf0]  ;;  %v11284_v54 = vld [vmem:[#allocation5 + $0x350] sm:$0xf] }
0x1239   :  { %v6238_v11 = vpack.c.bf16 %v6233_v28, %v6233_v28  ;;  %v11206_v28 = vor.u32 %v12309_v56, %v11203_v57  ;;  %v12349_v57 = vld [vmem:[#allocation5 + $0x3f4] sm:$0xf] }
0x123a   :  { %v6300_v61 = vpop.f32.mrf.mxu1  ;;  %7001 = vmatpush.bf16.msra.mxu1 %v11226_v33  ;;  %6717 = vmatmul.bf16.vlgmr.msra.gmra.mxu2 %v6237_v42  ;;  %v11131_v33 = vld [vmem:[#allocation5 + $0x228] sm:$0xf0] }
0x123b   :  { %6743 = vmatmul.bf16.vlgmr.msra.gmra.mxu0 %v6237_v42  ;;  %7013 = vmatpush.bf16.msra.mxu2 %v11174_v32  ;;  %v11134_v42 = vor.u32 %v12291_v55, %v11131_v33  ;;  %v12330_v55 = vld [vmem:[#allocation5 + $0x354] sm:$0xf0] }
0x123c   :  { %6991 = vmatpush.bf16.msrb.mxu0 %v11138_v58  ;;  %v12289_v58 = vld [vmem:[#allocation5 + $0x214] sm:$0xf]  ;;  %v12346_v33 = vld [vmem:[#allocation5 + $0x3d4] sm:$0xf0]  ;;  %v11285_v56 = vor.u32 %v12330_v55, %v11284_v54  ;;  %v12339_v54 = vld [vmem:[#allocation5 + $0x3a4] sm:$0xf] }
0x123d   :  { %v11126_v60 = vor.u32 %v12289_v58, %v11123_v59  ;;  %v12329_v58 = vld [vmem:[#allocation5 + $0x354] sm:$0xf]  ;;  %v11286_v59 = vld [vmem:[#allocation5 + $0x358] sm:$0xf0] }
0x123e   :  { %7002 = vmatpush.bf16.msra.mxu1 %v11218_v62  ;;  %v12307_v62 = vld [vmem:[#allocation5 + $0x2a4] sm:$0xf] }
0x1240   :  { %v6235_v10 = vpop.f32.mrf.mxu3  ;;  %6992 = vmatpush.bf16.msrb.mxu0 %v11130_v2  ;;  %v11198_v2 = vor.u32 %v12307_v62, %v11195_v63  ;;  %v11289_v63 = vor.u32 %v12329_v58, %v11286_v59 }
0x1241   :  { %v11190_v10 = vor.u32 %v12305_v4, %v11187_v5  ;;  %v11358_v4 = vld [vmem:[#allocation5 + $0x3e8] sm:$0xf0] }
0x1242   :  { %7003 = vmatpush.bf16.msra.mxu1 %v11210_v6  ;;  %v11115_v6 = vld [vmem:[#allocation5 + $0x208] sm:$0xf0] }
0x1243   :  { %v11118_v9 = vor.u32 %v12287_v3, %v11115_v6  ;;  %v12345_v6 = vld [vmem:[#allocation5 + $0x3d4] sm:$0xf] }
0x1244   :  { %6993 = vmatpush.bf16.msrb.mxu0 %v11122_v16 }
0x1245   :  { %6730 = vmatmul.bf16.vlgmr.msrb.gmra.mxu3 %v6238_v11  ;;  %6756 = vmatmul.bf16.vlgmr.msrb.gmra.mxu1 %v6238_v11 }
0x1246   :  { %7004 = vmatpush.bf16.msra.mxu1 %v11202_v22  ;;  %7026 = vmatpush.bf16.msrb.mxu3 %v11238_v47  ;;  %v11179_v22 = vld [vmem:[#allocation5 + $0x288] sm:$0xf0] }
0x1247   :  { %v11182_v23 = vor.u32 %v12303_v0, %v11179_v22  ;;  %v12327_v0 = vld [vmem:[#allocation5 + $0x344] sm:$0xf] }
0x1248   :  { %6994 = vmatpush.bf16.msrb.mxu0 %v11114_v27 }
0x124a   :  { %7005 = vmatpush.bf16.msra.mxu1 %v11194_v29  ;;  %11109 = vmatmul.msk.bf16.vlgmr.msrb.gmra.mxu2 %vm647_vm6, %v11108_v35 }
0x124c   :  { %7053 = vmatpush.bf16.msra.mxu0 %v13828_v25  ;;  %v11166_v25 = vor.u32 %v12299_v37, %v11163_v44 }
0x124e   :  { %7006 = vmatpush.bf16.msra.mxu1 %v11186_v21  ;;  %7014 = vmatpush.bf16.msra.mxu2 %v11166_v25  ;;  %v11300_v25 = vld [vmem:[#allocation5 + $0x370] sm:$0xf] }
0x124f   :  { %v11301_v47 = vor.u32 %v12334_v34, %v11300_v25  ;;  %v12324_v25 = vld [vmem:[#allocation5 + $0x324] sm:$0xf0] }
0x1252   :  { %7007 = vmatpush.bf16.msra.mxu1 %v11178_v13  ;;  %7015 = vmatpush.bf16.msra.mxu2 %v11158_v15  ;;  %v11302_v15 = vld [vmem:[#allocation5 + $0x378] sm:$0xf0] }
0x1253   :  { %v11305_v45 = vor.u32 %v12333_v14, %v11302_v15  ;;  %v11332_v15 = vld [vmem:[#allocation5 + $0x3b0] sm:$0xf] }
0x1255   :  { %11110 = vmatmul.msk.bf16.vlgmr.msra.gmra.mxu3 %vm647_vm6, %v11108_v35 }
0x1256   :  { %7066 = vmatpush.bf16.msrb.mxu1 %v13836_v51  ;;  %v11227_v51 = vld [vmem:[#allocation5 + $0x2e8] sm:$0xf0]  ;;  %7016 = vmatpush.bf16.msra.mxu2 %v11150_v19 }
0x1257   :  { %v11230_v24 = vor.u32 %v12315_v36, %v11227_v51  ;;  %v11365_v36 = vor.u32 %v12350_v31, %v11364_v46  ;;  %v11292_v51 = vld [vmem:[#allocation5 + $0x360] sm:$0xf]  ;;  %v11262_v31 = vld [vmem:[#allocation5 + $0x328] sm:$0xf0] }
0x1258   :  { %v11293_v19 = vor.u32 %v12332_v39, %v11292_v51  ;;  %v12341_v51 = vld [vmem:[#allocation5 + $0x3b4] sm:$0xf] }
0x1259   :  { %7027 = vmatpush.bf16.msrb.mxu3 %v11230_v24  ;;  %v11356_v24 = vld [vmem:[#allocation5 + $0x3e0] sm:$0xf] }
0x125a   :  { %7017 = vmatpush.bf16.msra.mxu2 %v11142_v48  ;;  %v11357_v48 = vor.u32 %v12348_v30, %v11356_v24  ;;  %v11334_v24 = vld [vmem:[#allocation5 + $0x3b8] sm:$0xf0]  ;;  %v11252_v30 = vld [vmem:[#allocation5 + $0x310] sm:$0xf] }
0x125d   :  { %7028 = vmatpush.bf16.msrb.mxu3 %v11222_v50  ;;  %v12331_v50 = vld [vmem:[#allocation5 + $0x364] sm:$0xf] }
0x125e   :  { %7018 = vmatpush.bf16.msra.mxu2 %v11134_v42 }
0x1261   :  { %7029 = vmatpush.bf16.msrb.mxu3 %v11214_v26  ;;  %v11348_v26 = vld [vmem:[#allocation5 + $0x3d0] sm:$0xf] }
0x1262   :  { %7019 = vmatpush.bf16.msra.mxu2 %v11126_v60  ;;  %v11349_v42 = vor.u32 %v12346_v33, %v11348_v26  ;;  %v11326_v26 = vld [vmem:[#allocation5 + $0x3a8] sm:$0xf0]  ;;  %v11244_v33 = vld [vmem:[#allocation5 + $0x300] sm:$0xf] }
0x1265   :  { %7030 = vmatpush.bf16.msrb.mxu3 %v11206_v28  ;;  %v11366_v28 = vld [vmem:[#allocation5 + $0x3f8] sm:$0xf0] }
0x1266   :  { %7020 = vmatpush.bf16.msra.mxu2 %v11118_v9  ;;  %v11369_v62 = vor.u32 %v12349_v57, %v11366_v28  ;;  %v11239_v9 = vld [vmem:[%s14073_s6 + $0xc] sm:$0xf]  ;;  %v11316_v57 = vld [vmem:[#allocation5 + $0x390] sm:$0xf]  ;;  %v12337_v28 = vld [vmem:[#allocation5 + $0x394] sm:$0xf] }
0x1269   :  { %7031 = vmatpush.bf16.msrb.mxu3 %v11198_v2  ;;  %v12347_v2 = vld [vmem:[#allocation5 + $0x3e4] sm:$0xf] }
0x126a   :  { %7267 = vmatpush.bf16.msrb.mxu2 %v11301_v47  ;;  %v11361_v5 = vor.u32 %v12347_v2, %v11358_v4  ;;  %v12323_v47 = vld [vmem:[#allocation5 + $0x324] sm:$0xf]  ;;  %v11308_v2 = vld [vmem:[#allocation5 + $0x380] sm:$0xf]  ;;  %v12336_v4 = vld [vmem:[#allocation5 + $0x384] sm:$0xf0] }
0x126b   :  { %v11265_v14 = vor.u32 %v12323_v47, %v11262_v31 }
0x126d   :  { %7032 = vmatpush.bf16.msrb.mxu3 %v11190_v10 }
0x126e   :  { %7268 = vmatpush.bf16.msrb.mxu2 %v11293_v19 }
0x1271   :  { %7033 = vmatpush.bf16.msrb.mxu3 %v11182_v23 }
0x1272   :  { %7269 = vmatpush.bf16.msrb.mxu2 %v11285_v56  ;;  %v11329_v56 = vor.u32 %v12339_v54, %v11326_v26  ;;  %v7339_v54 = vld [vmem:[%s14074_s12 + $0x90] sm:$0xff]  ;;  %v7338_v26 = vld [vmem:[%s14074_s12 + $0x88] sm:$0xff] }
0x1275   :  { %7280 = vmatpush.bf16.msra.mxu3 %v11365_v36  ;;  %v12342_v36 = vld [vmem:[#allocation5 + $0x3b4] sm:$0xf0] }
0x1276   :  { %v11333_v39 = vor.u32 %v12342_v36, %v11332_v15 }
0x1279   :  { %7281 = vmatpush.bf16.msra.mxu3 %v11357_v48  ;;  %v11324_v48 = vld [vmem:[#allocation5 + $0x3a0] sm:$0xf] }
0x127d   :  { %7282 = vmatpush.bf16.msra.mxu3 %v11349_v42  ;;  %v12338_v42 = vld [vmem:[#allocation5 + $0x394] sm:$0xf0] }
0x127e   :  { %v11317_v59 = vor.u32 %v12338_v42, %v11316_v57  ;;  %v7322_v57 = vld [vmem:[%s14074_s12 + $0x8] sm:$0xff]  ;;  %v7321_v42 = vld [vmem:[%s14074_s12] sm:$0xff] }
0x12a7   :  { %v6532_v40 = vpop.f32.mrf.mxu0 }
0x12ad   :  { %v6506_v61 = vpop.f32.mrf.mxu2 }
0x12af   :  { %v6534_v8 = vpop.f32.mrf.mxu0 }
0x12b0   :  { %v11350_v8 = vld [vmem:[#allocation5 + $0x3d8] sm:$0xf0] }
0x12b2   :  { %v6545_v11 = vpop.f32.mrf.mxu1 }
0x12b3   :  { %v6546_v16 = vadd.f32 %v6545_v11, %v6532_v40  ;;  %v11297_v40 = vor.u32 %v12331_v50, %v11294_v53  ;;  %v11353_v11 = vor.u32 %v12345_v6, %v11350_v8  ;;  %v12321_v50 = vld [vmem:[#allocation5 + $0x314] sm:$0xf]  ;;  %v12340_v53 = vld [vmem:[#allocation5 + $0x3a4] sm:$0xf0]  ;;  %v11309_v6 = vor.u32 %v12336_v4, %v11308_v2  ;;  %v11310_v8 = vld [vmem:[#allocation5 + $0x388] sm:$0xf0] }
0x12b4   :  { %v11325_v55 = vor.u32 %v12340_v53, %v11324_v48  ;;  %v7340_v48 = vld [vmem:[%s14074_s12 + $0x98] sm:$0xff]  ;;  %v7326_v53 = vld [vmem:[%s14074_s12 + $0x28] sm:$0xff] }
0x12b5   :  { %v6508_v20 = vpop.f32.mrf.mxu2 }
0x12b6   :  { %v12328_v20 = vld [vmem:[#allocation5 + $0x344] sm:$0xf0] }
0x12b8   :  { %v6519_v1 = vpop.f32.mrf.mxu3  ;;  %v6744_v29 = vpop.f32.mrf.mxu0 }
0x12b9   :  { %v6520_v27 = vadd.f32 %v6519_v1, %v6506_v61  ;;  %v6745_v41 = vadd.f32 %v6744_v29, %v6546_v16  ;;  %v11276_v16 = vld [vmem:[#allocation5 + $0x340] sm:$0xf]  ;;  %v11278_v1 = vld [vmem:[#allocation5 + $0x348] sm:$0xf0]  ;;  %v12326_v29 = vld [vmem:[#allocation5 + $0x334] sm:$0xf0] }
0x12ba   :  { %v6547_v18 = vpop.f32.mrf.mxu1  ;;  %v11277_v22 = vor.u32 %v12328_v20, %v11276_v16  ;;  %v11281_v23 = vor.u32 %v12327_v0, %v11278_v1  ;;  %v7351_v16 = vld [vmem:[%s14074_s12 + $0xf0] sm:$0xff]  ;;  %v7336_v20 = vld [vmem:[%s14074_s12 + $0x78] sm:$0xff]  ;;  %v7334_v1 = vld [vmem:[%s14074_s12 + $0x68] sm:$0xff] }
0x12bb   :  { %v7335_v0 = vld [vmem:[%s14074_s12 + $0x70] sm:$0xff] }
0x12bc   :  { %7270 = vmatpush.bf16.msrb.mxu2 %v11277_v22  ;;  %v7350_v22 = vld [vmem:[%s14074_s12 + $0xe8] sm:$0xff] }
0x12bd   :  { %v6718_v35 = vpop.f32.mrf.mxu2 }
0x12be   :  { %v6719_v12 = vadd.f32 %v6718_v35, %v6520_v27  ;;  %v11268_v27 = vld [vmem:[#allocation5 + $0x330] sm:$0xf]  ;;  %v11270_v35 = vld [vmem:[#allocation5 + $0x338] sm:$0xf0] }
0x12bf   :  { %v11269_v18 = vor.u32 %v12326_v29, %v11268_v27  ;;  %v7333_v29 = vld [vmem:[%s14074_s12 + $0x60] sm:$0xff] }
0x12c0   :  { %v6521_v21 = vpop.f32.mrf.mxu3  ;;  %v6746_v38 = vpop.f32.mrf.mxu0 }
0x12c1   :  { %7271 = vmatpush.bf16.msrb.mxu2 %v11269_v18  ;;  %v12344_v38 = vld [vmem:[#allocation5 + $0x3c4] sm:$0xf0] }
0x12c2   :  { %v6757_v13 = vpop.f32.mrf.mxu1 }
0x12c3   :  { %v13849_v17 = vadd.f32 %v6757_v13, %v6745_v41  ;;  %v12325_v41 = vld [vmem:[#allocation5 + $0x334] sm:$0xf]  ;;  %v12343_v13 = vld [vmem:[#allocation5 + $0x3c4] sm:$0xf] }
0x12c4   :  { %v11273_v21 = vor.u32 %v12325_v41, %v11270_v35  ;;  %v7348_v41 = vld [vmem:[%s14074_s12 + $0xd8] sm:$0xff] }
0x12c5   :  { %v6720_v7 = vpop.f32.mrf.mxu2 }
0x12c8   :  { %v6731_v32 = vpop.f32.mrf.mxu3 }
0x12c9   :  { %v13851_v37 = vadd.f32 %v6731_v32, %v6719_v12  ;;  %v11340_v12 = vld [vmem:[#allocation5 + $0x3c0] sm:$0xf]  ;;  %v11342_v32 = vld [vmem:[#allocation5 + $0x3c8] sm:$0xf0] }
0x12ca   :  { %v6759_v44 = vpop.f32.mrf.mxu1  ;;  %v11341_v7 = vor.u32 %v12344_v38, %v11340_v12  ;;  %v11345_v34 = vor.u32 %v12343_v13, %v11342_v32  ;;  %v7346_v38 = vld [vmem:[%s14074_s12 + $0xc8] sm:$0xff] }
0x12cb   :  { %v11260_v44 = vld [vmem:[#allocation5 + $0x320] sm:$0xf] }
0x12cc   :  { %v11261_v46 = vor.u32 %v12324_v25, %v11260_v44  ;;  %7283 = vmatpush.bf16.msra.mxu3 %v11341_v7 }
0x12cd   :  { %v6775_v49 = vpop.f32.mrf.mxu2 }
0x12ce   :  { %v6792_v43 = vpack.c.bf16 %v6775_v49, %v6775_v49  ;;  %7272 = vmatpush.bf16.msrb.mxu2 %v11261_v46  ;;  %v12322_v49 = vld [vmem:[#allocation5 + $0x314] sm:$0xf0] }
0x12cf   :  { %v11253_v19 = vor.u32 %v12322_v49, %v11252_v30  ;;  %v7330_v30 = vld [vmem:[%s14074_s12 + $0x48] sm:$0xff]  ;;  %v7343_v49 = vld [vmem:[%s14074_s12 + $0xb0] sm:$0xff] }
0x12d0   :  { %v6733_v52 = vpop.f32.mrf.mxu3  ;;  %6995 = vmatmul.bf16.vlgmr.msrb.gmra.mxu0 %v6792_v43  ;;  %7021 = vmatmul.bf16.vlgmr.msra.gmra.mxu2 %v6792_v43 }
0x12d1   :  { %7293 = vmatpush.bf16.msrb.mxu0 %v11305_v45  ;;  %v11337_v45 = vor.u32 %v12341_v51, %v11334_v24  ;;  %v11254_v52 = vld [vmem:[#allocation5 + $0x318] sm:$0xf0]  ;;  %7284 = vmatpush.bf16.msra.mxu3 %v11333_v39  ;;  %v7345_v39 = vld [vmem:[%s14074_s12 + $0xc0] sm:$0xff]  ;;  %v7331_v24 = vld [vmem:[%s14074_s12 + $0x50] sm:$0xff] }
0x12d2   :  { %v11257_v43 = vor.u32 %v12321_v50, %v11254_v52  ;;  %7273 = vmatpush.bf16.msrb.mxu2 %v11253_v19  ;;  %v7332_v51 = vld [vmem:[%s14074_s12 + $0x58] sm:$0xff]  ;;  %v7342_v19 = vld [vmem:[%s14074_s12 + $0xa8] sm:$0xff]  ;;  %v7341_v52 = vld [vmem:[%s14074_s12 + $0xa0] sm:$0xff] }
0x12d3   :  { %v7328_v50 = vld [vmem:[%s14074_s12 + $0x38] sm:$0xff] }
0x12d5   :  { %v6777_v60 = vpop.f32.mrf.mxu2  ;;  %7294 = vmatpush.bf16.msrb.mxu0 %v11297_v40  ;;  %v12320_v40 = vld [vmem:[#allocation5 + $0x304] sm:$0xf0]  ;;  %7285 = vmatpush.bf16.msra.mxu3 %v11325_v55  ;;  %v7325_v55 = vld [vmem:[%s14074_s12 + $0x20] sm:$0xff] }
0x12d6   :  { %v11245_v58 = vor.u32 %v12320_v40, %v11244_v33  ;;  %v11318_v60 = vld [vmem:[#allocation5 + $0x398] sm:$0xf0]  ;;  %v7337_v40 = vld [vmem:[%s14074_s12 + $0x80] sm:$0xff] }
0x12d7   :  { %v7324_v33 = vld [vmem:[%s14074_s12 + $0x18] sm:$0xff] }
0x12d8   :  { %v6788_v61 = vpop.f32.mrf.mxu3  ;;  %7274 = vmatpush.bf16.msrb.mxu2 %v11245_v58 }
0x12d9   :  { %v6793_v3 = vpack.c.bf16 %v6788_v61, %v6788_v61  ;;  %7295 = vmatpush.bf16.msrb.mxu0 %v11289_v63  ;;  %v12319_v61 = vld [vmem:[#allocation5 + $0x304] sm:$0xf]  ;;  %v11321_v63 = vor.u32 %v12337_v28, %v11318_v60  ;;  %7286 = vmatpush.bf16.msra.mxu3 %v11317_v59 }
0x12db   :  { %7008 = vmatmul.bf16.vlgmr.msra.gmra.mxu1 %v6793_v3  ;;  %7034 = vmatmul.bf16.vlgmr.msrb.gmra.mxu3 %v6793_v3 }
0x12dc   :  { %7306 = vmatpush.bf16.msra.mxu1 %v11369_v62  ;;  %v11246_v62 = vld [vmem:[#allocation5 + $0x308] sm:$0xf0]  ;;  %7395 = vmatpush.msra.mxu2 %v7336_v20 }
0x12dd   :  { %7296 = vmatpush.bf16.msrb.mxu0 %v11281_v23  ;;  %v11249_v3 = vor.u32 %v12319_v61, %v11246_v62  ;;  %7287 = vmatpush.bf16.msra.mxu3 %v11309_v6  ;;  %v7349_v23 = vld [vmem:[%s14074_s12 + $0xe0] sm:$0xff] }
0x12de   :  { %7396 = vmatpush.msra.mxu2 %v7335_v0 }
0x12e0   :  { %v6790_v10 = vpop.f32.mrf.mxu3  ;;  %7307 = vmatpush.bf16.msra.mxu1 %v11361_v5  ;;  %11240 = vmatmul.msk.bf16.vlgmr.msra.gmra.mxu0 %vm647_vm6, %v11239_v9  ;;  %v12335_v5 = vld [vmem:[#allocation5 + $0x384] sm:$0xf] }
0x12e1   :  { %7297 = vmatpush.bf16.msrb.mxu0 %v11273_v21  ;;  %7397 = vmatpush.msra.mxu2 %v7334_v1  ;;  %v7347_v21 = vld [vmem:[%s14074_s12 + $0xd0] sm:$0xff] }
0x12e3   :  { %7398 = vmatpush.msra.mxu2 %v7333_v29 }
0x12e4   :  { %7308 = vmatpush.bf16.msra.mxu1 %v11353_v11  ;;  %v7352_v11 = vld [vmem:[%s14074_s12 + $0xf8] sm:$0xff] }
0x12e5   :  { %7298 = vmatpush.bf16.msrb.mxu0 %v11265_v14  ;;  %7415 = vmatpush.msrb.mxu3 %v7352_v11 }
0x12e6   :  { %7399 = vmatpush.msra.mxu2 %v7332_v51 }
0x12e7   :  { %7416 = vmatpush.msrb.mxu3 %v7351_v16 }
0x12e8   :  { %7309 = vmatpush.bf16.msra.mxu1 %v11345_v34  ;;  %7400 = vmatpush.msra.mxu2 %v7331_v24 }
0x12e9   :  { %7299 = vmatpush.bf16.msrb.mxu0 %v11257_v43  ;;  %7417 = vmatpush.msrb.mxu3 %v7350_v22  ;;  %v7327_v43 = vld [vmem:[%s14074_s12 + $0x30] sm:$0xff] }
0x12ea   :  { %7401 = vmatpush.msra.mxu2 %v7330_v30 }
0x12eb   :  { %11241 = vmatmul.msk.bf16.vlgmr.msrb.gmra.mxu1 %vm647_vm6, %v11239_v9  ;;  %v11313_v9 = vor.u32 %v12335_v5, %v11310_v8  ;;  %7418 = vmatpush.msrb.mxu3 %v7349_v23 }
0x12ec   :  { %7310 = vmatpush.bf16.msra.mxu1 %v11337_v45  ;;  %v7329_v45 = vld [vmem:[%s14074_s12 + $0x40] sm:$0xff] }
0x12ed   :  { %7300 = vmatpush.bf16.msrb.mxu0 %v11249_v3  ;;  %7419 = vmatpush.msrb.mxu3 %v7348_v41 }
0x12ee   :  { %7402 = vmatpush.msra.mxu2 %v7329_v45 }
0x12ef   :  { %7420 = vmatpush.msrb.mxu3 %v7347_v21 }
0x12f0   :  { %7311 = vmatpush.bf16.msra.mxu1 %v11329_v56  ;;  %7403 = vmatpush.msra.mxu2 %v7328_v50  ;;  %v7323_v56 = vld [vmem:[%s14074_s12 + $0x10] sm:$0xff] }
0x12f1   :  { %7436 = vmatpush.msra.mxu0 %v7336_v20  ;;  %7421 = vmatpush.msrb.mxu3 %v7346_v38 }
0x12f2   :  { %7404 = vmatpush.msra.mxu2 %v7327_v43 }
0x12f3   :  { %7437 = vmatpush.msra.mxu0 %v7335_v0  ;;  %7422 = vmatpush.msrb.mxu3 %v7345_v39 }
0x12f4   :  { %7312 = vmatpush.bf16.msra.mxu1 %v11321_v63  ;;  %7405 = vmatpush.msra.mxu2 %v7326_v53 }
0x12f5   :  { %7438 = vmatpush.msra.mxu0 %v7334_v1 }
0x12f6   :  { %7406 = vmatpush.msra.mxu2 %v7325_v55 }
0x12f7   :  { %7439 = vmatpush.msra.mxu0 %v7333_v29 }
0x12f8   :  { %7313 = vmatpush.bf16.msra.mxu1 %v11313_v9  ;;  %7407 = vmatpush.msra.mxu2 %v7324_v33 }
0x12f9   :  { %7440 = vmatpush.msra.mxu0 %v7332_v51  ;;  %v7364_v51 = vld [vmem:[%s14075_s27 + $0x58] sm:$0xff] }
0x12fa   :  { %7408 = vmatpush.msra.mxu2 %v7323_v56 }
0x12fb   :  { %7441 = vmatpush.msra.mxu0 %v7331_v24  ;;  %v7362_v24 = vld [vmem:[%s14075_s27 + $0x48] sm:$0xff] }
0x12fc   :  { %7456 = vmatpush.msrb.mxu1 %v7352_v11  ;;  %7409 = vmatpush.msra.mxu2 %v7322_v57 }
0x12fd   :  { %7442 = vmatpush.msra.mxu0 %v7330_v30  ;;  %v7360_v30 = vld [vmem:[%s14075_s27 + $0x38] sm:$0xff] }
0x12fe   :  { %7457 = vmatpush.msrb.mxu1 %v7351_v16  ;;  %7410 = vmatpush.msra.mxu2 %v7321_v42 }
0x12ff   :  { %7443 = vmatpush.msra.mxu0 %v7329_v45  ;;  %v7358_v45 = vld [vmem:[%s14075_s27 + $0x28] sm:$0xff] }
0x1300   :  { %7458 = vmatpush.msrb.mxu1 %v7350_v22 }
0x1301   :  { %7444 = vmatpush.msra.mxu0 %v7328_v50  ;;  %v7356_v50 = vld [vmem:[%s14075_s27 + $0x18] sm:$0xff] }
0x1302   :  { %7459 = vmatpush.msrb.mxu1 %v7349_v23 }
0x1303   :  { %7445 = vmatpush.msra.mxu0 %v7327_v43  ;;  %v7354_v43 = vld [vmem:[%s14075_s27 + $0x8] sm:$0xff] }
0x1304   :  { %7460 = vmatpush.msrb.mxu1 %v7348_v41 }
0x1305   :  { %7446 = vmatpush.msra.mxu0 %v7326_v53 }
0x1306   :  { %7461 = vmatpush.msrb.mxu1 %v7347_v21 }
0x1307   :  { %7447 = vmatpush.msra.mxu0 %v7325_v55 }
0x1308   :  { %7462 = vmatpush.msrb.mxu1 %v7346_v38 }
0x1309   :  { %7448 = vmatpush.msra.mxu0 %v7324_v33 }
0x130a   :  { %7463 = vmatpush.msrb.mxu1 %v7345_v39  ;;  %v7361_v39 = vld [vmem:[%s14075_s27 + $0x40] sm:$0xff] }
0x130b   :  { %7449 = vmatpush.msra.mxu0 %v7323_v56 }
0x130d   :  { %7450 = vmatpush.msra.mxu0 %v7322_v57 }
0x130f   :  { %7451 = vmatpush.msra.mxu0 %v7321_v42 }
0x134d   :  { %v6996_v10 = vpop.f32.mrf.mxu0 }
0x1353   :  { %v7022_v27 = vpop.f32.mrf.mxu2 }
0x1355   :  { %v6998_v18 = vpop.f32.mrf.mxu0 }
0x1358   :  { %v7009_v35 = vpop.f32.mrf.mxu1 }
0x1359   :  { %v7010_v12 = vadd.f32 %v7009_v35, %v6996_v10 }
0x135b   :  { %v13868_v13 = vadd.f32 %v7010_v12, %v13851_v37  ;;  %v7024_v7 = vpop.f32.mrf.mxu2 }
0x135d   :  { %v7055_v25 = vpop.f32.mrf.mxu0 }
0x135e   :  { %v7035_v32 = vpop.f32.mrf.mxu3  ;;  %v7072_v46 = vpack.c.bf16 %v7055_v25, %v7055_v25 }
0x135f   :  { %v7036_v44 = vadd.f32 %v7035_v32, %v7022_v27 }
0x1360   :  { %v7011_v34 = vpop.f32.mrf.mxu1  ;;  %7275 = vmatmul.bf16.vlgmr.msrb.gmra.mxu2 %v7072_v46  ;;  %7301 = vmatmul.bf16.vlgmr.msrb.gmra.mxu0 %v7072_v46 }
0x1361   :  { %v13871_v47 = vadd.f32 %v7036_v44, %v13849_v17  ;;  %v7344_v17 = vld [vmem:[%s14074_s12 + $0xb8] sm:$0xff] }
0x1362   :  { %7423 = vmatpush.msrb.mxu3 %v7344_v17  ;;  %7464 = vmatpush.msrb.mxu1 %v7344_v17  ;;  %v7359_v17 = vld [vmem:[%s14075_s27 + $0x30] sm:$0xff] }
0x1364   :  { %7424 = vmatpush.msrb.mxu3 %v7343_v49  ;;  %7465 = vmatpush.msrb.mxu1 %v7343_v49  ;;  %v7357_v49 = vld [vmem:[%s14075_s27 + $0x20] sm:$0xff] }
0x1365   :  { %v7057_v31 = vpop.f32.mrf.mxu0 }
0x1366   :  { %v7037_v37 = vpop.f32.mrf.mxu3  ;;  %7425 = vmatpush.msrb.mxu3 %v7342_v19  ;;  %7466 = vmatpush.msrb.mxu1 %v7342_v19  ;;  %v7368_v31 = vld [vmem:[%s14075_s27 + $0x78] sm:$0xff]  ;;  %v7355_v19 = vld [vmem:[%s14075_s27 + $0x10] sm:$0xff] }
0x1367   :  { %v7367_v37 = vld [vmem:[%s14075_s27 + $0x70] sm:$0xff] }
0x1368   :  { %v7068_v14 = vpop.f32.mrf.mxu1  ;;  %7426 = vmatpush.msrb.mxu3 %v7341_v52  ;;  %7467 = vmatpush.msrb.mxu1 %v7341_v52  ;;  %v7353_v52 = vld [vmem:[%s14075_s27] sm:$0xff] }
0x1369   :  { %v7073_v15 = vpack.c.bf16 %v7068_v14, %v7068_v14  ;;  %v7365_v14 = vld [vmem:[%s14075_s27 + $0x60] sm:$0xff]  ;;  %7501 = vmatpush.msrb.mxu2 %v7367_v37  ;;  %7544 = vmatpush.msrb.mxu0 %v7367_v37  ;;  %v12370_v37 = vld [vmem:[%s14076_s15 + $0x98] sm:$0xff] }
0x136a   :  { %7427 = vmatpush.msrb.mxu3 %v7340_v48  ;;  %7468 = vmatpush.msrb.mxu1 %v7340_v48 }
0x136b   :  { %7288 = vmatmul.bf16.vlgmr.msra.gmra.mxu3 %v7073_v15  ;;  %7314 = vmatmul.bf16.vlgmr.msra.gmra.mxu1 %v7073_v15  ;;  %v7366_v15 = vld [vmem:[%s14075_s27 + $0x68] sm:$0xff] }
0x136c   :  { %7428 = vmatpush.msrb.mxu3 %v7339_v54  ;;  %7469 = vmatpush.msrb.mxu1 %v7339_v54 }
0x136d   :  { %7502 = vmatpush.msrb.mxu2 %v7365_v14  ;;  %7545 = vmatpush.msrb.mxu0 %v7365_v14  ;;  %v12369_v14 = vld [vmem:[%s14076_s15 + $0x90] sm:$0xff] }
0x136e   :  { %7429 = vmatpush.msrb.mxu3 %v7338_v26  ;;  %7470 = vmatpush.msrb.mxu1 %v7338_v26 }
0x1370   :  { %v7070_v36 = vpop.f32.mrf.mxu1  ;;  %7430 = vmatpush.msrb.mxu3 %v7337_v40  ;;  %7471 = vmatpush.msrb.mxu1 %v7337_v40 }
0x1371   :  { %v7363_v36 = vld [vmem:[%s14075_s27 + $0x50] sm:$0xff] }
0x1372   :  { %7521 = vmatpush.msra.mxu3 %v7368_v31  ;;  %7564 = vmatpush.msra.mxu1 %v7368_v31  ;;  %v12378_v31 = vld [vmem:[%s14076_s15 + $0xd8] sm:$0xff] }
0x1373   :  { %7503 = vmatpush.msrb.mxu2 %v7363_v36  ;;  %7546 = vmatpush.msrb.mxu0 %v7363_v36  ;;  %v12368_v36 = vld [vmem:[%s14076_s15 + $0x88] sm:$0xff] }
0x1374   :  { %7522 = vmatpush.msra.mxu3 %v7366_v15  ;;  %7565 = vmatpush.msra.mxu1 %v7366_v15  ;;  %v12377_v15 = vld [vmem:[%s14076_s15 + $0xd0] sm:$0xff] }
0x1375   :  { %7504 = vmatpush.msrb.mxu2 %v7361_v39  ;;  %7547 = vmatpush.msrb.mxu0 %v7361_v39  ;;  %v12367_v39 = vld [vmem:[%s14076_s15 + $0x80] sm:$0xff] }
0x1376   :  { %7523 = vmatpush.msra.mxu3 %v7364_v51  ;;  %7566 = vmatpush.msra.mxu1 %v7364_v51  ;;  %v12376_v51 = vld [vmem:[%s14076_s15 + $0xc8] sm:$0xff] }
0x1377   :  { %7505 = vmatpush.msrb.mxu2 %v7359_v17  ;;  %7548 = vmatpush.msrb.mxu0 %v7359_v17  ;;  %v12358_v17 = vld [vmem:[%s14076_s15 + $0x38] sm:$0xff] }
0x1378   :  { %7524 = vmatpush.msra.mxu3 %v7362_v24  ;;  %7567 = vmatpush.msra.mxu1 %v7362_v24  ;;  %v12375_v24 = vld [vmem:[%s14076_s15 + $0xc0] sm:$0xff] }
0x1379   :  { %7506 = vmatpush.msrb.mxu2 %v7357_v49  ;;  %7549 = vmatpush.msrb.mxu0 %v7357_v49  ;;  %v12357_v49 = vld [vmem:[%s14076_s15 + $0x30] sm:$0xff] }
0x137a   :  { %7525 = vmatpush.msra.mxu3 %v7360_v30  ;;  %7568 = vmatpush.msra.mxu1 %v7360_v30  ;;  %v12366_v30 = vld [vmem:[%s14076_s15 + $0x78] sm:$0xff] }
0x137b   :  { %7507 = vmatpush.msrb.mxu2 %v7355_v19  ;;  %7550 = vmatpush.msrb.mxu0 %v7355_v19  ;;  %v12356_v19 = vld [vmem:[%s14076_s15 + $0x28] sm:$0xff] }
0x137c   :  { %7526 = vmatpush.msra.mxu3 %v7358_v45  ;;  %7569 = vmatpush.msra.mxu1 %v7358_v45  ;;  %v12365_v45 = vld [vmem:[%s14076_s15 + $0x70] sm:$0xff] }
0x137d   :  { %7508 = vmatpush.msrb.mxu2 %v7353_v52  ;;  %7551 = vmatpush.msrb.mxu0 %v7353_v52  ;;  %v12355_v52 = vld [vmem:[%s14076_s15 + $0x20] sm:$0xff] }
0x137e   :  { %7527 = vmatpush.msra.mxu3 %v7356_v50  ;;  %7570 = vmatpush.msra.mxu1 %v7356_v50  ;;  %v12364_v50 = vld [vmem:[%s14076_s15 + $0x68] sm:$0xff] }
0x1380   :  { %7528 = vmatpush.msra.mxu3 %v7354_v43  ;;  %7571 = vmatpush.msra.mxu1 %v7354_v43  ;;  %v12363_v43 = vld [vmem:[%s14076_s15 + $0x60] sm:$0xff] }
0x13dd   :  { %v7302_v28 = vpop.f32.mrf.mxu0 }
0x13e3   :  { %v7276_v58 = vpop.f32.mrf.mxu2 }
0x13e5   :  { %v7304_v59 = vpop.f32.mrf.mxu0 }
0x13e8   :  { %v7315_v60 = vpop.f32.mrf.mxu1 }
0x13e9   :  { %v7316_v61 = vadd.f32 %v7315_v60, %v7302_v28 }
0x13eb   :  { %v13895_v62 = vadd.f32 %v7316_v61, %v13871_v47  ;;  %v7278_v2 = vpop.f32.mrf.mxu2 }
0x13ed   :  { %v7375_v63 = vrot.slane %v13895_v62, 4  ;;  %v7382_v3 = vmul.f32 %v13895_v62, %v13895_v62 }
0x13ee   :  { %v7289_v4 = vpop.f32.mrf.mxu3 }
0x13ef   :  { %v7376_v5 = vadd.f32 %v7375_v63, %v13895_v62  ;;  %v7389_v6 = vrot.slane %v7382_v3, 4  ;;  %v7290_v8 = vadd.f32 %v7289_v4, %v7276_v58 }
0x13f0   :  { %v7317_v9 = vpop.f32.mrf.mxu1 }
0x13f1   :  { %v7377_v10 = vrot.slane %v7376_v5, 2  ;;  %v7390_v11 = vadd.f32 %v7389_v6, %v7382_v3  ;;  %v13902_v16 = vadd.f32 %v7290_v8, %v13868_v13 }
0x13f3   :  { %v7378_v20 = vadd.f32 %v7377_v10, %v7376_v5  ;;  %v7391_v0 = vrot.slane %v7390_v11, 2  ;;  %v7369_v22 = vrot.slane %v13902_v16, 4  ;;  %v7381_v1 = vmul.f32 %v13902_v16, %v13902_v16 }
0x13f5   :  { %v7370_v23 = vadd.f32 %v7369_v22, %v13902_v16  ;;  %v7383_v27 = vrot.slane %v7381_v1, 4  ;;  %v7379_v29 = vrot.slane %v7378_v20, 1  ;;  %v7392_v41 = vadd.f32 %v7391_v0, %v7390_v11 }
0x13f6   :  { %v7291_v18 = vpop.f32.mrf.mxu3 }
0x13f7   :  { %v7371_v35 = vrot.slane %v7370_v23, 2  ;;  %v7384_v21 = vadd.f32 %v7383_v27, %v7381_v1  ;;  %v7380_v12 = vadd.f32 %v7379_v29, %v7378_v20  ;;  %v7393_v38 = vrot.slane %v7392_v41, 1 }
0x13f9   :  { %v7372_v13 = vadd.f32 %v7371_v35, %v7370_v23  ;;  %v7385_v7 = vrot.slane %v7384_v21, 2  ;;  %7431 = vmatmul.f32.vlgmr.msrb.gmra.mxu3 %v7380_v12  ;;  %v7394_v32 = vadd.f32 %v7393_v38, %v7392_v41  ;;  %v12374_v12 = vld [vmem:[%s14076_s15 + $0xb8] sm:$0xff] }
0x13fb   :  { %7472 = vmatmul.f32.vlgmr.msrb.gmra.mxu1 %v7394_v32  ;;  %v7373_v44 = vrot.slane %v7372_v13, 1  ;;  %v7386_v25 = vadd.f32 %v7385_v7, %v7384_v21  ;;  %v11376_v7 = vld [vmem:[%s14077_s18 + $0x1] sm:$0x1]  ;;  %v12373_v32 = vld [vmem:[%s14076_s15 + $0xb0] sm:$0xff] }
0x13fd   :  { %v7374_v34 = vadd.f32 %v7373_v44, %v7372_v13  ;;  %v7387_v46 = vrot.slane %v7386_v25, 1  ;;  %v7592_v13 = vld [vmem:[%s14077_s18] sm:$0x1]  ;;  %v12381_v44 = vld [vmem:[%s14076_s15 + $0xf0] sm:$0xff] }
0x13ff   :  { %7411 = vmatmul.f32.vlgmr.msra.gmra.mxu2 %v7374_v34  ;;  %v7388_v47 = vadd.f32 %v7387_v46, %v7386_v25  ;;  %v12372_v25 = vld [vmem:[%s14076_s15 + $0xa8] sm:$0xff]  ;;  %v12371_v46 = vld [vmem:[%s14076_s15 + $0xa0] sm:$0xff] }
0x1400   :  { %v12380_v34 = vld [vmem:[%s14076_s15 + $0xe8] sm:$0xff] }
0x1401   :  { %7452 = vmatmul.f32.vlgmr.msra.gmra.mxu0 %v7388_v47  ;;  %v12379_v47 = vld [vmem:[%s14076_s15 + $0xe0] sm:$0xff] }
0x1478   :  { %v7473_v53 = vpop.f32.mrf.mxu1 }
0x147c   :  { %v7432_v54 = vpop.f32.mrf.mxu3 }
0x147e   :  { %v7453_v48 = vpop.f32.mrf.mxu0 }
0x147f   :  { %v7474_v26 = vadd.f32 %v7473_v53, %v7453_v48  ;;  %v12354_v48 = vld [vmem:[%s14076_s15 + $0x18] sm:$0xff] }
0x1480   :  { %v12362_v53 = vld [vmem:[%s14076_s15 + $0x58] sm:$0xff] }
0x1481   :  { %v7476_v56 = vmul.f32 0.03125, %v7474_v26  ;;  %v12352_v26 = vld [vmem:[%s14076_s15 + $0x8] sm:$0xff] }
0x1482   :  { %v7412_v55 = vpop.f32.mrf.mxu2 }
0x1483   :  { %v7433_v33 = vadd.f32 %v7432_v54, %v7412_v55  ;;  %v12353_v54 = vld [vmem:[%s14076_s15 + $0x10] sm:$0xff] }
0x1484   :  { %v12361_v55 = vld [vmem:[%s14076_s15 + $0x50] sm:$0xff] }
0x1485   :  { %v7435_v40 = vmul.f32 0.03125, %v7433_v33  ;;  %v12360_v33 = vld [vmem:[%s14076_s15 + $0x48] sm:$0xff] }
0x1487   :  { %v7477_v57 = vmul.f32 %v7435_v40, %v7435_v40  ;;  %11370 = vmatmul.msk.f32.vlgmr.msrb.gmra.mxu2 %vm299_vm1, %v7435_v40  ;;  %11371 = vmatmul.msk.f32.vlgmr.msra.gmra.mxu3 %vm299_vm1, %v7435_v40  ;;  %v12351_v40 = vld [vmem:[%s14076_s15] sm:$0xff] }
0x1489   :  { %v7478_v42 = vsub.f32 %v7476_v56, %v7477_v57  ;;  %v12359_v56 = vld [vmem:[%s14076_s15 + $0x40] sm:$0xff] }
0x148b   :  { %v7479_v28 = vadd.f32 1e-05, %v7478_v42 }
0x148d   :  { %12472 = vrsqrt.f32 %v7479_v28  ;;  %vm7486_vm2 = vweird.f32 %v7479_v28 }
0x1493   :  { %v12473_v58 = vpop.eup %12472 }
0x1494   :  { %v7481_v59 = vmul.f32 %v12473_v58, %v7479_v28  ;;  %vm7487_vm6 = vweird.f32 %v12473_v58 }
0x1495   :  { %vm7488_vm3 = vmor %vm7486_vm2, %vm7487_vm6 }
0x1496   :  { %v7482_v60 = vmul.f32 %v12473_v58, %v7481_v59  ;;  %v12390_v59 = vld [vmem:[%s14076_s15 + $0x138] sm:$0xff] }
0x1498   :  { %v7483_v61 = vmul.f32 0.5, %v7482_v60  ;;  %v12398_v60 = vld [vmem:[%s14076_s15 + $0x178] sm:$0xff] }
0x149a   :  { %v7484_v63 = vsub.f32 1.5, %v7483_v61 }
0x149c   :  { %v7485_v3 = vmul.f32 %v12473_v58, %v7484_v63 }
0x149e   :  { %v7489_v2 = vsel %vm7488_vm3, %v12473_v58, %v7485_v3  ;;  %v12389_v3 = vld [vmem:[%s14076_s15 + $0x130] sm:$0xff] }
0x149f   :  { %11372 = vmatmul.msk.f32.vlgmr.msrb.gmra.mxu0 %vm299_vm1, %v7489_v2  ;;  %11373 = vmatmul.msk.f32.vlgmr.msra.gmra.mxu1 %vm299_vm1, %v7489_v2  ;;  %v12397_v2 = vld [vmem:[%s14076_s15 + $0x170] sm:$0xff] }
0x150a   :  { %v7510_v4 = vpop.f32.mrf.mxu2  ;;  %v7530_v5 = vpop.f32.mrf.mxu3 }
0x150b   :  { %v7576_v6 = vperm.slane %v7510_v4, 0  ;;  %v7577_v8 = vperm.slane %v7530_v5, 0 }
0x150d   :  { %v7578_v11 = vsub.f32 %v13902_v16, %v7576_v6  ;;  %v7579_v20 = vsub.f32 %v13895_v62, %v7577_v8  ;;  %v12382_v16 = vld [vmem:[%s14076_s15 + $0xf8] sm:$0xff] }
0x151c   :  { %v7553_v9 = vpop.f32.mrf.mxu0  ;;  %v7573_v10 = vpop.f32.mrf.mxu1 }
0x151d   :  { %v7580_v0 = vperm.slane %v7553_v9, 0  ;;  %v7581_v22 = vperm.slane %v7573_v10, 0  ;;  %v12388_v9 = vld [vmem:[%s14076_s15 + $0x128] sm:$0xff] }
0x151e   :  { %v12396_v10 = vld [vmem:[%s14076_s15 + $0x168] sm:$0xff] }
0x151f   :  { %v7582_v1 = vmul.f32 %v7580_v0, %v7578_v11  ;;  %v7583_v23 = vmul.f32 %v7581_v22, %v7579_v20  ;;  %v11539_v0 = vld [vmem:[%s14077_s18 + $0x2] sm:$0x1]  ;;  %v11638_v22 = vld [vmem:[%s14077_s18 + $0x3] sm:$0x1] }
0x1521   :  { %vm7584_vm4 = vcmp.gt.f32.partialorder %v7582_v1, 0.0  ;;  %v7586_v27 = vmul.f32 0.2, %v7582_v1  ;;  %vm7585_vm1 = vcmp.gt.f32.partialorder %v7583_v23, 0.0  ;;  %v7587_v29 = vmul.f32 0.2, %v7583_v23 }
0x1523   :  { %v7588_v41 = vsel %vm7584_vm4, %v7582_v1, %v7586_v27  ;;  %v7589_v18 = vsel %vm7585_vm1, %v7583_v23, %v7587_v29  ;;  %v12387_v1 = vld [vmem:[%s14076_s15 + $0x120] sm:$0xff]  ;;  %v12386_v27 = vld [vmem:[%s14076_s15 + $0x118] sm:$0xff] }
0x1524   :  { %v7590_v35 = vpack.c.bf16 %v7588_v41, %v7588_v41  ;;  %v7591_v21 = vpack.c.bf16 %v7589_v18, %v7589_v18  ;;  %v12395_v23 = vld [vmem:[%s14076_s15 + $0x160] sm:$0xff]  ;;  %v12394_v29 = vld [vmem:[%s14076_s15 + $0x158] sm:$0xff] }
0x1525   :  { %v12406_v41 = vld [vmem:[%s14076_s15 + $0x1b8] sm:$0xff] }
0x1526   :  { %v13933_v62 = vsel %vm2037_vm12, %v7590_v35, 0  ;;  %v13936_v38 = vsel %vm2037_vm12, %v7591_v21, 0  ;;  %v12414_v18 = vld [vmem:[%s14076_s15 + $0x1f8] sm:$0xff]  ;;  %v12385_v35 = vld [vmem:[%s14076_s15 + $0x110] sm:$0xff] }
0x1527   :  { %7609 = vmatpush.bf16.msra.mxu2 %v13933_v62  ;;  %7622 = vmatpush.bf16.msrb.mxu3 %v13936_v38  ;;  %v12393_v21 = vld [vmem:[%s14076_s15 + $0x150] sm:$0xff] }
0x1528   :  { %7674 = vmatpush.bf16.msra.mxu0 %v13933_v62  ;;  %7687 = vmatpush.bf16.msrb.mxu1 %v13936_v38 }
0x152a   :  { %11374 = vmatmul.msk.bf16.vlgmr.msra.gmra.mxu2 %vm2033_vm13, %v7592_v13  ;;  %11375 = vmatmul.msk.bf16.vlgmr.msrb.gmra.mxu3 %vm2033_vm13, %v7592_v13  ;;  %v12404_v13 = vld [vmem:[%s14076_s15 + $0x1a8] sm:$0xff] }
0x152b   :  { %7824 = vmatpush.bf16.msrb.mxu2 %v12374_v12  ;;  %7837 = vmatpush.bf16.msra.mxu3 %v12382_v16  ;;  %v12405_v12 = vld [vmem:[%s14076_s15 + $0x1b0] sm:$0xff] }
0x152c   :  { %11377 = vmatmul.msk.bf16.vlgmr.msra.gmra.mxu0 %vm2033_vm13, %v11376_v7  ;;  %11378 = vmatmul.msk.bf16.vlgmr.msrb.gmra.mxu1 %vm2033_vm13, %v11376_v7  ;;  %v12413_v16 = vld [vmem:[%s14076_s15 + $0x1f0] sm:$0xff]  ;;  %v12412_v7 = vld [vmem:[%s14076_s15 + $0x1e8] sm:$0xff] }
0x152d   :  { %7946 = vmatpush.bf16.msrb.mxu0 %v12358_v17  ;;  %7959 = vmatpush.bf16.msra.mxu1 %v12366_v30 }
0x152f   :  { %7825 = vmatpush.bf16.msrb.mxu2 %v12373_v32  ;;  %7838 = vmatpush.bf16.msra.mxu3 %v12381_v44  ;;  %v12383_v32 = vld [vmem:[%s14076_s15 + $0x100] sm:$0xff] }
0x1530   :  { %v12391_v44 = vld [vmem:[%s14076_s15 + $0x140] sm:$0xff] }
0x1531   :  { %7947 = vmatpush.bf16.msrb.mxu0 %v12357_v49  ;;  %7960 = vmatpush.bf16.msra.mxu1 %v12365_v45 }
0x1533   :  { %7826 = vmatpush.bf16.msrb.mxu2 %v12372_v25  ;;  %7839 = vmatpush.bf16.msra.mxu3 %v12380_v34  ;;  %v12403_v25 = vld [vmem:[%s14076_s15 + $0x1a0] sm:$0xff] }
0x1534   :  { %v12411_v34 = vld [vmem:[%s14076_s15 + $0x1e0] sm:$0xff] }
0x1535   :  { %7948 = vmatpush.bf16.msrb.mxu0 %v12356_v19  ;;  %7961 = vmatpush.bf16.msra.mxu1 %v12364_v50 }
0x1537   :  { %7827 = vmatpush.bf16.msrb.mxu2 %v12371_v46  ;;  %7840 = vmatpush.bf16.msra.mxu3 %v12379_v47  ;;  %v12402_v46 = vld [vmem:[%s14076_s15 + $0x198] sm:$0xff] }
0x1538   :  { %v12410_v47 = vld [vmem:[%s14076_s15 + $0x1d8] sm:$0xff] }
0x1539   :  { %7949 = vmatpush.bf16.msrb.mxu0 %v12355_v52  ;;  %7962 = vmatpush.bf16.msra.mxu1 %v12363_v43 }
0x153b   :  { %7828 = vmatpush.bf16.msrb.mxu2 %v12370_v37  ;;  %7841 = vmatpush.bf16.msra.mxu3 %v12378_v31  ;;  %v12401_v37 = vld [vmem:[%s14076_s15 + $0x190] sm:$0xff] }
0x153c   :  { %v12409_v31 = vld [vmem:[%s14076_s15 + $0x1d0] sm:$0xff] }
0x153d   :  { %7950 = vmatpush.bf16.msrb.mxu0 %v12354_v48  ;;  %7963 = vmatpush.bf16.msra.mxu1 %v12362_v53 }
0x153f   :  { %7829 = vmatpush.bf16.msrb.mxu2 %v12369_v14  ;;  %7842 = vmatpush.bf16.msra.mxu3 %v12377_v15  ;;  %v12400_v14 = vld [vmem:[%s14076_s15 + $0x188] sm:$0xff] }
0x1540   :  { %v12408_v15 = vld [vmem:[%s14076_s15 + $0x1c8] sm:$0xff] }
0x1541   :  { %7951 = vmatpush.bf16.msrb.mxu0 %v12353_v54  ;;  %7964 = vmatpush.bf16.msra.mxu1 %v12361_v55 }
0x1543   :  { %7830 = vmatpush.bf16.msrb.mxu2 %v12368_v36  ;;  %7843 = vmatpush.bf16.msra.mxu3 %v12376_v51 }
0x1545   :  { %7952 = vmatpush.bf16.msrb.mxu0 %v12352_v26  ;;  %7965 = vmatpush.bf16.msra.mxu1 %v12360_v33 }
0x1547   :  { %7831 = vmatpush.bf16.msrb.mxu2 %v12367_v39  ;;  %7844 = vmatpush.bf16.msra.mxu3 %v12375_v24  ;;  %v12399_v39 = vld [vmem:[%s14076_s15 + $0x180] sm:$0xff] }
0x1548   :  { %v12407_v24 = vld [vmem:[%s14076_s15 + $0x1c0] sm:$0xff] }
0x1549   :  { %7953 = vmatpush.bf16.msrb.mxu0 %v12351_v40  ;;  %7966 = vmatpush.bf16.msra.mxu1 %v12359_v56 }
0x154b   :  { %7984 = vmatpush.bf16.msra.mxu2 %v13933_v62  ;;  %7997 = vmatpush.bf16.msrb.mxu3 %v13936_v38 }
0x154d   :  { %8134 = vmatpush.bf16.msra.mxu0 %v12390_v59  ;;  %8147 = vmatpush.bf16.msrb.mxu1 %v12398_v60 }
0x1551   :  { %8135 = vmatpush.bf16.msra.mxu0 %v12389_v3  ;;  %8148 = vmatpush.bf16.msrb.mxu1 %v12397_v2 }
0x1555   :  { %8136 = vmatpush.bf16.msra.mxu0 %v12388_v9  ;;  %8149 = vmatpush.bf16.msrb.mxu1 %v12396_v10 }
0x1559   :  { %8137 = vmatpush.bf16.msra.mxu0 %v12387_v1  ;;  %8150 = vmatpush.bf16.msrb.mxu1 %v12395_v23 }
0x155d   :  { %8138 = vmatpush.bf16.msra.mxu0 %v12386_v27  ;;  %8151 = vmatpush.bf16.msrb.mxu1 %v12394_v29 }
0x1561   :  { %8139 = vmatpush.bf16.msra.mxu0 %v12385_v35  ;;  %8152 = vmatpush.bf16.msrb.mxu1 %v12393_v21 }
0x15a9   :  { %v7676_v57 = vpop.f32.mrf.mxu0  ;;  %v7689_v42 = vpop.f32.mrf.mxu1 }
0x15aa   :  { %v7693_v28 = vpack.c.bf16 %v7676_v57, %v7676_v57  ;;  %v7694_v58 = vpack.c.bf16 %v7689_v42, %v7689_v42 }
0x15ac   :  { %7832 = vmatmul.bf16.vlgmr.msrb.gmra.mxu2 %v7693_v28  ;;  %7845 = vmatmul.bf16.vlgmr.msra.gmra.mxu3 %v7694_v58 }
0x15ad   :  { %8173 = vmatpush.bf16.msrb.mxu2 %v13933_v62  ;;  %8186 = vmatpush.bf16.msra.mxu3 %v13936_v38  ;;  %v7611_v61 = vpop.f32.mrf.mxu2  ;;  %v7624_v63 = vpop.f32.mrf.mxu3  ;;  %v12384_v62 = vld [vmem:[%s14076_s15 + $0x108] sm:$0xff] }
0x15ae   :  { %v7628_v4 = vpack.c.bf16 %v7611_v61, %v7611_v61  ;;  %v7629_v5 = vpack.c.bf16 %v7624_v63, %v7624_v63  ;;  %v12392_v38 = vld [vmem:[%s14076_s15 + $0x148] sm:$0xff]  ;;  %8140 = vmatpush.bf16.msra.mxu0 %v12384_v62 }
0x15af   :  { %8153 = vmatpush.bf16.msrb.mxu1 %v12392_v38 }
0x15b0   :  { %7954 = vmatmul.bf16.vlgmr.msrb.gmra.mxu0 %v7628_v4  ;;  %7967 = vmatmul.bf16.vlgmr.msra.gmra.mxu1 %v7629_v5 }
0x15b1   :  { %v7678_v6 = vpop.f32.mrf.mxu0  ;;  %v7691_v8 = vpop.f32.mrf.mxu1 }
0x15b2   :  { %8141 = vmatpush.bf16.msra.mxu0 %v12383_v32 }
0x15b3   :  { %8154 = vmatpush.bf16.msrb.mxu1 %v12391_v44 }
0x15b5   :  { %v7613_v11 = vpop.f32.mrf.mxu2  ;;  %v7626_v20 = vpop.f32.mrf.mxu3 }
0x15bc   :  { %11540 = vmatmul.msk.bf16.vlgmr.msra.gmra.mxu2 %vm2033_vm13, %v11539_v0  ;;  %11541 = vmatmul.msk.bf16.vlgmr.msrb.gmra.mxu3 %vm2033_vm13, %v11539_v0 }
0x15bd   :  { %8323 = vmatpush.bf16.msra.mxu2 %v12406_v41  ;;  %8336 = vmatpush.bf16.msrb.mxu3 %v12414_v18 }
0x15c1   :  { %8324 = vmatpush.bf16.msra.mxu2 %v12405_v12  ;;  %8337 = vmatpush.bf16.msrb.mxu3 %v12413_v16 }
0x15c5   :  { %8325 = vmatpush.bf16.msra.mxu2 %v12404_v13  ;;  %8338 = vmatpush.bf16.msrb.mxu3 %v12412_v7 }
0x15c9   :  { %8326 = vmatpush.bf16.msra.mxu2 %v12403_v25  ;;  %8339 = vmatpush.bf16.msrb.mxu3 %v12411_v34 }
0x15cc   :  { %11639 = vmatmul.msk.bf16.vlgmr.msrb.gmra.mxu2 %vm2033_vm13, %v11638_v22  ;;  %11640 = vmatmul.msk.bf16.vlgmr.msra.gmra.mxu3 %vm2033_vm13, %v11638_v22 }
0x15cd   :  { %8327 = vmatpush.bf16.msra.mxu2 %v12402_v46  ;;  %8340 = vmatpush.bf16.msrb.mxu3 %v12410_v47 }
0x15d1   :  { %8328 = vmatpush.bf16.msra.mxu2 %v12401_v37  ;;  %8341 = vmatpush.bf16.msrb.mxu3 %v12409_v31 }
0x15d5   :  { %8329 = vmatpush.bf16.msra.mxu2 %v12400_v14  ;;  %8342 = vmatpush.bf16.msrb.mxu3 %v12408_v15 }
0x15d9   :  { %8330 = vmatpush.bf16.msra.mxu2 %v12399_v39  ;;  %8343 = vmatpush.bf16.msrb.mxu3 %v12407_v24 }
0x162d   :  { %v7955_v36 = vpop.f32.mrf.mxu0  ;;  %v7968_v51 = vpop.f32.mrf.mxu1 }
0x162f   :  { %v7833_v17 = vpop.f32.mrf.mxu2  ;;  %v7846_v30 = vpop.f32.mrf.mxu3 }
0x1630   :  { %v7847_v49 = vadd.f32 %v7846_v30, %v7833_v17 }
0x1632   :  { %v7956_v45 = vadd.f32 %v7955_v36, %v7847_v49 }
0x1634   :  { %v7969_v19 = vadd.f32 %v7968_v51, %v7956_v45 }
0x1635   :  { %v7957_v50 = vpop.f32.mrf.mxu0  ;;  %v7970_v52 = vpop.f32.mrf.mxu1 }
0x1637   :  { %v7835_v43 = vpop.f32.mrf.mxu2  ;;  %v7848_v48 = vpop.f32.mrf.mxu3 }
0x163f   :  { %v7986_v53 = vpop.f32.mrf.mxu2  ;;  %v7999_v54 = vpop.f32.mrf.mxu3 }
0x1640   :  { %v8003_v55 = vpack.c.bf16 %v7986_v53, %v7986_v53  ;;  %v8004_v26 = vpack.c.bf16 %v7999_v54, %v7999_v54 }
0x1642   :  { %8142 = vmatmul.bf16.vlgmr.msra.gmra.mxu0 %v8003_v55  ;;  %8155 = vmatmul.bf16.vlgmr.msrb.gmra.mxu1 %v8004_v26 }
0x1647   :  { %v7988_v33 = vpop.f32.mrf.mxu2  ;;  %v8001_v40 = vpop.f32.mrf.mxu3 }
0x164f   :  { %v8175_v56 = vpop.f32.mrf.mxu2  ;;  %v8188_v57 = vpop.f32.mrf.mxu3 }
0x1650   :  { %v8192_v42 = vpack.c.bf16 %v8175_v56, %v8175_v56  ;;  %v8193_v28 = vpack.c.bf16 %v8188_v57, %v8188_v57 }
0x1652   :  { %8331 = vmatmul.bf16.vlgmr.msra.gmra.mxu2 %v8192_v42  ;;  %8344 = vmatmul.bf16.vlgmr.msrb.gmra.mxu3 %v8193_v28 }
0x1657   :  { %v8177_v58 = vpop.f32.mrf.mxu2  ;;  %v8190_v59 = vpop.f32.mrf.mxu3 }
0x1658   :  { %12545 = shalt.err (!%p12542_p0)
}
0x1659   :  { %8368 = dma.vmem_to_hbm [thread:$0]  %s8364_s23, 32, %s8366_s26, [#allocation4]   ;;  %v12457_v9 = vld [vmem:[%s12781_s20] ss:$0 sm:$0xff] }
0x165a   :  { %s12617_s4 = smov [#allocation8]   ;;  %s8376_s7 = sshll.u32 %s12796_s24, 4  ;;  %s8377_s7 = int_to_ptr.hbm [resolvable:$true] %s8376_s7 }
0x165b   :  { %s8374_s2 = sshll.u32 %s12617_s4, 4  ;;  %s12558_s10 = sshra.s32 %s8377_s7, 4  ;;  %s8375_s2 = int_to_ptr.vmem [resolvable:$true] %s8374_s2  ;;  %s12559_s10 = int_to_ptr.hbm [resolvable:$true] %s12558_s10 }
0x165c   :  { %s12560_s11 = scalar_lea.hbm %s12559_s10, 2  ;;  %s12562_s16 = scalar_lea.hbm %s12796_s24, 2 }
0x165d   :  { %p12561_p1 = scmp.ne.s32.totalorder %s12559_s10, %s12560_s11  ;;  %p12563_p2 = scmp.lt.s32.totalorder %s12559_s10, %s12796_s24 }
0x165e   :  { %p12564_p3 = scmp.lt.s32.totalorder %s12562_s16, %s12560_s11 }
0x1660   :  { %p12565_p4 = por %p12564_p3, %p12563_p2 }
0x1662   :  { %p12566_p5 = pnand %p12565_p4, %p12561_p1 }
0x16bf   :  { %v8143_v60 = vpop.f32.mrf.mxu0  ;;  %v8156_v61 = vpop.f32.mrf.mxu1 }
0x16c0   :  { %v8157_v2 = vadd.f32 %v8156_v61, %v8143_v60 }
0x16c2   :  { %v8160_v6 = vadd.f32 %v8157_v2, %v7969_v19 }
0x16c7   :  { %v8145_v63 = vpop.f32.mrf.mxu0  ;;  %v8158_v3 = vpop.f32.mrf.mxu1 }
0x16d5   :  { %v8332_v4 = vpop.f32.mrf.mxu2  ;;  %v8345_v5 = vpop.f32.mrf.mxu3 }
0x16d6   :  { %v8346_v8 = vadd.f32 %v8345_v5, %v8332_v4 }
0x16d8   :  { %v8349_v10 = vadd.f32 %v8346_v8, %v8160_v6 }
0x16da   :  { %v8354_v11 = vadd.f32 %v12457_v9, %v8349_v10 }
0x16dc   :  { %8355 = vst.msk [vmem:[#allocation8] sm:$0x3] %vm2797_vm14, %v8354_v11 }
0x16dd   :  { %v8334_v20 = vpop.f32.mrf.mxu2  ;;  %v8347_v0 = vpop.f32.mrf.mxu3 }
0x16de   :  { %12569 = shalt.err (!%p12566_p5)
}
0x16df   :  { %8379 = dma.vmem_to_hbm [thread:$0]  %s8375_s2, 32, %s8377_s7, [#allocation9]  }
0x16e0   :  { %12574 = dma.done.wait [#allocation4], 32  }
0x16e1   :  { %12575 = vsyncadd [#allocation4], 4294967264 }
0x16e2   :  { %12576 = dma.done.wait [#allocation9], 32  }
0x16e3   :  { %12577 = vsyncadd [#allocation9], 4294967264 }
0x16e4   :  { %8390 = vsyncpa [#allocation3], 1 }
0x16e5   :  { %8391 = vsyncpa [#allocation6], 1 }
0x16e6   :  { %8392 = vsyncpa [#allocation4], 1 }
0x16e7   :  { %8393 = vsyncpa [#allocation9], 1 }

</bundles_post_ra>
